<compile_context>
chip_gen: v7x
topology: tpu7x:2x2x1
jax: 0.10.0
libtpu: 0.0.40
codegen_flags: <defaults>
</compile_context>

<pallas_src>
import math

import jax
import jax.numpy as jnp
from jax.experimental import pallas as pl
from jax.experimental.pallas import tpu as pltpu

GRID_SIZE = 5
SPLINE_ORDER = 3
GRID_RANGE = (-1.0, 1.0)
NUM_COEFF = GRID_SIZE + SPLINE_ORDER        # 8 basis functions / coefficients per input feature
FEAT_MULT = 1 + NUM_COEFF                   # 1 SiLU row block + 8 basis row blocks


def _make_knots():
    h = (GRID_RANGE[1] - GRID_RANGE[0]) / GRID_SIZE
    return tuple(float(j * h + GRID_RANGE[0])
                 for j in range(-SPLINE_ORDER, GRID_SIZE + SPLINE_ORDER + 1))


# 12 uniform knots, identical for every input feature (matches KANLinear's grid buffer)
KNOTS = _make_knots()

# Precomputed Cox-de-Boor reciprocals: 1/(t[j+k]-t[j]) and 1/(t[j+k+1]-t[j+1]),
# baked in as Python float constants so the kernel emits no runtime division.
_RECIP_L = {}
_RECIP_R = {}
for _k in range(1, SPLINE_ORDER + 1):
    for _j in range(len(KNOTS) - 1 - _k):
        _RECIP_L[(_k, _j)] = 1.0 / (KNOTS[_j + _k] - KNOTS[_j])
        _RECIP_R[(_k, _j)] = 1.0 / (KNOTS[_j + _k + 1] - KNOTS[_j + 1])


# ----------------------------- fused Pallas kernel -----------------------------
def _sigmoid(x):
    # One EUP transcendental per element; mathematically identical to 1/(1+e^-x)
    # and keeps the VPU divide / Newton-refinement off the critical VALU slots.
    return 0.5 * (jnp.tanh(0.5 * x) + 1.0)


def _kan_layer(x, w, activation):
    """One KANLinear layer + activation, feature-major, fully in-register.

    x: (IN, B) f32 activations (features on sublanes, batch on lanes)
    w: (OUT, (1+C)*IN) stacked [base_weight | coeff-major scaled spline weight]
    returns (OUT, B)
    """
    t = KNOTS

    # base path feature: SiLU(x)
    silu = x * _sigmoid(x)

    # degree-0 bases from 12 shared step functions: b_j = s_j - s_{j+1}
    steps = [(x >= t[j]).astype(jnp.float32) for j in range(len(t))]
    bases = [steps[j] - steps[j + 1] for j in range(len(t) - 1)]  # 11 x (IN, B)

    # Cox-de-Boor recurrence with constant reciprocals (matches KANLinear.b_splines)
    for k in range(1, SPLINE_ORDER + 1):
        bases = [
            (x - t[j]) * _RECIP_L[(k, j)] * bases[j]
            + (t[j + k + 1] - x) * _RECIP_R[(k, j)] * bases[j + 1]
            for j in range(len(bases) - 1)
        ]  # ends with NUM_COEFF arrays of (IN, B)

    # Sublane-aligned stack (IN is a multiple of 8 -> near-free), then one MXU
    # contraction: W (OUT, (1+C)*IN) @ feats ((1+C)*IN, B) -> (OUT, B), lane-dense.
    feats = jnp.concatenate([silu] + bases, axis=0)
    y = jnp.dot(w, feats, preferred_element_type=jnp.float32)

    if activation == "relu":
        return jnp.maximum(y, 0.0)
    return _sigmoid(y)


def _make_fused_kernel(num_layers):
    def kernel(x_ref, *args):
        w_refs = args[:num_layers]
        out_ref = args[num_layers]
        x = x_ref[...].astype(jnp.float32)
        for li, w_ref in enumerate(w_refs):
            act = "sigmoid" if li == num_layers - 1 else "relu"
            x = _kan_layer(x, w_ref[...], act)
        out_ref[...] = x.astype(out_ref.dtype)
    return kernel


# ----------------------- one-time parameter preparation ------------------------
def prepare_layer_weight(base_weight, spline_weight, spline_scaler):
    """Stack base and (scaled) spline weights into one (OUT, (1+C)*IN) matrix.

    Column layout matches the kernel's feature stack (feature-major):
      cols [0, IN)             -> base_weight           (multiplies SiLU(x))
      cols [IN + c*IN + i]     -> scaled_spline[:, i, c] (coeff-major flatten)
    """
    out_f, in_f = base_weight.shape
    scaled = spline_weight * spline_scaler[:, :, None]                  # (OUT, IN, C)
    wspl = jnp.transpose(scaled, (0, 2, 1)).reshape(out_f, NUM_COEFF * in_f)
    return jnp.concatenate([base_weight, wspl], axis=1).astype(jnp.float32)


def prepare_wkan5_weights(params):
    """Hoisted out of the forward path: call once after init / checkpoint load."""
    return [prepare_layer_weight(*p) for p in params]


# --------------------------------- forward -------------------------------------
def wkan5_cord_forward(stacked_weights, inputs, *, batch_tile=256):
    """Mirrors WKAN5_cord.forward: z = fclayer1..6(input[0]); return [z, input]."""
    x = inputs[0].astype(jnp.float32)
    B, in_f = x.shape
    num_layers = len(stacked_weights)
    out_f = stacked_weights[-1].shape[0]

    # Batch tile = lane axis of every activation vreg.  128-256 keeps the
    # Cox-de-Boor working set (12 step + up to 11 basis arrays) inside the
    # 64-vreg file; when B allows, use >=2 grid steps so the ("parallel",)
    # axis shards across v7x's two TensorCores.
    if B % 128 == 0:
        tb = min(batch_tile, B)
        if tb == B and B >= 256 and B % 256 == 0:
            tb = B // 2
    else:
        tb = B  # toy / ragged batches: single block (block == full array dim)
    assert B % tb == 0, "batch must be divisible by the batch tile"
    grid = (B // tb,)

    # Feature-major layout: wrapper-side transposes are layout plumbing only.
    xt = x.T                                              # (in_f, B)

    in_specs = [pl.BlockSpec((in_f, tb), lambda i: (0, i))]
    in_specs += [pl.BlockSpec(w.shape, lambda i: (0, 0)) for w in stacked_weights]
    out_specs = pl.BlockSpec((out_f, tb), lambda i: (0, i))

    zt = pl.pallas_call(
        _make_fused_kernel(num_layers),
        out_shape=jax.ShapeDtypeStruct((out_f, B), jnp.float32),
        grid=grid,
        in_specs=in_specs,
        out_specs=out_specs,
        compiler_params=pltpu.CompilerParams(dimension_semantics=("parallel",)),
    )(xt, *stacked_weights)
    return [zt.T, inputs]


# ----------------------------- parameter init -----------------------------------
def init_kan_params(key, in_features, out_features):
    """Deterministic, shape-correct parameter init.

    # TODO(synk): torch kaiming_uniform_/curve2coeff (lstsq) init is not reproduced
    # bit-for-bit; it only affects initial values, not forward semantics.
    """
    k1, k2, k3 = jax.random.split(key, 3)
    bound = math.sqrt(6.0 / max(in_features, 1))
    base_weight = jax.random.uniform(
        k1, (out_features, in_features), jnp.float32, -bound, bound)
    spline_weight = 0.1 * jax.random.normal(
        k2, (out_features, in_features, NUM_COEFF), jnp.float32)
    spline_scaler = jax.random.uniform(
        k3, (out_features, in_features), jnp.float32, -bound, bound)
    return (base_weight, spline_weight, spline_scaler)


def init_wkan5_cord(key, in_channels, hidden_dims):
    assert len(hidden_dims) == 5, "WKAN5_cord requires 5 hidden dims"
    dims = [in_channels] + list(hidden_dims) + [2]
    keys = jax.random.split(key, len(dims) - 1)
    return [init_kan_params(k, dims[i], dims[i + 1]) for i, k in enumerate(keys)]


# ---------------- pure-JAX reference (for correctness check) ----------------
def _ref_kan_layer(x, base_weight, spline_weight, spline_scaler, activation):
    t = jnp.asarray(KNOTS, jnp.float32)
    xe = x[:, :, None]
    bases = ((xe >= t[:-1]) & (xe < t[1:])).astype(jnp.float32)
    for k in range(1, SPLINE_ORDER + 1):
        bases = ((xe - t[: -(k + 1)]) / (t[k:-1] - t[: -(k + 1)]) * bases[:, :, :-1]
                 + (t[k + 1:] - xe) / (t[k + 1:] - t[1:-k]) * bases[:, :, 1:])
    base_out = (x * jax.nn.sigmoid(x)) @ base_weight.T
    scaled = spline_weight * spline_scaler[:, :, None]
    spline_out = bases.reshape(x.shape[0], -1) @ scaled.reshape(base_weight.shape[0], -1).T
    y = base_out + spline_out
    return jnp.maximum(y, 0.0) if activation == "relu" else jax.nn.sigmoid(y)


def _ref_forward(params, inputs):
    x = inputs[0]
    acts = ["relu"] * (len(params) - 1) + ["sigmoid"]
    for (bw, sw, sc), a in zip(params, acts):
        x = _ref_kan_layer(x, bw, sw, sc, a)
    return x


if __name__ == "__main__":
    key = jax.random.PRNGKey(0)
    k_in, k_cord, k_params = jax.random.split(key, 3)

    batch = 16
    in_channels = 8
    hidden_dims = [32, 32, 16, 16, 16]   # WKAN5_cord uses 5 hidden dims

    x = jax.random.normal(k_in, (batch, in_channels), jnp.float32)
    cords = jax.random.uniform(k_cord, (batch, 2), jnp.float32)   # input[1], passthrough
    inputs = [x, cords]

    params = init_wkan5_cord(k_params, in_channels, hidden_dims)
    stacked = prepare_wkan5_weights(params)   # hoisted weight prep: once, not per forward

    out = wkan5_cord_forward(stacked, inputs)
    z = jax.block_until_ready(out[0])

    z_ref = _ref_forward(params, inputs)
    assert z.shape == (batch, 2)
    assert out[1] is inputs
    assert jnp.allclose(z, z_ref, atol=1e-4, rtol=1e-4), "Pallas output mismatch vs reference"

    print("KERNEL_OK")
</pallas_src>

<mosaic_0001>
module attributes {stable_mosaic.version = 11 : i64} {
  func.func @kernel(%arg0: i32, %arg1: memref<8x16xf32, #tpu.memory_space<vmem>>, %arg2: memref<32x72xf32, #tpu.memory_space<vmem>>, %arg3: memref<32x288xf32, #tpu.memory_space<vmem>>, %arg4: memref<16x288xf32, #tpu.memory_space<vmem>>, %arg5: memref<16x144xf32, #tpu.memory_space<vmem>>, %arg6: memref<16x144xf32, #tpu.memory_space<vmem>>, %arg7: memref<2x144xf32, #tpu.memory_space<vmem>>, %arg8: memref<2x16xf32, #tpu.memory_space<vmem>>) attributes {dimension_semantics = [#tpu.dimension_semantics<parallel>], iteration_bounds = array<i64: 1>, scalar_prefetch = 0 : i64, scratch_operands = 0 : i64, tpu.core_type = #tpu.core_type<tc>, window_params = [{transform_indices = @transform_0, window_bounds = array<i64: 8, 16>}, {pipeline_mode = #tpu.pipeline_mode<synchronous>, transform_indices = @transform_1, window_bounds = array<i64: 32, 72>}, {pipeline_mode = #tpu.pipeline_mode<synchronous>, transform_indices = @transform_2, window_bounds = array<i64: 32, 288>}, {pipeline_mode = #tpu.pipeline_mode<synchronous>, transform_indices = @transform_3, window_bounds = array<i64: 16, 288>}, {pipeline_mode = #tpu.pipeline_mode<synchronous>, transform_indices = @transform_4, window_bounds = array<i64: 16, 144>}, {pipeline_mode = #tpu.pipeline_mode<synchronous>, transform_indices = @transform_5, window_bounds = array<i64: 16, 144>}, {pipeline_mode = #tpu.pipeline_mode<synchronous>, transform_indices = @transform_6, window_bounds = array<i64: 2, 144>}, {transform_indices = @transform_7, window_bounds = array<i64: 2, 16>}]} {
    %c0 = arith.constant 0 : index
    %c0_0 = arith.constant 0 : index
    %0 = vector.load %arg1[%c0, %c0_0] : memref<8x16xf32, #tpu.memory_space<vmem>>, vector<8x16xf32>
    %c0_1 = arith.constant 0 : index
    %c0_2 = arith.constant 0 : index
    %1 = vector.load %arg2[%c0_1, %c0_2] : memref<32x72xf32, #tpu.memory_space<vmem>>, vector<32x72xf32>
    %cst = arith.constant 5.000000e-01 : f32
    %2 = vector.broadcast %cst : f32 to vector<8x16xf32>
    %3 = arith.mulf %2, %0 : vector<8x16xf32>
    %4 = math.tanh %3 : vector<8x16xf32>
    %cst_3 = arith.constant 1.000000e+00 : f32
    %5 = vector.broadcast %cst_3 : f32 to vector<8x16xf32>
    %6 = arith.addf %4, %5 : vector<8x16xf32>
    %cst_4 = arith.constant 5.000000e-01 : f32
    %7 = vector.broadcast %cst_4 : f32 to vector<8x16xf32>
    %8 = arith.mulf %7, %6 : vector<8x16xf32>
    %9 = arith.mulf %0, %8 : vector<8x16xf32>
    %cst_5 = arith.constant -2.200000e+00 : f32
    %10 = vector.broadcast %cst_5 : f32 to vector<8x16xf32>
    %11 = arith.cmpf oge, %0, %10 : vector<8x16xf32>
    %12 = arith.extui %11 : vector<8x16xi1> to vector<8x16xi32>
    %13 = arith.sitofp %12 : vector<8x16xi32> to vector<8x16xf32>
    %cst_6 = arith.constant -1.800000e+00 : f32
    %14 = vector.broadcast %cst_6 : f32 to vector<8x16xf32>
    %15 = arith.cmpf oge, %0, %14 : vector<8x16xf32>
    %16 = arith.extui %15 : vector<8x16xi1> to vector<8x16xi32>
    %17 = arith.sitofp %16 : vector<8x16xi32> to vector<8x16xf32>
    %cst_7 = arith.constant -1.400000e+00 : f32
    %18 = vector.broadcast %cst_7 : f32 to vector<8x16xf32>
    %19 = arith.cmpf oge, %0, %18 : vector<8x16xf32>
    %20 = arith.extui %19 : vector<8x16xi1> to vector<8x16xi32>
    %21 = arith.sitofp %20 : vector<8x16xi32> to vector<8x16xf32>
    %cst_8 = arith.constant -1.000000e+00 : f32
    %22 = vector.broadcast %cst_8 : f32 to vector<8x16xf32>
    %23 = arith.cmpf oge, %0, %22 : vector<8x16xf32>
    %24 = arith.extui %23 : vector<8x16xi1> to vector<8x16xi32>
    %25 = arith.sitofp %24 : vector<8x16xi32> to vector<8x16xf32>
    %cst_9 = arith.constant -6.000000e-01 : f32
    %26 = vector.broadcast %cst_9 : f32 to vector<8x16xf32>
    %27 = arith.cmpf oge, %0, %26 : vector<8x16xf32>
    %28 = arith.extui %27 : vector<8x16xi1> to vector<8x16xi32>
    %29 = arith.sitofp %28 : vector<8x16xi32> to vector<8x16xf32>
    %cst_10 = arith.constant -2.000000e-01 : f32
    %30 = vector.broadcast %cst_10 : f32 to vector<8x16xf32>
    %31 = arith.cmpf oge, %0, %30 : vector<8x16xf32>
    %32 = arith.extui %31 : vector<8x16xi1> to vector<8x16xi32>
    %33 = arith.sitofp %32 : vector<8x16xi32> to vector<8x16xf32>
    %cst_11 = arith.constant 2.000000e-01 : f32
    %34 = vector.broadcast %cst_11 : f32 to vector<8x16xf32>
    %35 = arith.cmpf oge, %0, %34 : vector<8x16xf32>
    %36 = arith.extui %35 : vector<8x16xi1> to vector<8x16xi32>
    %37 = arith.sitofp %36 : vector<8x16xi32> to vector<8x16xf32>
    %cst_12 = arith.constant 6.000000e-01 : f32
    %38 = vector.broadcast %cst_12 : f32 to vector<8x16xf32>
    %39 = arith.cmpf oge, %0, %38 : vector<8x16xf32>
    %40 = arith.extui %39 : vector<8x16xi1> to vector<8x16xi32>
    %41 = arith.sitofp %40 : vector<8x16xi32> to vector<8x16xf32>
    %cst_13 = arith.constant 1.000000e+00 : f32
    %42 = vector.broadcast %cst_13 : f32 to vector<8x16xf32>
    %43 = arith.cmpf oge, %0, %42 : vector<8x16xf32>
    %44 = arith.extui %43 : vector<8x16xi1> to vector<8x16xi32>
    %45 = arith.sitofp %44 : vector<8x16xi32> to vector<8x16xf32>
    %cst_14 = arith.constant 1.400000e+00 : f32
    %46 = vector.broadcast %cst_14 : f32 to vector<8x16xf32>
    %47 = arith.cmpf oge, %0, %46 : vector<8x16xf32>
    %48 = arith.extui %47 : vector<8x16xi1> to vector<8x16xi32>
    %49 = arith.sitofp %48 : vector<8x16xi32> to vector<8x16xf32>
    %cst_15 = arith.constant 1.800000e+00 : f32
    %50 = vector.broadcast %cst_15 : f32 to vector<8x16xf32>
    %51 = arith.cmpf oge, %0, %50 : vector<8x16xf32>
    %52 = arith.extui %51 : vector<8x16xi1> to vector<8x16xi32>
    %53 = arith.sitofp %52 : vector<8x16xi32> to vector<8x16xf32>
    %cst_16 = arith.constant 2.200000e+00 : f32
    %54 = vector.broadcast %cst_16 : f32 to vector<8x16xf32>
    %55 = arith.cmpf oge, %0, %54 : vector<8x16xf32>
    %56 = arith.extui %55 : vector<8x16xi1> to vector<8x16xi32>
    %57 = arith.sitofp %56 : vector<8x16xi32> to vector<8x16xf32>
    %58 = arith.subf %13, %17 : vector<8x16xf32>
    %59 = arith.subf %17, %21 : vector<8x16xf32>
    %60 = arith.subf %21, %25 : vector<8x16xf32>
    %61 = arith.subf %25, %29 : vector<8x16xf32>
    %62 = arith.subf %29, %33 : vector<8x16xf32>
    %63 = arith.subf %33, %37 : vector<8x16xf32>
    %64 = arith.subf %37, %41 : vector<8x16xf32>
    %65 = arith.subf %41, %45 : vector<8x16xf32>
    %66 = arith.subf %45, %49 : vector<8x16xf32>
    %67 = arith.subf %49, %53 : vector<8x16xf32>
    %68 = arith.subf %53, %57 : vector<8x16xf32>
    %cst_17 = arith.constant -2.200000e+00 : f32
    %69 = vector.broadcast %cst_17 : f32 to vector<8x16xf32>
    %70 = arith.subf %0, %69 : vector<8x16xf32>
    %cst_18 = arith.constant 2.500000e+00 : f32
    %71 = vector.broadcast %cst_18 : f32 to vector<8x16xf32>
    %72 = arith.mulf %70, %71 : vector<8x16xf32>
    %73 = arith.mulf %72, %58 : vector<8x16xf32>
    %cst_19 = arith.constant -1.400000e+00 : f32
    %74 = vector.broadcast %cst_19 : f32 to vector<8x16xf32>
    %75 = arith.subf %74, %0 : vector<8x16xf32>
    %cst_20 = arith.constant 2.500000e+00 : f32
    %76 = vector.broadcast %cst_20 : f32 to vector<8x16xf32>
    %77 = arith.mulf %75, %76 : vector<8x16xf32>
    %78 = arith.mulf %77, %59 : vector<8x16xf32>
    %79 = arith.addf %73, %78 : vector<8x16xf32>
    %cst_21 = arith.constant -1.800000e+00 : f32
    %80 = vector.broadcast %cst_21 : f32 to vector<8x16xf32>
    %81 = arith.subf %0, %80 : vector<8x16xf32>
    %cst_22 = arith.constant 2.500000e+00 : f32
    %82 = vector.broadcast %cst_22 : f32 to vector<8x16xf32>
    %83 = arith.mulf %81, %82 : vector<8x16xf32>
    %84 = arith.mulf %83, %59 : vector<8x16xf32>
    %cst_23 = arith.constant -1.000000e+00 : f32
    %85 = vector.broadcast %cst_23 : f32 to vector<8x16xf32>
    %86 = arith.subf %85, %0 : vector<8x16xf32>
    %cst_24 = arith.constant 2.500000e+00 : f32
    %87 = vector.broadcast %cst_24 : f32 to vector<8x16xf32>
    %88 = arith.mulf %86, %87 : vector<8x16xf32>
    %89 = arith.mulf %88, %60 : vector<8x16xf32>
    %90 = arith.addf %84, %89 : vector<8x16xf32>
    %cst_25 = arith.constant -1.400000e+00 : f32
    %91 = vector.broadcast %cst_25 : f32 to vector<8x16xf32>
    %92 = arith.subf %0, %91 : vector<8x16xf32>
    %cst_26 = arith.constant 2.500000e+00 : f32
    %93 = vector.broadcast %cst_26 : f32 to vector<8x16xf32>
    %94 = arith.mulf %92, %93 : vector<8x16xf32>
    %95 = arith.mulf %94, %60 : vector<8x16xf32>
    %cst_27 = arith.constant -6.000000e-01 : f32
    %96 = vector.broadcast %cst_27 : f32 to vector<8x16xf32>
    %97 = arith.subf %96, %0 : vector<8x16xf32>
    %cst_28 = arith.constant 2.500000e+00 : f32
    %98 = vector.broadcast %cst_28 : f32 to vector<8x16xf32>
    %99 = arith.mulf %97, %98 : vector<8x16xf32>
    %100 = arith.mulf %99, %61 : vector<8x16xf32>
    %101 = arith.addf %95, %100 : vector<8x16xf32>
    %cst_29 = arith.constant -1.000000e+00 : f32
    %102 = vector.broadcast %cst_29 : f32 to vector<8x16xf32>
    %103 = arith.subf %0, %102 : vector<8x16xf32>
    %cst_30 = arith.constant 2.500000e+00 : f32
    %104 = vector.broadcast %cst_30 : f32 to vector<8x16xf32>
    %105 = arith.mulf %103, %104 : vector<8x16xf32>
    %106 = arith.mulf %105, %61 : vector<8x16xf32>
    %cst_31 = arith.constant -2.000000e-01 : f32
    %107 = vector.broadcast %cst_31 : f32 to vector<8x16xf32>
    %108 = arith.subf %107, %0 : vector<8x16xf32>
    %cst_32 = arith.constant 2.500000e+00 : f32
    %109 = vector.broadcast %cst_32 : f32 to vector<8x16xf32>
    %110 = arith.mulf %108, %109 : vector<8x16xf32>
    %111 = arith.mulf %110, %62 : vector<8x16xf32>
    %112 = arith.addf %106, %111 : vector<8x16xf32>
    %cst_33 = arith.constant -6.000000e-01 : f32
    %113 = vector.broadcast %cst_33 : f32 to vector<8x16xf32>
    %114 = arith.subf %0, %113 : vector<8x16xf32>
    %cst_34 = arith.constant 2.500000e+00 : f32
    %115 = vector.broadcast %cst_34 : f32 to vector<8x16xf32>
    %116 = arith.mulf %114, %115 : vector<8x16xf32>
    %117 = arith.mulf %116, %62 : vector<8x16xf32>
    %cst_35 = arith.constant 2.000000e-01 : f32
    %118 = vector.broadcast %cst_35 : f32 to vector<8x16xf32>
    %119 = arith.subf %118, %0 : vector<8x16xf32>
    %cst_36 = arith.constant 2.500000e+00 : f32
    %120 = vector.broadcast %cst_36 : f32 to vector<8x16xf32>
    %121 = arith.mulf %119, %120 : vector<8x16xf32>
    %122 = arith.mulf %121, %63 : vector<8x16xf32>
    %123 = arith.addf %117, %122 : vector<8x16xf32>
    %cst_37 = arith.constant -2.000000e-01 : f32
    %124 = vector.broadcast %cst_37 : f32 to vector<8x16xf32>
    %125 = arith.subf %0, %124 : vector<8x16xf32>
    %cst_38 = arith.constant 2.500000e+00 : f32
    %126 = vector.broadcast %cst_38 : f32 to vector<8x16xf32>
    %127 = arith.mulf %125, %126 : vector<8x16xf32>
    %128 = arith.mulf %127, %63 : vector<8x16xf32>
    %cst_39 = arith.constant 6.000000e-01 : f32
    %129 = vector.broadcast %cst_39 : f32 to vector<8x16xf32>
    %130 = arith.subf %129, %0 : vector<8x16xf32>
    %cst_40 = arith.constant 2.500000e+00 : f32
    %131 = vector.broadcast %cst_40 : f32 to vector<8x16xf32>
    %132 = arith.mulf %130, %131 : vector<8x16xf32>
    %133 = arith.mulf %132, %64 : vector<8x16xf32>
    %134 = arith.addf %128, %133 : vector<8x16xf32>
    %cst_41 = arith.constant 2.000000e-01 : f32
    %135 = vector.broadcast %cst_41 : f32 to vector<8x16xf32>
    %136 = arith.subf %0, %135 : vector<8x16xf32>
    %cst_42 = arith.constant 2.500000e+00 : f32
    %137 = vector.broadcast %cst_42 : f32 to vector<8x16xf32>
    %138 = arith.mulf %136, %137 : vector<8x16xf32>
    %139 = arith.mulf %138, %64 : vector<8x16xf32>
    %cst_43 = arith.constant 1.000000e+00 : f32
    %140 = vector.broadcast %cst_43 : f32 to vector<8x16xf32>
    %141 = arith.subf %140, %0 : vector<8x16xf32>
    %cst_44 = arith.constant 2.500000e+00 : f32
    %142 = vector.broadcast %cst_44 : f32 to vector<8x16xf32>
    %143 = arith.mulf %141, %142 : vector<8x16xf32>
    %144 = arith.mulf %143, %65 : vector<8x16xf32>
    %145 = arith.addf %139, %144 : vector<8x16xf32>
    %cst_45 = arith.constant 6.000000e-01 : f32
    %146 = vector.broadcast %cst_45 : f32 to vector<8x16xf32>
    %147 = arith.subf %0, %146 : vector<8x16xf32>
    %cst_46 = arith.constant 2.500000e+00 : f32
    %148 = vector.broadcast %cst_46 : f32 to vector<8x16xf32>
    %149 = arith.mulf %147, %148 : vector<8x16xf32>
    %150 = arith.mulf %149, %65 : vector<8x16xf32>
    %cst_47 = arith.constant 1.400000e+00 : f32
    %151 = vector.broadcast %cst_47 : f32 to vector<8x16xf32>
    %152 = arith.subf %151, %0 : vector<8x16xf32>
    %cst_48 = arith.constant 2.500000e+00 : f32
    %153 = vector.broadcast %cst_48 : f32 to vector<8x16xf32>
    %154 = arith.mulf %152, %153 : vector<8x16xf32>
    %155 = arith.mulf %154, %66 : vector<8x16xf32>
    %156 = arith.addf %150, %155 : vector<8x16xf32>
    %cst_49 = arith.constant 1.000000e+00 : f32
    %157 = vector.broadcast %cst_49 : f32 to vector<8x16xf32>
    %158 = arith.subf %0, %157 : vector<8x16xf32>
    %cst_50 = arith.constant 2.500000e+00 : f32
    %159 = vector.broadcast %cst_50 : f32 to vector<8x16xf32>
    %160 = arith.mulf %158, %159 : vector<8x16xf32>
    %161 = arith.mulf %160, %66 : vector<8x16xf32>
    %cst_51 = arith.constant 1.800000e+00 : f32
    %162 = vector.broadcast %cst_51 : f32 to vector<8x16xf32>
    %163 = arith.subf %162, %0 : vector<8x16xf32>
    %cst_52 = arith.constant 2.500000e+00 : f32
    %164 = vector.broadcast %cst_52 : f32 to vector<8x16xf32>
    %165 = arith.mulf %163, %164 : vector<8x16xf32>
    %166 = arith.mulf %165, %67 : vector<8x16xf32>
    %167 = arith.addf %161, %166 : vector<8x16xf32>
    %cst_53 = arith.constant 1.400000e+00 : f32
    %168 = vector.broadcast %cst_53 : f32 to vector<8x16xf32>
    %169 = arith.subf %0, %168 : vector<8x16xf32>
    %cst_54 = arith.constant 2.500000e+00 : f32
    %170 = vector.broadcast %cst_54 : f32 to vector<8x16xf32>
    %171 = arith.mulf %169, %170 : vector<8x16xf32>
    %172 = arith.mulf %171, %67 : vector<8x16xf32>
    %cst_55 = arith.constant 2.200000e+00 : f32
    %173 = vector.broadcast %cst_55 : f32 to vector<8x16xf32>
    %174 = arith.subf %173, %0 : vector<8x16xf32>
    %cst_56 = arith.constant 2.500000e+00 : f32
    %175 = vector.broadcast %cst_56 : f32 to vector<8x16xf32>
    %176 = arith.mulf %174, %175 : vector<8x16xf32>
    %177 = arith.mulf %176, %68 : vector<8x16xf32>
    %178 = arith.addf %172, %177 : vector<8x16xf32>
    %cst_57 = arith.constant -2.200000e+00 : f32
    %179 = vector.broadcast %cst_57 : f32 to vector<8x16xf32>
    %180 = arith.subf %0, %179 : vector<8x16xf32>
    %cst_58 = arith.constant 1.250000e+00 : f32
    %181 = vector.broadcast %cst_58 : f32 to vector<8x16xf32>
    %182 = arith.mulf %180, %181 : vector<8x16xf32>
    %183 = arith.mulf %182, %79 : vector<8x16xf32>
    %cst_59 = arith.constant -1.000000e+00 : f32
    %184 = vector.broadcast %cst_59 : f32 to vector<8x16xf32>
    %185 = arith.subf %184, %0 : vector<8x16xf32>
    %cst_60 = arith.constant 1.250000e+00 : f32
    %186 = vector.broadcast %cst_60 : f32 to vector<8x16xf32>
    %187 = arith.mulf %185, %186 : vector<8x16xf32>
    %188 = arith.mulf %187, %90 : vector<8x16xf32>
    %189 = arith.addf %183, %188 : vector<8x16xf32>
    %cst_61 = arith.constant -1.800000e+00 : f32
    %190 = vector.broadcast %cst_61 : f32 to vector<8x16xf32>
    %191 = arith.subf %0, %190 : vector<8x16xf32>
    %cst_62 = arith.constant 1.250000e+00 : f32
    %192 = vector.broadcast %cst_62 : f32 to vector<8x16xf32>
    %193 = arith.mulf %191, %192 : vector<8x16xf32>
    %194 = arith.mulf %193, %90 : vector<8x16xf32>
    %cst_63 = arith.constant -6.000000e-01 : f32
    %195 = vector.broadcast %cst_63 : f32 to vector<8x16xf32>
    %196 = arith.subf %195, %0 : vector<8x16xf32>
    %cst_64 = arith.constant 1.250000e+00 : f32
    %197 = vector.broadcast %cst_64 : f32 to vector<8x16xf32>
    %198 = arith.mulf %196, %197 : vector<8x16xf32>
    %199 = arith.mulf %198, %101 : vector<8x16xf32>
    %200 = arith.addf %194, %199 : vector<8x16xf32>
    %cst_65 = arith.constant -1.400000e+00 : f32
    %201 = vector.broadcast %cst_65 : f32 to vector<8x16xf32>
    %202 = arith.subf %0, %201 : vector<8x16xf32>
    %cst_66 = arith.constant 1.250000e+00 : f32
    %203 = vector.broadcast %cst_66 : f32 to vector<8x16xf32>
    %204 = arith.mulf %202, %203 : vector<8x16xf32>
    %205 = arith.mulf %204, %101 : vector<8x16xf32>
    %cst_67 = arith.constant -2.000000e-01 : f32
    %206 = vector.broadcast %cst_67 : f32 to vector<8x16xf32>
    %207 = arith.subf %206, %0 : vector<8x16xf32>
    %cst_68 = arith.constant 1.250000e+00 : f32
    %208 = vector.broadcast %cst_68 : f32 to vector<8x16xf32>
    %209 = arith.mulf %207, %208 : vector<8x16xf32>
    %210 = arith.mulf %209, %112 : vector<8x16xf32>
    %211 = arith.addf %205, %210 : vector<8x16xf32>
    %cst_69 = arith.constant -1.000000e+00 : f32
    %212 = vector.broadcast %cst_69 : f32 to vector<8x16xf32>
    %213 = arith.subf %0, %212 : vector<8x16xf32>
    %cst_70 = arith.constant 1.250000e+00 : f32
    %214 = vector.broadcast %cst_70 : f32 to vector<8x16xf32>
    %215 = arith.mulf %213, %214 : vector<8x16xf32>
    %216 = arith.mulf %215, %112 : vector<8x16xf32>
    %cst_71 = arith.constant 2.000000e-01 : f32
    %217 = vector.broadcast %cst_71 : f32 to vector<8x16xf32>
    %218 = arith.subf %217, %0 : vector<8x16xf32>
    %cst_72 = arith.constant 1.250000e+00 : f32
    %219 = vector.broadcast %cst_72 : f32 to vector<8x16xf32>
    %220 = arith.mulf %218, %219 : vector<8x16xf32>
    %221 = arith.mulf %220, %123 : vector<8x16xf32>
    %222 = arith.addf %216, %221 : vector<8x16xf32>
    %cst_73 = arith.constant -6.000000e-01 : f32
    %223 = vector.broadcast %cst_73 : f32 to vector<8x16xf32>
    %224 = arith.subf %0, %223 : vector<8x16xf32>
    %cst_74 = arith.constant 1.250000e+00 : f32
    %225 = vector.broadcast %cst_74 : f32 to vector<8x16xf32>
    %226 = arith.mulf %224, %225 : vector<8x16xf32>
    %227 = arith.mulf %226, %123 : vector<8x16xf32>
    %cst_75 = arith.constant 6.000000e-01 : f32
    %228 = vector.broadcast %cst_75 : f32 to vector<8x16xf32>
    %229 = arith.subf %228, %0 : vector<8x16xf32>
    %cst_76 = arith.constant 1.250000e+00 : f32
    %230 = vector.broadcast %cst_76 : f32 to vector<8x16xf32>
    %231 = arith.mulf %229, %230 : vector<8x16xf32>
    %232 = arith.mulf %231, %134 : vector<8x16xf32>
    %233 = arith.addf %227, %232 : vector<8x16xf32>
    %cst_77 = arith.constant -2.000000e-01 : f32
    %234 = vector.broadcast %cst_77 : f32 to vector<8x16xf32>
    %235 = arith.subf %0, %234 : vector<8x16xf32>
    %cst_78 = arith.constant 1.250000e+00 : f32
    %236 = vector.broadcast %cst_78 : f32 to vector<8x16xf32>
    %237 = arith.mulf %235, %236 : vector<8x16xf32>
    %238 = arith.mulf %237, %134 : vector<8x16xf32>
    %cst_79 = arith.constant 1.000000e+00 : f32
    %239 = vector.broadcast %cst_79 : f32 to vector<8x16xf32>
    %240 = arith.subf %239, %0 : vector<8x16xf32>
    %cst_80 = arith.constant 1.250000e+00 : f32
    %241 = vector.broadcast %cst_80 : f32 to vector<8x16xf32>
    %242 = arith.mulf %240, %241 : vector<8x16xf32>
    %243 = arith.mulf %242, %145 : vector<8x16xf32>
    %244 = arith.addf %238, %243 : vector<8x16xf32>
    %cst_81 = arith.constant 2.000000e-01 : f32
    %245 = vector.broadcast %cst_81 : f32 to vector<8x16xf32>
    %246 = arith.subf %0, %245 : vector<8x16xf32>
    %cst_82 = arith.constant 1.250000e+00 : f32
    %247 = vector.broadcast %cst_82 : f32 to vector<8x16xf32>
    %248 = arith.mulf %246, %247 : vector<8x16xf32>
    %249 = arith.mulf %248, %145 : vector<8x16xf32>
    %cst_83 = arith.constant 1.400000e+00 : f32
    %250 = vector.broadcast %cst_83 : f32 to vector<8x16xf32>
    %251 = arith.subf %250, %0 : vector<8x16xf32>
    %cst_84 = arith.constant 1.250000e+00 : f32
    %252 = vector.broadcast %cst_84 : f32 to vector<8x16xf32>
    %253 = arith.mulf %251, %252 : vector<8x16xf32>
    %254 = arith.mulf %253, %156 : vector<8x16xf32>
    %255 = arith.addf %249, %254 : vector<8x16xf32>
    %cst_85 = arith.constant 6.000000e-01 : f32
    %256 = vector.broadcast %cst_85 : f32 to vector<8x16xf32>
    %257 = arith.subf %0, %256 : vector<8x16xf32>
    %cst_86 = arith.constant 1.250000e+00 : f32
    %258 = vector.broadcast %cst_86 : f32 to vector<8x16xf32>
    %259 = arith.mulf %257, %258 : vector<8x16xf32>
    %260 = arith.mulf %259, %156 : vector<8x16xf32>
    %cst_87 = arith.constant 1.800000e+00 : f32
    %261 = vector.broadcast %cst_87 : f32 to vector<8x16xf32>
    %262 = arith.subf %261, %0 : vector<8x16xf32>
    %cst_88 = arith.constant 1.250000e+00 : f32
    %263 = vector.broadcast %cst_88 : f32 to vector<8x16xf32>
    %264 = arith.mulf %262, %263 : vector<8x16xf32>
    %265 = arith.mulf %264, %167 : vector<8x16xf32>
    %266 = arith.addf %260, %265 : vector<8x16xf32>
    %cst_89 = arith.constant 1.000000e+00 : f32
    %267 = vector.broadcast %cst_89 : f32 to vector<8x16xf32>
    %268 = arith.subf %0, %267 : vector<8x16xf32>
    %cst_90 = arith.constant 1.250000e+00 : f32
    %269 = vector.broadcast %cst_90 : f32 to vector<8x16xf32>
    %270 = arith.mulf %268, %269 : vector<8x16xf32>
    %271 = arith.mulf %270, %167 : vector<8x16xf32>
    %cst_91 = arith.constant 2.200000e+00 : f32
    %272 = vector.broadcast %cst_91 : f32 to vector<8x16xf32>
    %273 = arith.subf %272, %0 : vector<8x16xf32>
    %cst_92 = arith.constant 1.250000e+00 : f32
    %274 = vector.broadcast %cst_92 : f32 to vector<8x16xf32>
    %275 = arith.mulf %273, %274 : vector<8x16xf32>
    %276 = arith.mulf %275, %178 : vector<8x16xf32>
    %277 = arith.addf %271, %276 : vector<8x16xf32>
    %cst_93 = arith.constant -2.200000e+00 : f32
    %278 = vector.broadcast %cst_93 : f32 to vector<8x16xf32>
    %279 = arith.subf %0, %278 : vector<8x16xf32>
    %cst_94 = arith.constant 0.833333313 : f32
    %280 = vector.broadcast %cst_94 : f32 to vector<8x16xf32>
    %281 = arith.mulf %279, %280 : vector<8x16xf32>
    %282 = arith.mulf %281, %189 : vector<8x16xf32>
    %cst_95 = arith.constant -6.000000e-01 : f32
    %283 = vector.broadcast %cst_95 : f32 to vector<8x16xf32>
    %284 = arith.subf %283, %0 : vector<8x16xf32>
    %cst_96 = arith.constant 0.833333313 : f32
    %285 = vector.broadcast %cst_96 : f32 to vector<8x16xf32>
    %286 = arith.mulf %284, %285 : vector<8x16xf32>
    %287 = arith.mulf %286, %200 : vector<8x16xf32>
    %288 = arith.addf %282, %287 : vector<8x16xf32>
    %cst_97 = arith.constant -1.800000e+00 : f32
    %289 = vector.broadcast %cst_97 : f32 to vector<8x16xf32>
    %290 = arith.subf %0, %289 : vector<8x16xf32>
    %cst_98 = arith.constant 0.833333313 : f32
    %291 = vector.broadcast %cst_98 : f32 to vector<8x16xf32>
    %292 = arith.mulf %290, %291 : vector<8x16xf32>
    %293 = arith.mulf %292, %200 : vector<8x16xf32>
    %cst_99 = arith.constant -2.000000e-01 : f32
    %294 = vector.broadcast %cst_99 : f32 to vector<8x16xf32>
    %295 = arith.subf %294, %0 : vector<8x16xf32>
    %cst_100 = arith.constant 0.833333313 : f32
    %296 = vector.broadcast %cst_100 : f32 to vector<8x16xf32>
    %297 = arith.mulf %295, %296 : vector<8x16xf32>
    %298 = arith.mulf %297, %211 : vector<8x16xf32>
    %299 = arith.addf %293, %298 : vector<8x16xf32>
    %cst_101 = arith.constant -1.400000e+00 : f32
    %300 = vector.broadcast %cst_101 : f32 to vector<8x16xf32>
    %301 = arith.subf %0, %300 : vector<8x16xf32>
    %cst_102 = arith.constant 0.833333313 : f32
    %302 = vector.broadcast %cst_102 : f32 to vector<8x16xf32>
    %303 = arith.mulf %301, %302 : vector<8x16xf32>
    %304 = arith.mulf %303, %211 : vector<8x16xf32>
    %cst_103 = arith.constant 2.000000e-01 : f32
    %305 = vector.broadcast %cst_103 : f32 to vector<8x16xf32>
    %306 = arith.subf %305, %0 : vector<8x16xf32>
    %cst_104 = arith.constant 0.833333313 : f32
    %307 = vector.broadcast %cst_104 : f32 to vector<8x16xf32>
    %308 = arith.mulf %306, %307 : vector<8x16xf32>
    %309 = arith.mulf %308, %222 : vector<8x16xf32>
    %310 = arith.addf %304, %309 : vector<8x16xf32>
    %cst_105 = arith.constant -1.000000e+00 : f32
    %311 = vector.broadcast %cst_105 : f32 to vector<8x16xf32>
    %312 = arith.subf %0, %311 : vector<8x16xf32>
    %cst_106 = arith.constant 0.833333313 : f32
    %313 = vector.broadcast %cst_106 : f32 to vector<8x16xf32>
    %314 = arith.mulf %312, %313 : vector<8x16xf32>
    %315 = arith.mulf %314, %222 : vector<8x16xf32>
    %cst_107 = arith.constant 6.000000e-01 : f32
    %316 = vector.broadcast %cst_107 : f32 to vector<8x16xf32>
    %317 = arith.subf %316, %0 : vector<8x16xf32>
    %cst_108 = arith.constant 0.833333313 : f32
    %318 = vector.broadcast %cst_108 : f32 to vector<8x16xf32>
    %319 = arith.mulf %317, %318 : vector<8x16xf32>
    %320 = arith.mulf %319, %233 : vector<8x16xf32>
    %321 = arith.addf %315, %320 : vector<8x16xf32>
    %cst_109 = arith.constant -6.000000e-01 : f32
    %322 = vector.broadcast %cst_109 : f32 to vector<8x16xf32>
    %323 = arith.subf %0, %322 : vector<8x16xf32>
    %cst_110 = arith.constant 0.833333313 : f32
    %324 = vector.broadcast %cst_110 : f32 to vector<8x16xf32>
    %325 = arith.mulf %323, %324 : vector<8x16xf32>
    %326 = arith.mulf %325, %233 : vector<8x16xf32>
    %cst_111 = arith.constant 1.000000e+00 : f32
    %327 = vector.broadcast %cst_111 : f32 to vector<8x16xf32>
    %328 = arith.subf %327, %0 : vector<8x16xf32>
    %cst_112 = arith.constant 0.833333313 : f32
    %329 = vector.broadcast %cst_112 : f32 to vector<8x16xf32>
    %330 = arith.mulf %328, %329 : vector<8x16xf32>
    %331 = arith.mulf %330, %244 : vector<8x16xf32>
    %332 = arith.addf %326, %331 : vector<8x16xf32>
    %cst_113 = arith.constant -2.000000e-01 : f32
    %333 = vector.broadcast %cst_113 : f32 to vector<8x16xf32>
    %334 = arith.subf %0, %333 : vector<8x16xf32>
    %cst_114 = arith.constant 0.833333313 : f32
    %335 = vector.broadcast %cst_114 : f32 to vector<8x16xf32>
    %336 = arith.mulf %334, %335 : vector<8x16xf32>
    %337 = arith.mulf %336, %244 : vector<8x16xf32>
    %cst_115 = arith.constant 1.400000e+00 : f32
    %338 = vector.broadcast %cst_115 : f32 to vector<8x16xf32>
    %339 = arith.subf %338, %0 : vector<8x16xf32>
    %cst_116 = arith.constant 0.833333313 : f32
    %340 = vector.broadcast %cst_116 : f32 to vector<8x16xf32>
    %341 = arith.mulf %339, %340 : vector<8x16xf32>
    %342 = arith.mulf %341, %255 : vector<8x16xf32>
    %343 = arith.addf %337, %342 : vector<8x16xf32>
    %cst_117 = arith.constant 2.000000e-01 : f32
    %344 = vector.broadcast %cst_117 : f32 to vector<8x16xf32>
    %345 = arith.subf %0, %344 : vector<8x16xf32>
    %cst_118 = arith.constant 0.833333313 : f32
    %346 = vector.broadcast %cst_118 : f32 to vector<8x16xf32>
    %347 = arith.mulf %345, %346 : vector<8x16xf32>
    %348 = arith.mulf %347, %255 : vector<8x16xf32>
    %cst_119 = arith.constant 1.800000e+00 : f32
    %349 = vector.broadcast %cst_119 : f32 to vector<8x16xf32>
    %350 = arith.subf %349, %0 : vector<8x16xf32>
    %cst_120 = arith.constant 0.833333313 : f32
    %351 = vector.broadcast %cst_120 : f32 to vector<8x16xf32>
    %352 = arith.mulf %350, %351 : vector<8x16xf32>
    %353 = arith.mulf %352, %266 : vector<8x16xf32>
    %354 = arith.addf %348, %353 : vector<8x16xf32>
    %cst_121 = arith.constant 6.000000e-01 : f32
    %355 = vector.broadcast %cst_121 : f32 to vector<8x16xf32>
    %356 = arith.subf %0, %355 : vector<8x16xf32>
    %cst_122 = arith.constant 0.833333313 : f32
    %357 = vector.broadcast %cst_122 : f32 to vector<8x16xf32>
    %358 = arith.mulf %356, %357 : vector<8x16xf32>
    %359 = arith.mulf %358, %266 : vector<8x16xf32>
    %cst_123 = arith.constant 2.200000e+00 : f32
    %360 = vector.broadcast %cst_123 : f32 to vector<8x16xf32>
    %361 = arith.subf %360, %0 : vector<8x16xf32>
    %cst_124 = arith.constant 0.833333313 : f32
    %362 = vector.broadcast %cst_124 : f32 to vector<8x16xf32>
    %363 = arith.mulf %361, %362 : vector<8x16xf32>
    %364 = arith.mulf %363, %277 : vector<8x16xf32>
    %365 = arith.addf %359, %364 : vector<8x16xf32>
    %366 = tpu.concatenate %9, %288, %299, %310, %321, %332, %343, %354, %365 in 0 : vector<8x16xf32>, vector<8x16xf32>, vector<8x16xf32>, vector<8x16xf32>, vector<8x16xf32>, vector<8x16xf32>, vector<8x16xf32>, vector<8x16xf32>, vector<8x16xf32> -> vector<72x16xf32>
    %cst_125 = arith.constant dense<0.000000e+00> : vector<32x16xf32>
    %367 = tpu.matmul %1, %366, %cst_125 {dimension_numbers = #tpu.dot_dimension_numbers<[1], [0], [0], [1], [0, 0, 1, 1], [], []>} : vector<32x72xf32>, vector<72x16xf32>, vector<32x16xf32> -> vector<32x16xf32>
    %cst_126 = arith.constant 0.000000e+00 : f32
    %368 = vector.broadcast %cst_126 : f32 to vector<32x16xf32>
    %369 = arith.maximumf %367, %368 : vector<32x16xf32>
    %c0_127 = arith.constant 0 : index
    %c0_128 = arith.constant 0 : index
    %370 = vector.load %arg3[%c0_127, %c0_128] : memref<32x288xf32, #tpu.memory_space<vmem>>, vector<32x288xf32>
    %cst_129 = arith.constant 5.000000e-01 : f32
    %371 = vector.broadcast %cst_129 : f32 to vector<32x16xf32>
    %372 = arith.mulf %371, %369 : vector<32x16xf32>
    %373 = math.tanh %372 : vector<32x16xf32>
    %cst_130 = arith.constant 1.000000e+00 : f32
    %374 = vector.broadcast %cst_130 : f32 to vector<32x16xf32>
    %375 = arith.addf %373, %374 : vector<32x16xf32>
    %cst_131 = arith.constant 5.000000e-01 : f32
    %376 = vector.broadcast %cst_131 : f32 to vector<32x16xf32>
    %377 = arith.mulf %376, %375 : vector<32x16xf32>
    %378 = arith.mulf %369, %377 : vector<32x16xf32>
    %cst_132 = arith.constant -2.200000e+00 : f32
    %379 = vector.broadcast %cst_132 : f32 to vector<32x16xf32>
    %380 = arith.cmpf oge, %369, %379 : vector<32x16xf32>
    %381 = arith.extui %380 : vector<32x16xi1> to vector<32x16xi32>
    %382 = arith.sitofp %381 : vector<32x16xi32> to vector<32x16xf32>
    %cst_133 = arith.constant -1.800000e+00 : f32
    %383 = vector.broadcast %cst_133 : f32 to vector<32x16xf32>
    %384 = arith.cmpf oge, %369, %383 : vector<32x16xf32>
    %385 = arith.extui %384 : vector<32x16xi1> to vector<32x16xi32>
    %386 = arith.sitofp %385 : vector<32x16xi32> to vector<32x16xf32>
    %cst_134 = arith.constant -1.400000e+00 : f32
    %387 = vector.broadcast %cst_134 : f32 to vector<32x16xf32>
    %388 = arith.cmpf oge, %369, %387 : vector<32x16xf32>
    %389 = arith.extui %388 : vector<32x16xi1> to vector<32x16xi32>
    %390 = arith.sitofp %389 : vector<32x16xi32> to vector<32x16xf32>
    %cst_135 = arith.constant -1.000000e+00 : f32
    %391 = vector.broadcast %cst_135 : f32 to vector<32x16xf32>
    %392 = arith.cmpf oge, %369, %391 : vector<32x16xf32>
    %393 = arith.extui %392 : vector<32x16xi1> to vector<32x16xi32>
    %394 = arith.sitofp %393 : vector<32x16xi32> to vector<32x16xf32>
    %cst_136 = arith.constant -6.000000e-01 : f32
    %395 = vector.broadcast %cst_136 : f32 to vector<32x16xf32>
    %396 = arith.cmpf oge, %369, %395 : vector<32x16xf32>
    %397 = arith.extui %396 : vector<32x16xi1> to vector<32x16xi32>
    %398 = arith.sitofp %397 : vector<32x16xi32> to vector<32x16xf32>
    %cst_137 = arith.constant -2.000000e-01 : f32
    %399 = vector.broadcast %cst_137 : f32 to vector<32x16xf32>
    %400 = arith.cmpf oge, %369, %399 : vector<32x16xf32>
    %401 = arith.extui %400 : vector<32x16xi1> to vector<32x16xi32>
    %402 = arith.sitofp %401 : vector<32x16xi32> to vector<32x16xf32>
    %cst_138 = arith.constant 2.000000e-01 : f32
    %403 = vector.broadcast %cst_138 : f32 to vector<32x16xf32>
    %404 = arith.cmpf oge, %369, %403 : vector<32x16xf32>
    %405 = arith.extui %404 : vector<32x16xi1> to vector<32x16xi32>
    %406 = arith.sitofp %405 : vector<32x16xi32> to vector<32x16xf32>
    %cst_139 = arith.constant 6.000000e-01 : f32
    %407 = vector.broadcast %cst_139 : f32 to vector<32x16xf32>
    %408 = arith.cmpf oge, %369, %407 : vector<32x16xf32>
    %409 = arith.extui %408 : vector<32x16xi1> to vector<32x16xi32>
    %410 = arith.sitofp %409 : vector<32x16xi32> to vector<32x16xf32>
    %cst_140 = arith.constant 1.000000e+00 : f32
    %411 = vector.broadcast %cst_140 : f32 to vector<32x16xf32>
    %412 = arith.cmpf oge, %369, %411 : vector<32x16xf32>
    %413 = arith.extui %412 : vector<32x16xi1> to vector<32x16xi32>
    %414 = arith.sitofp %413 : vector<32x16xi32> to vector<32x16xf32>
    %cst_141 = arith.constant 1.400000e+00 : f32
    %415 = vector.broadcast %cst_141 : f32 to vector<32x16xf32>
    %416 = arith.cmpf oge, %369, %415 : vector<32x16xf32>
    %417 = arith.extui %416 : vector<32x16xi1> to vector<32x16xi32>
    %418 = arith.sitofp %417 : vector<32x16xi32> to vector<32x16xf32>
    %cst_142 = arith.constant 1.800000e+00 : f32
    %419 = vector.broadcast %cst_142 : f32 to vector<32x16xf32>
    %420 = arith.cmpf oge, %369, %419 : vector<32x16xf32>
    %421 = arith.extui %420 : vector<32x16xi1> to vector<32x16xi32>
    %422 = arith.sitofp %421 : vector<32x16xi32> to vector<32x16xf32>
    %cst_143 = arith.constant 2.200000e+00 : f32
    %423 = vector.broadcast %cst_143 : f32 to vector<32x16xf32>
    %424 = arith.cmpf oge, %369, %423 : vector<32x16xf32>
    %425 = arith.extui %424 : vector<32x16xi1> to vector<32x16xi32>
    %426 = arith.sitofp %425 : vector<32x16xi32> to vector<32x16xf32>
    %427 = arith.subf %382, %386 : vector<32x16xf32>
    %428 = arith.subf %386, %390 : vector<32x16xf32>
    %429 = arith.subf %390, %394 : vector<32x16xf32>
    %430 = arith.subf %394, %398 : vector<32x16xf32>
    %431 = arith.subf %398, %402 : vector<32x16xf32>
    %432 = arith.subf %402, %406 : vector<32x16xf32>
    %433 = arith.subf %406, %410 : vector<32x16xf32>
    %434 = arith.subf %410, %414 : vector<32x16xf32>
    %435 = arith.subf %414, %418 : vector<32x16xf32>
    %436 = arith.subf %418, %422 : vector<32x16xf32>
    %437 = arith.subf %422, %426 : vector<32x16xf32>
    %cst_144 = arith.constant -2.200000e+00 : f32
    %438 = vector.broadcast %cst_144 : f32 to vector<32x16xf32>
    %439 = arith.subf %369, %438 : vector<32x16xf32>
    %cst_145 = arith.constant 2.500000e+00 : f32
    %440 = vector.broadcast %cst_145 : f32 to vector<32x16xf32>
    %441 = arith.mulf %439, %440 : vector<32x16xf32>
    %442 = arith.mulf %441, %427 : vector<32x16xf32>
    %cst_146 = arith.constant -1.400000e+00 : f32
    %443 = vector.broadcast %cst_146 : f32 to vector<32x16xf32>
    %444 = arith.subf %443, %369 : vector<32x16xf32>
    %cst_147 = arith.constant 2.500000e+00 : f32
    %445 = vector.broadcast %cst_147 : f32 to vector<32x16xf32>
    %446 = arith.mulf %444, %445 : vector<32x16xf32>
    %447 = arith.mulf %446, %428 : vector<32x16xf32>
    %448 = arith.addf %442, %447 : vector<32x16xf32>
    %cst_148 = arith.constant -1.800000e+00 : f32
    %449 = vector.broadcast %cst_148 : f32 to vector<32x16xf32>
    %450 = arith.subf %369, %449 : vector<32x16xf32>
    %cst_149 = arith.constant 2.500000e+00 : f32
    %451 = vector.broadcast %cst_149 : f32 to vector<32x16xf32>
    %452 = arith.mulf %450, %451 : vector<32x16xf32>
    %453 = arith.mulf %452, %428 : vector<32x16xf32>
    %cst_150 = arith.constant -1.000000e+00 : f32
    %454 = vector.broadcast %cst_150 : f32 to vector<32x16xf32>
    %455 = arith.subf %454, %369 : vector<32x16xf32>
    %cst_151 = arith.constant 2.500000e+00 : f32
    %456 = vector.broadcast %cst_151 : f32 to vector<32x16xf32>
    %457 = arith.mulf %455, %456 : vector<32x16xf32>
    %458 = arith.mulf %457, %429 : vector<32x16xf32>
    %459 = arith.addf %453, %458 : vector<32x16xf32>
    %cst_152 = arith.constant -1.400000e+00 : f32
    %460 = vector.broadcast %cst_152 : f32 to vector<32x16xf32>
    %461 = arith.subf %369, %460 : vector<32x16xf32>
    %cst_153 = arith.constant 2.500000e+00 : f32
    %462 = vector.broadcast %cst_153 : f32 to vector<32x16xf32>
    %463 = arith.mulf %461, %462 : vector<32x16xf32>
    %464 = arith.mulf %463, %429 : vector<32x16xf32>
    %cst_154 = arith.constant -6.000000e-01 : f32
    %465 = vector.broadcast %cst_154 : f32 to vector<32x16xf32>
    %466 = arith.subf %465, %369 : vector<32x16xf32>
    %cst_155 = arith.constant 2.500000e+00 : f32
    %467 = vector.broadcast %cst_155 : f32 to vector<32x16xf32>
    %468 = arith.mulf %466, %467 : vector<32x16xf32>
    %469 = arith.mulf %468, %430 : vector<32x16xf32>
    %470 = arith.addf %464, %469 : vector<32x16xf32>
    %cst_156 = arith.constant -1.000000e+00 : f32
    %471 = vector.broadcast %cst_156 : f32 to vector<32x16xf32>
    %472 = arith.subf %369, %471 : vector<32x16xf32>
    %cst_157 = arith.constant 2.500000e+00 : f32
    %473 = vector.broadcast %cst_157 : f32 to vector<32x16xf32>
    %474 = arith.mulf %472, %473 : vector<32x16xf32>
    %475 = arith.mulf %474, %430 : vector<32x16xf32>
    %cst_158 = arith.constant -2.000000e-01 : f32
    %476 = vector.broadcast %cst_158 : f32 to vector<32x16xf32>
    %477 = arith.subf %476, %369 : vector<32x16xf32>
    %cst_159 = arith.constant 2.500000e+00 : f32
    %478 = vector.broadcast %cst_159 : f32 to vector<32x16xf32>
    %479 = arith.mulf %477, %478 : vector<32x16xf32>
    %480 = arith.mulf %479, %431 : vector<32x16xf32>
    %481 = arith.addf %475, %480 : vector<32x16xf32>
    %cst_160 = arith.constant -6.000000e-01 : f32
    %482 = vector.broadcast %cst_160 : f32 to vector<32x16xf32>
    %483 = arith.subf %369, %482 : vector<32x16xf32>
    %cst_161 = arith.constant 2.500000e+00 : f32
    %484 = vector.broadcast %cst_161 : f32 to vector<32x16xf32>
    %485 = arith.mulf %483, %484 : vector<32x16xf32>
    %486 = arith.mulf %485, %431 : vector<32x16xf32>
    %cst_162 = arith.constant 2.000000e-01 : f32
    %487 = vector.broadcast %cst_162 : f32 to vector<32x16xf32>
    %488 = arith.subf %487, %369 : vector<32x16xf32>
    %cst_163 = arith.constant 2.500000e+00 : f32
    %489 = vector.broadcast %cst_163 : f32 to vector<32x16xf32>
    %490 = arith.mulf %488, %489 : vector<32x16xf32>
    %491 = arith.mulf %490, %432 : vector<32x16xf32>
    %492 = arith.addf %486, %491 : vector<32x16xf32>
    %cst_164 = arith.constant -2.000000e-01 : f32
    %493 = vector.broadcast %cst_164 : f32 to vector<32x16xf32>
    %494 = arith.subf %369, %493 : vector<32x16xf32>
    %cst_165 = arith.constant 2.500000e+00 : f32
    %495 = vector.broadcast %cst_165 : f32 to vector<32x16xf32>
    %496 = arith.mulf %494, %495 : vector<32x16xf32>
    %497 = arith.mulf %496, %432 : vector<32x16xf32>
    %cst_166 = arith.constant 6.000000e-01 : f32
    %498 = vector.broadcast %cst_166 : f32 to vector<32x16xf32>
    %499 = arith.subf %498, %369 : vector<32x16xf32>
    %cst_167 = arith.constant 2.500000e+00 : f32
    %500 = vector.broadcast %cst_167 : f32 to vector<32x16xf32>
    %501 = arith.mulf %499, %500 : vector<32x16xf32>
    %502 = arith.mulf %501, %433 : vector<32x16xf32>
    %503 = arith.addf %497, %502 : vector<32x16xf32>
    %cst_168 = arith.constant 2.000000e-01 : f32
    %504 = vector.broadcast %cst_168 : f32 to vector<32x16xf32>
    %505 = arith.subf %369, %504 : vector<32x16xf32>
    %cst_169 = arith.constant 2.500000e+00 : f32
    %506 = vector.broadcast %cst_169 : f32 to vector<32x16xf32>
    %507 = arith.mulf %505, %506 : vector<32x16xf32>
    %508 = arith.mulf %507, %433 : vector<32x16xf32>
    %cst_170 = arith.constant 1.000000e+00 : f32
    %509 = vector.broadcast %cst_170 : f32 to vector<32x16xf32>
    %510 = arith.subf %509, %369 : vector<32x16xf32>
    %cst_171 = arith.constant 2.500000e+00 : f32
    %511 = vector.broadcast %cst_171 : f32 to vector<32x16xf32>
    %512 = arith.mulf %510, %511 : vector<32x16xf32>
    %513 = arith.mulf %512, %434 : vector<32x16xf32>
    %514 = arith.addf %508, %513 : vector<32x16xf32>
    %cst_172 = arith.constant 6.000000e-01 : f32
    %515 = vector.broadcast %cst_172 : f32 to vector<32x16xf32>
    %516 = arith.subf %369, %515 : vector<32x16xf32>
    %cst_173 = arith.constant 2.500000e+00 : f32
    %517 = vector.broadcast %cst_173 : f32 to vector<32x16xf32>
    %518 = arith.mulf %516, %517 : vector<32x16xf32>
    %519 = arith.mulf %518, %434 : vector<32x16xf32>
    %cst_174 = arith.constant 1.400000e+00 : f32
    %520 = vector.broadcast %cst_174 : f32 to vector<32x16xf32>
    %521 = arith.subf %520, %369 : vector<32x16xf32>
    %cst_175 = arith.constant 2.500000e+00 : f32
    %522 = vector.broadcast %cst_175 : f32 to vector<32x16xf32>
    %523 = arith.mulf %521, %522 : vector<32x16xf32>
    %524 = arith.mulf %523, %435 : vector<32x16xf32>
    %525 = arith.addf %519, %524 : vector<32x16xf32>
    %cst_176 = arith.constant 1.000000e+00 : f32
    %526 = vector.broadcast %cst_176 : f32 to vector<32x16xf32>
    %527 = arith.subf %369, %526 : vector<32x16xf32>
    %cst_177 = arith.constant 2.500000e+00 : f32
    %528 = vector.broadcast %cst_177 : f32 to vector<32x16xf32>
    %529 = arith.mulf %527, %528 : vector<32x16xf32>
    %530 = arith.mulf %529, %435 : vector<32x16xf32>
    %cst_178 = arith.constant 1.800000e+00 : f32
    %531 = vector.broadcast %cst_178 : f32 to vector<32x16xf32>
    %532 = arith.subf %531, %369 : vector<32x16xf32>
    %cst_179 = arith.constant 2.500000e+00 : f32
    %533 = vector.broadcast %cst_179 : f32 to vector<32x16xf32>
    %534 = arith.mulf %532, %533 : vector<32x16xf32>
    %535 = arith.mulf %534, %436 : vector<32x16xf32>
    %536 = arith.addf %530, %535 : vector<32x16xf32>
    %cst_180 = arith.constant 1.400000e+00 : f32
    %537 = vector.broadcast %cst_180 : f32 to vector<32x16xf32>
    %538 = arith.subf %369, %537 : vector<32x16xf32>
    %cst_181 = arith.constant 2.500000e+00 : f32
    %539 = vector.broadcast %cst_181 : f32 to vector<32x16xf32>
    %540 = arith.mulf %538, %539 : vector<32x16xf32>
    %541 = arith.mulf %540, %436 : vector<32x16xf32>
    %cst_182 = arith.constant 2.200000e+00 : f32
    %542 = vector.broadcast %cst_182 : f32 to vector<32x16xf32>
    %543 = arith.subf %542, %369 : vector<32x16xf32>
    %cst_183 = arith.constant 2.500000e+00 : f32
    %544 = vector.broadcast %cst_183 : f32 to vector<32x16xf32>
    %545 = arith.mulf %543, %544 : vector<32x16xf32>
    %546 = arith.mulf %545, %437 : vector<32x16xf32>
    %547 = arith.addf %541, %546 : vector<32x16xf32>
    %cst_184 = arith.constant -2.200000e+00 : f32
    %548 = vector.broadcast %cst_184 : f32 to vector<32x16xf32>
    %549 = arith.subf %369, %548 : vector<32x16xf32>
    %cst_185 = arith.constant 1.250000e+00 : f32
    %550 = vector.broadcast %cst_185 : f32 to vector<32x16xf32>
    %551 = arith.mulf %549, %550 : vector<32x16xf32>
    %552 = arith.mulf %551, %448 : vector<32x16xf32>
    %cst_186 = arith.constant -1.000000e+00 : f32
    %553 = vector.broadcast %cst_186 : f32 to vector<32x16xf32>
    %554 = arith.subf %553, %369 : vector<32x16xf32>
    %cst_187 = arith.constant 1.250000e+00 : f32
    %555 = vector.broadcast %cst_187 : f32 to vector<32x16xf32>
    %556 = arith.mulf %554, %555 : vector<32x16xf32>
    %557 = arith.mulf %556, %459 : vector<32x16xf32>
    %558 = arith.addf %552, %557 : vector<32x16xf32>
    %cst_188 = arith.constant -1.800000e+00 : f32
    %559 = vector.broadcast %cst_188 : f32 to vector<32x16xf32>
    %560 = arith.subf %369, %559 : vector<32x16xf32>
    %cst_189 = arith.constant 1.250000e+00 : f32
    %561 = vector.broadcast %cst_189 : f32 to vector<32x16xf32>
    %562 = arith.mulf %560, %561 : vector<32x16xf32>
    %563 = arith.mulf %562, %459 : vector<32x16xf32>
    %cst_190 = arith.constant -6.000000e-01 : f32
    %564 = vector.broadcast %cst_190 : f32 to vector<32x16xf32>
    %565 = arith.subf %564, %369 : vector<32x16xf32>
    %cst_191 = arith.constant 1.250000e+00 : f32
    %566 = vector.broadcast %cst_191 : f32 to vector<32x16xf32>
    %567 = arith.mulf %565, %566 : vector<32x16xf32>
    %568 = arith.mulf %567, %470 : vector<32x16xf32>
    %569 = arith.addf %563, %568 : vector<32x16xf32>
    %cst_192 = arith.constant -1.400000e+00 : f32
    %570 = vector.broadcast %cst_192 : f32 to vector<32x16xf32>
    %571 = arith.subf %369, %570 : vector<32x16xf32>
    %cst_193 = arith.constant 1.250000e+00 : f32
    %572 = vector.broadcast %cst_193 : f32 to vector<32x16xf32>
    %573 = arith.mulf %571, %572 : vector<32x16xf32>
    %574 = arith.mulf %573, %470 : vector<32x16xf32>
    %cst_194 = arith.constant -2.000000e-01 : f32
    %575 = vector.broadcast %cst_194 : f32 to vector<32x16xf32>
    %576 = arith.subf %575, %369 : vector<32x16xf32>
    %cst_195 = arith.constant 1.250000e+00 : f32
    %577 = vector.broadcast %cst_195 : f32 to vector<32x16xf32>
    %578 = arith.mulf %576, %577 : vector<32x16xf32>
    %579 = arith.mulf %578, %481 : vector<32x16xf32>
    %580 = arith.addf %574, %579 : vector<32x16xf32>
    %cst_196 = arith.constant -1.000000e+00 : f32
    %581 = vector.broadcast %cst_196 : f32 to vector<32x16xf32>
    %582 = arith.subf %369, %581 : vector<32x16xf32>
    %cst_197 = arith.constant 1.250000e+00 : f32
    %583 = vector.broadcast %cst_197 : f32 to vector<32x16xf32>
    %584 = arith.mulf %582, %583 : vector<32x16xf32>
    %585 = arith.mulf %584, %481 : vector<32x16xf32>
    %cst_198 = arith.constant 2.000000e-01 : f32
    %586 = vector.broadcast %cst_198 : f32 to vector<32x16xf32>
    %587 = arith.subf %586, %369 : vector<32x16xf32>
    %cst_199 = arith.constant 1.250000e+00 : f32
    %588 = vector.broadcast %cst_199 : f32 to vector<32x16xf32>
    %589 = arith.mulf %587, %588 : vector<32x16xf32>
    %590 = arith.mulf %589, %492 : vector<32x16xf32>
    %591 = arith.addf %585, %590 : vector<32x16xf32>
    %cst_200 = arith.constant -6.000000e-01 : f32
    %592 = vector.broadcast %cst_200 : f32 to vector<32x16xf32>
    %593 = arith.subf %369, %592 : vector<32x16xf32>
    %cst_201 = arith.constant 1.250000e+00 : f32
    %594 = vector.broadcast %cst_201 : f32 to vector<32x16xf32>
    %595 = arith.mulf %593, %594 : vector<32x16xf32>
    %596 = arith.mulf %595, %492 : vector<32x16xf32>
    %cst_202 = arith.constant 6.000000e-01 : f32
    %597 = vector.broadcast %cst_202 : f32 to vector<32x16xf32>
    %598 = arith.subf %597, %369 : vector<32x16xf32>
    %cst_203 = arith.constant 1.250000e+00 : f32
    %599 = vector.broadcast %cst_203 : f32 to vector<32x16xf32>
    %600 = arith.mulf %598, %599 : vector<32x16xf32>
    %601 = arith.mulf %600, %503 : vector<32x16xf32>
    %602 = arith.addf %596, %601 : vector<32x16xf32>
    %cst_204 = arith.constant -2.000000e-01 : f32
    %603 = vector.broadcast %cst_204 : f32 to vector<32x16xf32>
    %604 = arith.subf %369, %603 : vector<32x16xf32>
    %cst_205 = arith.constant 1.250000e+00 : f32
    %605 = vector.broadcast %cst_205 : f32 to vector<32x16xf32>
    %606 = arith.mulf %604, %605 : vector<32x16xf32>
    %607 = arith.mulf %606, %503 : vector<32x16xf32>
    %cst_206 = arith.constant 1.000000e+00 : f32
    %608 = vector.broadcast %cst_206 : f32 to vector<32x16xf32>
    %609 = arith.subf %608, %369 : vector<32x16xf32>
    %cst_207 = arith.constant 1.250000e+00 : f32
    %610 = vector.broadcast %cst_207 : f32 to vector<32x16xf32>
    %611 = arith.mulf %609, %610 : vector<32x16xf32>
    %612 = arith.mulf %611, %514 : vector<32x16xf32>
    %613 = arith.addf %607, %612 : vector<32x16xf32>
    %cst_208 = arith.constant 2.000000e-01 : f32
    %614 = vector.broadcast %cst_208 : f32 to vector<32x16xf32>
    %615 = arith.subf %369, %614 : vector<32x16xf32>
    %cst_209 = arith.constant 1.250000e+00 : f32
    %616 = vector.broadcast %cst_209 : f32 to vector<32x16xf32>
    %617 = arith.mulf %615, %616 : vector<32x16xf32>
    %618 = arith.mulf %617, %514 : vector<32x16xf32>
    %cst_210 = arith.constant 1.400000e+00 : f32
    %619 = vector.broadcast %cst_210 : f32 to vector<32x16xf32>
    %620 = arith.subf %619, %369 : vector<32x16xf32>
    %cst_211 = arith.constant 1.250000e+00 : f32
    %621 = vector.broadcast %cst_211 : f32 to vector<32x16xf32>
    %622 = arith.mulf %620, %621 : vector<32x16xf32>
    %623 = arith.mulf %622, %525 : vector<32x16xf32>
    %624 = arith.addf %618, %623 : vector<32x16xf32>
    %cst_212 = arith.constant 6.000000e-01 : f32
    %625 = vector.broadcast %cst_212 : f32 to vector<32x16xf32>
    %626 = arith.subf %369, %625 : vector<32x16xf32>
    %cst_213 = arith.constant 1.250000e+00 : f32
    %627 = vector.broadcast %cst_213 : f32 to vector<32x16xf32>
    %628 = arith.mulf %626, %627 : vector<32x16xf32>
    %629 = arith.mulf %628, %525 : vector<32x16xf32>
    %cst_214 = arith.constant 1.800000e+00 : f32
    %630 = vector.broadcast %cst_214 : f32 to vector<32x16xf32>
    %631 = arith.subf %630, %369 : vector<32x16xf32>
    %cst_215 = arith.constant 1.250000e+00 : f32
    %632 = vector.broadcast %cst_215 : f32 to vector<32x16xf32>
    %633 = arith.mulf %631, %632 : vector<32x16xf32>
    %634 = arith.mulf %633, %536 : vector<32x16xf32>
    %635 = arith.addf %629, %634 : vector<32x16xf32>
    %cst_216 = arith.constant 1.000000e+00 : f32
    %636 = vector.broadcast %cst_216 : f32 to vector<32x16xf32>
    %637 = arith.subf %369, %636 : vector<32x16xf32>
    %cst_217 = arith.constant 1.250000e+00 : f32
    %638 = vector.broadcast %cst_217 : f32 to vector<32x16xf32>
    %639 = arith.mulf %637, %638 : vector<32x16xf32>
    %640 = arith.mulf %639, %536 : vector<32x16xf32>
    %cst_218 = arith.constant 2.200000e+00 : f32
    %641 = vector.broadcast %cst_218 : f32 to vector<32x16xf32>
    %642 = arith.subf %641, %369 : vector<32x16xf32>
    %cst_219 = arith.constant 1.250000e+00 : f32
    %643 = vector.broadcast %cst_219 : f32 to vector<32x16xf32>
    %644 = arith.mulf %642, %643 : vector<32x16xf32>
    %645 = arith.mulf %644, %547 : vector<32x16xf32>
    %646 = arith.addf %640, %645 : vector<32x16xf32>
    %cst_220 = arith.constant -2.200000e+00 : f32
    %647 = vector.broadcast %cst_220 : f32 to vector<32x16xf32>
    %648 = arith.subf %369, %647 : vector<32x16xf32>
    %cst_221 = arith.constant 0.833333313 : f32
    %649 = vector.broadcast %cst_221 : f32 to vector<32x16xf32>
    %650 = arith.mulf %648, %649 : vector<32x16xf32>
    %651 = arith.mulf %650, %558 : vector<32x16xf32>
    %cst_222 = arith.constant -6.000000e-01 : f32
    %652 = vector.broadcast %cst_222 : f32 to vector<32x16xf32>
    %653 = arith.subf %652, %369 : vector<32x16xf32>
    %cst_223 = arith.constant 0.833333313 : f32
    %654 = vector.broadcast %cst_223 : f32 to vector<32x16xf32>
    %655 = arith.mulf %653, %654 : vector<32x16xf32>
    %656 = arith.mulf %655, %569 : vector<32x16xf32>
    %657 = arith.addf %651, %656 : vector<32x16xf32>
    %cst_224 = arith.constant -1.800000e+00 : f32
    %658 = vector.broadcast %cst_224 : f32 to vector<32x16xf32>
    %659 = arith.subf %369, %658 : vector<32x16xf32>
    %cst_225 = arith.constant 0.833333313 : f32
    %660 = vector.broadcast %cst_225 : f32 to vector<32x16xf32>
    %661 = arith.mulf %659, %660 : vector<32x16xf32>
    %662 = arith.mulf %661, %569 : vector<32x16xf32>
    %cst_226 = arith.constant -2.000000e-01 : f32
    %663 = vector.broadcast %cst_226 : f32 to vector<32x16xf32>
    %664 = arith.subf %663, %369 : vector<32x16xf32>
    %cst_227 = arith.constant 0.833333313 : f32
    %665 = vector.broadcast %cst_227 : f32 to vector<32x16xf32>
    %666 = arith.mulf %664, %665 : vector<32x16xf32>
    %667 = arith.mulf %666, %580 : vector<32x16xf32>
    %668 = arith.addf %662, %667 : vector<32x16xf32>
    %cst_228 = arith.constant -1.400000e+00 : f32
    %669 = vector.broadcast %cst_228 : f32 to vector<32x16xf32>
    %670 = arith.subf %369, %669 : vector<32x16xf32>
    %cst_229 = arith.constant 0.833333313 : f32
    %671 = vector.broadcast %cst_229 : f32 to vector<32x16xf32>
    %672 = arith.mulf %670, %671 : vector<32x16xf32>
    %673 = arith.mulf %672, %580 : vector<32x16xf32>
    %cst_230 = arith.constant 2.000000e-01 : f32
    %674 = vector.broadcast %cst_230 : f32 to vector<32x16xf32>
    %675 = arith.subf %674, %369 : vector<32x16xf32>
    %cst_231 = arith.constant 0.833333313 : f32
    %676 = vector.broadcast %cst_231 : f32 to vector<32x16xf32>
    %677 = arith.mulf %675, %676 : vector<32x16xf32>
    %678 = arith.mulf %677, %591 : vector<32x16xf32>
    %679 = arith.addf %673, %678 : vector<32x16xf32>
    %cst_232 = arith.constant -1.000000e+00 : f32
    %680 = vector.broadcast %cst_232 : f32 to vector<32x16xf32>
    %681 = arith.subf %369, %680 : vector<32x16xf32>
    %cst_233 = arith.constant 0.833333313 : f32
    %682 = vector.broadcast %cst_233 : f32 to vector<32x16xf32>
    %683 = arith.mulf %681, %682 : vector<32x16xf32>
    %684 = arith.mulf %683, %591 : vector<32x16xf32>
    %cst_234 = arith.constant 6.000000e-01 : f32
    %685 = vector.broadcast %cst_234 : f32 to vector<32x16xf32>
    %686 = arith.subf %685, %369 : vector<32x16xf32>
    %cst_235 = arith.constant 0.833333313 : f32
    %687 = vector.broadcast %cst_235 : f32 to vector<32x16xf32>
    %688 = arith.mulf %686, %687 : vector<32x16xf32>
    %689 = arith.mulf %688, %602 : vector<32x16xf32>
    %690 = arith.addf %684, %689 : vector<32x16xf32>
    %cst_236 = arith.constant -6.000000e-01 : f32
    %691 = vector.broadcast %cst_236 : f32 to vector<32x16xf32>
    %692 = arith.subf %369, %691 : vector<32x16xf32>
    %cst_237 = arith.constant 0.833333313 : f32
    %693 = vector.broadcast %cst_237 : f32 to vector<32x16xf32>
    %694 = arith.mulf %692, %693 : vector<32x16xf32>
    %695 = arith.mulf %694, %602 : vector<32x16xf32>
    %cst_238 = arith.constant 1.000000e+00 : f32
    %696 = vector.broadcast %cst_238 : f32 to vector<32x16xf32>
    %697 = arith.subf %696, %369 : vector<32x16xf32>
    %cst_239 = arith.constant 0.833333313 : f32
    %698 = vector.broadcast %cst_239 : f32 to vector<32x16xf32>
    %699 = arith.mulf %697, %698 : vector<32x16xf32>
    %700 = arith.mulf %699, %613 : vector<32x16xf32>
    %701 = arith.addf %695, %700 : vector<32x16xf32>
    %cst_240 = arith.constant -2.000000e-01 : f32
    %702 = vector.broadcast %cst_240 : f32 to vector<32x16xf32>
    %703 = arith.subf %369, %702 : vector<32x16xf32>
    %cst_241 = arith.constant 0.833333313 : f32
    %704 = vector.broadcast %cst_241 : f32 to vector<32x16xf32>
    %705 = arith.mulf %703, %704 : vector<32x16xf32>
    %706 = arith.mulf %705, %613 : vector<32x16xf32>
    %cst_242 = arith.constant 1.400000e+00 : f32
    %707 = vector.broadcast %cst_242 : f32 to vector<32x16xf32>
    %708 = arith.subf %707, %369 : vector<32x16xf32>
    %cst_243 = arith.constant 0.833333313 : f32
    %709 = vector.broadcast %cst_243 : f32 to vector<32x16xf32>
    %710 = arith.mulf %708, %709 : vector<32x16xf32>
    %711 = arith.mulf %710, %624 : vector<32x16xf32>
    %712 = arith.addf %706, %711 : vector<32x16xf32>
    %cst_244 = arith.constant 2.000000e-01 : f32
    %713 = vector.broadcast %cst_244 : f32 to vector<32x16xf32>
    %714 = arith.subf %369, %713 : vector<32x16xf32>
    %cst_245 = arith.constant 0.833333313 : f32
    %715 = vector.broadcast %cst_245 : f32 to vector<32x16xf32>
    %716 = arith.mulf %714, %715 : vector<32x16xf32>
    %717 = arith.mulf %716, %624 : vector<32x16xf32>
    %cst_246 = arith.constant 1.800000e+00 : f32
    %718 = vector.broadcast %cst_246 : f32 to vector<32x16xf32>
    %719 = arith.subf %718, %369 : vector<32x16xf32>
    %cst_247 = arith.constant 0.833333313 : f32
    %720 = vector.broadcast %cst_247 : f32 to vector<32x16xf32>
    %721 = arith.mulf %719, %720 : vector<32x16xf32>
    %722 = arith.mulf %721, %635 : vector<32x16xf32>
    %723 = arith.addf %717, %722 : vector<32x16xf32>
    %cst_248 = arith.constant 6.000000e-01 : f32
    %724 = vector.broadcast %cst_248 : f32 to vector<32x16xf32>
    %725 = arith.subf %369, %724 : vector<32x16xf32>
    %cst_249 = arith.constant 0.833333313 : f32
    %726 = vector.broadcast %cst_249 : f32 to vector<32x16xf32>
    %727 = arith.mulf %725, %726 : vector<32x16xf32>
    %728 = arith.mulf %727, %635 : vector<32x16xf32>
    %cst_250 = arith.constant 2.200000e+00 : f32
    %729 = vector.broadcast %cst_250 : f32 to vector<32x16xf32>
    %730 = arith.subf %729, %369 : vector<32x16xf32>
    %cst_251 = arith.constant 0.833333313 : f32
    %731 = vector.broadcast %cst_251 : f32 to vector<32x16xf32>
    %732 = arith.mulf %730, %731 : vector<32x16xf32>
    %733 = arith.mulf %732, %646 : vector<32x16xf32>
    %734 = arith.addf %728, %733 : vector<32x16xf32>
    %735 = tpu.concatenate %378, %657, %668, %679, %690, %701, %712, %723, %734 in 0 : vector<32x16xf32>, vector<32x16xf32>, vector<32x16xf32>, vector<32x16xf32>, vector<32x16xf32>, vector<32x16xf32>, vector<32x16xf32>, vector<32x16xf32>, vector<32x16xf32> -> vector<288x16xf32>
    %cst_252 = arith.constant dense<0.000000e+00> : vector<32x16xf32>
    %736 = tpu.matmul %370, %735, %cst_252 {dimension_numbers = #tpu.dot_dimension_numbers<[1], [0], [0], [1], [0, 0, 1, 1], [], []>} : vector<32x288xf32>, vector<288x16xf32>, vector<32x16xf32> -> vector<32x16xf32>
    %cst_253 = arith.constant 0.000000e+00 : f32
    %737 = vector.broadcast %cst_253 : f32 to vector<32x16xf32>
    %738 = arith.maximumf %736, %737 : vector<32x16xf32>
    %c0_254 = arith.constant 0 : index
    %c0_255 = arith.constant 0 : index
    %739 = vector.load %arg4[%c0_254, %c0_255] : memref<16x288xf32, #tpu.memory_space<vmem>>, vector<16x288xf32>
    %cst_256 = arith.constant 5.000000e-01 : f32
    %740 = vector.broadcast %cst_256 : f32 to vector<32x16xf32>
    %741 = arith.mulf %740, %738 : vector<32x16xf32>
    %742 = math.tanh %741 : vector<32x16xf32>
    %cst_257 = arith.constant 1.000000e+00 : f32
    %743 = vector.broadcast %cst_257 : f32 to vector<32x16xf32>
    %744 = arith.addf %742, %743 : vector<32x16xf32>
    %cst_258 = arith.constant 5.000000e-01 : f32
    %745 = vector.broadcast %cst_258 : f32 to vector<32x16xf32>
    %746 = arith.mulf %745, %744 : vector<32x16xf32>
    %747 = arith.mulf %738, %746 : vector<32x16xf32>
    %cst_259 = arith.constant -2.200000e+00 : f32
    %748 = vector.broadcast %cst_259 : f32 to vector<32x16xf32>
    %749 = arith.cmpf oge, %738, %748 : vector<32x16xf32>
    %750 = arith.extui %749 : vector<32x16xi1> to vector<32x16xi32>
    %751 = arith.sitofp %750 : vector<32x16xi32> to vector<32x16xf32>
    %cst_260 = arith.constant -1.800000e+00 : f32
    %752 = vector.broadcast %cst_260 : f32 to vector<32x16xf32>
    %753 = arith.cmpf oge, %738, %752 : vector<32x16xf32>
    %754 = arith.extui %753 : vector<32x16xi1> to vector<32x16xi32>
    %755 = arith.sitofp %754 : vector<32x16xi32> to vector<32x16xf32>
    %cst_261 = arith.constant -1.400000e+00 : f32
    %756 = vector.broadcast %cst_261 : f32 to vector<32x16xf32>
    %757 = arith.cmpf oge, %738, %756 : vector<32x16xf32>
    %758 = arith.extui %757 : vector<32x16xi1> to vector<32x16xi32>
    %759 = arith.sitofp %758 : vector<32x16xi32> to vector<32x16xf32>
    %cst_262 = arith.constant -1.000000e+00 : f32
    %760 = vector.broadcast %cst_262 : f32 to vector<32x16xf32>
    %761 = arith.cmpf oge, %738, %760 : vector<32x16xf32>
    %762 = arith.extui %761 : vector<32x16xi1> to vector<32x16xi32>
    %763 = arith.sitofp %762 : vector<32x16xi32> to vector<32x16xf32>
    %cst_263 = arith.constant -6.000000e-01 : f32
    %764 = vector.broadcast %cst_263 : f32 to vector<32x16xf32>
    %765 = arith.cmpf oge, %738, %764 : vector<32x16xf32>
    %766 = arith.extui %765 : vector<32x16xi1> to vector<32x16xi32>
    %767 = arith.sitofp %766 : vector<32x16xi32> to vector<32x16xf32>
    %cst_264 = arith.constant -2.000000e-01 : f32
    %768 = vector.broadcast %cst_264 : f32 to vector<32x16xf32>
    %769 = arith.cmpf oge, %738, %768 : vector<32x16xf32>
    %770 = arith.extui %769 : vector<32x16xi1> to vector<32x16xi32>
    %771 = arith.sitofp %770 : vector<32x16xi32> to vector<32x16xf32>
    %cst_265 = arith.constant 2.000000e-01 : f32
    %772 = vector.broadcast %cst_265 : f32 to vector<32x16xf32>
    %773 = arith.cmpf oge, %738, %772 : vector<32x16xf32>
    %774 = arith.extui %773 : vector<32x16xi1> to vector<32x16xi32>
    %775 = arith.sitofp %774 : vector<32x16xi32> to vector<32x16xf32>
    %cst_266 = arith.constant 6.000000e-01 : f32
    %776 = vector.broadcast %cst_266 : f32 to vector<32x16xf32>
    %777 = arith.cmpf oge, %738, %776 : vector<32x16xf32>
    %778 = arith.extui %777 : vector<32x16xi1> to vector<32x16xi32>
    %779 = arith.sitofp %778 : vector<32x16xi32> to vector<32x16xf32>
    %cst_267 = arith.constant 1.000000e+00 : f32
    %780 = vector.broadcast %cst_267 : f32 to vector<32x16xf32>
    %781 = arith.cmpf oge, %738, %780 : vector<32x16xf32>
    %782 = arith.extui %781 : vector<32x16xi1> to vector<32x16xi32>
    %783 = arith.sitofp %782 : vector<32x16xi32> to vector<32x16xf32>
    %cst_268 = arith.constant 1.400000e+00 : f32
    %784 = vector.broadcast %cst_268 : f32 to vector<32x16xf32>
    %785 = arith.cmpf oge, %738, %784 : vector<32x16xf32>
    %786 = arith.extui %785 : vector<32x16xi1> to vector<32x16xi32>
    %787 = arith.sitofp %786 : vector<32x16xi32> to vector<32x16xf32>
    %cst_269 = arith.constant 1.800000e+00 : f32
    %788 = vector.broadcast %cst_269 : f32 to vector<32x16xf32>
    %789 = arith.cmpf oge, %738, %788 : vector<32x16xf32>
    %790 = arith.extui %789 : vector<32x16xi1> to vector<32x16xi32>
    %791 = arith.sitofp %790 : vector<32x16xi32> to vector<32x16xf32>
    %cst_270 = arith.constant 2.200000e+00 : f32
    %792 = vector.broadcast %cst_270 : f32 to vector<32x16xf32>
    %793 = arith.cmpf oge, %738, %792 : vector<32x16xf32>
    %794 = arith.extui %793 : vector<32x16xi1> to vector<32x16xi32>
    %795 = arith.sitofp %794 : vector<32x16xi32> to vector<32x16xf32>
    %796 = arith.subf %751, %755 : vector<32x16xf32>
    %797 = arith.subf %755, %759 : vector<32x16xf32>
    %798 = arith.subf %759, %763 : vector<32x16xf32>
    %799 = arith.subf %763, %767 : vector<32x16xf32>
    %800 = arith.subf %767, %771 : vector<32x16xf32>
    %801 = arith.subf %771, %775 : vector<32x16xf32>
    %802 = arith.subf %775, %779 : vector<32x16xf32>
    %803 = arith.subf %779, %783 : vector<32x16xf32>
    %804 = arith.subf %783, %787 : vector<32x16xf32>
    %805 = arith.subf %787, %791 : vector<32x16xf32>
    %806 = arith.subf %791, %795 : vector<32x16xf32>
    %cst_271 = arith.constant -2.200000e+00 : f32
    %807 = vector.broadcast %cst_271 : f32 to vector<32x16xf32>
    %808 = arith.subf %738, %807 : vector<32x16xf32>
    %cst_272 = arith.constant 2.500000e+00 : f32
    %809 = vector.broadcast %cst_272 : f32 to vector<32x16xf32>
    %810 = arith.mulf %808, %809 : vector<32x16xf32>
    %811 = arith.mulf %810, %796 : vector<32x16xf32>
    %cst_273 = arith.constant -1.400000e+00 : f32
    %812 = vector.broadcast %cst_273 : f32 to vector<32x16xf32>
    %813 = arith.subf %812, %738 : vector<32x16xf32>
    %cst_274 = arith.constant 2.500000e+00 : f32
    %814 = vector.broadcast %cst_274 : f32 to vector<32x16xf32>
    %815 = arith.mulf %813, %814 : vector<32x16xf32>
    %816 = arith.mulf %815, %797 : vector<32x16xf32>
    %817 = arith.addf %811, %816 : vector<32x16xf32>
    %cst_275 = arith.constant -1.800000e+00 : f32
    %818 = vector.broadcast %cst_275 : f32 to vector<32x16xf32>
    %819 = arith.subf %738, %818 : vector<32x16xf32>
    %cst_276 = arith.constant 2.500000e+00 : f32
    %820 = vector.broadcast %cst_276 : f32 to vector<32x16xf32>
    %821 = arith.mulf %819, %820 : vector<32x16xf32>
    %822 = arith.mulf %821, %797 : vector<32x16xf32>
    %cst_277 = arith.constant -1.000000e+00 : f32
    %823 = vector.broadcast %cst_277 : f32 to vector<32x16xf32>
    %824 = arith.subf %823, %738 : vector<32x16xf32>
    %cst_278 = arith.constant 2.500000e+00 : f32
    %825 = vector.broadcast %cst_278 : f32 to vector<32x16xf32>
    %826 = arith.mulf %824, %825 : vector<32x16xf32>
    %827 = arith.mulf %826, %798 : vector<32x16xf32>
    %828 = arith.addf %822, %827 : vector<32x16xf32>
    %cst_279 = arith.constant -1.400000e+00 : f32
    %829 = vector.broadcast %cst_279 : f32 to vector<32x16xf32>
    %830 = arith.subf %738, %829 : vector<32x16xf32>
    %cst_280 = arith.constant 2.500000e+00 : f32
    %831 = vector.broadcast %cst_280 : f32 to vector<32x16xf32>
    %832 = arith.mulf %830, %831 : vector<32x16xf32>
    %833 = arith.mulf %832, %798 : vector<32x16xf32>
    %cst_281 = arith.constant -6.000000e-01 : f32
    %834 = vector.broadcast %cst_281 : f32 to vector<32x16xf32>
    %835 = arith.subf %834, %738 : vector<32x16xf32>
    %cst_282 = arith.constant 2.500000e+00 : f32
    %836 = vector.broadcast %cst_282 : f32 to vector<32x16xf32>
    %837 = arith.mulf %835, %836 : vector<32x16xf32>
    %838 = arith.mulf %837, %799 : vector<32x16xf32>
    %839 = arith.addf %833, %838 : vector<32x16xf32>
    %cst_283 = arith.constant -1.000000e+00 : f32
    %840 = vector.broadcast %cst_283 : f32 to vector<32x16xf32>
    %841 = arith.subf %738, %840 : vector<32x16xf32>
    %cst_284 = arith.constant 2.500000e+00 : f32
    %842 = vector.broadcast %cst_284 : f32 to vector<32x16xf32>
    %843 = arith.mulf %841, %842 : vector<32x16xf32>
    %844 = arith.mulf %843, %799 : vector<32x16xf32>
    %cst_285 = arith.constant -2.000000e-01 : f32
    %845 = vector.broadcast %cst_285 : f32 to vector<32x16xf32>
    %846 = arith.subf %845, %738 : vector<32x16xf32>
    %cst_286 = arith.constant 2.500000e+00 : f32
    %847 = vector.broadcast %cst_286 : f32 to vector<32x16xf32>
    %848 = arith.mulf %846, %847 : vector<32x16xf32>
    %849 = arith.mulf %848, %800 : vector<32x16xf32>
    %850 = arith.addf %844, %849 : vector<32x16xf32>
    %cst_287 = arith.constant -6.000000e-01 : f32
    %851 = vector.broadcast %cst_287 : f32 to vector<32x16xf32>
    %852 = arith.subf %738, %851 : vector<32x16xf32>
    %cst_288 = arith.constant 2.500000e+00 : f32
    %853 = vector.broadcast %cst_288 : f32 to vector<32x16xf32>
    %854 = arith.mulf %852, %853 : vector<32x16xf32>
    %855 = arith.mulf %854, %800 : vector<32x16xf32>
    %cst_289 = arith.constant 2.000000e-01 : f32
    %856 = vector.broadcast %cst_289 : f32 to vector<32x16xf32>
    %857 = arith.subf %856, %738 : vector<32x16xf32>
    %cst_290 = arith.constant 2.500000e+00 : f32
    %858 = vector.broadcast %cst_290 : f32 to vector<32x16xf32>
    %859 = arith.mulf %857, %858 : vector<32x16xf32>
    %860 = arith.mulf %859, %801 : vector<32x16xf32>
    %861 = arith.addf %855, %860 : vector<32x16xf32>
    %cst_291 = arith.constant -2.000000e-01 : f32
    %862 = vector.broadcast %cst_291 : f32 to vector<32x16xf32>
    %863 = arith.subf %738, %862 : vector<32x16xf32>
    %cst_292 = arith.constant 2.500000e+00 : f32
    %864 = vector.broadcast %cst_292 : f32 to vector<32x16xf32>
    %865 = arith.mulf %863, %864 : vector<32x16xf32>
    %866 = arith.mulf %865, %801 : vector<32x16xf32>
    %cst_293 = arith.constant 6.000000e-01 : f32
    %867 = vector.broadcast %cst_293 : f32 to vector<32x16xf32>
    %868 = arith.subf %867, %738 : vector<32x16xf32>
    %cst_294 = arith.constant 2.500000e+00 : f32
    %869 = vector.broadcast %cst_294 : f32 to vector<32x16xf32>
    %870 = arith.mulf %868, %869 : vector<32x16xf32>
    %871 = arith.mulf %870, %802 : vector<32x16xf32>
    %872 = arith.addf %866, %871 : vector<32x16xf32>
    %cst_295 = arith.constant 2.000000e-01 : f32
    %873 = vector.broadcast %cst_295 : f32 to vector<32x16xf32>
    %874 = arith.subf %738, %873 : vector<32x16xf32>
    %cst_296 = arith.constant 2.500000e+00 : f32
    %875 = vector.broadcast %cst_296 : f32 to vector<32x16xf32>
    %876 = arith.mulf %874, %875 : vector<32x16xf32>
    %877 = arith.mulf %876, %802 : vector<32x16xf32>
    %cst_297 = arith.constant 1.000000e+00 : f32
    %878 = vector.broadcast %cst_297 : f32 to vector<32x16xf32>
    %879 = arith.subf %878, %738 : vector<32x16xf32>
    %cst_298 = arith.constant 2.500000e+00 : f32
    %880 = vector.broadcast %cst_298 : f32 to vector<32x16xf32>
    %881 = arith.mulf %879, %880 : vector<32x16xf32>
    %882 = arith.mulf %881, %803 : vector<32x16xf32>
    %883 = arith.addf %877, %882 : vector<32x16xf32>
    %cst_299 = arith.constant 6.000000e-01 : f32
    %884 = vector.broadcast %cst_299 : f32 to vector<32x16xf32>
    %885 = arith.subf %738, %884 : vector<32x16xf32>
    %cst_300 = arith.constant 2.500000e+00 : f32
    %886 = vector.broadcast %cst_300 : f32 to vector<32x16xf32>
    %887 = arith.mulf %885, %886 : vector<32x16xf32>
    %888 = arith.mulf %887, %803 : vector<32x16xf32>
    %cst_301 = arith.constant 1.400000e+00 : f32
    %889 = vector.broadcast %cst_301 : f32 to vector<32x16xf32>
    %890 = arith.subf %889, %738 : vector<32x16xf32>
    %cst_302 = arith.constant 2.500000e+00 : f32
    %891 = vector.broadcast %cst_302 : f32 to vector<32x16xf32>
    %892 = arith.mulf %890, %891 : vector<32x16xf32>
    %893 = arith.mulf %892, %804 : vector<32x16xf32>
    %894 = arith.addf %888, %893 : vector<32x16xf32>
    %cst_303 = arith.constant 1.000000e+00 : f32
    %895 = vector.broadcast %cst_303 : f32 to vector<32x16xf32>
    %896 = arith.subf %738, %895 : vector<32x16xf32>
    %cst_304 = arith.constant 2.500000e+00 : f32
    %897 = vector.broadcast %cst_304 : f32 to vector<32x16xf32>
    %898 = arith.mulf %896, %897 : vector<32x16xf32>
    %899 = arith.mulf %898, %804 : vector<32x16xf32>
    %cst_305 = arith.constant 1.800000e+00 : f32
    %900 = vector.broadcast %cst_305 : f32 to vector<32x16xf32>
    %901 = arith.subf %900, %738 : vector<32x16xf32>
    %cst_306 = arith.constant 2.500000e+00 : f32
    %902 = vector.broadcast %cst_306 : f32 to vector<32x16xf32>
    %903 = arith.mulf %901, %902 : vector<32x16xf32>
    %904 = arith.mulf %903, %805 : vector<32x16xf32>
    %905 = arith.addf %899, %904 : vector<32x16xf32>
    %cst_307 = arith.constant 1.400000e+00 : f32
    %906 = vector.broadcast %cst_307 : f32 to vector<32x16xf32>
    %907 = arith.subf %738, %906 : vector<32x16xf32>
    %cst_308 = arith.constant 2.500000e+00 : f32
    %908 = vector.broadcast %cst_308 : f32 to vector<32x16xf32>
    %909 = arith.mulf %907, %908 : vector<32x16xf32>
    %910 = arith.mulf %909, %805 : vector<32x16xf32>
    %cst_309 = arith.constant 2.200000e+00 : f32
    %911 = vector.broadcast %cst_309 : f32 to vector<32x16xf32>
    %912 = arith.subf %911, %738 : vector<32x16xf32>
    %cst_310 = arith.constant 2.500000e+00 : f32
    %913 = vector.broadcast %cst_310 : f32 to vector<32x16xf32>
    %914 = arith.mulf %912, %913 : vector<32x16xf32>
    %915 = arith.mulf %914, %806 : vector<32x16xf32>
    %916 = arith.addf %910, %915 : vector<32x16xf32>
    %cst_311 = arith.constant -2.200000e+00 : f32
    %917 = vector.broadcast %cst_311 : f32 to vector<32x16xf32>
    %918 = arith.subf %738, %917 : vector<32x16xf32>
    %cst_312 = arith.constant 1.250000e+00 : f32
    %919 = vector.broadcast %cst_312 : f32 to vector<32x16xf32>
    %920 = arith.mulf %918, %919 : vector<32x16xf32>
    %921 = arith.mulf %920, %817 : vector<32x16xf32>
    %cst_313 = arith.constant -1.000000e+00 : f32
    %922 = vector.broadcast %cst_313 : f32 to vector<32x16xf32>
    %923 = arith.subf %922, %738 : vector<32x16xf32>
    %cst_314 = arith.constant 1.250000e+00 : f32
    %924 = vector.broadcast %cst_314 : f32 to vector<32x16xf32>
    %925 = arith.mulf %923, %924 : vector<32x16xf32>
    %926 = arith.mulf %925, %828 : vector<32x16xf32>
    %927 = arith.addf %921, %926 : vector<32x16xf32>
    %cst_315 = arith.constant -1.800000e+00 : f32
    %928 = vector.broadcast %cst_315 : f32 to vector<32x16xf32>
    %929 = arith.subf %738, %928 : vector<32x16xf32>
    %cst_316 = arith.constant 1.250000e+00 : f32
    %930 = vector.broadcast %cst_316 : f32 to vector<32x16xf32>
    %931 = arith.mulf %929, %930 : vector<32x16xf32>
    %932 = arith.mulf %931, %828 : vector<32x16xf32>
    %cst_317 = arith.constant -6.000000e-01 : f32
    %933 = vector.broadcast %cst_317 : f32 to vector<32x16xf32>
    %934 = arith.subf %933, %738 : vector<32x16xf32>
    %cst_318 = arith.constant 1.250000e+00 : f32
    %935 = vector.broadcast %cst_318 : f32 to vector<32x16xf32>
    %936 = arith.mulf %934, %935 : vector<32x16xf32>
    %937 = arith.mulf %936, %839 : vector<32x16xf32>
    %938 = arith.addf %932, %937 : vector<32x16xf32>
    %cst_319 = arith.constant -1.400000e+00 : f32
    %939 = vector.broadcast %cst_319 : f32 to vector<32x16xf32>
    %940 = arith.subf %738, %939 : vector<32x16xf32>
    %cst_320 = arith.constant 1.250000e+00 : f32
    %941 = vector.broadcast %cst_320 : f32 to vector<32x16xf32>
    %942 = arith.mulf %940, %941 : vector<32x16xf32>
    %943 = arith.mulf %942, %839 : vector<32x16xf32>
    %cst_321 = arith.constant -2.000000e-01 : f32
    %944 = vector.broadcast %cst_321 : f32 to vector<32x16xf32>
    %945 = arith.subf %944, %738 : vector<32x16xf32>
    %cst_322 = arith.constant 1.250000e+00 : f32
    %946 = vector.broadcast %cst_322 : f32 to vector<32x16xf32>
    %947 = arith.mulf %945, %946 : vector<32x16xf32>
    %948 = arith.mulf %947, %850 : vector<32x16xf32>
    %949 = arith.addf %943, %948 : vector<32x16xf32>
    %cst_323 = arith.constant -1.000000e+00 : f32
    %950 = vector.broadcast %cst_323 : f32 to vector<32x16xf32>
    %951 = arith.subf %738, %950 : vector<32x16xf32>
    %cst_324 = arith.constant 1.250000e+00 : f32
    %952 = vector.broadcast %cst_324 : f32 to vector<32x16xf32>
    %953 = arith.mulf %951, %952 : vector<32x16xf32>
    %954 = arith.mulf %953, %850 : vector<32x16xf32>
    %cst_325 = arith.constant 2.000000e-01 : f32
    %955 = vector.broadcast %cst_325 : f32 to vector<32x16xf32>
    %956 = arith.subf %955, %738 : vector<32x16xf32>
    %cst_326 = arith.constant 1.250000e+00 : f32
    %957 = vector.broadcast %cst_326 : f32 to vector<32x16xf32>
    %958 = arith.mulf %956, %957 : vector<32x16xf32>
    %959 = arith.mulf %958, %861 : vector<32x16xf32>
    %960 = arith.addf %954, %959 : vector<32x16xf32>
    %cst_327 = arith.constant -6.000000e-01 : f32
    %961 = vector.broadcast %cst_327 : f32 to vector<32x16xf32>
    %962 = arith.subf %738, %961 : vector<32x16xf32>
    %cst_328 = arith.constant 1.250000e+00 : f32
    %963 = vector.broadcast %cst_328 : f32 to vector<32x16xf32>
    %964 = arith.mulf %962, %963 : vector<32x16xf32>
    %965 = arith.mulf %964, %861 : vector<32x16xf32>
    %cst_329 = arith.constant 6.000000e-01 : f32
    %966 = vector.broadcast %cst_329 : f32 to vector<32x16xf32>
    %967 = arith.subf %966, %738 : vector<32x16xf32>
    %cst_330 = arith.constant 1.250000e+00 : f32
    %968 = vector.broadcast %cst_330 : f32 to vector<32x16xf32>
    %969 = arith.mulf %967, %968 : vector<32x16xf32>
    %970 = arith.mulf %969, %872 : vector<32x16xf32>
    %971 = arith.addf %965, %970 : vector<32x16xf32>
    %cst_331 = arith.constant -2.000000e-01 : f32
    %972 = vector.broadcast %cst_331 : f32 to vector<32x16xf32>
    %973 = arith.subf %738, %972 : vector<32x16xf32>
    %cst_332 = arith.constant 1.250000e+00 : f32
    %974 = vector.broadcast %cst_332 : f32 to vector<32x16xf32>
    %975 = arith.mulf %973, %974 : vector<32x16xf32>
    %976 = arith.mulf %975, %872 : vector<32x16xf32>
    %cst_333 = arith.constant 1.000000e+00 : f32
    %977 = vector.broadcast %cst_333 : f32 to vector<32x16xf32>
    %978 = arith.subf %977, %738 : vector<32x16xf32>
    %cst_334 = arith.constant 1.250000e+00 : f32
    %979 = vector.broadcast %cst_334 : f32 to vector<32x16xf32>
    %980 = arith.mulf %978, %979 : vector<32x16xf32>
    %981 = arith.mulf %980, %883 : vector<32x16xf32>
    %982 = arith.addf %976, %981 : vector<32x16xf32>
    %cst_335 = arith.constant 2.000000e-01 : f32
    %983 = vector.broadcast %cst_335 : f32 to vector<32x16xf32>
    %984 = arith.subf %738, %983 : vector<32x16xf32>
    %cst_336 = arith.constant 1.250000e+00 : f32
    %985 = vector.broadcast %cst_336 : f32 to vector<32x16xf32>
    %986 = arith.mulf %984, %985 : vector<32x16xf32>
    %987 = arith.mulf %986, %883 : vector<32x16xf32>
    %cst_337 = arith.constant 1.400000e+00 : f32
    %988 = vector.broadcast %cst_337 : f32 to vector<32x16xf32>
    %989 = arith.subf %988, %738 : vector<32x16xf32>
    %cst_338 = arith.constant 1.250000e+00 : f32
    %990 = vector.broadcast %cst_338 : f32 to vector<32x16xf32>
    %991 = arith.mulf %989, %990 : vector<32x16xf32>
    %992 = arith.mulf %991, %894 : vector<32x16xf32>
    %993 = arith.addf %987, %992 : vector<32x16xf32>
    %cst_339 = arith.constant 6.000000e-01 : f32
    %994 = vector.broadcast %cst_339 : f32 to vector<32x16xf32>
    %995 = arith.subf %738, %994 : vector<32x16xf32>
    %cst_340 = arith.constant 1.250000e+00 : f32
    %996 = vector.broadcast %cst_340 : f32 to vector<32x16xf32>
    %997 = arith.mulf %995, %996 : vector<32x16xf32>
    %998 = arith.mulf %997, %894 : vector<32x16xf32>
    %cst_341 = arith.constant 1.800000e+00 : f32
    %999 = vector.broadcast %cst_341 : f32 to vector<32x16xf32>
    %1000 = arith.subf %999, %738 : vector<32x16xf32>
    %cst_342 = arith.constant 1.250000e+00 : f32
    %1001 = vector.broadcast %cst_342 : f32 to vector<32x16xf32>
    %1002 = arith.mulf %1000, %1001 : vector<32x16xf32>
    %1003 = arith.mulf %1002, %905 : vector<32x16xf32>
    %1004 = arith.addf %998, %1003 : vector<32x16xf32>
    %cst_343 = arith.constant 1.000000e+00 : f32
    %1005 = vector.broadcast %cst_343 : f32 to vector<32x16xf32>
    %1006 = arith.subf %738, %1005 : vector<32x16xf32>
    %cst_344 = arith.constant 1.250000e+00 : f32
    %1007 = vector.broadcast %cst_344 : f32 to vector<32x16xf32>
    %1008 = arith.mulf %1006, %1007 : vector<32x16xf32>
    %1009 = arith.mulf %1008, %905 : vector<32x16xf32>
    %cst_345 = arith.constant 2.200000e+00 : f32
    %1010 = vector.broadcast %cst_345 : f32 to vector<32x16xf32>
    %1011 = arith.subf %1010, %738 : vector<32x16xf32>
    %cst_346 = arith.constant 1.250000e+00 : f32
    %1012 = vector.broadcast %cst_346 : f32 to vector<32x16xf32>
    %1013 = arith.mulf %1011, %1012 : vector<32x16xf32>
    %1014 = arith.mulf %1013, %916 : vector<32x16xf32>
    %1015 = arith.addf %1009, %1014 : vector<32x16xf32>
    %cst_347 = arith.constant -2.200000e+00 : f32
    %1016 = vector.broadcast %cst_347 : f32 to vector<32x16xf32>
    %1017 = arith.subf %738, %1016 : vector<32x16xf32>
    %cst_348 = arith.constant 0.833333313 : f32
    %1018 = vector.broadcast %cst_348 : f32 to vector<32x16xf32>
    %1019 = arith.mulf %1017, %1018 : vector<32x16xf32>
    %1020 = arith.mulf %1019, %927 : vector<32x16xf32>
    %cst_349 = arith.constant -6.000000e-01 : f32
    %1021 = vector.broadcast %cst_349 : f32 to vector<32x16xf32>
    %1022 = arith.subf %1021, %738 : vector<32x16xf32>
    %cst_350 = arith.constant 0.833333313 : f32
    %1023 = vector.broadcast %cst_350 : f32 to vector<32x16xf32>
    %1024 = arith.mulf %1022, %1023 : vector<32x16xf32>
    %1025 = arith.mulf %1024, %938 : vector<32x16xf32>
    %1026 = arith.addf %1020, %1025 : vector<32x16xf32>
    %cst_351 = arith.constant -1.800000e+00 : f32
    %1027 = vector.broadcast %cst_351 : f32 to vector<32x16xf32>
    %1028 = arith.subf %738, %1027 : vector<32x16xf32>
    %cst_352 = arith.constant 0.833333313 : f32
    %1029 = vector.broadcast %cst_352 : f32 to vector<32x16xf32>
    %1030 = arith.mulf %1028, %1029 : vector<32x16xf32>
    %1031 = arith.mulf %1030, %938 : vector<32x16xf32>
    %cst_353 = arith.constant -2.000000e-01 : f32
    %1032 = vector.broadcast %cst_353 : f32 to vector<32x16xf32>
    %1033 = arith.subf %1032, %738 : vector<32x16xf32>
    %cst_354 = arith.constant 0.833333313 : f32
    %1034 = vector.broadcast %cst_354 : f32 to vector<32x16xf32>
    %1035 = arith.mulf %1033, %1034 : vector<32x16xf32>
    %1036 = arith.mulf %1035, %949 : vector<32x16xf32>
    %1037 = arith.addf %1031, %1036 : vector<32x16xf32>
    %cst_355 = arith.constant -1.400000e+00 : f32
    %1038 = vector.broadcast %cst_355 : f32 to vector<32x16xf32>
    %1039 = arith.subf %738, %1038 : vector<32x16xf32>
    %cst_356 = arith.constant 0.833333313 : f32
    %1040 = vector.broadcast %cst_356 : f32 to vector<32x16xf32>
    %1041 = arith.mulf %1039, %1040 : vector<32x16xf32>
    %1042 = arith.mulf %1041, %949 : vector<32x16xf32>
    %cst_357 = arith.constant 2.000000e-01 : f32
    %1043 = vector.broadcast %cst_357 : f32 to vector<32x16xf32>
    %1044 = arith.subf %1043, %738 : vector<32x16xf32>
    %cst_358 = arith.constant 0.833333313 : f32
    %1045 = vector.broadcast %cst_358 : f32 to vector<32x16xf32>
    %1046 = arith.mulf %1044, %1045 : vector<32x16xf32>
    %1047 = arith.mulf %1046, %960 : vector<32x16xf32>
    %1048 = arith.addf %1042, %1047 : vector<32x16xf32>
    %cst_359 = arith.constant -1.000000e+00 : f32
    %1049 = vector.broadcast %cst_359 : f32 to vector<32x16xf32>
    %1050 = arith.subf %738, %1049 : vector<32x16xf32>
    %cst_360 = arith.constant 0.833333313 : f32
    %1051 = vector.broadcast %cst_360 : f32 to vector<32x16xf32>
    %1052 = arith.mulf %1050, %1051 : vector<32x16xf32>
    %1053 = arith.mulf %1052, %960 : vector<32x16xf32>
    %cst_361 = arith.constant 6.000000e-01 : f32
    %1054 = vector.broadcast %cst_361 : f32 to vector<32x16xf32>
    %1055 = arith.subf %1054, %738 : vector<32x16xf32>
    %cst_362 = arith.constant 0.833333313 : f32
    %1056 = vector.broadcast %cst_362 : f32 to vector<32x16xf32>
    %1057 = arith.mulf %1055, %1056 : vector<32x16xf32>
    %1058 = arith.mulf %1057, %971 : vector<32x16xf32>
    %1059 = arith.addf %1053, %1058 : vector<32x16xf32>
    %cst_363 = arith.constant -6.000000e-01 : f32
    %1060 = vector.broadcast %cst_363 : f32 to vector<32x16xf32>
    %1061 = arith.subf %738, %1060 : vector<32x16xf32>
    %cst_364 = arith.constant 0.833333313 : f32
    %1062 = vector.broadcast %cst_364 : f32 to vector<32x16xf32>
    %1063 = arith.mulf %1061, %1062 : vector<32x16xf32>
    %1064 = arith.mulf %1063, %971 : vector<32x16xf32>
    %cst_365 = arith.constant 1.000000e+00 : f32
    %1065 = vector.broadcast %cst_365 : f32 to vector<32x16xf32>
    %1066 = arith.subf %1065, %738 : vector<32x16xf32>
    %cst_366 = arith.constant 0.833333313 : f32
    %1067 = vector.broadcast %cst_366 : f32 to vector<32x16xf32>
    %1068 = arith.mulf %1066, %1067 : vector<32x16xf32>
    %1069 = arith.mulf %1068, %982 : vector<32x16xf32>
    %1070 = arith.addf %1064, %1069 : vector<32x16xf32>
    %cst_367 = arith.constant -2.000000e-01 : f32
    %1071 = vector.broadcast %cst_367 : f32 to vector<32x16xf32>
    %1072 = arith.subf %738, %1071 : vector<32x16xf32>
    %cst_368 = arith.constant 0.833333313 : f32
    %1073 = vector.broadcast %cst_368 : f32 to vector<32x16xf32>
    %1074 = arith.mulf %1072, %1073 : vector<32x16xf32>
    %1075 = arith.mulf %1074, %982 : vector<32x16xf32>
    %cst_369 = arith.constant 1.400000e+00 : f32
    %1076 = vector.broadcast %cst_369 : f32 to vector<32x16xf32>
    %1077 = arith.subf %1076, %738 : vector<32x16xf32>
    %cst_370 = arith.constant 0.833333313 : f32
    %1078 = vector.broadcast %cst_370 : f32 to vector<32x16xf32>
    %1079 = arith.mulf %1077, %1078 : vector<32x16xf32>
    %1080 = arith.mulf %1079, %993 : vector<32x16xf32>
    %1081 = arith.addf %1075, %1080 : vector<32x16xf32>
    %cst_371 = arith.constant 2.000000e-01 : f32
    %1082 = vector.broadcast %cst_371 : f32 to vector<32x16xf32>
    %1083 = arith.subf %738, %1082 : vector<32x16xf32>
    %cst_372 = arith.constant 0.833333313 : f32
    %1084 = vector.broadcast %cst_372 : f32 to vector<32x16xf32>
    %1085 = arith.mulf %1083, %1084 : vector<32x16xf32>
    %1086 = arith.mulf %1085, %993 : vector<32x16xf32>
    %cst_373 = arith.constant 1.800000e+00 : f32
    %1087 = vector.broadcast %cst_373 : f32 to vector<32x16xf32>
    %1088 = arith.subf %1087, %738 : vector<32x16xf32>
    %cst_374 = arith.constant 0.833333313 : f32
    %1089 = vector.broadcast %cst_374 : f32 to vector<32x16xf32>
    %1090 = arith.mulf %1088, %1089 : vector<32x16xf32>
    %1091 = arith.mulf %1090, %1004 : vector<32x16xf32>
    %1092 = arith.addf %1086, %1091 : vector<32x16xf32>
    %cst_375 = arith.constant 6.000000e-01 : f32
    %1093 = vector.broadcast %cst_375 : f32 to vector<32x16xf32>
    %1094 = arith.subf %738, %1093 : vector<32x16xf32>
    %cst_376 = arith.constant 0.833333313 : f32
    %1095 = vector.broadcast %cst_376 : f32 to vector<32x16xf32>
    %1096 = arith.mulf %1094, %1095 : vector<32x16xf32>
    %1097 = arith.mulf %1096, %1004 : vector<32x16xf32>
    %cst_377 = arith.constant 2.200000e+00 : f32
    %1098 = vector.broadcast %cst_377 : f32 to vector<32x16xf32>
    %1099 = arith.subf %1098, %738 : vector<32x16xf32>
    %cst_378 = arith.constant 0.833333313 : f32
    %1100 = vector.broadcast %cst_378 : f32 to vector<32x16xf32>
    %1101 = arith.mulf %1099, %1100 : vector<32x16xf32>
    %1102 = arith.mulf %1101, %1015 : vector<32x16xf32>
    %1103 = arith.addf %1097, %1102 : vector<32x16xf32>
    %1104 = tpu.concatenate %747, %1026, %1037, %1048, %1059, %1070, %1081, %1092, %1103 in 0 : vector<32x16xf32>, vector<32x16xf32>, vector<32x16xf32>, vector<32x16xf32>, vector<32x16xf32>, vector<32x16xf32>, vector<32x16xf32>, vector<32x16xf32>, vector<32x16xf32> -> vector<288x16xf32>
    %cst_379 = arith.constant dense<0.000000e+00> : vector<16x16xf32>
    %1105 = tpu.matmul %739, %1104, %cst_379 {dimension_numbers = #tpu.dot_dimension_numbers<[1], [0], [0], [1], [0, 0, 1, 1], [], []>} : vector<16x288xf32>, vector<288x16xf32>, vector<16x16xf32> -> vector<16x16xf32>
    %cst_380 = arith.constant 0.000000e+00 : f32
    %1106 = vector.broadcast %cst_380 : f32 to vector<16x16xf32>
    %1107 = arith.maximumf %1105, %1106 : vector<16x16xf32>
    %c0_381 = arith.constant 0 : index
    %c0_382 = arith.constant 0 : index
    %1108 = vector.load %arg5[%c0_381, %c0_382] : memref<16x144xf32, #tpu.memory_space<vmem>>, vector<16x144xf32>
    %cst_383 = arith.constant 5.000000e-01 : f32
    %1109 = vector.broadcast %cst_383 : f32 to vector<16x16xf32>
    %1110 = arith.mulf %1109, %1107 : vector<16x16xf32>
    %1111 = math.tanh %1110 : vector<16x16xf32>
    %cst_384 = arith.constant 1.000000e+00 : f32
    %1112 = vector.broadcast %cst_384 : f32 to vector<16x16xf32>
    %1113 = arith.addf %1111, %1112 : vector<16x16xf32>
    %cst_385 = arith.constant 5.000000e-01 : f32
    %1114 = vector.broadcast %cst_385 : f32 to vector<16x16xf32>
    %1115 = arith.mulf %1114, %1113 : vector<16x16xf32>
    %1116 = arith.mulf %1107, %1115 : vector<16x16xf32>
    %cst_386 = arith.constant -2.200000e+00 : f32
    %1117 = vector.broadcast %cst_386 : f32 to vector<16x16xf32>
    %1118 = arith.cmpf oge, %1107, %1117 : vector<16x16xf32>
    %1119 = arith.extui %1118 : vector<16x16xi1> to vector<16x16xi32>
    %1120 = arith.sitofp %1119 : vector<16x16xi32> to vector<16x16xf32>
    %cst_387 = arith.constant -1.800000e+00 : f32
    %1121 = vector.broadcast %cst_387 : f32 to vector<16x16xf32>
    %1122 = arith.cmpf oge, %1107, %1121 : vector<16x16xf32>
    %1123 = arith.extui %1122 : vector<16x16xi1> to vector<16x16xi32>
    %1124 = arith.sitofp %1123 : vector<16x16xi32> to vector<16x16xf32>
    %cst_388 = arith.constant -1.400000e+00 : f32
    %1125 = vector.broadcast %cst_388 : f32 to vector<16x16xf32>
    %1126 = arith.cmpf oge, %1107, %1125 : vector<16x16xf32>
    %1127 = arith.extui %1126 : vector<16x16xi1> to vector<16x16xi32>
    %1128 = arith.sitofp %1127 : vector<16x16xi32> to vector<16x16xf32>
    %cst_389 = arith.constant -1.000000e+00 : f32
    %1129 = vector.broadcast %cst_389 : f32 to vector<16x16xf32>
    %1130 = arith.cmpf oge, %1107, %1129 : vector<16x16xf32>
    %1131 = arith.extui %1130 : vector<16x16xi1> to vector<16x16xi32>
    %1132 = arith.sitofp %1131 : vector<16x16xi32> to vector<16x16xf32>
    %cst_390 = arith.constant -6.000000e-01 : f32
    %1133 = vector.broadcast %cst_390 : f32 to vector<16x16xf32>
    %1134 = arith.cmpf oge, %1107, %1133 : vector<16x16xf32>
    %1135 = arith.extui %1134 : vector<16x16xi1> to vector<16x16xi32>
    %1136 = arith.sitofp %1135 : vector<16x16xi32> to vector<16x16xf32>
    %cst_391 = arith.constant -2.000000e-01 : f32
    %1137 = vector.broadcast %cst_391 : f32 to vector<16x16xf32>
    %1138 = arith.cmpf oge, %1107, %1137 : vector<16x16xf32>
    %1139 = arith.extui %1138 : vector<16x16xi1> to vector<16x16xi32>
    %1140 = arith.sitofp %1139 : vector<16x16xi32> to vector<16x16xf32>
    %cst_392 = arith.constant 2.000000e-01 : f32
    %1141 = vector.broadcast %cst_392 : f32 to vector<16x16xf32>
    %1142 = arith.cmpf oge, %1107, %1141 : vector<16x16xf32>
    %1143 = arith.extui %1142 : vector<16x16xi1> to vector<16x16xi32>
    %1144 = arith.sitofp %1143 : vector<16x16xi32> to vector<16x16xf32>
    %cst_393 = arith.constant 6.000000e-01 : f32
    %1145 = vector.broadcast %cst_393 : f32 to vector<16x16xf32>
    %1146 = arith.cmpf oge, %1107, %1145 : vector<16x16xf32>
    %1147 = arith.extui %1146 : vector<16x16xi1> to vector<16x16xi32>
    %1148 = arith.sitofp %1147 : vector<16x16xi32> to vector<16x16xf32>
    %cst_394 = arith.constant 1.000000e+00 : f32
    %1149 = vector.broadcast %cst_394 : f32 to vector<16x16xf32>
    %1150 = arith.cmpf oge, %1107, %1149 : vector<16x16xf32>
    %1151 = arith.extui %1150 : vector<16x16xi1> to vector<16x16xi32>
    %1152 = arith.sitofp %1151 : vector<16x16xi32> to vector<16x16xf32>
    %cst_395 = arith.constant 1.400000e+00 : f32
    %1153 = vector.broadcast %cst_395 : f32 to vector<16x16xf32>
    %1154 = arith.cmpf oge, %1107, %1153 : vector<16x16xf32>
    %1155 = arith.extui %1154 : vector<16x16xi1> to vector<16x16xi32>
    %1156 = arith.sitofp %1155 : vector<16x16xi32> to vector<16x16xf32>
    %cst_396 = arith.constant 1.800000e+00 : f32
    %1157 = vector.broadcast %cst_396 : f32 to vector<16x16xf32>
    %1158 = arith.cmpf oge, %1107, %1157 : vector<16x16xf32>
    %1159 = arith.extui %1158 : vector<16x16xi1> to vector<16x16xi32>
    %1160 = arith.sitofp %1159 : vector<16x16xi32> to vector<16x16xf32>
    %cst_397 = arith.constant 2.200000e+00 : f32
    %1161 = vector.broadcast %cst_397 : f32 to vector<16x16xf32>
    %1162 = arith.cmpf oge, %1107, %1161 : vector<16x16xf32>
    %1163 = arith.extui %1162 : vector<16x16xi1> to vector<16x16xi32>
    %1164 = arith.sitofp %1163 : vector<16x16xi32> to vector<16x16xf32>
    %1165 = arith.subf %1120, %1124 : vector<16x16xf32>
    %1166 = arith.subf %1124, %1128 : vector<16x16xf32>
    %1167 = arith.subf %1128, %1132 : vector<16x16xf32>
    %1168 = arith.subf %1132, %1136 : vector<16x16xf32>
    %1169 = arith.subf %1136, %1140 : vector<16x16xf32>
    %1170 = arith.subf %1140, %1144 : vector<16x16xf32>
    %1171 = arith.subf %1144, %1148 : vector<16x16xf32>
    %1172 = arith.subf %1148, %1152 : vector<16x16xf32>
    %1173 = arith.subf %1152, %1156 : vector<16x16xf32>
    %1174 = arith.subf %1156, %1160 : vector<16x16xf32>
    %1175 = arith.subf %1160, %1164 : vector<16x16xf32>
    %cst_398 = arith.constant -2.200000e+00 : f32
    %1176 = vector.broadcast %cst_398 : f32 to vector<16x16xf32>
    %1177 = arith.subf %1107, %1176 : vector<16x16xf32>
    %cst_399 = arith.constant 2.500000e+00 : f32
    %1178 = vector.broadcast %cst_399 : f32 to vector<16x16xf32>
    %1179 = arith.mulf %1177, %1178 : vector<16x16xf32>
    %1180 = arith.mulf %1179, %1165 : vector<16x16xf32>
    %cst_400 = arith.constant -1.400000e+00 : f32
    %1181 = vector.broadcast %cst_400 : f32 to vector<16x16xf32>
    %1182 = arith.subf %1181, %1107 : vector<16x16xf32>
    %cst_401 = arith.constant 2.500000e+00 : f32
    %1183 = vector.broadcast %cst_401 : f32 to vector<16x16xf32>
    %1184 = arith.mulf %1182, %1183 : vector<16x16xf32>
    %1185 = arith.mulf %1184, %1166 : vector<16x16xf32>
    %1186 = arith.addf %1180, %1185 : vector<16x16xf32>
    %cst_402 = arith.constant -1.800000e+00 : f32
    %1187 = vector.broadcast %cst_402 : f32 to vector<16x16xf32>
    %1188 = arith.subf %1107, %1187 : vector<16x16xf32>
    %cst_403 = arith.constant 2.500000e+00 : f32
    %1189 = vector.broadcast %cst_403 : f32 to vector<16x16xf32>
    %1190 = arith.mulf %1188, %1189 : vector<16x16xf32>
    %1191 = arith.mulf %1190, %1166 : vector<16x16xf32>
    %cst_404 = arith.constant -1.000000e+00 : f32
    %1192 = vector.broadcast %cst_404 : f32 to vector<16x16xf32>
    %1193 = arith.subf %1192, %1107 : vector<16x16xf32>
    %cst_405 = arith.constant 2.500000e+00 : f32
    %1194 = vector.broadcast %cst_405 : f32 to vector<16x16xf32>
    %1195 = arith.mulf %1193, %1194 : vector<16x16xf32>
    %1196 = arith.mulf %1195, %1167 : vector<16x16xf32>
    %1197 = arith.addf %1191, %1196 : vector<16x16xf32>
    %cst_406 = arith.constant -1.400000e+00 : f32
    %1198 = vector.broadcast %cst_406 : f32 to vector<16x16xf32>
    %1199 = arith.subf %1107, %1198 : vector<16x16xf32>
    %cst_407 = arith.constant 2.500000e+00 : f32
    %1200 = vector.broadcast %cst_407 : f32 to vector<16x16xf32>
    %1201 = arith.mulf %1199, %1200 : vector<16x16xf32>
    %1202 = arith.mulf %1201, %1167 : vector<16x16xf32>
    %cst_408 = arith.constant -6.000000e-01 : f32
    %1203 = vector.broadcast %cst_408 : f32 to vector<16x16xf32>
    %1204 = arith.subf %1203, %1107 : vector<16x16xf32>
    %cst_409 = arith.constant 2.500000e+00 : f32
    %1205 = vector.broadcast %cst_409 : f32 to vector<16x16xf32>
    %1206 = arith.mulf %1204, %1205 : vector<16x16xf32>
    %1207 = arith.mulf %1206, %1168 : vector<16x16xf32>
    %1208 = arith.addf %1202, %1207 : vector<16x16xf32>
    %cst_410 = arith.constant -1.000000e+00 : f32
    %1209 = vector.broadcast %cst_410 : f32 to vector<16x16xf32>
    %1210 = arith.subf %1107, %1209 : vector<16x16xf32>
    %cst_411 = arith.constant 2.500000e+00 : f32
    %1211 = vector.broadcast %cst_411 : f32 to vector<16x16xf32>
    %1212 = arith.mulf %1210, %1211 : vector<16x16xf32>
    %1213 = arith.mulf %1212, %1168 : vector<16x16xf32>
    %cst_412 = arith.constant -2.000000e-01 : f32
    %1214 = vector.broadcast %cst_412 : f32 to vector<16x16xf32>
    %1215 = arith.subf %1214, %1107 : vector<16x16xf32>
    %cst_413 = arith.constant 2.500000e+00 : f32
    %1216 = vector.broadcast %cst_413 : f32 to vector<16x16xf32>
    %1217 = arith.mulf %1215, %1216 : vector<16x16xf32>
    %1218 = arith.mulf %1217, %1169 : vector<16x16xf32>
    %1219 = arith.addf %1213, %1218 : vector<16x16xf32>
    %cst_414 = arith.constant -6.000000e-01 : f32
    %1220 = vector.broadcast %cst_414 : f32 to vector<16x16xf32>
    %1221 = arith.subf %1107, %1220 : vector<16x16xf32>
    %cst_415 = arith.constant 2.500000e+00 : f32
    %1222 = vector.broadcast %cst_415 : f32 to vector<16x16xf32>
    %1223 = arith.mulf %1221, %1222 : vector<16x16xf32>
    %1224 = arith.mulf %1223, %1169 : vector<16x16xf32>
    %cst_416 = arith.constant 2.000000e-01 : f32
    %1225 = vector.broadcast %cst_416 : f32 to vector<16x16xf32>
    %1226 = arith.subf %1225, %1107 : vector<16x16xf32>
    %cst_417 = arith.constant 2.500000e+00 : f32
    %1227 = vector.broadcast %cst_417 : f32 to vector<16x16xf32>
    %1228 = arith.mulf %1226, %1227 : vector<16x16xf32>
    %1229 = arith.mulf %1228, %1170 : vector<16x16xf32>
    %1230 = arith.addf %1224, %1229 : vector<16x16xf32>
    %cst_418 = arith.constant -2.000000e-01 : f32
    %1231 = vector.broadcast %cst_418 : f32 to vector<16x16xf32>
    %1232 = arith.subf %1107, %1231 : vector<16x16xf32>
    %cst_419 = arith.constant 2.500000e+00 : f32
    %1233 = vector.broadcast %cst_419 : f32 to vector<16x16xf32>
    %1234 = arith.mulf %1232, %1233 : vector<16x16xf32>
    %1235 = arith.mulf %1234, %1170 : vector<16x16xf32>
    %cst_420 = arith.constant 6.000000e-01 : f32
    %1236 = vector.broadcast %cst_420 : f32 to vector<16x16xf32>
    %1237 = arith.subf %1236, %1107 : vector<16x16xf32>
    %cst_421 = arith.constant 2.500000e+00 : f32
    %1238 = vector.broadcast %cst_421 : f32 to vector<16x16xf32>
    %1239 = arith.mulf %1237, %1238 : vector<16x16xf32>
    %1240 = arith.mulf %1239, %1171 : vector<16x16xf32>
    %1241 = arith.addf %1235, %1240 : vector<16x16xf32>
    %cst_422 = arith.constant 2.000000e-01 : f32
    %1242 = vector.broadcast %cst_422 : f32 to vector<16x16xf32>
    %1243 = arith.subf %1107, %1242 : vector<16x16xf32>
    %cst_423 = arith.constant 2.500000e+00 : f32
    %1244 = vector.broadcast %cst_423 : f32 to vector<16x16xf32>
    %1245 = arith.mulf %1243, %1244 : vector<16x16xf32>
    %1246 = arith.mulf %1245, %1171 : vector<16x16xf32>
    %cst_424 = arith.constant 1.000000e+00 : f32
    %1247 = vector.broadcast %cst_424 : f32 to vector<16x16xf32>
    %1248 = arith.subf %1247, %1107 : vector<16x16xf32>
    %cst_425 = arith.constant 2.500000e+00 : f32
    %1249 = vector.broadcast %cst_425 : f32 to vector<16x16xf32>
    %1250 = arith.mulf %1248, %1249 : vector<16x16xf32>
    %1251 = arith.mulf %1250, %1172 : vector<16x16xf32>
    %1252 = arith.addf %1246, %1251 : vector<16x16xf32>
    %cst_426 = arith.constant 6.000000e-01 : f32
    %1253 = vector.broadcast %cst_426 : f32 to vector<16x16xf32>
    %1254 = arith.subf %1107, %1253 : vector<16x16xf32>
    %cst_427 = arith.constant 2.500000e+00 : f32
    %1255 = vector.broadcast %cst_427 : f32 to vector<16x16xf32>
    %1256 = arith.mulf %1254, %1255 : vector<16x16xf32>
    %1257 = arith.mulf %1256, %1172 : vector<16x16xf32>
    %cst_428 = arith.constant 1.400000e+00 : f32
    %1258 = vector.broadcast %cst_428 : f32 to vector<16x16xf32>
    %1259 = arith.subf %1258, %1107 : vector<16x16xf32>
    %cst_429 = arith.constant 2.500000e+00 : f32
    %1260 = vector.broadcast %cst_429 : f32 to vector<16x16xf32>
    %1261 = arith.mulf %1259, %1260 : vector<16x16xf32>
    %1262 = arith.mulf %1261, %1173 : vector<16x16xf32>
    %1263 = arith.addf %1257, %1262 : vector<16x16xf32>
    %cst_430 = arith.constant 1.000000e+00 : f32
    %1264 = vector.broadcast %cst_430 : f32 to vector<16x16xf32>
    %1265 = arith.subf %1107, %1264 : vector<16x16xf32>
    %cst_431 = arith.constant 2.500000e+00 : f32
    %1266 = vector.broadcast %cst_431 : f32 to vector<16x16xf32>
    %1267 = arith.mulf %1265, %1266 : vector<16x16xf32>
    %1268 = arith.mulf %1267, %1173 : vector<16x16xf32>
    %cst_432 = arith.constant 1.800000e+00 : f32
    %1269 = vector.broadcast %cst_432 : f32 to vector<16x16xf32>
    %1270 = arith.subf %1269, %1107 : vector<16x16xf32>
    %cst_433 = arith.constant 2.500000e+00 : f32
    %1271 = vector.broadcast %cst_433 : f32 to vector<16x16xf32>
    %1272 = arith.mulf %1270, %1271 : vector<16x16xf32>
    %1273 = arith.mulf %1272, %1174 : vector<16x16xf32>
    %1274 = arith.addf %1268, %1273 : vector<16x16xf32>
    %cst_434 = arith.constant 1.400000e+00 : f32
    %1275 = vector.broadcast %cst_434 : f32 to vector<16x16xf32>
    %1276 = arith.subf %1107, %1275 : vector<16x16xf32>
    %cst_435 = arith.constant 2.500000e+00 : f32
    %1277 = vector.broadcast %cst_435 : f32 to vector<16x16xf32>
    %1278 = arith.mulf %1276, %1277 : vector<16x16xf32>
    %1279 = arith.mulf %1278, %1174 : vector<16x16xf32>
    %cst_436 = arith.constant 2.200000e+00 : f32
    %1280 = vector.broadcast %cst_436 : f32 to vector<16x16xf32>
    %1281 = arith.subf %1280, %1107 : vector<16x16xf32>
    %cst_437 = arith.constant 2.500000e+00 : f32
    %1282 = vector.broadcast %cst_437 : f32 to vector<16x16xf32>
    %1283 = arith.mulf %1281, %1282 : vector<16x16xf32>
    %1284 = arith.mulf %1283, %1175 : vector<16x16xf32>
    %1285 = arith.addf %1279, %1284 : vector<16x16xf32>
    %cst_438 = arith.constant -2.200000e+00 : f32
    %1286 = vector.broadcast %cst_438 : f32 to vector<16x16xf32>
    %1287 = arith.subf %1107, %1286 : vector<16x16xf32>
    %cst_439 = arith.constant 1.250000e+00 : f32
    %1288 = vector.broadcast %cst_439 : f32 to vector<16x16xf32>
    %1289 = arith.mulf %1287, %1288 : vector<16x16xf32>
    %1290 = arith.mulf %1289, %1186 : vector<16x16xf32>
    %cst_440 = arith.constant -1.000000e+00 : f32
    %1291 = vector.broadcast %cst_440 : f32 to vector<16x16xf32>
    %1292 = arith.subf %1291, %1107 : vector<16x16xf32>
    %cst_441 = arith.constant 1.250000e+00 : f32
    %1293 = vector.broadcast %cst_441 : f32 to vector<16x16xf32>
    %1294 = arith.mulf %1292, %1293 : vector<16x16xf32>
    %1295 = arith.mulf %1294, %1197 : vector<16x16xf32>
    %1296 = arith.addf %1290, %1295 : vector<16x16xf32>
    %cst_442 = arith.constant -1.800000e+00 : f32
    %1297 = vector.broadcast %cst_442 : f32 to vector<16x16xf32>
    %1298 = arith.subf %1107, %1297 : vector<16x16xf32>
    %cst_443 = arith.constant 1.250000e+00 : f32
    %1299 = vector.broadcast %cst_443 : f32 to vector<16x16xf32>
    %1300 = arith.mulf %1298, %1299 : vector<16x16xf32>
    %1301 = arith.mulf %1300, %1197 : vector<16x16xf32>
    %cst_444 = arith.constant -6.000000e-01 : f32
    %1302 = vector.broadcast %cst_444 : f32 to vector<16x16xf32>
    %1303 = arith.subf %1302, %1107 : vector<16x16xf32>
    %cst_445 = arith.constant 1.250000e+00 : f32
    %1304 = vector.broadcast %cst_445 : f32 to vector<16x16xf32>
    %1305 = arith.mulf %1303, %1304 : vector<16x16xf32>
    %1306 = arith.mulf %1305, %1208 : vector<16x16xf32>
    %1307 = arith.addf %1301, %1306 : vector<16x16xf32>
    %cst_446 = arith.constant -1.400000e+00 : f32
    %1308 = vector.broadcast %cst_446 : f32 to vector<16x16xf32>
    %1309 = arith.subf %1107, %1308 : vector<16x16xf32>
    %cst_447 = arith.constant 1.250000e+00 : f32
    %1310 = vector.broadcast %cst_447 : f32 to vector<16x16xf32>
    %1311 = arith.mulf %1309, %1310 : vector<16x16xf32>
    %1312 = arith.mulf %1311, %1208 : vector<16x16xf32>
    %cst_448 = arith.constant -2.000000e-01 : f32
    %1313 = vector.broadcast %cst_448 : f32 to vector<16x16xf32>
    %1314 = arith.subf %1313, %1107 : vector<16x16xf32>
    %cst_449 = arith.constant 1.250000e+00 : f32
    %1315 = vector.broadcast %cst_449 : f32 to vector<16x16xf32>
    %1316 = arith.mulf %1314, %1315 : vector<16x16xf32>
    %1317 = arith.mulf %1316, %1219 : vector<16x16xf32>
    %1318 = arith.addf %1312, %1317 : vector<16x16xf32>
    %cst_450 = arith.constant -1.000000e+00 : f32
    %1319 = vector.broadcast %cst_450 : f32 to vector<16x16xf32>
    %1320 = arith.subf %1107, %1319 : vector<16x16xf32>
    %cst_451 = arith.constant 1.250000e+00 : f32
    %1321 = vector.broadcast %cst_451 : f32 to vector<16x16xf32>
    %1322 = arith.mulf %1320, %1321 : vector<16x16xf32>
    %1323 = arith.mulf %1322, %1219 : vector<16x16xf32>
    %cst_452 = arith.constant 2.000000e-01 : f32
    %1324 = vector.broadcast %cst_452 : f32 to vector<16x16xf32>
    %1325 = arith.subf %1324, %1107 : vector<16x16xf32>
    %cst_453 = arith.constant 1.250000e+00 : f32
    %1326 = vector.broadcast %cst_453 : f32 to vector<16x16xf32>
    %1327 = arith.mulf %1325, %1326 : vector<16x16xf32>
    %1328 = arith.mulf %1327, %1230 : vector<16x16xf32>
    %1329 = arith.addf %1323, %1328 : vector<16x16xf32>
    %cst_454 = arith.constant -6.000000e-01 : f32
    %1330 = vector.broadcast %cst_454 : f32 to vector<16x16xf32>
    %1331 = arith.subf %1107, %1330 : vector<16x16xf32>
    %cst_455 = arith.constant 1.250000e+00 : f32
    %1332 = vector.broadcast %cst_455 : f32 to vector<16x16xf32>
    %1333 = arith.mulf %1331, %1332 : vector<16x16xf32>
    %1334 = arith.mulf %1333, %1230 : vector<16x16xf32>
    %cst_456 = arith.constant 6.000000e-01 : f32
    %1335 = vector.broadcast %cst_456 : f32 to vector<16x16xf32>
    %1336 = arith.subf %1335, %1107 : vector<16x16xf32>
    %cst_457 = arith.constant 1.250000e+00 : f32
    %1337 = vector.broadcast %cst_457 : f32 to vector<16x16xf32>
    %1338 = arith.mulf %1336, %1337 : vector<16x16xf32>
    %1339 = arith.mulf %1338, %1241 : vector<16x16xf32>
    %1340 = arith.addf %1334, %1339 : vector<16x16xf32>
    %cst_458 = arith.constant -2.000000e-01 : f32
    %1341 = vector.broadcast %cst_458 : f32 to vector<16x16xf32>
    %1342 = arith.subf %1107, %1341 : vector<16x16xf32>
    %cst_459 = arith.constant 1.250000e+00 : f32
    %1343 = vector.broadcast %cst_459 : f32 to vector<16x16xf32>
    %1344 = arith.mulf %1342, %1343 : vector<16x16xf32>
    %1345 = arith.mulf %1344, %1241 : vector<16x16xf32>
    %cst_460 = arith.constant 1.000000e+00 : f32
    %1346 = vector.broadcast %cst_460 : f32 to vector<16x16xf32>
    %1347 = arith.subf %1346, %1107 : vector<16x16xf32>
    %cst_461 = arith.constant 1.250000e+00 : f32
    %1348 = vector.broadcast %cst_461 : f32 to vector<16x16xf32>
    %1349 = arith.mulf %1347, %1348 : vector<16x16xf32>
    %1350 = arith.mulf %1349, %1252 : vector<16x16xf32>
    %1351 = arith.addf %1345, %1350 : vector<16x16xf32>
    %cst_462 = arith.constant 2.000000e-01 : f32
    %1352 = vector.broadcast %cst_462 : f32 to vector<16x16xf32>
    %1353 = arith.subf %1107, %1352 : vector<16x16xf32>
    %cst_463 = arith.constant 1.250000e+00 : f32
    %1354 = vector.broadcast %cst_463 : f32 to vector<16x16xf32>
    %1355 = arith.mulf %1353, %1354 : vector<16x16xf32>
    %1356 = arith.mulf %1355, %1252 : vector<16x16xf32>
    %cst_464 = arith.constant 1.400000e+00 : f32
    %1357 = vector.broadcast %cst_464 : f32 to vector<16x16xf32>
    %1358 = arith.subf %1357, %1107 : vector<16x16xf32>
    %cst_465 = arith.constant 1.250000e+00 : f32
    %1359 = vector.broadcast %cst_465 : f32 to vector<16x16xf32>
    %1360 = arith.mulf %1358, %1359 : vector<16x16xf32>
    %1361 = arith.mulf %1360, %1263 : vector<16x16xf32>
    %1362 = arith.addf %1356, %1361 : vector<16x16xf32>
    %cst_466 = arith.constant 6.000000e-01 : f32
    %1363 = vector.broadcast %cst_466 : f32 to vector<16x16xf32>
    %1364 = arith.subf %1107, %1363 : vector<16x16xf32>
    %cst_467 = arith.constant 1.250000e+00 : f32
    %1365 = vector.broadcast %cst_467 : f32 to vector<16x16xf32>
    %1366 = arith.mulf %1364, %1365 : vector<16x16xf32>
    %1367 = arith.mulf %1366, %1263 : vector<16x16xf32>
    %cst_468 = arith.constant 1.800000e+00 : f32
    %1368 = vector.broadcast %cst_468 : f32 to vector<16x16xf32>
    %1369 = arith.subf %1368, %1107 : vector<16x16xf32>
    %cst_469 = arith.constant 1.250000e+00 : f32
    %1370 = vector.broadcast %cst_469 : f32 to vector<16x16xf32>
    %1371 = arith.mulf %1369, %1370 : vector<16x16xf32>
    %1372 = arith.mulf %1371, %1274 : vector<16x16xf32>
    %1373 = arith.addf %1367, %1372 : vector<16x16xf32>
    %cst_470 = arith.constant 1.000000e+00 : f32
    %1374 = vector.broadcast %cst_470 : f32 to vector<16x16xf32>
    %1375 = arith.subf %1107, %1374 : vector<16x16xf32>
    %cst_471 = arith.constant 1.250000e+00 : f32
    %1376 = vector.broadcast %cst_471 : f32 to vector<16x16xf32>
    %1377 = arith.mulf %1375, %1376 : vector<16x16xf32>
    %1378 = arith.mulf %1377, %1274 : vector<16x16xf32>
    %cst_472 = arith.constant 2.200000e+00 : f32
    %1379 = vector.broadcast %cst_472 : f32 to vector<16x16xf32>
    %1380 = arith.subf %1379, %1107 : vector<16x16xf32>
    %cst_473 = arith.constant 1.250000e+00 : f32
    %1381 = vector.broadcast %cst_473 : f32 to vector<16x16xf32>
    %1382 = arith.mulf %1380, %1381 : vector<16x16xf32>
    %1383 = arith.mulf %1382, %1285 : vector<16x16xf32>
    %1384 = arith.addf %1378, %1383 : vector<16x16xf32>
    %cst_474 = arith.constant -2.200000e+00 : f32
    %1385 = vector.broadcast %cst_474 : f32 to vector<16x16xf32>
    %1386 = arith.subf %1107, %1385 : vector<16x16xf32>
    %cst_475 = arith.constant 0.833333313 : f32
    %1387 = vector.broadcast %cst_475 : f32 to vector<16x16xf32>
    %1388 = arith.mulf %1386, %1387 : vector<16x16xf32>
    %1389 = arith.mulf %1388, %1296 : vector<16x16xf32>
    %cst_476 = arith.constant -6.000000e-01 : f32
    %1390 = vector.broadcast %cst_476 : f32 to vector<16x16xf32>
    %1391 = arith.subf %1390, %1107 : vector<16x16xf32>
    %cst_477 = arith.constant 0.833333313 : f32
    %1392 = vector.broadcast %cst_477 : f32 to vector<16x16xf32>
    %1393 = arith.mulf %1391, %1392 : vector<16x16xf32>
    %1394 = arith.mulf %1393, %1307 : vector<16x16xf32>
    %1395 = arith.addf %1389, %1394 : vector<16x16xf32>
    %cst_478 = arith.constant -1.800000e+00 : f32
    %1396 = vector.broadcast %cst_478 : f32 to vector<16x16xf32>
    %1397 = arith.subf %1107, %1396 : vector<16x16xf32>
    %cst_479 = arith.constant 0.833333313 : f32
    %1398 = vector.broadcast %cst_479 : f32 to vector<16x16xf32>
    %1399 = arith.mulf %1397, %1398 : vector<16x16xf32>
    %1400 = arith.mulf %1399, %1307 : vector<16x16xf32>
    %cst_480 = arith.constant -2.000000e-01 : f32
    %1401 = vector.broadcast %cst_480 : f32 to vector<16x16xf32>
    %1402 = arith.subf %1401, %1107 : vector<16x16xf32>
    %cst_481 = arith.constant 0.833333313 : f32
    %1403 = vector.broadcast %cst_481 : f32 to vector<16x16xf32>
    %1404 = arith.mulf %1402, %1403 : vector<16x16xf32>
    %1405 = arith.mulf %1404, %1318 : vector<16x16xf32>
    %1406 = arith.addf %1400, %1405 : vector<16x16xf32>
    %cst_482 = arith.constant -1.400000e+00 : f32
    %1407 = vector.broadcast %cst_482 : f32 to vector<16x16xf32>
    %1408 = arith.subf %1107, %1407 : vector<16x16xf32>
    %cst_483 = arith.constant 0.833333313 : f32
    %1409 = vector.broadcast %cst_483 : f32 to vector<16x16xf32>
    %1410 = arith.mulf %1408, %1409 : vector<16x16xf32>
    %1411 = arith.mulf %1410, %1318 : vector<16x16xf32>
    %cst_484 = arith.constant 2.000000e-01 : f32
    %1412 = vector.broadcast %cst_484 : f32 to vector<16x16xf32>
    %1413 = arith.subf %1412, %1107 : vector<16x16xf32>
    %cst_485 = arith.constant 0.833333313 : f32
    %1414 = vector.broadcast %cst_485 : f32 to vector<16x16xf32>
    %1415 = arith.mulf %1413, %1414 : vector<16x16xf32>
    %1416 = arith.mulf %1415, %1329 : vector<16x16xf32>
    %1417 = arith.addf %1411, %1416 : vector<16x16xf32>
    %cst_486 = arith.constant -1.000000e+00 : f32
    %1418 = vector.broadcast %cst_486 : f32 to vector<16x16xf32>
    %1419 = arith.subf %1107, %1418 : vector<16x16xf32>
    %cst_487 = arith.constant 0.833333313 : f32
    %1420 = vector.broadcast %cst_487 : f32 to vector<16x16xf32>
    %1421 = arith.mulf %1419, %1420 : vector<16x16xf32>
    %1422 = arith.mulf %1421, %1329 : vector<16x16xf32>
    %cst_488 = arith.constant 6.000000e-01 : f32
    %1423 = vector.broadcast %cst_488 : f32 to vector<16x16xf32>
    %1424 = arith.subf %1423, %1107 : vector<16x16xf32>
    %cst_489 = arith.constant 0.833333313 : f32
    %1425 = vector.broadcast %cst_489 : f32 to vector<16x16xf32>
    %1426 = arith.mulf %1424, %1425 : vector<16x16xf32>
    %1427 = arith.mulf %1426, %1340 : vector<16x16xf32>
    %1428 = arith.addf %1422, %1427 : vector<16x16xf32>
    %cst_490 = arith.constant -6.000000e-01 : f32
    %1429 = vector.broadcast %cst_490 : f32 to vector<16x16xf32>
    %1430 = arith.subf %1107, %1429 : vector<16x16xf32>
    %cst_491 = arith.constant 0.833333313 : f32
    %1431 = vector.broadcast %cst_491 : f32 to vector<16x16xf32>
    %1432 = arith.mulf %1430, %1431 : vector<16x16xf32>
    %1433 = arith.mulf %1432, %1340 : vector<16x16xf32>
    %cst_492 = arith.constant 1.000000e+00 : f32
    %1434 = vector.broadcast %cst_492 : f32 to vector<16x16xf32>
    %1435 = arith.subf %1434, %1107 : vector<16x16xf32>
    %cst_493 = arith.constant 0.833333313 : f32
    %1436 = vector.broadcast %cst_493 : f32 to vector<16x16xf32>
    %1437 = arith.mulf %1435, %1436 : vector<16x16xf32>
    %1438 = arith.mulf %1437, %1351 : vector<16x16xf32>
    %1439 = arith.addf %1433, %1438 : vector<16x16xf32>
    %cst_494 = arith.constant -2.000000e-01 : f32
    %1440 = vector.broadcast %cst_494 : f32 to vector<16x16xf32>
    %1441 = arith.subf %1107, %1440 : vector<16x16xf32>
    %cst_495 = arith.constant 0.833333313 : f32
    %1442 = vector.broadcast %cst_495 : f32 to vector<16x16xf32>
    %1443 = arith.mulf %1441, %1442 : vector<16x16xf32>
    %1444 = arith.mulf %1443, %1351 : vector<16x16xf32>
    %cst_496 = arith.constant 1.400000e+00 : f32
    %1445 = vector.broadcast %cst_496 : f32 to vector<16x16xf32>
    %1446 = arith.subf %1445, %1107 : vector<16x16xf32>
    %cst_497 = arith.constant 0.833333313 : f32
    %1447 = vector.broadcast %cst_497 : f32 to vector<16x16xf32>
    %1448 = arith.mulf %1446, %1447 : vector<16x16xf32>
    %1449 = arith.mulf %1448, %1362 : vector<16x16xf32>
    %1450 = arith.addf %1444, %1449 : vector<16x16xf32>
    %cst_498 = arith.constant 2.000000e-01 : f32
    %1451 = vector.broadcast %cst_498 : f32 to vector<16x16xf32>
    %1452 = arith.subf %1107, %1451 : vector<16x16xf32>
    %cst_499 = arith.constant 0.833333313 : f32
    %1453 = vector.broadcast %cst_499 : f32 to vector<16x16xf32>
    %1454 = arith.mulf %1452, %1453 : vector<16x16xf32>
    %1455 = arith.mulf %1454, %1362 : vector<16x16xf32>
    %cst_500 = arith.constant 1.800000e+00 : f32
    %1456 = vector.broadcast %cst_500 : f32 to vector<16x16xf32>
    %1457 = arith.subf %1456, %1107 : vector<16x16xf32>
    %cst_501 = arith.constant 0.833333313 : f32
    %1458 = vector.broadcast %cst_501 : f32 to vector<16x16xf32>
    %1459 = arith.mulf %1457, %1458 : vector<16x16xf32>
    %1460 = arith.mulf %1459, %1373 : vector<16x16xf32>
    %1461 = arith.addf %1455, %1460 : vector<16x16xf32>
    %cst_502 = arith.constant 6.000000e-01 : f32
    %1462 = vector.broadcast %cst_502 : f32 to vector<16x16xf32>
    %1463 = arith.subf %1107, %1462 : vector<16x16xf32>
    %cst_503 = arith.constant 0.833333313 : f32
    %1464 = vector.broadcast %cst_503 : f32 to vector<16x16xf32>
    %1465 = arith.mulf %1463, %1464 : vector<16x16xf32>
    %1466 = arith.mulf %1465, %1373 : vector<16x16xf32>
    %cst_504 = arith.constant 2.200000e+00 : f32
    %1467 = vector.broadcast %cst_504 : f32 to vector<16x16xf32>
    %1468 = arith.subf %1467, %1107 : vector<16x16xf32>
    %cst_505 = arith.constant 0.833333313 : f32
    %1469 = vector.broadcast %cst_505 : f32 to vector<16x16xf32>
    %1470 = arith.mulf %1468, %1469 : vector<16x16xf32>
    %1471 = arith.mulf %1470, %1384 : vector<16x16xf32>
    %1472 = arith.addf %1466, %1471 : vector<16x16xf32>
    %1473 = tpu.concatenate %1116, %1395, %1406, %1417, %1428, %1439, %1450, %1461, %1472 in 0 : vector<16x16xf32>, vector<16x16xf32>, vector<16x16xf32>, vector<16x16xf32>, vector<16x16xf32>, vector<16x16xf32>, vector<16x16xf32>, vector<16x16xf32>, vector<16x16xf32> -> vector<144x16xf32>
    %cst_506 = arith.constant dense<0.000000e+00> : vector<16x16xf32>
    %1474 = tpu.matmul %1108, %1473, %cst_506 {dimension_numbers = #tpu.dot_dimension_numbers<[1], [0], [0], [1], [0, 0, 1, 1], [], []>} : vector<16x144xf32>, vector<144x16xf32>, vector<16x16xf32> -> vector<16x16xf32>
    %cst_507 = arith.constant 0.000000e+00 : f32
    %1475 = vector.broadcast %cst_507 : f32 to vector<16x16xf32>
    %1476 = arith.maximumf %1474, %1475 : vector<16x16xf32>
    %c0_508 = arith.constant 0 : index
    %c0_509 = arith.constant 0 : index
    %1477 = vector.load %arg6[%c0_508, %c0_509] : memref<16x144xf32, #tpu.memory_space<vmem>>, vector<16x144xf32>
    %cst_510 = arith.constant 5.000000e-01 : f32
    %1478 = vector.broadcast %cst_510 : f32 to vector<16x16xf32>
    %1479 = arith.mulf %1478, %1476 : vector<16x16xf32>
    %1480 = math.tanh %1479 : vector<16x16xf32>
    %cst_511 = arith.constant 1.000000e+00 : f32
    %1481 = vector.broadcast %cst_511 : f32 to vector<16x16xf32>
    %1482 = arith.addf %1480, %1481 : vector<16x16xf32>
    %cst_512 = arith.constant 5.000000e-01 : f32
    %1483 = vector.broadcast %cst_512 : f32 to vector<16x16xf32>
    %1484 = arith.mulf %1483, %1482 : vector<16x16xf32>
    %1485 = arith.mulf %1476, %1484 : vector<16x16xf32>
    %cst_513 = arith.constant -2.200000e+00 : f32
    %1486 = vector.broadcast %cst_513 : f32 to vector<16x16xf32>
    %1487 = arith.cmpf oge, %1476, %1486 : vector<16x16xf32>
    %1488 = arith.extui %1487 : vector<16x16xi1> to vector<16x16xi32>
    %1489 = arith.sitofp %1488 : vector<16x16xi32> to vector<16x16xf32>
    %cst_514 = arith.constant -1.800000e+00 : f32
    %1490 = vector.broadcast %cst_514 : f32 to vector<16x16xf32>
    %1491 = arith.cmpf oge, %1476, %1490 : vector<16x16xf32>
    %1492 = arith.extui %1491 : vector<16x16xi1> to vector<16x16xi32>
    %1493 = arith.sitofp %1492 : vector<16x16xi32> to vector<16x16xf32>
    %cst_515 = arith.constant -1.400000e+00 : f32
    %1494 = vector.broadcast %cst_515 : f32 to vector<16x16xf32>
    %1495 = arith.cmpf oge, %1476, %1494 : vector<16x16xf32>
    %1496 = arith.extui %1495 : vector<16x16xi1> to vector<16x16xi32>
    %1497 = arith.sitofp %1496 : vector<16x16xi32> to vector<16x16xf32>
    %cst_516 = arith.constant -1.000000e+00 : f32
    %1498 = vector.broadcast %cst_516 : f32 to vector<16x16xf32>
    %1499 = arith.cmpf oge, %1476, %1498 : vector<16x16xf32>
    %1500 = arith.extui %1499 : vector<16x16xi1> to vector<16x16xi32>
    %1501 = arith.sitofp %1500 : vector<16x16xi32> to vector<16x16xf32>
    %cst_517 = arith.constant -6.000000e-01 : f32
    %1502 = vector.broadcast %cst_517 : f32 to vector<16x16xf32>
    %1503 = arith.cmpf oge, %1476, %1502 : vector<16x16xf32>
    %1504 = arith.extui %1503 : vector<16x16xi1> to vector<16x16xi32>
    %1505 = arith.sitofp %1504 : vector<16x16xi32> to vector<16x16xf32>
    %cst_518 = arith.constant -2.000000e-01 : f32
    %1506 = vector.broadcast %cst_518 : f32 to vector<16x16xf32>
    %1507 = arith.cmpf oge, %1476, %1506 : vector<16x16xf32>
    %1508 = arith.extui %1507 : vector<16x16xi1> to vector<16x16xi32>
    %1509 = arith.sitofp %1508 : vector<16x16xi32> to vector<16x16xf32>
    %cst_519 = arith.constant 2.000000e-01 : f32
    %1510 = vector.broadcast %cst_519 : f32 to vector<16x16xf32>
    %1511 = arith.cmpf oge, %1476, %1510 : vector<16x16xf32>
    %1512 = arith.extui %1511 : vector<16x16xi1> to vector<16x16xi32>
    %1513 = arith.sitofp %1512 : vector<16x16xi32> to vector<16x16xf32>
    %cst_520 = arith.constant 6.000000e-01 : f32
    %1514 = vector.broadcast %cst_520 : f32 to vector<16x16xf32>
    %1515 = arith.cmpf oge, %1476, %1514 : vector<16x16xf32>
    %1516 = arith.extui %1515 : vector<16x16xi1> to vector<16x16xi32>
    %1517 = arith.sitofp %1516 : vector<16x16xi32> to vector<16x16xf32>
    %cst_521 = arith.constant 1.000000e+00 : f32
    %1518 = vector.broadcast %cst_521 : f32 to vector<16x16xf32>
    %1519 = arith.cmpf oge, %1476, %1518 : vector<16x16xf32>
    %1520 = arith.extui %1519 : vector<16x16xi1> to vector<16x16xi32>
    %1521 = arith.sitofp %1520 : vector<16x16xi32> to vector<16x16xf32>
    %cst_522 = arith.constant 1.400000e+00 : f32
    %1522 = vector.broadcast %cst_522 : f32 to vector<16x16xf32>
    %1523 = arith.cmpf oge, %1476, %1522 : vector<16x16xf32>
    %1524 = arith.extui %1523 : vector<16x16xi1> to vector<16x16xi32>
    %1525 = arith.sitofp %1524 : vector<16x16xi32> to vector<16x16xf32>
    %cst_523 = arith.constant 1.800000e+00 : f32
    %1526 = vector.broadcast %cst_523 : f32 to vector<16x16xf32>
    %1527 = arith.cmpf oge, %1476, %1526 : vector<16x16xf32>
    %1528 = arith.extui %1527 : vector<16x16xi1> to vector<16x16xi32>
    %1529 = arith.sitofp %1528 : vector<16x16xi32> to vector<16x16xf32>
    %cst_524 = arith.constant 2.200000e+00 : f32
    %1530 = vector.broadcast %cst_524 : f32 to vector<16x16xf32>
    %1531 = arith.cmpf oge, %1476, %1530 : vector<16x16xf32>
    %1532 = arith.extui %1531 : vector<16x16xi1> to vector<16x16xi32>
    %1533 = arith.sitofp %1532 : vector<16x16xi32> to vector<16x16xf32>
    %1534 = arith.subf %1489, %1493 : vector<16x16xf32>
    %1535 = arith.subf %1493, %1497 : vector<16x16xf32>
    %1536 = arith.subf %1497, %1501 : vector<16x16xf32>
    %1537 = arith.subf %1501, %1505 : vector<16x16xf32>
    %1538 = arith.subf %1505, %1509 : vector<16x16xf32>
    %1539 = arith.subf %1509, %1513 : vector<16x16xf32>
    %1540 = arith.subf %1513, %1517 : vector<16x16xf32>
    %1541 = arith.subf %1517, %1521 : vector<16x16xf32>
    %1542 = arith.subf %1521, %1525 : vector<16x16xf32>
    %1543 = arith.subf %1525, %1529 : vector<16x16xf32>
    %1544 = arith.subf %1529, %1533 : vector<16x16xf32>
    %cst_525 = arith.constant -2.200000e+00 : f32
    %1545 = vector.broadcast %cst_525 : f32 to vector<16x16xf32>
    %1546 = arith.subf %1476, %1545 : vector<16x16xf32>
    %cst_526 = arith.constant 2.500000e+00 : f32
    %1547 = vector.broadcast %cst_526 : f32 to vector<16x16xf32>
    %1548 = arith.mulf %1546, %1547 : vector<16x16xf32>
    %1549 = arith.mulf %1548, %1534 : vector<16x16xf32>
    %cst_527 = arith.constant -1.400000e+00 : f32
    %1550 = vector.broadcast %cst_527 : f32 to vector<16x16xf32>
    %1551 = arith.subf %1550, %1476 : vector<16x16xf32>
    %cst_528 = arith.constant 2.500000e+00 : f32
    %1552 = vector.broadcast %cst_528 : f32 to vector<16x16xf32>
    %1553 = arith.mulf %1551, %1552 : vector<16x16xf32>
    %1554 = arith.mulf %1553, %1535 : vector<16x16xf32>
    %1555 = arith.addf %1549, %1554 : vector<16x16xf32>
    %cst_529 = arith.constant -1.800000e+00 : f32
    %1556 = vector.broadcast %cst_529 : f32 to vector<16x16xf32>
    %1557 = arith.subf %1476, %1556 : vector<16x16xf32>
    %cst_530 = arith.constant 2.500000e+00 : f32
    %1558 = vector.broadcast %cst_530 : f32 to vector<16x16xf32>
    %1559 = arith.mulf %1557, %1558 : vector<16x16xf32>
    %1560 = arith.mulf %1559, %1535 : vector<16x16xf32>
    %cst_531 = arith.constant -1.000000e+00 : f32
    %1561 = vector.broadcast %cst_531 : f32 to vector<16x16xf32>
    %1562 = arith.subf %1561, %1476 : vector<16x16xf32>
    %cst_532 = arith.constant 2.500000e+00 : f32
    %1563 = vector.broadcast %cst_532 : f32 to vector<16x16xf32>
    %1564 = arith.mulf %1562, %1563 : vector<16x16xf32>
    %1565 = arith.mulf %1564, %1536 : vector<16x16xf32>
    %1566 = arith.addf %1560, %1565 : vector<16x16xf32>
    %cst_533 = arith.constant -1.400000e+00 : f32
    %1567 = vector.broadcast %cst_533 : f32 to vector<16x16xf32>
    %1568 = arith.subf %1476, %1567 : vector<16x16xf32>
    %cst_534 = arith.constant 2.500000e+00 : f32
    %1569 = vector.broadcast %cst_534 : f32 to vector<16x16xf32>
    %1570 = arith.mulf %1568, %1569 : vector<16x16xf32>
    %1571 = arith.mulf %1570, %1536 : vector<16x16xf32>
    %cst_535 = arith.constant -6.000000e-01 : f32
    %1572 = vector.broadcast %cst_535 : f32 to vector<16x16xf32>
    %1573 = arith.subf %1572, %1476 : vector<16x16xf32>
    %cst_536 = arith.constant 2.500000e+00 : f32
    %1574 = vector.broadcast %cst_536 : f32 to vector<16x16xf32>
    %1575 = arith.mulf %1573, %1574 : vector<16x16xf32>
    %1576 = arith.mulf %1575, %1537 : vector<16x16xf32>
    %1577 = arith.addf %1571, %1576 : vector<16x16xf32>
    %cst_537 = arith.constant -1.000000e+00 : f32
    %1578 = vector.broadcast %cst_537 : f32 to vector<16x16xf32>
    %1579 = arith.subf %1476, %1578 : vector<16x16xf32>
    %cst_538 = arith.constant 2.500000e+00 : f32
    %1580 = vector.broadcast %cst_538 : f32 to vector<16x16xf32>
    %1581 = arith.mulf %1579, %1580 : vector<16x16xf32>
    %1582 = arith.mulf %1581, %1537 : vector<16x16xf32>
    %cst_539 = arith.constant -2.000000e-01 : f32
    %1583 = vector.broadcast %cst_539 : f32 to vector<16x16xf32>
    %1584 = arith.subf %1583, %1476 : vector<16x16xf32>
    %cst_540 = arith.constant 2.500000e+00 : f32
    %1585 = vector.broadcast %cst_540 : f32 to vector<16x16xf32>
    %1586 = arith.mulf %1584, %1585 : vector<16x16xf32>
    %1587 = arith.mulf %1586, %1538 : vector<16x16xf32>
    %1588 = arith.addf %1582, %1587 : vector<16x16xf32>
    %cst_541 = arith.constant -6.000000e-01 : f32
    %1589 = vector.broadcast %cst_541 : f32 to vector<16x16xf32>
    %1590 = arith.subf %1476, %1589 : vector<16x16xf32>
    %cst_542 = arith.constant 2.500000e+00 : f32
    %1591 = vector.broadcast %cst_542 : f32 to vector<16x16xf32>
    %1592 = arith.mulf %1590, %1591 : vector<16x16xf32>
    %1593 = arith.mulf %1592, %1538 : vector<16x16xf32>
    %cst_543 = arith.constant 2.000000e-01 : f32
    %1594 = vector.broadcast %cst_543 : f32 to vector<16x16xf32>
    %1595 = arith.subf %1594, %1476 : vector<16x16xf32>
    %cst_544 = arith.constant 2.500000e+00 : f32
    %1596 = vector.broadcast %cst_544 : f32 to vector<16x16xf32>
    %1597 = arith.mulf %1595, %1596 : vector<16x16xf32>
    %1598 = arith.mulf %1597, %1539 : vector<16x16xf32>
    %1599 = arith.addf %1593, %1598 : vector<16x16xf32>
    %cst_545 = arith.constant -2.000000e-01 : f32
    %1600 = vector.broadcast %cst_545 : f32 to vector<16x16xf32>
    %1601 = arith.subf %1476, %1600 : vector<16x16xf32>
    %cst_546 = arith.constant 2.500000e+00 : f32
    %1602 = vector.broadcast %cst_546 : f32 to vector<16x16xf32>
    %1603 = arith.mulf %1601, %1602 : vector<16x16xf32>
    %1604 = arith.mulf %1603, %1539 : vector<16x16xf32>
    %cst_547 = arith.constant 6.000000e-01 : f32
    %1605 = vector.broadcast %cst_547 : f32 to vector<16x16xf32>
    %1606 = arith.subf %1605, %1476 : vector<16x16xf32>
    %cst_548 = arith.constant 2.500000e+00 : f32
    %1607 = vector.broadcast %cst_548 : f32 to vector<16x16xf32>
    %1608 = arith.mulf %1606, %1607 : vector<16x16xf32>
    %1609 = arith.mulf %1608, %1540 : vector<16x16xf32>
    %1610 = arith.addf %1604, %1609 : vector<16x16xf32>
    %cst_549 = arith.constant 2.000000e-01 : f32
    %1611 = vector.broadcast %cst_549 : f32 to vector<16x16xf32>
    %1612 = arith.subf %1476, %1611 : vector<16x16xf32>
    %cst_550 = arith.constant 2.500000e+00 : f32
    %1613 = vector.broadcast %cst_550 : f32 to vector<16x16xf32>
    %1614 = arith.mulf %1612, %1613 : vector<16x16xf32>
    %1615 = arith.mulf %1614, %1540 : vector<16x16xf32>
    %cst_551 = arith.constant 1.000000e+00 : f32
    %1616 = vector.broadcast %cst_551 : f32 to vector<16x16xf32>
    %1617 = arith.subf %1616, %1476 : vector<16x16xf32>
    %cst_552 = arith.constant 2.500000e+00 : f32
    %1618 = vector.broadcast %cst_552 : f32 to vector<16x16xf32>
    %1619 = arith.mulf %1617, %1618 : vector<16x16xf32>
    %1620 = arith.mulf %1619, %1541 : vector<16x16xf32>
    %1621 = arith.addf %1615, %1620 : vector<16x16xf32>
    %cst_553 = arith.constant 6.000000e-01 : f32
    %1622 = vector.broadcast %cst_553 : f32 to vector<16x16xf32>
    %1623 = arith.subf %1476, %1622 : vector<16x16xf32>
    %cst_554 = arith.constant 2.500000e+00 : f32
    %1624 = vector.broadcast %cst_554 : f32 to vector<16x16xf32>
    %1625 = arith.mulf %1623, %1624 : vector<16x16xf32>
    %1626 = arith.mulf %1625, %1541 : vector<16x16xf32>
    %cst_555 = arith.constant 1.400000e+00 : f32
    %1627 = vector.broadcast %cst_555 : f32 to vector<16x16xf32>
    %1628 = arith.subf %1627, %1476 : vector<16x16xf32>
    %cst_556 = arith.constant 2.500000e+00 : f32
    %1629 = vector.broadcast %cst_556 : f32 to vector<16x16xf32>
    %1630 = arith.mulf %1628, %1629 : vector<16x16xf32>
    %1631 = arith.mulf %1630, %1542 : vector<16x16xf32>
    %1632 = arith.addf %1626, %1631 : vector<16x16xf32>
    %cst_557 = arith.constant 1.000000e+00 : f32
    %1633 = vector.broadcast %cst_557 : f32 to vector<16x16xf32>
    %1634 = arith.subf %1476, %1633 : vector<16x16xf32>
    %cst_558 = arith.constant 2.500000e+00 : f32
    %1635 = vector.broadcast %cst_558 : f32 to vector<16x16xf32>
    %1636 = arith.mulf %1634, %1635 : vector<16x16xf32>
    %1637 = arith.mulf %1636, %1542 : vector<16x16xf32>
    %cst_559 = arith.constant 1.800000e+00 : f32
    %1638 = vector.broadcast %cst_559 : f32 to vector<16x16xf32>
    %1639 = arith.subf %1638, %1476 : vector<16x16xf32>
    %cst_560 = arith.constant 2.500000e+00 : f32
    %1640 = vector.broadcast %cst_560 : f32 to vector<16x16xf32>
    %1641 = arith.mulf %1639, %1640 : vector<16x16xf32>
    %1642 = arith.mulf %1641, %1543 : vector<16x16xf32>
    %1643 = arith.addf %1637, %1642 : vector<16x16xf32>
    %cst_561 = arith.constant 1.400000e+00 : f32
    %1644 = vector.broadcast %cst_561 : f32 to vector<16x16xf32>
    %1645 = arith.subf %1476, %1644 : vector<16x16xf32>
    %cst_562 = arith.constant 2.500000e+00 : f32
    %1646 = vector.broadcast %cst_562 : f32 to vector<16x16xf32>
    %1647 = arith.mulf %1645, %1646 : vector<16x16xf32>
    %1648 = arith.mulf %1647, %1543 : vector<16x16xf32>
    %cst_563 = arith.constant 2.200000e+00 : f32
    %1649 = vector.broadcast %cst_563 : f32 to vector<16x16xf32>
    %1650 = arith.subf %1649, %1476 : vector<16x16xf32>
    %cst_564 = arith.constant 2.500000e+00 : f32
    %1651 = vector.broadcast %cst_564 : f32 to vector<16x16xf32>
    %1652 = arith.mulf %1650, %1651 : vector<16x16xf32>
    %1653 = arith.mulf %1652, %1544 : vector<16x16xf32>
    %1654 = arith.addf %1648, %1653 : vector<16x16xf32>
    %cst_565 = arith.constant -2.200000e+00 : f32
    %1655 = vector.broadcast %cst_565 : f32 to vector<16x16xf32>
    %1656 = arith.subf %1476, %1655 : vector<16x16xf32>
    %cst_566 = arith.constant 1.250000e+00 : f32
    %1657 = vector.broadcast %cst_566 : f32 to vector<16x16xf32>
    %1658 = arith.mulf %1656, %1657 : vector<16x16xf32>
    %1659 = arith.mulf %1658, %1555 : vector<16x16xf32>
    %cst_567 = arith.constant -1.000000e+00 : f32
    %1660 = vector.broadcast %cst_567 : f32 to vector<16x16xf32>
    %1661 = arith.subf %1660, %1476 : vector<16x16xf32>
    %cst_568 = arith.constant 1.250000e+00 : f32
    %1662 = vector.broadcast %cst_568 : f32 to vector<16x16xf32>
    %1663 = arith.mulf %1661, %1662 : vector<16x16xf32>
    %1664 = arith.mulf %1663, %1566 : vector<16x16xf32>
    %1665 = arith.addf %1659, %1664 : vector<16x16xf32>
    %cst_569 = arith.constant -1.800000e+00 : f32
    %1666 = vector.broadcast %cst_569 : f32 to vector<16x16xf32>
    %1667 = arith.subf %1476, %1666 : vector<16x16xf32>
    %cst_570 = arith.constant 1.250000e+00 : f32
    %1668 = vector.broadcast %cst_570 : f32 to vector<16x16xf32>
    %1669 = arith.mulf %1667, %1668 : vector<16x16xf32>
    %1670 = arith.mulf %1669, %1566 : vector<16x16xf32>
    %cst_571 = arith.constant -6.000000e-01 : f32
    %1671 = vector.broadcast %cst_571 : f32 to vector<16x16xf32>
    %1672 = arith.subf %1671, %1476 : vector<16x16xf32>
    %cst_572 = arith.constant 1.250000e+00 : f32
    %1673 = vector.broadcast %cst_572 : f32 to vector<16x16xf32>
    %1674 = arith.mulf %1672, %1673 : vector<16x16xf32>
    %1675 = arith.mulf %1674, %1577 : vector<16x16xf32>
    %1676 = arith.addf %1670, %1675 : vector<16x16xf32>
    %cst_573 = arith.constant -1.400000e+00 : f32
    %1677 = vector.broadcast %cst_573 : f32 to vector<16x16xf32>
    %1678 = arith.subf %1476, %1677 : vector<16x16xf32>
    %cst_574 = arith.constant 1.250000e+00 : f32
    %1679 = vector.broadcast %cst_574 : f32 to vector<16x16xf32>
    %1680 = arith.mulf %1678, %1679 : vector<16x16xf32>
    %1681 = arith.mulf %1680, %1577 : vector<16x16xf32>
    %cst_575 = arith.constant -2.000000e-01 : f32
    %1682 = vector.broadcast %cst_575 : f32 to vector<16x16xf32>
    %1683 = arith.subf %1682, %1476 : vector<16x16xf32>
    %cst_576 = arith.constant 1.250000e+00 : f32
    %1684 = vector.broadcast %cst_576 : f32 to vector<16x16xf32>
    %1685 = arith.mulf %1683, %1684 : vector<16x16xf32>
    %1686 = arith.mulf %1685, %1588 : vector<16x16xf32>
    %1687 = arith.addf %1681, %1686 : vector<16x16xf32>
    %cst_577 = arith.constant -1.000000e+00 : f32
    %1688 = vector.broadcast %cst_577 : f32 to vector<16x16xf32>
    %1689 = arith.subf %1476, %1688 : vector<16x16xf32>
    %cst_578 = arith.constant 1.250000e+00 : f32
    %1690 = vector.broadcast %cst_578 : f32 to vector<16x16xf32>
    %1691 = arith.mulf %1689, %1690 : vector<16x16xf32>
    %1692 = arith.mulf %1691, %1588 : vector<16x16xf32>
    %cst_579 = arith.constant 2.000000e-01 : f32
    %1693 = vector.broadcast %cst_579 : f32 to vector<16x16xf32>
    %1694 = arith.subf %1693, %1476 : vector<16x16xf32>
    %cst_580 = arith.constant 1.250000e+00 : f32
    %1695 = vector.broadcast %cst_580 : f32 to vector<16x16xf32>
    %1696 = arith.mulf %1694, %1695 : vector<16x16xf32>
    %1697 = arith.mulf %1696, %1599 : vector<16x16xf32>
    %1698 = arith.addf %1692, %1697 : vector<16x16xf32>
    %cst_581 = arith.constant -6.000000e-01 : f32
    %1699 = vector.broadcast %cst_581 : f32 to vector<16x16xf32>
    %1700 = arith.subf %1476, %1699 : vector<16x16xf32>
    %cst_582 = arith.constant 1.250000e+00 : f32
    %1701 = vector.broadcast %cst_582 : f32 to vector<16x16xf32>
    %1702 = arith.mulf %1700, %1701 : vector<16x16xf32>
    %1703 = arith.mulf %1702, %1599 : vector<16x16xf32>
    %cst_583 = arith.constant 6.000000e-01 : f32
    %1704 = vector.broadcast %cst_583 : f32 to vector<16x16xf32>
    %1705 = arith.subf %1704, %1476 : vector<16x16xf32>
    %cst_584 = arith.constant 1.250000e+00 : f32
    %1706 = vector.broadcast %cst_584 : f32 to vector<16x16xf32>
    %1707 = arith.mulf %1705, %1706 : vector<16x16xf32>
    %1708 = arith.mulf %1707, %1610 : vector<16x16xf32>
    %1709 = arith.addf %1703, %1708 : vector<16x16xf32>
    %cst_585 = arith.constant -2.000000e-01 : f32
    %1710 = vector.broadcast %cst_585 : f32 to vector<16x16xf32>
    %1711 = arith.subf %1476, %1710 : vector<16x16xf32>
    %cst_586 = arith.constant 1.250000e+00 : f32
    %1712 = vector.broadcast %cst_586 : f32 to vector<16x16xf32>
    %1713 = arith.mulf %1711, %1712 : vector<16x16xf32>
    %1714 = arith.mulf %1713, %1610 : vector<16x16xf32>
    %cst_587 = arith.constant 1.000000e+00 : f32
    %1715 = vector.broadcast %cst_587 : f32 to vector<16x16xf32>
    %1716 = arith.subf %1715, %1476 : vector<16x16xf32>
    %cst_588 = arith.constant 1.250000e+00 : f32
    %1717 = vector.broadcast %cst_588 : f32 to vector<16x16xf32>
    %1718 = arith.mulf %1716, %1717 : vector<16x16xf32>
    %1719 = arith.mulf %1718, %1621 : vector<16x16xf32>
    %1720 = arith.addf %1714, %1719 : vector<16x16xf32>
    %cst_589 = arith.constant 2.000000e-01 : f32
    %1721 = vector.broadcast %cst_589 : f32 to vector<16x16xf32>
    %1722 = arith.subf %1476, %1721 : vector<16x16xf32>
    %cst_590 = arith.constant 1.250000e+00 : f32
    %1723 = vector.broadcast %cst_590 : f32 to vector<16x16xf32>
    %1724 = arith.mulf %1722, %1723 : vector<16x16xf32>
    %1725 = arith.mulf %1724, %1621 : vector<16x16xf32>
    %cst_591 = arith.constant 1.400000e+00 : f32
    %1726 = vector.broadcast %cst_591 : f32 to vector<16x16xf32>
    %1727 = arith.subf %1726, %1476 : vector<16x16xf32>
    %cst_592 = arith.constant 1.250000e+00 : f32
    %1728 = vector.broadcast %cst_592 : f32 to vector<16x16xf32>
    %1729 = arith.mulf %1727, %1728 : vector<16x16xf32>
    %1730 = arith.mulf %1729, %1632 : vector<16x16xf32>
    %1731 = arith.addf %1725, %1730 : vector<16x16xf32>
    %cst_593 = arith.constant 6.000000e-01 : f32
    %1732 = vector.broadcast %cst_593 : f32 to vector<16x16xf32>
    %1733 = arith.subf %1476, %1732 : vector<16x16xf32>
    %cst_594 = arith.constant 1.250000e+00 : f32
    %1734 = vector.broadcast %cst_594 : f32 to vector<16x16xf32>
    %1735 = arith.mulf %1733, %1734 : vector<16x16xf32>
    %1736 = arith.mulf %1735, %1632 : vector<16x16xf32>
    %cst_595 = arith.constant 1.800000e+00 : f32
    %1737 = vector.broadcast %cst_595 : f32 to vector<16x16xf32>
    %1738 = arith.subf %1737, %1476 : vector<16x16xf32>
    %cst_596 = arith.constant 1.250000e+00 : f32
    %1739 = vector.broadcast %cst_596 : f32 to vector<16x16xf32>
    %1740 = arith.mulf %1738, %1739 : vector<16x16xf32>
    %1741 = arith.mulf %1740, %1643 : vector<16x16xf32>
    %1742 = arith.addf %1736, %1741 : vector<16x16xf32>
    %cst_597 = arith.constant 1.000000e+00 : f32
    %1743 = vector.broadcast %cst_597 : f32 to vector<16x16xf32>
    %1744 = arith.subf %1476, %1743 : vector<16x16xf32>
    %cst_598 = arith.constant 1.250000e+00 : f32
    %1745 = vector.broadcast %cst_598 : f32 to vector<16x16xf32>
    %1746 = arith.mulf %1744, %1745 : vector<16x16xf32>
    %1747 = arith.mulf %1746, %1643 : vector<16x16xf32>
    %cst_599 = arith.constant 2.200000e+00 : f32
    %1748 = vector.broadcast %cst_599 : f32 to vector<16x16xf32>
    %1749 = arith.subf %1748, %1476 : vector<16x16xf32>
    %cst_600 = arith.constant 1.250000e+00 : f32
    %1750 = vector.broadcast %cst_600 : f32 to vector<16x16xf32>
    %1751 = arith.mulf %1749, %1750 : vector<16x16xf32>
    %1752 = arith.mulf %1751, %1654 : vector<16x16xf32>
    %1753 = arith.addf %1747, %1752 : vector<16x16xf32>
    %cst_601 = arith.constant -2.200000e+00 : f32
    %1754 = vector.broadcast %cst_601 : f32 to vector<16x16xf32>
    %1755 = arith.subf %1476, %1754 : vector<16x16xf32>
    %cst_602 = arith.constant 0.833333313 : f32
    %1756 = vector.broadcast %cst_602 : f32 to vector<16x16xf32>
    %1757 = arith.mulf %1755, %1756 : vector<16x16xf32>
    %1758 = arith.mulf %1757, %1665 : vector<16x16xf32>
    %cst_603 = arith.constant -6.000000e-01 : f32
    %1759 = vector.broadcast %cst_603 : f32 to vector<16x16xf32>
    %1760 = arith.subf %1759, %1476 : vector<16x16xf32>
    %cst_604 = arith.constant 0.833333313 : f32
    %1761 = vector.broadcast %cst_604 : f32 to vector<16x16xf32>
    %1762 = arith.mulf %1760, %1761 : vector<16x16xf32>
    %1763 = arith.mulf %1762, %1676 : vector<16x16xf32>
    %1764 = arith.addf %1758, %1763 : vector<16x16xf32>
    %cst_605 = arith.constant -1.800000e+00 : f32
    %1765 = vector.broadcast %cst_605 : f32 to vector<16x16xf32>
    %1766 = arith.subf %1476, %1765 : vector<16x16xf32>
    %cst_606 = arith.constant 0.833333313 : f32
    %1767 = vector.broadcast %cst_606 : f32 to vector<16x16xf32>
    %1768 = arith.mulf %1766, %1767 : vector<16x16xf32>
    %1769 = arith.mulf %1768, %1676 : vector<16x16xf32>
    %cst_607 = arith.constant -2.000000e-01 : f32
    %1770 = vector.broadcast %cst_607 : f32 to vector<16x16xf32>
    %1771 = arith.subf %1770, %1476 : vector<16x16xf32>
    %cst_608 = arith.constant 0.833333313 : f32
    %1772 = vector.broadcast %cst_608 : f32 to vector<16x16xf32>
    %1773 = arith.mulf %1771, %1772 : vector<16x16xf32>
    %1774 = arith.mulf %1773, %1687 : vector<16x16xf32>
    %1775 = arith.addf %1769, %1774 : vector<16x16xf32>
    %cst_609 = arith.constant -1.400000e+00 : f32
    %1776 = vector.broadcast %cst_609 : f32 to vector<16x16xf32>
    %1777 = arith.subf %1476, %1776 : vector<16x16xf32>
    %cst_610 = arith.constant 0.833333313 : f32
    %1778 = vector.broadcast %cst_610 : f32 to vector<16x16xf32>
    %1779 = arith.mulf %1777, %1778 : vector<16x16xf32>
    %1780 = arith.mulf %1779, %1687 : vector<16x16xf32>
    %cst_611 = arith.constant 2.000000e-01 : f32
    %1781 = vector.broadcast %cst_611 : f32 to vector<16x16xf32>
    %1782 = arith.subf %1781, %1476 : vector<16x16xf32>
    %cst_612 = arith.constant 0.833333313 : f32
    %1783 = vector.broadcast %cst_612 : f32 to vector<16x16xf32>
    %1784 = arith.mulf %1782, %1783 : vector<16x16xf32>
    %1785 = arith.mulf %1784, %1698 : vector<16x16xf32>
    %1786 = arith.addf %1780, %1785 : vector<16x16xf32>
    %cst_613 = arith.constant -1.000000e+00 : f32
    %1787 = vector.broadcast %cst_613 : f32 to vector<16x16xf32>
    %1788 = arith.subf %1476, %1787 : vector<16x16xf32>
    %cst_614 = arith.constant 0.833333313 : f32
    %1789 = vector.broadcast %cst_614 : f32 to vector<16x16xf32>
    %1790 = arith.mulf %1788, %1789 : vector<16x16xf32>
    %1791 = arith.mulf %1790, %1698 : vector<16x16xf32>
    %cst_615 = arith.constant 6.000000e-01 : f32
    %1792 = vector.broadcast %cst_615 : f32 to vector<16x16xf32>
    %1793 = arith.subf %1792, %1476 : vector<16x16xf32>
    %cst_616 = arith.constant 0.833333313 : f32
    %1794 = vector.broadcast %cst_616 : f32 to vector<16x16xf32>
    %1795 = arith.mulf %1793, %1794 : vector<16x16xf32>
    %1796 = arith.mulf %1795, %1709 : vector<16x16xf32>
    %1797 = arith.addf %1791, %1796 : vector<16x16xf32>
    %cst_617 = arith.constant -6.000000e-01 : f32
    %1798 = vector.broadcast %cst_617 : f32 to vector<16x16xf32>
    %1799 = arith.subf %1476, %1798 : vector<16x16xf32>
    %cst_618 = arith.constant 0.833333313 : f32
    %1800 = vector.broadcast %cst_618 : f32 to vector<16x16xf32>
    %1801 = arith.mulf %1799, %1800 : vector<16x16xf32>
    %1802 = arith.mulf %1801, %1709 : vector<16x16xf32>
    %cst_619 = arith.constant 1.000000e+00 : f32
    %1803 = vector.broadcast %cst_619 : f32 to vector<16x16xf32>
    %1804 = arith.subf %1803, %1476 : vector<16x16xf32>
    %cst_620 = arith.constant 0.833333313 : f32
    %1805 = vector.broadcast %cst_620 : f32 to vector<16x16xf32>
    %1806 = arith.mulf %1804, %1805 : vector<16x16xf32>
    %1807 = arith.mulf %1806, %1720 : vector<16x16xf32>
    %1808 = arith.addf %1802, %1807 : vector<16x16xf32>
    %cst_621 = arith.constant -2.000000e-01 : f32
    %1809 = vector.broadcast %cst_621 : f32 to vector<16x16xf32>
    %1810 = arith.subf %1476, %1809 : vector<16x16xf32>
    %cst_622 = arith.constant 0.833333313 : f32
    %1811 = vector.broadcast %cst_622 : f32 to vector<16x16xf32>
    %1812 = arith.mulf %1810, %1811 : vector<16x16xf32>
    %1813 = arith.mulf %1812, %1720 : vector<16x16xf32>
    %cst_623 = arith.constant 1.400000e+00 : f32
    %1814 = vector.broadcast %cst_623 : f32 to vector<16x16xf32>
    %1815 = arith.subf %1814, %1476 : vector<16x16xf32>
    %cst_624 = arith.constant 0.833333313 : f32
    %1816 = vector.broadcast %cst_624 : f32 to vector<16x16xf32>
    %1817 = arith.mulf %1815, %1816 : vector<16x16xf32>
    %1818 = arith.mulf %1817, %1731 : vector<16x16xf32>
    %1819 = arith.addf %1813, %1818 : vector<16x16xf32>
    %cst_625 = arith.constant 2.000000e-01 : f32
    %1820 = vector.broadcast %cst_625 : f32 to vector<16x16xf32>
    %1821 = arith.subf %1476, %1820 : vector<16x16xf32>
    %cst_626 = arith.constant 0.833333313 : f32
    %1822 = vector.broadcast %cst_626 : f32 to vector<16x16xf32>
    %1823 = arith.mulf %1821, %1822 : vector<16x16xf32>
    %1824 = arith.mulf %1823, %1731 : vector<16x16xf32>
    %cst_627 = arith.constant 1.800000e+00 : f32
    %1825 = vector.broadcast %cst_627 : f32 to vector<16x16xf32>
    %1826 = arith.subf %1825, %1476 : vector<16x16xf32>
    %cst_628 = arith.constant 0.833333313 : f32
    %1827 = vector.broadcast %cst_628 : f32 to vector<16x16xf32>
    %1828 = arith.mulf %1826, %1827 : vector<16x16xf32>
    %1829 = arith.mulf %1828, %1742 : vector<16x16xf32>
    %1830 = arith.addf %1824, %1829 : vector<16x16xf32>
    %cst_629 = arith.constant 6.000000e-01 : f32
    %1831 = vector.broadcast %cst_629 : f32 to vector<16x16xf32>
    %1832 = arith.subf %1476, %1831 : vector<16x16xf32>
    %cst_630 = arith.constant 0.833333313 : f32
    %1833 = vector.broadcast %cst_630 : f32 to vector<16x16xf32>
    %1834 = arith.mulf %1832, %1833 : vector<16x16xf32>
    %1835 = arith.mulf %1834, %1742 : vector<16x16xf32>
    %cst_631 = arith.constant 2.200000e+00 : f32
    %1836 = vector.broadcast %cst_631 : f32 to vector<16x16xf32>
    %1837 = arith.subf %1836, %1476 : vector<16x16xf32>
    %cst_632 = arith.constant 0.833333313 : f32
    %1838 = vector.broadcast %cst_632 : f32 to vector<16x16xf32>
    %1839 = arith.mulf %1837, %1838 : vector<16x16xf32>
    %1840 = arith.mulf %1839, %1753 : vector<16x16xf32>
    %1841 = arith.addf %1835, %1840 : vector<16x16xf32>
    %1842 = tpu.concatenate %1485, %1764, %1775, %1786, %1797, %1808, %1819, %1830, %1841 in 0 : vector<16x16xf32>, vector<16x16xf32>, vector<16x16xf32>, vector<16x16xf32>, vector<16x16xf32>, vector<16x16xf32>, vector<16x16xf32>, vector<16x16xf32>, vector<16x16xf32> -> vector<144x16xf32>
    %cst_633 = arith.constant dense<0.000000e+00> : vector<16x16xf32>
    %1843 = tpu.matmul %1477, %1842, %cst_633 {dimension_numbers = #tpu.dot_dimension_numbers<[1], [0], [0], [1], [0, 0, 1, 1], [], []>} : vector<16x144xf32>, vector<144x16xf32>, vector<16x16xf32> -> vector<16x16xf32>
    %cst_634 = arith.constant 0.000000e+00 : f32
    %1844 = vector.broadcast %cst_634 : f32 to vector<16x16xf32>
    %1845 = arith.maximumf %1843, %1844 : vector<16x16xf32>
    %c0_635 = arith.constant 0 : index
    %c0_636 = arith.constant 0 : index
    %1846 = vector.load %arg7[%c0_635, %c0_636] : memref<2x144xf32, #tpu.memory_space<vmem>>, vector<2x144xf32>
    %cst_637 = arith.constant 5.000000e-01 : f32
    %1847 = vector.broadcast %cst_637 : f32 to vector<16x16xf32>
    %1848 = arith.mulf %1847, %1845 : vector<16x16xf32>
    %1849 = math.tanh %1848 : vector<16x16xf32>
    %cst_638 = arith.constant 1.000000e+00 : f32
    %1850 = vector.broadcast %cst_638 : f32 to vector<16x16xf32>
    %1851 = arith.addf %1849, %1850 : vector<16x16xf32>
    %cst_639 = arith.constant 5.000000e-01 : f32
    %1852 = vector.broadcast %cst_639 : f32 to vector<16x16xf32>
    %1853 = arith.mulf %1852, %1851 : vector<16x16xf32>
    %1854 = arith.mulf %1845, %1853 : vector<16x16xf32>
    %cst_640 = arith.constant -2.200000e+00 : f32
    %1855 = vector.broadcast %cst_640 : f32 to vector<16x16xf32>
    %1856 = arith.cmpf oge, %1845, %1855 : vector<16x16xf32>
    %1857 = arith.extui %1856 : vector<16x16xi1> to vector<16x16xi32>
    %1858 = arith.sitofp %1857 : vector<16x16xi32> to vector<16x16xf32>
    %cst_641 = arith.constant -1.800000e+00 : f32
    %1859 = vector.broadcast %cst_641 : f32 to vector<16x16xf32>
    %1860 = arith.cmpf oge, %1845, %1859 : vector<16x16xf32>
    %1861 = arith.extui %1860 : vector<16x16xi1> to vector<16x16xi32>
    %1862 = arith.sitofp %1861 : vector<16x16xi32> to vector<16x16xf32>
    %cst_642 = arith.constant -1.400000e+00 : f32
    %1863 = vector.broadcast %cst_642 : f32 to vector<16x16xf32>
    %1864 = arith.cmpf oge, %1845, %1863 : vector<16x16xf32>
    %1865 = arith.extui %1864 : vector<16x16xi1> to vector<16x16xi32>
    %1866 = arith.sitofp %1865 : vector<16x16xi32> to vector<16x16xf32>
    %cst_643 = arith.constant -1.000000e+00 : f32
    %1867 = vector.broadcast %cst_643 : f32 to vector<16x16xf32>
    %1868 = arith.cmpf oge, %1845, %1867 : vector<16x16xf32>
    %1869 = arith.extui %1868 : vector<16x16xi1> to vector<16x16xi32>
    %1870 = arith.sitofp %1869 : vector<16x16xi32> to vector<16x16xf32>
    %cst_644 = arith.constant -6.000000e-01 : f32
    %1871 = vector.broadcast %cst_644 : f32 to vector<16x16xf32>
    %1872 = arith.cmpf oge, %1845, %1871 : vector<16x16xf32>
    %1873 = arith.extui %1872 : vector<16x16xi1> to vector<16x16xi32>
    %1874 = arith.sitofp %1873 : vector<16x16xi32> to vector<16x16xf32>
    %cst_645 = arith.constant -2.000000e-01 : f32
    %1875 = vector.broadcast %cst_645 : f32 to vector<16x16xf32>
    %1876 = arith.cmpf oge, %1845, %1875 : vector<16x16xf32>
    %1877 = arith.extui %1876 : vector<16x16xi1> to vector<16x16xi32>
    %1878 = arith.sitofp %1877 : vector<16x16xi32> to vector<16x16xf32>
    %cst_646 = arith.constant 2.000000e-01 : f32
    %1879 = vector.broadcast %cst_646 : f32 to vector<16x16xf32>
    %1880 = arith.cmpf oge, %1845, %1879 : vector<16x16xf32>
    %1881 = arith.extui %1880 : vector<16x16xi1> to vector<16x16xi32>
    %1882 = arith.sitofp %1881 : vector<16x16xi32> to vector<16x16xf32>
    %cst_647 = arith.constant 6.000000e-01 : f32
    %1883 = vector.broadcast %cst_647 : f32 to vector<16x16xf32>
    %1884 = arith.cmpf oge, %1845, %1883 : vector<16x16xf32>
    %1885 = arith.extui %1884 : vector<16x16xi1> to vector<16x16xi32>
    %1886 = arith.sitofp %1885 : vector<16x16xi32> to vector<16x16xf32>
    %cst_648 = arith.constant 1.000000e+00 : f32
    %1887 = vector.broadcast %cst_648 : f32 to vector<16x16xf32>
    %1888 = arith.cmpf oge, %1845, %1887 : vector<16x16xf32>
    %1889 = arith.extui %1888 : vector<16x16xi1> to vector<16x16xi32>
    %1890 = arith.sitofp %1889 : vector<16x16xi32> to vector<16x16xf32>
    %cst_649 = arith.constant 1.400000e+00 : f32
    %1891 = vector.broadcast %cst_649 : f32 to vector<16x16xf32>
    %1892 = arith.cmpf oge, %1845, %1891 : vector<16x16xf32>
    %1893 = arith.extui %1892 : vector<16x16xi1> to vector<16x16xi32>
    %1894 = arith.sitofp %1893 : vector<16x16xi32> to vector<16x16xf32>
    %cst_650 = arith.constant 1.800000e+00 : f32
    %1895 = vector.broadcast %cst_650 : f32 to vector<16x16xf32>
    %1896 = arith.cmpf oge, %1845, %1895 : vector<16x16xf32>
    %1897 = arith.extui %1896 : vector<16x16xi1> to vector<16x16xi32>
    %1898 = arith.sitofp %1897 : vector<16x16xi32> to vector<16x16xf32>
    %cst_651 = arith.constant 2.200000e+00 : f32
    %1899 = vector.broadcast %cst_651 : f32 to vector<16x16xf32>
    %1900 = arith.cmpf oge, %1845, %1899 : vector<16x16xf32>
    %1901 = arith.extui %1900 : vector<16x16xi1> to vector<16x16xi32>
    %1902 = arith.sitofp %1901 : vector<16x16xi32> to vector<16x16xf32>
    %1903 = arith.subf %1858, %1862 : vector<16x16xf32>
    %1904 = arith.subf %1862, %1866 : vector<16x16xf32>
    %1905 = arith.subf %1866, %1870 : vector<16x16xf32>
    %1906 = arith.subf %1870, %1874 : vector<16x16xf32>
    %1907 = arith.subf %1874, %1878 : vector<16x16xf32>
    %1908 = arith.subf %1878, %1882 : vector<16x16xf32>
    %1909 = arith.subf %1882, %1886 : vector<16x16xf32>
    %1910 = arith.subf %1886, %1890 : vector<16x16xf32>
    %1911 = arith.subf %1890, %1894 : vector<16x16xf32>
    %1912 = arith.subf %1894, %1898 : vector<16x16xf32>
    %1913 = arith.subf %1898, %1902 : vector<16x16xf32>
    %cst_652 = arith.constant -2.200000e+00 : f32
    %1914 = vector.broadcast %cst_652 : f32 to vector<16x16xf32>
    %1915 = arith.subf %1845, %1914 : vector<16x16xf32>
    %cst_653 = arith.constant 2.500000e+00 : f32
    %1916 = vector.broadcast %cst_653 : f32 to vector<16x16xf32>
    %1917 = arith.mulf %1915, %1916 : vector<16x16xf32>
    %1918 = arith.mulf %1917, %1903 : vector<16x16xf32>
    %cst_654 = arith.constant -1.400000e+00 : f32
    %1919 = vector.broadcast %cst_654 : f32 to vector<16x16xf32>
    %1920 = arith.subf %1919, %1845 : vector<16x16xf32>
    %cst_655 = arith.constant 2.500000e+00 : f32
    %1921 = vector.broadcast %cst_655 : f32 to vector<16x16xf32>
    %1922 = arith.mulf %1920, %1921 : vector<16x16xf32>
    %1923 = arith.mulf %1922, %1904 : vector<16x16xf32>
    %1924 = arith.addf %1918, %1923 : vector<16x16xf32>
    %cst_656 = arith.constant -1.800000e+00 : f32
    %1925 = vector.broadcast %cst_656 : f32 to vector<16x16xf32>
    %1926 = arith.subf %1845, %1925 : vector<16x16xf32>
    %cst_657 = arith.constant 2.500000e+00 : f32
    %1927 = vector.broadcast %cst_657 : f32 to vector<16x16xf32>
    %1928 = arith.mulf %1926, %1927 : vector<16x16xf32>
    %1929 = arith.mulf %1928, %1904 : vector<16x16xf32>
    %cst_658 = arith.constant -1.000000e+00 : f32
    %1930 = vector.broadcast %cst_658 : f32 to vector<16x16xf32>
    %1931 = arith.subf %1930, %1845 : vector<16x16xf32>
    %cst_659 = arith.constant 2.500000e+00 : f32
    %1932 = vector.broadcast %cst_659 : f32 to vector<16x16xf32>
    %1933 = arith.mulf %1931, %1932 : vector<16x16xf32>
    %1934 = arith.mulf %1933, %1905 : vector<16x16xf32>
    %1935 = arith.addf %1929, %1934 : vector<16x16xf32>
    %cst_660 = arith.constant -1.400000e+00 : f32
    %1936 = vector.broadcast %cst_660 : f32 to vector<16x16xf32>
    %1937 = arith.subf %1845, %1936 : vector<16x16xf32>
    %cst_661 = arith.constant 2.500000e+00 : f32
    %1938 = vector.broadcast %cst_661 : f32 to vector<16x16xf32>
    %1939 = arith.mulf %1937, %1938 : vector<16x16xf32>
    %1940 = arith.mulf %1939, %1905 : vector<16x16xf32>
    %cst_662 = arith.constant -6.000000e-01 : f32
    %1941 = vector.broadcast %cst_662 : f32 to vector<16x16xf32>
    %1942 = arith.subf %1941, %1845 : vector<16x16xf32>
    %cst_663 = arith.constant 2.500000e+00 : f32
    %1943 = vector.broadcast %cst_663 : f32 to vector<16x16xf32>
    %1944 = arith.mulf %1942, %1943 : vector<16x16xf32>
    %1945 = arith.mulf %1944, %1906 : vector<16x16xf32>
    %1946 = arith.addf %1940, %1945 : vector<16x16xf32>
    %cst_664 = arith.constant -1.000000e+00 : f32
    %1947 = vector.broadcast %cst_664 : f32 to vector<16x16xf32>
    %1948 = arith.subf %1845, %1947 : vector<16x16xf32>
    %cst_665 = arith.constant 2.500000e+00 : f32
    %1949 = vector.broadcast %cst_665 : f32 to vector<16x16xf32>
    %1950 = arith.mulf %1948, %1949 : vector<16x16xf32>
    %1951 = arith.mulf %1950, %1906 : vector<16x16xf32>
    %cst_666 = arith.constant -2.000000e-01 : f32
    %1952 = vector.broadcast %cst_666 : f32 to vector<16x16xf32>
    %1953 = arith.subf %1952, %1845 : vector<16x16xf32>
    %cst_667 = arith.constant 2.500000e+00 : f32
    %1954 = vector.broadcast %cst_667 : f32 to vector<16x16xf32>
    %1955 = arith.mulf %1953, %1954 : vector<16x16xf32>
    %1956 = arith.mulf %1955, %1907 : vector<16x16xf32>
    %1957 = arith.addf %1951, %1956 : vector<16x16xf32>
    %cst_668 = arith.constant -6.000000e-01 : f32
    %1958 = vector.broadcast %cst_668 : f32 to vector<16x16xf32>
    %1959 = arith.subf %1845, %1958 : vector<16x16xf32>
    %cst_669 = arith.constant 2.500000e+00 : f32
    %1960 = vector.broadcast %cst_669 : f32 to vector<16x16xf32>
    %1961 = arith.mulf %1959, %1960 : vector<16x16xf32>
    %1962 = arith.mulf %1961, %1907 : vector<16x16xf32>
    %cst_670 = arith.constant 2.000000e-01 : f32
    %1963 = vector.broadcast %cst_670 : f32 to vector<16x16xf32>
    %1964 = arith.subf %1963, %1845 : vector<16x16xf32>
    %cst_671 = arith.constant 2.500000e+00 : f32
    %1965 = vector.broadcast %cst_671 : f32 to vector<16x16xf32>
    %1966 = arith.mulf %1964, %1965 : vector<16x16xf32>
    %1967 = arith.mulf %1966, %1908 : vector<16x16xf32>
    %1968 = arith.addf %1962, %1967 : vector<16x16xf32>
    %cst_672 = arith.constant -2.000000e-01 : f32
    %1969 = vector.broadcast %cst_672 : f32 to vector<16x16xf32>
    %1970 = arith.subf %1845, %1969 : vector<16x16xf32>
    %cst_673 = arith.constant 2.500000e+00 : f32
    %1971 = vector.broadcast %cst_673 : f32 to vector<16x16xf32>
    %1972 = arith.mulf %1970, %1971 : vector<16x16xf32>
    %1973 = arith.mulf %1972, %1908 : vector<16x16xf32>
    %cst_674 = arith.constant 6.000000e-01 : f32
    %1974 = vector.broadcast %cst_674 : f32 to vector<16x16xf32>
    %1975 = arith.subf %1974, %1845 : vector<16x16xf32>
    %cst_675 = arith.constant 2.500000e+00 : f32
    %1976 = vector.broadcast %cst_675 : f32 to vector<16x16xf32>
    %1977 = arith.mulf %1975, %1976 : vector<16x16xf32>
    %1978 = arith.mulf %1977, %1909 : vector<16x16xf32>
    %1979 = arith.addf %1973, %1978 : vector<16x16xf32>
    %cst_676 = arith.constant 2.000000e-01 : f32
    %1980 = vector.broadcast %cst_676 : f32 to vector<16x16xf32>
    %1981 = arith.subf %1845, %1980 : vector<16x16xf32>
    %cst_677 = arith.constant 2.500000e+00 : f32
    %1982 = vector.broadcast %cst_677 : f32 to vector<16x16xf32>
    %1983 = arith.mulf %1981, %1982 : vector<16x16xf32>
    %1984 = arith.mulf %1983, %1909 : vector<16x16xf32>
    %cst_678 = arith.constant 1.000000e+00 : f32
    %1985 = vector.broadcast %cst_678 : f32 to vector<16x16xf32>
    %1986 = arith.subf %1985, %1845 : vector<16x16xf32>
    %cst_679 = arith.constant 2.500000e+00 : f32
    %1987 = vector.broadcast %cst_679 : f32 to vector<16x16xf32>
    %1988 = arith.mulf %1986, %1987 : vector<16x16xf32>
    %1989 = arith.mulf %1988, %1910 : vector<16x16xf32>
    %1990 = arith.addf %1984, %1989 : vector<16x16xf32>
    %cst_680 = arith.constant 6.000000e-01 : f32
    %1991 = vector.broadcast %cst_680 : f32 to vector<16x16xf32>
    %1992 = arith.subf %1845, %1991 : vector<16x16xf32>
    %cst_681 = arith.constant 2.500000e+00 : f32
    %1993 = vector.broadcast %cst_681 : f32 to vector<16x16xf32>
    %1994 = arith.mulf %1992, %1993 : vector<16x16xf32>
    %1995 = arith.mulf %1994, %1910 : vector<16x16xf32>
    %cst_682 = arith.constant 1.400000e+00 : f32
    %1996 = vector.broadcast %cst_682 : f32 to vector<16x16xf32>
    %1997 = arith.subf %1996, %1845 : vector<16x16xf32>
    %cst_683 = arith.constant 2.500000e+00 : f32
    %1998 = vector.broadcast %cst_683 : f32 to vector<16x16xf32>
    %1999 = arith.mulf %1997, %1998 : vector<16x16xf32>
    %2000 = arith.mulf %1999, %1911 : vector<16x16xf32>
    %2001 = arith.addf %1995, %2000 : vector<16x16xf32>
    %cst_684 = arith.constant 1.000000e+00 : f32
    %2002 = vector.broadcast %cst_684 : f32 to vector<16x16xf32>
    %2003 = arith.subf %1845, %2002 : vector<16x16xf32>
    %cst_685 = arith.constant 2.500000e+00 : f32
    %2004 = vector.broadcast %cst_685 : f32 to vector<16x16xf32>
    %2005 = arith.mulf %2003, %2004 : vector<16x16xf32>
    %2006 = arith.mulf %2005, %1911 : vector<16x16xf32>
    %cst_686 = arith.constant 1.800000e+00 : f32
    %2007 = vector.broadcast %cst_686 : f32 to vector<16x16xf32>
    %2008 = arith.subf %2007, %1845 : vector<16x16xf32>
    %cst_687 = arith.constant 2.500000e+00 : f32
    %2009 = vector.broadcast %cst_687 : f32 to vector<16x16xf32>
    %2010 = arith.mulf %2008, %2009 : vector<16x16xf32>
    %2011 = arith.mulf %2010, %1912 : vector<16x16xf32>
    %2012 = arith.addf %2006, %2011 : vector<16x16xf32>
    %cst_688 = arith.constant 1.400000e+00 : f32
    %2013 = vector.broadcast %cst_688 : f32 to vector<16x16xf32>
    %2014 = arith.subf %1845, %2013 : vector<16x16xf32>
    %cst_689 = arith.constant 2.500000e+00 : f32
    %2015 = vector.broadcast %cst_689 : f32 to vector<16x16xf32>
    %2016 = arith.mulf %2014, %2015 : vector<16x16xf32>
    %2017 = arith.mulf %2016, %1912 : vector<16x16xf32>
    %cst_690 = arith.constant 2.200000e+00 : f32
    %2018 = vector.broadcast %cst_690 : f32 to vector<16x16xf32>
    %2019 = arith.subf %2018, %1845 : vector<16x16xf32>
    %cst_691 = arith.constant 2.500000e+00 : f32
    %2020 = vector.broadcast %cst_691 : f32 to vector<16x16xf32>
    %2021 = arith.mulf %2019, %2020 : vector<16x16xf32>
    %2022 = arith.mulf %2021, %1913 : vector<16x16xf32>
    %2023 = arith.addf %2017, %2022 : vector<16x16xf32>
    %cst_692 = arith.constant -2.200000e+00 : f32
    %2024 = vector.broadcast %cst_692 : f32 to vector<16x16xf32>
    %2025 = arith.subf %1845, %2024 : vector<16x16xf32>
    %cst_693 = arith.constant 1.250000e+00 : f32
    %2026 = vector.broadcast %cst_693 : f32 to vector<16x16xf32>
    %2027 = arith.mulf %2025, %2026 : vector<16x16xf32>
    %2028 = arith.mulf %2027, %1924 : vector<16x16xf32>
    %cst_694 = arith.constant -1.000000e+00 : f32
    %2029 = vector.broadcast %cst_694 : f32 to vector<16x16xf32>
    %2030 = arith.subf %2029, %1845 : vector<16x16xf32>
    %cst_695 = arith.constant 1.250000e+00 : f32
    %2031 = vector.broadcast %cst_695 : f32 to vector<16x16xf32>
    %2032 = arith.mulf %2030, %2031 : vector<16x16xf32>
    %2033 = arith.mulf %2032, %1935 : vector<16x16xf32>
    %2034 = arith.addf %2028, %2033 : vector<16x16xf32>
    %cst_696 = arith.constant -1.800000e+00 : f32
    %2035 = vector.broadcast %cst_696 : f32 to vector<16x16xf32>
    %2036 = arith.subf %1845, %2035 : vector<16x16xf32>
    %cst_697 = arith.constant 1.250000e+00 : f32
    %2037 = vector.broadcast %cst_697 : f32 to vector<16x16xf32>
    %2038 = arith.mulf %2036, %2037 : vector<16x16xf32>
    %2039 = arith.mulf %2038, %1935 : vector<16x16xf32>
    %cst_698 = arith.constant -6.000000e-01 : f32
    %2040 = vector.broadcast %cst_698 : f32 to vector<16x16xf32>
    %2041 = arith.subf %2040, %1845 : vector<16x16xf32>
    %cst_699 = arith.constant 1.250000e+00 : f32
    %2042 = vector.broadcast %cst_699 : f32 to vector<16x16xf32>
    %2043 = arith.mulf %2041, %2042 : vector<16x16xf32>
    %2044 = arith.mulf %2043, %1946 : vector<16x16xf32>
    %2045 = arith.addf %2039, %2044 : vector<16x16xf32>
    %cst_700 = arith.constant -1.400000e+00 : f32
    %2046 = vector.broadcast %cst_700 : f32 to vector<16x16xf32>
    %2047 = arith.subf %1845, %2046 : vector<16x16xf32>
    %cst_701 = arith.constant 1.250000e+00 : f32
    %2048 = vector.broadcast %cst_701 : f32 to vector<16x16xf32>
    %2049 = arith.mulf %2047, %2048 : vector<16x16xf32>
    %2050 = arith.mulf %2049, %1946 : vector<16x16xf32>
    %cst_702 = arith.constant -2.000000e-01 : f32
    %2051 = vector.broadcast %cst_702 : f32 to vector<16x16xf32>
    %2052 = arith.subf %2051, %1845 : vector<16x16xf32>
    %cst_703 = arith.constant 1.250000e+00 : f32
    %2053 = vector.broadcast %cst_703 : f32 to vector<16x16xf32>
    %2054 = arith.mulf %2052, %2053 : vector<16x16xf32>
    %2055 = arith.mulf %2054, %1957 : vector<16x16xf32>
    %2056 = arith.addf %2050, %2055 : vector<16x16xf32>
    %cst_704 = arith.constant -1.000000e+00 : f32
    %2057 = vector.broadcast %cst_704 : f32 to vector<16x16xf32>
    %2058 = arith.subf %1845, %2057 : vector<16x16xf32>
    %cst_705 = arith.constant 1.250000e+00 : f32
    %2059 = vector.broadcast %cst_705 : f32 to vector<16x16xf32>
    %2060 = arith.mulf %2058, %2059 : vector<16x16xf32>
    %2061 = arith.mulf %2060, %1957 : vector<16x16xf32>
    %cst_706 = arith.constant 2.000000e-01 : f32
    %2062 = vector.broadcast %cst_706 : f32 to vector<16x16xf32>
    %2063 = arith.subf %2062, %1845 : vector<16x16xf32>
    %cst_707 = arith.constant 1.250000e+00 : f32
    %2064 = vector.broadcast %cst_707 : f32 to vector<16x16xf32>
    %2065 = arith.mulf %2063, %2064 : vector<16x16xf32>
    %2066 = arith.mulf %2065, %1968 : vector<16x16xf32>
    %2067 = arith.addf %2061, %2066 : vector<16x16xf32>
    %cst_708 = arith.constant -6.000000e-01 : f32
    %2068 = vector.broadcast %cst_708 : f32 to vector<16x16xf32>
    %2069 = arith.subf %1845, %2068 : vector<16x16xf32>
    %cst_709 = arith.constant 1.250000e+00 : f32
    %2070 = vector.broadcast %cst_709 : f32 to vector<16x16xf32>
    %2071 = arith.mulf %2069, %2070 : vector<16x16xf32>
    %2072 = arith.mulf %2071, %1968 : vector<16x16xf32>
    %cst_710 = arith.constant 6.000000e-01 : f32
    %2073 = vector.broadcast %cst_710 : f32 to vector<16x16xf32>
    %2074 = arith.subf %2073, %1845 : vector<16x16xf32>
    %cst_711 = arith.constant 1.250000e+00 : f32
    %2075 = vector.broadcast %cst_711 : f32 to vector<16x16xf32>
    %2076 = arith.mulf %2074, %2075 : vector<16x16xf32>
    %2077 = arith.mulf %2076, %1979 : vector<16x16xf32>
    %2078 = arith.addf %2072, %2077 : vector<16x16xf32>
    %cst_712 = arith.constant -2.000000e-01 : f32
    %2079 = vector.broadcast %cst_712 : f32 to vector<16x16xf32>
    %2080 = arith.subf %1845, %2079 : vector<16x16xf32>
    %cst_713 = arith.constant 1.250000e+00 : f32
    %2081 = vector.broadcast %cst_713 : f32 to vector<16x16xf32>
    %2082 = arith.mulf %2080, %2081 : vector<16x16xf32>
    %2083 = arith.mulf %2082, %1979 : vector<16x16xf32>
    %cst_714 = arith.constant 1.000000e+00 : f32
    %2084 = vector.broadcast %cst_714 : f32 to vector<16x16xf32>
    %2085 = arith.subf %2084, %1845 : vector<16x16xf32>
    %cst_715 = arith.constant 1.250000e+00 : f32
    %2086 = vector.broadcast %cst_715 : f32 to vector<16x16xf32>
    %2087 = arith.mulf %2085, %2086 : vector<16x16xf32>
    %2088 = arith.mulf %2087, %1990 : vector<16x16xf32>
    %2089 = arith.addf %2083, %2088 : vector<16x16xf32>
    %cst_716 = arith.constant 2.000000e-01 : f32
    %2090 = vector.broadcast %cst_716 : f32 to vector<16x16xf32>
    %2091 = arith.subf %1845, %2090 : vector<16x16xf32>
    %cst_717 = arith.constant 1.250000e+00 : f32
    %2092 = vector.broadcast %cst_717 : f32 to vector<16x16xf32>
    %2093 = arith.mulf %2091, %2092 : vector<16x16xf32>
    %2094 = arith.mulf %2093, %1990 : vector<16x16xf32>
    %cst_718 = arith.constant 1.400000e+00 : f32
    %2095 = vector.broadcast %cst_718 : f32 to vector<16x16xf32>
    %2096 = arith.subf %2095, %1845 : vector<16x16xf32>
    %cst_719 = arith.constant 1.250000e+00 : f32
    %2097 = vector.broadcast %cst_719 : f32 to vector<16x16xf32>
    %2098 = arith.mulf %2096, %2097 : vector<16x16xf32>
    %2099 = arith.mulf %2098, %2001 : vector<16x16xf32>
    %2100 = arith.addf %2094, %2099 : vector<16x16xf32>
    %cst_720 = arith.constant 6.000000e-01 : f32
    %2101 = vector.broadcast %cst_720 : f32 to vector<16x16xf32>
    %2102 = arith.subf %1845, %2101 : vector<16x16xf32>
    %cst_721 = arith.constant 1.250000e+00 : f32
    %2103 = vector.broadcast %cst_721 : f32 to vector<16x16xf32>
    %2104 = arith.mulf %2102, %2103 : vector<16x16xf32>
    %2105 = arith.mulf %2104, %2001 : vector<16x16xf32>
    %cst_722 = arith.constant 1.800000e+00 : f32
    %2106 = vector.broadcast %cst_722 : f32 to vector<16x16xf32>
    %2107 = arith.subf %2106, %1845 : vector<16x16xf32>
    %cst_723 = arith.constant 1.250000e+00 : f32
    %2108 = vector.broadcast %cst_723 : f32 to vector<16x16xf32>
    %2109 = arith.mulf %2107, %2108 : vector<16x16xf32>
    %2110 = arith.mulf %2109, %2012 : vector<16x16xf32>
    %2111 = arith.addf %2105, %2110 : vector<16x16xf32>
    %cst_724 = arith.constant 1.000000e+00 : f32
    %2112 = vector.broadcast %cst_724 : f32 to vector<16x16xf32>
    %2113 = arith.subf %1845, %2112 : vector<16x16xf32>
    %cst_725 = arith.constant 1.250000e+00 : f32
    %2114 = vector.broadcast %cst_725 : f32 to vector<16x16xf32>
    %2115 = arith.mulf %2113, %2114 : vector<16x16xf32>
    %2116 = arith.mulf %2115, %2012 : vector<16x16xf32>
    %cst_726 = arith.constant 2.200000e+00 : f32
    %2117 = vector.broadcast %cst_726 : f32 to vector<16x16xf32>
    %2118 = arith.subf %2117, %1845 : vector<16x16xf32>
    %cst_727 = arith.constant 1.250000e+00 : f32
    %2119 = vector.broadcast %cst_727 : f32 to vector<16x16xf32>
    %2120 = arith.mulf %2118, %2119 : vector<16x16xf32>
    %2121 = arith.mulf %2120, %2023 : vector<16x16xf32>
    %2122 = arith.addf %2116, %2121 : vector<16x16xf32>
    %cst_728 = arith.constant -2.200000e+00 : f32
    %2123 = vector.broadcast %cst_728 : f32 to vector<16x16xf32>
    %2124 = arith.subf %1845, %2123 : vector<16x16xf32>
    %cst_729 = arith.constant 0.833333313 : f32
    %2125 = vector.broadcast %cst_729 : f32 to vector<16x16xf32>
    %2126 = arith.mulf %2124, %2125 : vector<16x16xf32>
    %2127 = arith.mulf %2126, %2034 : vector<16x16xf32>
    %cst_730 = arith.constant -6.000000e-01 : f32
    %2128 = vector.broadcast %cst_730 : f32 to vector<16x16xf32>
    %2129 = arith.subf %2128, %1845 : vector<16x16xf32>
    %cst_731 = arith.constant 0.833333313 : f32
    %2130 = vector.broadcast %cst_731 : f32 to vector<16x16xf32>
    %2131 = arith.mulf %2129, %2130 : vector<16x16xf32>
    %2132 = arith.mulf %2131, %2045 : vector<16x16xf32>
    %2133 = arith.addf %2127, %2132 : vector<16x16xf32>
    %cst_732 = arith.constant -1.800000e+00 : f32
    %2134 = vector.broadcast %cst_732 : f32 to vector<16x16xf32>
    %2135 = arith.subf %1845, %2134 : vector<16x16xf32>
    %cst_733 = arith.constant 0.833333313 : f32
    %2136 = vector.broadcast %cst_733 : f32 to vector<16x16xf32>
    %2137 = arith.mulf %2135, %2136 : vector<16x16xf32>
    %2138 = arith.mulf %2137, %2045 : vector<16x16xf32>
    %cst_734 = arith.constant -2.000000e-01 : f32
    %2139 = vector.broadcast %cst_734 : f32 to vector<16x16xf32>
    %2140 = arith.subf %2139, %1845 : vector<16x16xf32>
    %cst_735 = arith.constant 0.833333313 : f32
    %2141 = vector.broadcast %cst_735 : f32 to vector<16x16xf32>
    %2142 = arith.mulf %2140, %2141 : vector<16x16xf32>
    %2143 = arith.mulf %2142, %2056 : vector<16x16xf32>
    %2144 = arith.addf %2138, %2143 : vector<16x16xf32>
    %cst_736 = arith.constant -1.400000e+00 : f32
    %2145 = vector.broadcast %cst_736 : f32 to vector<16x16xf32>
    %2146 = arith.subf %1845, %2145 : vector<16x16xf32>
    %cst_737 = arith.constant 0.833333313 : f32
    %2147 = vector.broadcast %cst_737 : f32 to vector<16x16xf32>
    %2148 = arith.mulf %2146, %2147 : vector<16x16xf32>
    %2149 = arith.mulf %2148, %2056 : vector<16x16xf32>
    %cst_738 = arith.constant 2.000000e-01 : f32
    %2150 = vector.broadcast %cst_738 : f32 to vector<16x16xf32>
    %2151 = arith.subf %2150, %1845 : vector<16x16xf32>
    %cst_739 = arith.constant 0.833333313 : f32
    %2152 = vector.broadcast %cst_739 : f32 to vector<16x16xf32>
    %2153 = arith.mulf %2151, %2152 : vector<16x16xf32>
    %2154 = arith.mulf %2153, %2067 : vector<16x16xf32>
    %2155 = arith.addf %2149, %2154 : vector<16x16xf32>
    %cst_740 = arith.constant -1.000000e+00 : f32
    %2156 = vector.broadcast %cst_740 : f32 to vector<16x16xf32>
    %2157 = arith.subf %1845, %2156 : vector<16x16xf32>
    %cst_741 = arith.constant 0.833333313 : f32
    %2158 = vector.broadcast %cst_741 : f32 to vector<16x16xf32>
    %2159 = arith.mulf %2157, %2158 : vector<16x16xf32>
    %2160 = arith.mulf %2159, %2067 : vector<16x16xf32>
    %cst_742 = arith.constant 6.000000e-01 : f32
    %2161 = vector.broadcast %cst_742 : f32 to vector<16x16xf32>
    %2162 = arith.subf %2161, %1845 : vector<16x16xf32>
    %cst_743 = arith.constant 0.833333313 : f32
    %2163 = vector.broadcast %cst_743 : f32 to vector<16x16xf32>
    %2164 = arith.mulf %2162, %2163 : vector<16x16xf32>
    %2165 = arith.mulf %2164, %2078 : vector<16x16xf32>
    %2166 = arith.addf %2160, %2165 : vector<16x16xf32>
    %cst_744 = arith.constant -6.000000e-01 : f32
    %2167 = vector.broadcast %cst_744 : f32 to vector<16x16xf32>
    %2168 = arith.subf %1845, %2167 : vector<16x16xf32>
    %cst_745 = arith.constant 0.833333313 : f32
    %2169 = vector.broadcast %cst_745 : f32 to vector<16x16xf32>
    %2170 = arith.mulf %2168, %2169 : vector<16x16xf32>
    %2171 = arith.mulf %2170, %2078 : vector<16x16xf32>
    %cst_746 = arith.constant 1.000000e+00 : f32
    %2172 = vector.broadcast %cst_746 : f32 to vector<16x16xf32>
    %2173 = arith.subf %2172, %1845 : vector<16x16xf32>
    %cst_747 = arith.constant 0.833333313 : f32
    %2174 = vector.broadcast %cst_747 : f32 to vector<16x16xf32>
    %2175 = arith.mulf %2173, %2174 : vector<16x16xf32>
    %2176 = arith.mulf %2175, %2089 : vector<16x16xf32>
    %2177 = arith.addf %2171, %2176 : vector<16x16xf32>
    %cst_748 = arith.constant -2.000000e-01 : f32
    %2178 = vector.broadcast %cst_748 : f32 to vector<16x16xf32>
    %2179 = arith.subf %1845, %2178 : vector<16x16xf32>
    %cst_749 = arith.constant 0.833333313 : f32
    %2180 = vector.broadcast %cst_749 : f32 to vector<16x16xf32>
    %2181 = arith.mulf %2179, %2180 : vector<16x16xf32>
    %2182 = arith.mulf %2181, %2089 : vector<16x16xf32>
    %cst_750 = arith.constant 1.400000e+00 : f32
    %2183 = vector.broadcast %cst_750 : f32 to vector<16x16xf32>
    %2184 = arith.subf %2183, %1845 : vector<16x16xf32>
    %cst_751 = arith.constant 0.833333313 : f32
    %2185 = vector.broadcast %cst_751 : f32 to vector<16x16xf32>
    %2186 = arith.mulf %2184, %2185 : vector<16x16xf32>
    %2187 = arith.mulf %2186, %2100 : vector<16x16xf32>
    %2188 = arith.addf %2182, %2187 : vector<16x16xf32>
    %cst_752 = arith.constant 2.000000e-01 : f32
    %2189 = vector.broadcast %cst_752 : f32 to vector<16x16xf32>
    %2190 = arith.subf %1845, %2189 : vector<16x16xf32>
    %cst_753 = arith.constant 0.833333313 : f32
    %2191 = vector.broadcast %cst_753 : f32 to vector<16x16xf32>
    %2192 = arith.mulf %2190, %2191 : vector<16x16xf32>
    %2193 = arith.mulf %2192, %2100 : vector<16x16xf32>
    %cst_754 = arith.constant 1.800000e+00 : f32
    %2194 = vector.broadcast %cst_754 : f32 to vector<16x16xf32>
    %2195 = arith.subf %2194, %1845 : vector<16x16xf32>
    %cst_755 = arith.constant 0.833333313 : f32
    %2196 = vector.broadcast %cst_755 : f32 to vector<16x16xf32>
    %2197 = arith.mulf %2195, %2196 : vector<16x16xf32>
    %2198 = arith.mulf %2197, %2111 : vector<16x16xf32>
    %2199 = arith.addf %2193, %2198 : vector<16x16xf32>
    %cst_756 = arith.constant 6.000000e-01 : f32
    %2200 = vector.broadcast %cst_756 : f32 to vector<16x16xf32>
    %2201 = arith.subf %1845, %2200 : vector<16x16xf32>
    %cst_757 = arith.constant 0.833333313 : f32
    %2202 = vector.broadcast %cst_757 : f32 to vector<16x16xf32>
    %2203 = arith.mulf %2201, %2202 : vector<16x16xf32>
    %2204 = arith.mulf %2203, %2111 : vector<16x16xf32>
    %cst_758 = arith.constant 2.200000e+00 : f32
    %2205 = vector.broadcast %cst_758 : f32 to vector<16x16xf32>
    %2206 = arith.subf %2205, %1845 : vector<16x16xf32>
    %cst_759 = arith.constant 0.833333313 : f32
    %2207 = vector.broadcast %cst_759 : f32 to vector<16x16xf32>
    %2208 = arith.mulf %2206, %2207 : vector<16x16xf32>
    %2209 = arith.mulf %2208, %2122 : vector<16x16xf32>
    %2210 = arith.addf %2204, %2209 : vector<16x16xf32>
    %2211 = tpu.concatenate %1854, %2133, %2144, %2155, %2166, %2177, %2188, %2199, %2210 in 0 : vector<16x16xf32>, vector<16x16xf32>, vector<16x16xf32>, vector<16x16xf32>, vector<16x16xf32>, vector<16x16xf32>, vector<16x16xf32>, vector<16x16xf32>, vector<16x16xf32> -> vector<144x16xf32>
    %cst_760 = arith.constant dense<0.000000e+00> : vector<2x16xf32>
    %2212 = tpu.matmul %1846, %2211, %cst_760 {dimension_numbers = #tpu.dot_dimension_numbers<[1], [0], [0], [1], [0, 0, 1, 1], [], []>} : vector<2x144xf32>, vector<144x16xf32>, vector<2x16xf32> -> vector<2x16xf32>
    %cst_761 = arith.constant 5.000000e-01 : f32
    %2213 = vector.broadcast %cst_761 : f32 to vector<2x16xf32>
    %2214 = arith.mulf %2213, %2212 : vector<2x16xf32>
    %2215 = math.tanh %2214 : vector<2x16xf32>
    %cst_762 = arith.constant 1.000000e+00 : f32
    %2216 = vector.broadcast %cst_762 : f32 to vector<2x16xf32>
    %2217 = arith.addf %2215, %2216 : vector<2x16xf32>
    %cst_763 = arith.constant 5.000000e-01 : f32
    %2218 = vector.broadcast %cst_763 : f32 to vector<2x16xf32>
    %2219 = arith.mulf %2218, %2217 : vector<2x16xf32>
    %c0_764 = arith.constant 0 : index
    %c0_765 = arith.constant 0 : index
    %2220 = vector.load %arg8[%c0_764, %c0_765] : memref<2x16xf32, #tpu.memory_space<vmem>>, vector<2x16xf32>
    tpu.vector_store %arg8[%c0_764, %c0_765], %2219 {strides = array<i32>} : memref<2x16xf32, #tpu.memory_space<vmem>>, vector<2x16xf32>,
    return
  }
  func.func @transform_0(%arg0: i32) -> (i32, i32) {
    %c0_i32 = arith.constant 0 : i32
    %c0_i32_0 = arith.constant 0 : i32
    return %c0_i32, %arg0 : i32, i32
  }
  func.func @transform_1(%arg0: i32) -> (i32, i32) {
    %c0_i32 = arith.constant 0 : i32
    %c0_i32_0 = arith.constant 0 : i32
    %c0_i32_1 = arith.constant 0 : i32
    return %c0_i32, %c0_i32_0 : i32, i32
  }
  func.func @transform_2(%arg0: i32) -> (i32, i32) {
    %c0_i32 = arith.constant 0 : i32
    %c0_i32_0 = arith.constant 0 : i32
    %c0_i32_1 = arith.constant 0 : i32
    return %c0_i32, %c0_i32_0 : i32, i32
  }
  func.func @transform_3(%arg0: i32) -> (i32, i32) {
    %c0_i32 = arith.constant 0 : i32
    %c0_i32_0 = arith.constant 0 : i32
    %c0_i32_1 = arith.constant 0 : i32
    return %c0_i32, %c0_i32_0 : i32, i32
  }
  func.func @transform_4(%arg0: i32) -> (i32, i32) {
    %c0_i32 = arith.constant 0 : i32
    %c0_i32_0 = arith.constant 0 : i32
    %c0_i32_1 = arith.constant 0 : i32
    return %c0_i32, %c0_i32_0 : i32, i32
  }
  func.func @transform_5(%arg0: i32) -> (i32, i32) {
    %c0_i32 = arith.constant 0 : i32
    %c0_i32_0 = arith.constant 0 : i32
    %c0_i32_1 = arith.constant 0 : i32
    return %c0_i32, %c0_i32_0 : i32, i32
  }
  func.func @transform_6(%arg0: i32) -> (i32, i32) {
    %c0_i32 = arith.constant 0 : i32
    %c0_i32_0 = arith.constant 0 : i32
    %c0_i32_1 = arith.constant 0 : i32
    return %c0_i32, %c0_i32_0 : i32, i32
  }
  func.func @transform_7(%arg0: i32) -> (i32, i32) {
    %c0_i32 = arith.constant 0 : i32
    %c0_i32_0 = arith.constant 0 : i32
    return %c0_i32, %arg0 : i32, i32
  }
}

</mosaic_0001>

<bundles_post_ra>
// kernel: tpu_custom_call.1
= control target key start
LH: loop header
LB: loop body
LE: loop exit
PB: predicated region body
PF: predicated region fallthrough
CT: control target
= control target key end

     0   :  { %12 = vsyncpa [#allocation3], 0  ;;  %s7209_s0 = inlined_call_operand.hbm [shape: f32[8,16], index: 0, kind: input, shape index: {}]   ;;  %s7210_s1 = inlined_call_operand.hbm [shape: f32[32,72], index: 1, kind: input, shape index: {}]   ;;  %s7211_s2 = inlined_call_operand.hbm [shape: f32[32,288], index: 2, kind: input, shape index: {}]   ;;  %s7212_s3 = inlined_call_operand.hbm [shape: f32[16,288], index: 3, kind: input, shape index: {}]   ;;  %s7213_s4 = inlined_call_operand.hbm [shape: f32[16,144], index: 4, kind: input, shape index: {}]   ;;  %s7214_s5 = inlined_call_operand.hbm [shape: f32[16,144], index: 5, kind: input, shape index: {}]   ;;  %s7215_s6 = inlined_call_operand.vmem [shape: f32[2,144], index: 6, kind: input, shape index: {}]   ;;  %s7216_s7 = inlined_call_operand.hbm [shape: f32[2,16], index: 7, kind: output, shape index: {}]  }
   0x1   :  { %13 = vsyncpa [#allocation6], 0 }
   0x2   :  { %14 = vsyncpa [#allocation9], 0 }
   0x3   :  { %15 = vsyncpa [#allocation12], 0 }
   0x4   :  { %16 = vsyncpa [#allocation4], 0  ;;  %s4856_s24 = smov [#allocation5]   ;;  %s4692_s28 = scalar_lea.hbm %s7210_s1, 512 }
   0x5   :  { %s32_s25 = sshll.u32 %s4856_s24, 4  ;;  %p4693_p0 = scmp.ne.s32.totalorder %s7210_s1, %s4692_s28  ;;  %s33_s25 = int_to_ptr.vmem [resolvable:$true] %s32_s25 }
   0x6   :  { %p4696_p1 = scmp.lt.u32.totalorder %s4692_s28, %s7210_s1 }
   0x8   :  { %p4698_p2 = pnand %p4696_p1, %p4693_p0 }
   0xa   :  { %4701 = shalt.err (!%p4698_p2)
}
   0xb   :  { %s4702_s10 = scalar_lea.vmem %s33_s25, 512  ;;  %p4707_p4 = scmp.lt.s32.totalorder %s33_s25, %s33_s25 }
   0xc   :  { %p4703_p3 = scmp.ne.s32.totalorder %s33_s25, %s4702_s10  ;;  %p4708_p5 = scmp.lt.s32.totalorder %s4702_s10, %s4702_s10 }
   0xe   :  { %p4709_p6 = por %p4708_p5, %p4707_p4 }
  0x10   :  { %p4710_p7 = pnand %p4709_p6, %p4703_p3 }
  0x12   :  { %4713 = shalt.err (!%p4710_p7)
}
  0x13   :  { %s4857_s11 = smov 128   ;;  %s4858_s12 = smov 8  }
  0x14   :  { %38 = dma.hbm_to_vmem [thread:$0]  %s7210_s1, 512, %s33_s25, [#allocation6], %s4857_s11, %s4857_s11, %s4858_s12  }
  0x15   :  { %s4859_s15 = smov [#allocation8]   ;;  %s4860_s17 = smov [#allocation2]  }
  0x16   :  { %s56_s16 = sshll.u32 %s4859_s15, 4  ;;  %s23_s18 = sshll.u32 %s4860_s17, 4  ;;  %s57_s16 = int_to_ptr.vmem [resolvable:$true] %s56_s16  ;;  %s24_s18 = int_to_ptr.vmem [resolvable:$true] %s23_s18 }
  0x17   :  { %s4714_s21 = scalar_lea.hbm %s7212_s3, 768 }
  0x18   :  { %p4715_p8 = scmp.ne.s32.totalorder %s7212_s3, %s4714_s21  ;;  %p4718_p9 = scmp.lt.u32.totalorder %s4714_s21, %s7212_s3 }
  0x1a   :  { %p4720_p10 = pnand %p4718_p9, %p4715_p8 }
  0x1c   :  { %4723 = shalt.err (!%p4720_p10)
}
  0x1d   :  { %s4724_s1 = scalar_lea.vmem %s57_s16, 768  ;;  %p4729_p12 = scmp.lt.s32.totalorder %s57_s16, %s57_s16 }
  0x1e   :  { %p4725_p11 = scmp.ne.s32.totalorder %s57_s16, %s4724_s1  ;;  %p4730_p13 = scmp.lt.s32.totalorder %s4724_s1, %s4724_s1 }
  0x20   :  { %p4731_p0 = por %p4730_p13, %p4729_p12 }
  0x22   :  { %p4732_p1 = pnand %p4731_p0, %p4725_p11 }
  0x24   :  { %4735 = shalt.err (!%p4732_p1)
}
  0x25   :  { %s4861_s25 = smov 384   ;;  %s4862_s27 = smov 24  }
  0x26   :  { %62 = dma.hbm_to_vmem [thread:$0]  %s7212_s3, 768, %s57_s16, [#allocation9], %s4861_s25, %s4861_s25, %s4862_s27  }
  0x27   :  { %s4736_s9 = scalar_lea.hbm %s7209_s0, 128 }
  0x28   :  { %p4737_p2 = scmp.ne.s32.totalorder %s7209_s0, %s4736_s9  ;;  %p4740_p3 = scmp.lt.u32.totalorder %s4736_s9, %s7209_s0 }
  0x2a   :  { %p4742_p4 = pnand %p4740_p3, %p4737_p2 }
  0x2c   :  { %4745 = shalt.err (!%p4742_p4)
}
  0x2d   :  { %s4746_s14 = scalar_lea.vmem %s24_s18, 128  ;;  %p4751_p6 = scmp.lt.s32.totalorder %s24_s18, %s24_s18 }
  0x2e   :  { %p4747_p5 = scmp.ne.s32.totalorder %s24_s18, %s4746_s14  ;;  %p4752_p7 = scmp.lt.s32.totalorder %s4746_s14, %s4746_s14 }
  0x30   :  { %p4753_p8 = por %p4752_p7, %p4751_p6 }
  0x32   :  { %p4754_p9 = pnand %p4753_p8, %p4747_p5 }
  0x34   :  { %4757 = shalt.err (!%p4754_p9)
}
  0x35   :  { %26 = dma.hbm_to_vmem [thread:$0]  %s7209_s0, 128, %s24_s18, [#allocation3]  }
  0x36   :  { %s4863_s16 = smov [#allocation7]   ;;  %s4864_s19 = smov [#allocation10]  }
  0x37   :  { %s44_s17 = sshll.u32 %s4863_s16, 4  ;;  %s68_s20 = sshll.u32 %s4864_s19, 4  ;;  %s45_s17 = int_to_ptr.vmem [resolvable:$true] %s44_s17  ;;  %s69_s20 = int_to_ptr.vmem [resolvable:$true] %s68_s20 }
  0x38   :  { %s4758_s23 = scalar_lea.hbm %s7211_s2, 1536 }
  0x39   :  { %p4759_p10 = scmp.ne.s32.totalorder %s7211_s2, %s4758_s23  ;;  %p4762_p11 = scmp.lt.u32.totalorder %s4758_s23, %s7211_s2 }
  0x3b   :  { %p4764_p12 = pnand %p4762_p11, %p4759_p10 }
  0x3d   :  { %4767 = shalt.err (!%p4764_p12)
}
  0x3e   :  { %s4768_s0 = scalar_lea.vmem %s45_s17, 1536  ;;  %p4773_p0 = scmp.lt.s32.totalorder %s45_s17, %s45_s17 }
  0x3f   :  { %p4769_p13 = scmp.ne.s32.totalorder %s45_s17, %s4768_s0  ;;  %p4774_p1 = scmp.lt.s32.totalorder %s4768_s0, %s4768_s0 }
  0x41   :  { %p4775_p2 = por %p4774_p1, %p4773_p0 }
  0x43   :  { %p4776_p3 = pnand %p4775_p2, %p4769_p13 }
  0x45   :  { %4779 = shalt.err (!%p4776_p3)
}
  0x46   :  { %50 = dma.hbm_to_vmem [thread:$0]  %s7211_s2, 1536, %s45_s17, [#allocation6], %s4861_s25, %s4861_s25, %s4862_s27  }
  0x47   :  { %s4780_s9 = scalar_lea.hbm %s7213_s4, 512 }
  0x48   :  { %p4781_p4 = scmp.ne.s32.totalorder %s7213_s4, %s4780_s9  ;;  %p4784_p5 = scmp.lt.u32.totalorder %s4780_s9, %s7213_s4 }
  0x4a   :  { %p4786_p6 = pnand %p4784_p5, %p4781_p4 }
  0x4c   :  { %4789 = shalt.err (!%p4786_p6)
}
  0x4d   :  { %s4790_s14 = scalar_lea.vmem %s69_s20, 512  ;;  %p4795_p8 = scmp.lt.s32.totalorder %s69_s20, %s69_s20 }
  0x4e   :  { %p4791_p7 = scmp.ne.s32.totalorder %s69_s20, %s4790_s14  ;;  %p4796_p9 = scmp.lt.s32.totalorder %s4790_s14, %s4790_s14 }
  0x50   :  { %p4797_p10 = por %p4796_p9, %p4795_p8 }
  0x52   :  { %p4798_p11 = pnand %p4797_p10, %p4791_p7 }
  0x54   :  { %4801 = shalt.err (!%p4798_p11)
}
  0x55   :  { %s4865_s2 = smov 256   ;;  %s4866_s25 = smov 16  }
  0x56   :  { %74 = dma.hbm_to_vmem [thread:$0]  %s7213_s4, 512, %s69_s20, [#allocation9], %s4865_s2, %s4865_s2, %s4866_s25  }
  0x57   :  { %s4867_s15 = smov [#allocation11]   ;;  %s4802_s21 = scalar_lea.hbm %s7214_s5, 512 }
  0x58   :  { %s80_s16 = sshll.u32 %s4867_s15, 4  ;;  %p4803_p12 = scmp.ne.s32.totalorder %s7214_s5, %s4802_s21  ;;  %s81_s16 = int_to_ptr.vmem [resolvable:$true] %s80_s16 }
  0x59   :  { %p4806_p13 = scmp.lt.u32.totalorder %s4802_s21, %s7214_s5 }
  0x5b   :  { %p4808_p0 = pnand %p4806_p13, %p4803_p12 }
  0x5d   :  { %4811 = shalt.err (!%p4808_p0)
}
  0x5e   :  { %s4812_s1 = scalar_lea.vmem %s81_s16, 512  ;;  %p4817_p2 = scmp.lt.s32.totalorder %s81_s16, %s81_s16 }
  0x5f   :  { %p4813_p1 = scmp.ne.s32.totalorder %s81_s16, %s4812_s1  ;;  %p4818_p3 = scmp.lt.s32.totalorder %s4812_s1, %s4812_s1 }
  0x61   :  { %p4819_p4 = por %p4818_p3, %p4817_p2 }
  0x63   :  { %p4820_p5 = pnand %p4819_p4, %p4813_p1 }
  0x65   :  { %4823 = shalt.err (!%p4820_p5)
}
  0x66   :  { %86 = dma.hbm_to_vmem [thread:$0]  %s7214_s5, 512, %s81_s16, [#allocation12], %s4865_s2, %s4865_s2, %s4866_s25  }
  0x67   :  { %4846 = dma.done.wait [#allocation3], 128  }
  0x68   :  { %4847 = vsyncadd [#allocation3], 4294967168 }
  0x69   :  { %4848 = dma.done.wait [#allocation6], 2048  }
  0x6a   :  { %4849 = vsyncadd [#allocation6], 4294965248 }
  0x6b   :  { %4850 = dma.done.wait [#allocation9], 1280  }
  0x6c   :  { %4851 = vsyncadd [#allocation9], 4294966016 }
  0x6d   :  { %4852 = dma.done.wait [#allocation12], 512  }
  0x6e   :  { %4853 = vsyncadd [#allocation12], 4294966784  ;;  %vm319_vm0 = vcmask 588800   ;;  %v4989_v0 = vld [vmem:[#allocation2] sm:$0xff]  ;;  %v108_v1 = vld [vmem:[#allocation5] sm:$0xff]  ;;  %v7217_v3 = vmov 0.0  }
  0x6f   :  { %v112_v2 = vmul.f32 0.5, %v4989_v0  ;;  %vm117_vm1 = vcmp.ge.f32.partialorder %v4989_v0, -2.2  ;;  %vm120_vm2 = vcmp.ge.f32.partialorder %v4989_v0, -1.8  ;;  %vm126_vm3 = vcmp.ge.f32.partialorder %v4989_v0, -1.0  ;;  %4437 = vmatprep.mubr.msk.f32.mxu0 %vm319_vm0, %v108_v1 }
  0x70   :  { %v3964_v4 = vsel %vm117_vm1, 1.0, %v7217_v3  ;;  %v3965_v5 = vsel %vm120_vm2, 1.0, %v7217_v3  ;;  %vm123_vm4 = vcmp.ge.f32.partialorder %v4989_v0, -1.4  ;;  %v3967_v6 = vsel %vm126_vm3, 1.0, %v7217_v3 }
  0x71   :  { %4660 = vtanh.f32 %v112_v2  ;;  %v3966_v7 = vsel %vm123_vm4, 1.0, %v7217_v3  ;;  %vm129_vm5 = vcmp.ge.f32.partialorder %v4989_v0, -0.6  ;;  %vm132_vm6 = vcmp.ge.f32.partialorder %v4989_v0, -0.2 }
  0x72   :  { %v3968_v8 = vsel %vm129_vm5, 1.0, %v7217_v3  ;;  %v3969_v9 = vsel %vm132_vm6, 1.0, %v7217_v3  ;;  %v153_v10 = vsub.f32 %v3964_v4, %v3965_v5  ;;  %v154_v11 = vsub.f32 %v3965_v5, %v3966_v7 }
  0x73   :  { %v155_v12 = vsub.f32 %v3966_v7, %v3967_v6  ;;  %v156_v13 = vsub.f32 %v3967_v6, %v3968_v8  ;;  %v157_v14 = vsub.f32 %v3968_v8, %v3969_v9  ;;  %v3976_v15 = vadd.f32 2.2, %v4989_v0 }
  0x74   :  { %v167_v16 = vsub.f32 -1.4, %v4989_v0  ;;  %v3977_v17 = vadd.f32 1.8, %v4989_v0  ;;  %v174_v18 = vsub.f32 -1.0, %v4989_v0  ;;  %v5010_v19 = vadd.f32 1.0, %v4989_v0 }
  0x75   :  { %v165_v20 = vmul.f32 2.5, %v3976_v15  ;;  %v3978_v21 = vadd.f32 1.4, %v4989_v0  ;;  %v181_v22 = vsub.f32 -0.6, %v4989_v0  ;;  %v234_v23 = vmul.f32 1.25, %v3976_v15 }
  0x76   :  { %v168_v24 = vmul.f32 2.5, %v167_v16  ;;  %v172_v25 = vmul.f32 2.5, %v3977_v17  ;;  %v175_v26 = vmul.f32 2.5, %v174_v18  ;;  %v236_v27 = vmul.f32 1.25, %v174_v18 }
  0x77   :  { %v166_v28 = vmul.f32 %v165_v20, %v153_v10  ;;  %v179_v29 = vmul.f32 2.5, %v3978_v21  ;;  %v182_v30 = vmul.f32 2.5, %v181_v22  ;;  %v239_v31 = vmul.f32 1.25, %v3977_v17 }
  0x78   :  { %v169_v32 = vmul.f32 %v168_v24, %v154_v11  ;;  %v173_v33 = vmul.f32 %v172_v25, %v154_v11  ;;  %v176_v34 = vmul.f32 %v175_v26, %v155_v12  ;;  %v241_v35 = vmul.f32 1.25, %v181_v22 }
  0x79   :  { %v180_v36 = vmul.f32 %v179_v29, %v155_v12  ;;  %v183_v37 = vmul.f32 %v182_v30, %v156_v13  ;;  %v279_v38 = vmul.f32 0.8333333, %v3976_v15  ;;  %v281_v39 = vmul.f32 0.8333333, %v181_v22 }
  0x7a   :  { %v170_v40 = vadd.f32 %v169_v32, %v166_v28  ;;  %v177_v41 = vadd.f32 %v176_v34, %v173_v33  ;;  %vm135_vm7 = vcmp.ge.f32.partialorder %v4989_v0, 0.2  ;;  %v186_v42 = vmul.f32 2.5, %v5010_v19 }
  0x7b   :  { %v4661_v43 = vpop.eup %4660  ;;  %v184_v44 = vadd.f32 %v183_v37, %v180_v36  ;;  %v3970_v45 = vsel %vm135_vm7, 1.0, %v7217_v3  ;;  %v188_v46 = vsub.f32 -0.2, %v4989_v0  ;;  %v5019_v47 = vadd.f32 0.6, %v4989_v0 }
  0x7c   :  { %v114_v48 = vadd.f32 1.0, %v4661_v43  ;;  %v235_v49 = vmul.f32 %v234_v23, %v170_v40  ;;  %v237_v50 = vmul.f32 %v236_v27, %v177_v41  ;;  %v240_v51 = vmul.f32 %v239_v31, %v177_v41 }
  0x7d   :  { %v242_v52 = vmul.f32 %v241_v35, %v184_v44  ;;  %v158_v53 = vsub.f32 %v3969_v9, %v3970_v45  ;;  %v187_v54 = vmul.f32 %v186_v42, %v156_v13  ;;  %v189_v55 = vmul.f32 2.5, %v188_v46 }
  0x7e   :  { %v115_v56 = vmul.f32 0.5, %v114_v48  ;;  %v238_v57 = vadd.f32 %v237_v50, %v235_v49  ;;  %v193_v58 = vmul.f32 2.5, %v5019_v47  ;;  %v195_v59 = vsub.f32 0.2, %v4989_v0 }
  0x7f   :  { %v243_v60 = vadd.f32 %v242_v52, %v240_v51  ;;  %v190_v61 = vmul.f32 %v189_v55, %v157_v14  ;;  %v244_v62 = vmul.f32 1.25, %v3978_v21  ;;  %v246_v63 = vmul.f32 1.25, %v188_v46 }
  0x80   :  { %v116_v1 = vmul.f32 %v115_v56, %v4989_v0  ;;  %v280_v2 = vmul.f32 %v279_v38, %v238_v57  ;;  %v194_v4 = vmul.f32 %v193_v58, %v157_v14  ;;  %v196_v5 = vmul.f32 2.5, %v195_v59 }
  0x81   :  { %v282_v6 = vmul.f32 %v281_v39, %v243_v60  ;;  %v191_v7 = vadd.f32 %v190_v61, %v187_v54  ;;  %v245_v8 = vmul.f32 %v244_v62, %v184_v44  ;;  %v249_v9 = vmul.f32 1.25, %v5010_v19 }
  0x82   :  { %v197_v10 = vmul.f32 %v196_v5, %v158_v53  ;;  %v251_v11 = vmul.f32 1.25, %v195_v59  ;;  %v284_v12 = vmul.f32 0.8333333, %v3977_v17  ;;  %v286_v13 = vmul.f32 0.8333333, %v188_v46 }
  0x83   :  { %v283_v15 = vadd.f32 %v282_v6, %v280_v2  ;;  %v247_v16 = vmul.f32 %v246_v63, %v191_v7  ;;  %v250_v18 = vmul.f32 %v249_v9, %v191_v7  ;;  %v289_v20 = vmul.f32 0.8333333, %v3978_v21 }
  0x84   :  { %v198_v22 = vadd.f32 %v197_v10, %v194_v4  ;;  %v285_v23 = vmul.f32 %v284_v12, %v243_v60  ;;  %v291_v24 = vmul.f32 0.8333333, %v195_v59  ;;  %vm138_vm8 = vcmp.ge.f32.partialorder %v4989_v0, 0.6 }
  0x85   :  { %v4468_v14 = vpack.c.bf16 %v283_v15, %v116_v1  ;;  %v248_v25 = vadd.f32 %v247_v16, %v245_v8  ;;  %v3971_v26 = vsel %vm138_vm8, 1.0, %v7217_v3  ;;  %vm141_vm9 = vcmp.ge.f32.partialorder %v4989_v0, 1.0 }
  0x86   :  { %v252_v27 = vmul.f32 %v251_v11, %v198_v22  ;;  %v3972_v28 = vsel %vm141_vm9, 1.0, %v7217_v3  ;;  %v159_v17 = vsub.f32 %v3970_v45, %v3971_v26  ;;  %v5030_v29 = vadd.f32 0.2, %v4989_v0 }
  0x87   :  { %4469 = vmatprep.subr.bf16.mxu0 %v4468_v14  ;;  %v287_v21 = vmul.f32 %v286_v13, %v248_v25  ;;  %v290_v30 = vmul.f32 %v289_v20, %v248_v25  ;;  %v160_v31 = vsub.f32 %v3971_v26, %v3972_v28  ;;  %v202_v32 = vsub.f32 0.6, %v4989_v0 }
  0x88   :  { %4471 = vmatpush3.bf16.msra.mxu0 %v4468_v14  ;;  %v253_v33 = vadd.f32 %v252_v27, %v250_v18  ;;  %v200_v34 = vmul.f32 2.5, %v5030_v29  ;;  %v5035_v35 = vadd.f32 -0.2, %v4989_v0  ;;  %v209_v36 = vsub.f32 1.0, %v4989_v0 }
  0x89   :  { %v288_v37 = vadd.f32 %v287_v21, %v285_v23  ;;  %v203_v38 = vmul.f32 2.5, %v202_v32  ;;  %v254_v39 = vmul.f32 1.25, %v5019_v47  ;;  %v256_v40 = vmul.f32 1.25, %v202_v32 }
  0x8a   :  { %v292_v41 = vmul.f32 %v291_v24, %v253_v33  ;;  %v201_v42 = vmul.f32 %v200_v34, %v158_v53  ;;  %v207_v43 = vmul.f32 2.5, %v5035_v35  ;;  %v210_v44 = vmul.f32 2.5, %v209_v36 }
  0x8b   :  { %v204_v45 = vmul.f32 %v203_v38, %v159_v17  ;;  %v255_v46 = vmul.f32 %v254_v39, %v198_v22  ;;  %v259_v48 = vmul.f32 1.25, %v5030_v29  ;;  %v261_v49 = vmul.f32 1.25, %v209_v36 }
  0x8c   :  { %v293_v50 = vadd.f32 %v292_v41, %v290_v30  ;;  %v208_v51 = vmul.f32 %v207_v43, %v159_v17  ;;  %v211_v52 = vmul.f32 %v210_v44, %v160_v31  ;;  %v294_v54 = vmul.f32 0.8333333, %v5010_v19 }
  0x8d   :  { %v205_v55 = vadd.f32 %v204_v45, %v201_v42  ;;  %v296_v56 = vmul.f32 0.8333333, %v202_v32  ;;  %v299_v57 = vmul.f32 0.8333333, %v5019_v47  ;;  %v301_v58 = vmul.f32 0.8333333, %v209_v36 }
  0x8e   :  { %v4472_v59 = vpack.c.bf16 %v293_v50, %v288_v37  ;;  %v212_v53 = vadd.f32 %v211_v52, %v208_v51  ;;  %v295_v60 = vmul.f32 %v294_v54, %v253_v33  ;;  %vm144_vm10 = vcmp.ge.f32.partialorder %v4989_v0, 1.4 }
  0x8f   :  { %v257_v61 = vmul.f32 %v256_v40, %v205_v55  ;;  %v260_v62 = vmul.f32 %v259_v48, %v205_v55  ;;  %v3973_v63 = vsel %vm144_vm10, 1.0, %v7217_v3  ;;  %vm147_vm11 = vcmp.ge.f32.partialorder %v4989_v0, 1.8 }
  0x90   :  { %4473 = vmatprep.subr.bf16.mxu0 %v4472_v59  ;;  %v262_v1 = vmul.f32 %v261_v49, %v212_v53  ;;  %v3974_v19 = vsel %vm147_vm11, 1.0, %v7217_v3  ;;  %v161_v2 = vsub.f32 %v3972_v28, %v3973_v63  ;;  %v3983_v4 = vadd.f32 -0.6, %v4989_v0 }
  0x91   :  { %4475 = vmatpush3.bf16.msra.mxu0 %v4472_v59  ;;  %v258_v47 = vadd.f32 %v257_v61, %v255_v46  ;;  %v162_v5 = vsub.f32 %v3973_v63, %v3974_v19  ;;  %v216_v6 = vsub.f32 1.4, %v4989_v0  ;;  %v3984_v7 = vadd.f32 -1.0, %v4989_v0 }
  0x92   :  { %v263_v8 = vadd.f32 %v262_v1, %v260_v62  ;;  %v214_v9 = vmul.f32 2.5, %v3983_v4  ;;  %v223_v10 = vsub.f32 1.8, %v4989_v0  ;;  %v264_v11 = vmul.f32 1.25, %v5035_v35 }
  0x93   :  { %v297_v12 = vmul.f32 %v296_v56, %v258_v47  ;;  %v300_v13 = vmul.f32 %v299_v57, %v258_v47  ;;  %v217_v15 = vmul.f32 2.5, %v216_v6  ;;  %v221_v16 = vmul.f32 2.5, %v3984_v7  ;;  %v109_v47 = vld [vmem:[#allocation5 + $0x8] sm:$0xff] }
  0x94   :  { %v302_v18 = vmul.f32 %v301_v58, %v263_v8  ;;  %v215_v20 = vmul.f32 %v214_v9, %v160_v31  ;;  %v224_v22 = vmul.f32 2.5, %v223_v10  ;;  %v266_v25 = vmul.f32 1.25, %v216_v6 }
  0x95   :  { %v298_v23 = vadd.f32 %v297_v12, %v295_v60  ;;  %v218_v24 = vmul.f32 %v217_v15, %v161_v2  ;;  %v222_v14 = vmul.f32 %v221_v16, %v161_v2  ;;  %v269_v28 = vmul.f32 1.25, %v3983_v4 }
  0x96   :  { %v303_v26 = vadd.f32 %v302_v18, %v300_v13  ;;  %v225_v27 = vmul.f32 %v224_v22, %v162_v5  ;;  %v271_v17 = vmul.f32 1.25, %v223_v10  ;;  %v265_v30 = vmul.f32 %v264_v11, %v212_v53 }
  0x97   :  { %v219_v21 = vadd.f32 %v218_v24, %v215_v20  ;;  %v304_v32 = vmul.f32 0.8333333, %v5030_v29  ;;  %v306_v33 = vmul.f32 0.8333333, %v216_v6  ;;  %v309_v37 = vmul.f32 0.8333333, %v5035_v35 }
  0x98   :  { %v4476_v34 = vpack.c.bf16 %v303_v26, %v298_v23  ;;  %v226_v36 = vadd.f32 %v225_v27, %v222_v14  ;;  %vm150_vm12 = vcmp.ge.f32.partialorder %v4989_v0, 2.2  ;;  %v311_v39 = vmul.f32 0.8333333, %v223_v10  ;;  %v110_v6 = vld [vmem:[#allocation5 + $0x10] sm:$0xff] }
  0x99   :  { %v267_v31 = vmul.f32 %v266_v25, %v219_v21  ;;  %v270_v38 = vmul.f32 %v269_v28, %v219_v21  ;;  %v3975_v40 = vsel %vm150_vm12, 1.0, %v7217_v3  ;;  %v3985_v43 = vadd.f32 -1.4, %v4989_v0 }
  0x9a   :  { %4477 = vmatprep.subr.bf16.mxu0 %v4476_v34  ;;  %v272_v41 = vmul.f32 %v271_v17, %v226_v36  ;;  %v163_v42 = vsub.f32 %v3974_v19, %v3975_v40  ;;  %v230_v44 = vsub.f32 2.2, %v4989_v0  ;;  %v305_v45 = vmul.f32 %v304_v32, %v263_v8 }
  0x9b   :  { %4479 = vmatpush3.bf16.msra.mxu0 %v4476_v34  ;;  %v268_v29 = vadd.f32 %v267_v31, %v265_v30  ;;  %v228_v48 = vmul.f32 2.5, %v3985_v43  ;;  %v274_v49 = vmul.f32 1.25, %v3984_v7  ;;  %v314_v60 = vmul.f32 0.8333333, %v3983_v4 }
  0x9c   :  { %v273_v46 = vadd.f32 %v272_v41, %v270_v38  ;;  %v231_v35 = vmul.f32 2.5, %v230_v44  ;;  %v276_v56 = vmul.f32 1.25, %v230_v44  ;;  %v316_v62 = vmul.f32 0.8333333, %v230_v44 }
  0x9d   :  { %v307_v50 = vmul.f32 %v306_v33, %v268_v29  ;;  %v310_v51 = vmul.f32 %v309_v37, %v268_v29  ;;  %v229_v54 = vmul.f32 %v228_v48, %v162_v5  ;;  %v275_v53 = vmul.f32 %v274_v49, %v226_v36  ;;  %v111_v5 = vld [vmem:[#allocation5 + $0x18] sm:$0xff] }
  0x9e   :  { %v312_v52 = vmul.f32 %v311_v39, %v273_v46  ;;  %v232_v55 = vmul.f32 %v231_v35, %v163_v42  ;;  %v315_v1 = vmul.f32 %v314_v60, %v273_v46 }
  0x9f   :  { %v308_v57 = vadd.f32 %v307_v50, %v305_v45 }
  0xa0   :  { %v313_v58 = vadd.f32 %v312_v52, %v310_v51  ;;  %v233_v59 = vadd.f32 %v232_v55, %v229_v54 }
  0xa2   :  { %v4480_v61 = vpack.c.bf16 %v313_v58, %v308_v57  ;;  %v277_v0 = vmul.f32 %v276_v56, %v233_v59 }
  0xa4   :  { %4481 = vmatprep.subr.bf16.mxu0 %v4480_v61  ;;  %v278_v63 = vadd.f32 %v277_v0, %v275_v53 }
  0xa5   :  { %4483 = vmatpush3.bf16.msra.mxu0 %v4480_v61 }
  0xa6   :  { %v317_v19 = vmul.f32 %v316_v62, %v278_v63 }
  0xa8   :  { %v318_v2 = vadd.f32 %v317_v19, %v315_v1 }
  0xaa   :  { %4435 = vmatprep.subr.mxu0 %v318_v2 }
  0xab   :  { %4436 = vmatpush3.msra.mxu0 %v318_v2 }
  0xac   :  { %4438 = vmatmul.mubr.msk.f32.vlgmr.msra.gmra.mrb[0].mxu0 %vm319_vm0, %v109_v47 }
  0xad   :  { %4440 = vmatprep.mubr.msk.f32.mxu0 %vm319_vm0, %v110_v6 }
  0xb0   :  { %4441 = vmatmul.mubr.msk.f32.gmra.mrb[2].mxu0 %vm319_vm0, %v111_v5 }
 0x17f   :  { %v4439_v4 = vpop.f32.mrb[0].mxu0 }
 0x180   :  { %v5061_v7 = vmax.f32 %v4439_v4, 0.0  ;;  %v398_v8 = vpop.f32.mrb[1].mxu0 }
 0x181   :  { %v5063_v9 = vmax.f32 %v398_v8, 0.0 }
 0x182   :  { %vm478_vm13 = vcmp.ge.f32.partialorder %v5061_v7, -1.4  ;;  %vm490_vm14 = vcmp.ge.f32.partialorder %v5061_v7, -1.0  ;;  %vm502_vm2 = vcmp.ge.f32.partialorder %v5061_v7, -0.6  ;;  %vm550_vm3 = vcmp.ge.f32.partialorder %v5061_v7, 1.0 }
 0x183   :  { %v4442_v10 = vpop.f32.mrb[2].mxu0  ;;  %vm477_vm15 = vcmp.ge.f32.partialorder %v5063_v9, -1.4  ;;  %vm489_vm1 = vcmp.ge.f32.partialorder %v5063_v9, -1.0  ;;  %v5071_v12 = vsel %vm478_vm13, 1.0, %v7217_v3  ;;  %v5074_v13 = vsel %vm490_vm14, 1.0, %v7217_v3 }
 0x184   :  { %v408_v11 = vpop.f32.mrb[3].mxu0  ;;  %vm501_vm0 = vcmp.ge.f32.partialorder %v5063_v9, -0.6  ;;  %v5078_v15 = vmax.f32 %v4442_v10, 0.0  ;;  %v5081_v16 = vsel %vm489_vm1, 1.0, %v7217_v3  ;;  %v4007_v20 = vsel %vm502_vm2, 1.0, %v7217_v3 }
 0x185   :  { %v4006_v18 = vsel %vm501_vm0, 1.0, %v7217_v3  ;;  %vm513_vm4 = vcmp.ge.f32.partialorder %v5063_v9, -0.2  ;;  %vm514_vm5 = vcmp.ge.f32.partialorder %v5061_v7, -0.2  ;;  %vm549_vm7 = vcmp.ge.f32.partialorder %v5063_v9, 1.0 }
 0x186   :  { %vm525_vm6 = vcmp.ge.f32.partialorder %v5063_v9, 0.2  ;;  %v4010_v22 = vsel %vm513_vm4, 1.0, %v7217_v3  ;;  %v4011_v23 = vsel %vm514_vm5, 1.0, %v7217_v3  ;;  %vm526_vm8 = vcmp.ge.f32.partialorder %v5061_v7, 0.2 }
 0x187   :  { %vm537_vm9 = vcmp.ge.f32.partialorder %v5063_v9, 0.6  ;;  %v4014_v24 = vsel %vm525_vm6, 1.0, %v7217_v3  ;;  %v4015_v14 = vsel %vm526_vm8, 1.0, %v7217_v3  ;;  %vm538_vm10 = vcmp.ge.f32.partialorder %v5061_v7, 0.6 }
 0x188   :  { %v4018_v25 = vsel %vm537_vm9, 1.0, %v7217_v3  ;;  %v5097_v26 = vmax.f32 %v408_v11, 0.0  ;;  %v5102_v27 = vsel %vm477_vm15, 1.0, %v7217_v3  ;;  %v4019_v28 = vsel %vm538_vm10, 1.0, %v7217_v3 }
 0x189   :  { %v5106_v17 = vsel %vm549_vm7, 1.0, %v7217_v3  ;;  %v5111_v21 = vsel %vm550_vm3, 1.0, %v7217_v3  ;;  %v5114_v30 = vsub.f32 %v5081_v16, %v4006_v18  ;;  %v5117_v32 = vsub.f32 %v5074_v13, %v4007_v20 }
 0x18a   :  { %v613_v33 = vsub.f32 %v4006_v18, %v4010_v22  ;;  %v614_v34 = vsub.f32 %v4007_v20, %v4011_v23  ;;  %v617_v36 = vsub.f32 %v4010_v22, %v4014_v24  ;;  %v618_v37 = vsub.f32 %v4011_v23, %v4015_v14 }
 0x18b   :  { %v5119_v31 = vsub.f32 %v4014_v24, %v4018_v25  ;;  %v5121_v38 = vsub.f32 %v4015_v14, %v4019_v28  ;;  %v5124_v39 = vsub.f32 %v4018_v25, %v5106_v17  ;;  %v4050_v40 = vadd.f32 1.0, %v5063_v9 }
 0x18c   :  { %v4051_v41 = vadd.f32 1.0, %v5061_v7  ;;  %v5129_v42 = vsub.f32 %v4019_v28, %v5111_v21  ;;  %v5132_v43 = vsub.f32 -0.2, %v5063_v9  ;;  %v5135_v44 = vsub.f32 -0.2, %v5061_v7 }
 0x18d   :  { %v5138_v29 = vadd.f32 0.6, %v5063_v9  ;;  %v729_v45 = vmul.f32 2.5, %v4050_v40  ;;  %v5141_v48 = vadd.f32 0.6, %v5061_v7  ;;  %v981_v18 = vmul.f32 1.25, %v4050_v40 }
 0x18e   :  { %7311 = vst [vmem:[#allocation19_spill] sm:$0xff] %v5132_v43  ;;  %7312 = vst [vmem:[#allocation20_spill] sm:$0xff] %v5135_v44  ;;  %v730_v46 = vmul.f32 2.5, %v4051_v41  ;;  %v5144_v35 = vsub.f32 0.2, %v5063_v9  ;;  %v741_v49 = vmul.f32 2.5, %v5132_v43 }
 0x18f   :  { %v742_v50 = vmul.f32 2.5, %v5135_v44  ;;  %v757_v51 = vmul.f32 2.5, %v5138_v29  ;;  %v5150_v52 = vsub.f32 0.2, %v5061_v7  ;;  %v733_v54 = vmul.f32 %v729_v45, %v5114_v30 }
 0x190   :  { %7313 = vst [vmem:[#allocation21_spill] sm:$0xff] %v5144_v35  ;;  %v734_v55 = vmul.f32 %v730_v46, %v5117_v32  ;;  %v758_v56 = vmul.f32 2.5, %v5141_v48  ;;  %v769_v57 = vmul.f32 2.5, %v5144_v35  ;;  %v745_v58 = vmul.f32 %v741_v49, %v613_v33 }
 0x191   :  { %7314 = vst [vmem:[#allocation22_spill] sm:$0xff] %v5150_v52  ;;  %v746_v59 = vmul.f32 %v742_v50, %v614_v34  ;;  %v761_v53 = vmul.f32 %v757_v51, %v613_v33  ;;  %v770_v60 = vmul.f32 2.5, %v5150_v52  ;;  %v5158_v62 = vadd.f32 0.2, %v5063_v9 }
 0x192   :  { %v762_v61 = vmul.f32 %v758_v56, %v614_v34  ;;  %v773_v0 = vmul.f32 %v769_v57, %v617_v36  ;;  %v5161_v63 = vadd.f32 0.2, %v5061_v7  ;;  %v5163_v1 = vadd.f32 %v745_v58, %v733_v54 }
 0x193   :  { %v5165_v19 = vadd.f32 %v746_v59, %v734_v55  ;;  %v774_v2 = vmul.f32 %v770_v60, %v618_v37  ;;  %v793_v47 = vsub.f32 0.6, %v5063_v9  ;;  %v785_v5 = vmul.f32 2.5, %v5158_v62 }
 0x194   :  { %7315 = vst [vmem:[#allocation23_spill] sm:$0xff] %v5163_v1  ;;  %v777_v6 = vadd.f32 %v773_v0, %v761_v53  ;;  %v786_v4 = vmul.f32 2.5, %v5161_v63  ;;  %v794_v8 = vsub.f32 0.6, %v5061_v7  ;;  %v982_v20 = vmul.f32 1.25, %v4051_v41 }
 0x195   :  { %7316 = vst [vmem:[#allocation24_spill] sm:$0xff] %v5165_v19  ;;  %v778_v10 = vadd.f32 %v774_v2, %v762_v61  ;;  %v797_v11 = vmul.f32 2.5, %v793_v47  ;;  %v789_v22 = vmul.f32 %v785_v5, %v617_v36  ;;  %v989_v14 = vmul.f32 1.25, %v5144_v35 }
 0x196   :  { %v790_v23 = vmul.f32 %v786_v4, %v618_v37  ;;  %v798_v24 = vmul.f32 2.5, %v794_v8  ;;  %v985_v28 = vmul.f32 %v981_v18, %v5163_v1  ;;  %v986_v33 = vmul.f32 %v982_v20, %v5165_v19 }
 0x197   :  { %v801_v25 = vmul.f32 %v797_v11, %v5119_v31  ;;  %v990_v34 = vmul.f32 1.25, %v5150_v52  ;;  %v993_v46 = vmul.f32 %v989_v14, %v777_v6  ;;  %v1001_v49 = vmul.f32 1.25, %v5138_v29 }
 0x198   :  { %v802_v45 = vmul.f32 %v798_v24, %v5121_v38  ;;  %v1002_v50 = vmul.f32 1.25, %v5141_v48  ;;  %v1009_v51 = vmul.f32 1.25, %v793_v47  ;;  %v1010_v54 = vmul.f32 1.25, %v794_v8 }
 0x199   :  { %v5179_v36 = vadd.f32 %v801_v25, %v789_v22  ;;  %v994_v37 = vmul.f32 %v990_v34, %v778_v10  ;;  %v5183_v56 = vadd.f32 %v993_v46, %v985_v28  ;;  %v1005_v57 = vmul.f32 %v1001_v49, %v777_v6 }
 0x19a   :  { %v5181_v55 = vadd.f32 %v802_v45, %v790_v23  ;;  %v1006_v58 = vmul.f32 %v1002_v50, %v778_v10  ;;  %v1161_v60 = vmul.f32 0.8333333, %v4050_v40  ;;  %v1162_v61 = vmul.f32 0.8333333, %v4051_v41 }
 0x19b   :  { %7317 = vst [vmem:[#allocation25_spill] sm:$0xff] %v5183_v56  ;;  %v5185_v59 = vadd.f32 %v994_v37, %v986_v33  ;;  %v1013_v53 = vmul.f32 %v1009_v51, %v5179_v36  ;;  %v1169_v2 = vmul.f32 0.8333333, %v793_v47  ;;  %v1170_v5 = vmul.f32 0.8333333, %v794_v8 }
 0x19c   :  { %v1014_v0 = vmul.f32 %v1010_v54, %v5181_v55  ;;  %vm561_vm11 = vcmp.ge.f32.partialorder %v5063_v9, 1.4  ;;  %v1165_v11 = vmul.f32 %v1161_v60, %v5183_v56  ;;  %vm562_vm12 = vcmp.ge.f32.partialorder %v5061_v7, 1.4 }
 0x19d   :  { %7318 = vst [vmem:[#allocation26_spill] sm:$0xff] %v5185_v59  ;;  %v5190_v4 = vadd.f32 %v1013_v53, %v1005_v57  ;;  %v1166_v18 = vmul.f32 %v1162_v61, %v5185_v59  ;;  %v4026_v10 = vsel %vm561_vm11, 1.0, %v7217_v3  ;;  %v4027_v40 = vsel %vm562_vm12, 1.0, %v7217_v3 }
 0x19e   :  { %v5195_v6 = vadd.f32 %v1014_v0, %v1006_v58  ;;  %vm573_vm13 = vcmp.ge.f32.partialorder %v5063_v9, 1.8  ;;  %vm574_vm14 = vcmp.ge.f32.partialorder %v5061_v7, 1.8  ;;  %vm585_vm15 = vcmp.ge.f32.partialorder %v5063_v9, 2.2 }
 0x19f   :  { %v1173_v41 = vmul.f32 %v1169_v2, %v5190_v4  ;;  %v4030_v47 = vsel %vm573_vm13, 1.0, %v7217_v3  ;;  %v4031_v20 = vsel %vm574_vm14, 1.0, %v7217_v3  ;;  %vm586_vm1 = vcmp.ge.f32.partialorder %v5061_v7, 2.2 }
 0x1a0   :  { %v1174_v8 = vmul.f32 %v1170_v5, %v5195_v6  ;;  %v4034_v22 = vsel %vm585_vm15, 1.0, %v7217_v3  ;;  %v4035_v24 = vsel %vm586_vm1, 1.0, %v7217_v3  ;;  %v629_v14 = vsub.f32 %v5106_v17, %v4026_v10 }
 0x1a1   :  { %v1177_v23 = vadd.f32 %v1173_v41, %v1165_v11  ;;  %v630_v25 = vsub.f32 %v5111_v21, %v4027_v40  ;;  %v633_v33 = vsub.f32 %v4026_v10, %v4030_v47  ;;  %v634_v34 = vsub.f32 %v4027_v40, %v4031_v20 }
 0x1a2   :  { %v1178_v28 = vadd.f32 %v1174_v8, %v1166_v18  ;;  %v637_v45 = vsub.f32 %v4030_v47, %v4034_v22  ;;  %v638_v46 = vsub.f32 %v4031_v20, %v4035_v24  ;;  %v4066_v49 = vadd.f32 -0.6, %v5063_v9 }
 0x1a3   :  { %v4067_v50 = vadd.f32 -0.6, %v5061_v7  ;;  %v5214_v37 = vsub.f32 1.4, %v5063_v9  ;;  %v5217_v54 = vsub.f32 1.4, %v5061_v7 }
 0x1a4   :  { %v4484_v51 = vpack.c.bf16 %v1178_v28, %v1177_v23  ;;  %v4070_v17 = vadd.f32 -1.0, %v5063_v9  ;;  %v4071_v21 = vadd.f32 -1.0, %v5061_v7  ;;  %v841_v57 = vmul.f32 2.5, %v4066_v49 }
 0x1a5   :  { %7319 = vst [vmem:[#allocation27_spill] sm:$0xff] %v5214_v37  ;;  %7320 = vst [vmem:[#allocation28_spill] sm:$0xff] %v5217_v54  ;;  %v842_v58 = vmul.f32 2.5, %v4067_v50  ;;  %v853_v53 = vmul.f32 2.5, %v5214_v37  ;;  %v5223_v60 = vsub.f32 1.8, %v5063_v9 }
 0x1a6   :  { %4485 = vmatprep.subr.bf16.mxu1 %v4484_v51  ;;  %v854_v61 = vmul.f32 2.5, %v5217_v54  ;;  %v869_v0 = vmul.f32 2.5, %v4070_v17  ;;  %v870_v2 = vmul.f32 2.5, %v4071_v21  ;;  %v5227_v5 = vsub.f32 1.8, %v5061_v7 }
 0x1a7   :  { %7321 = vst [vmem:[#allocation29_spill] sm:$0xff] %v5223_v60  ;;  %v845_v11 = vmul.f32 %v841_v57, %v5124_v39  ;;  %v846_v18 = vmul.f32 %v842_v58, %v5129_v42  ;;  %v857_v10 = vmul.f32 %v853_v53, %v629_v14  ;;  %v881_v40 = vmul.f32 2.5, %v5223_v60 }
 0x1a8   :  { %7322 = vst [vmem:[#allocation30_spill] sm:$0xff] %v5227_v5  ;;  %v858_v41 = vmul.f32 %v854_v61, %v630_v25  ;;  %v873_v47 = vmul.f32 %v869_v0, %v629_v14  ;;  %v874_v8 = vmul.f32 %v870_v2, %v630_v25  ;;  %v882_v20 = vmul.f32 2.5, %v5227_v5 }
 0x1a9   :  { %v5233_v22 = vadd.f32 %v857_v10, %v845_v11  ;;  %v885_v23 = vmul.f32 %v881_v40, %v633_v33  ;;  %v4074_v24 = vadd.f32 -1.4, %v5063_v9  ;;  %v4075_v28 = vadd.f32 -1.4, %v5061_v7 }
 0x1aa   :  { %v5237_v51 = vadd.f32 %v858_v41, %v846_v18  ;;  %v886_v57 = vmul.f32 %v882_v20, %v634_v34  ;;  %v905_v58 = vsub.f32 2.2, %v5063_v9  ;;  %v906_v53 = vsub.f32 2.2, %v5061_v7 }
 0x1ab   :  { %7323 = vst [vmem:[#allocation31_spill] sm:$0xff] %v5233_v22  ;;  %v889_v3 = vadd.f32 %v885_v23, %v873_v47  ;;  %v897_v61 = vmul.f32 2.5, %v4074_v24  ;;  %v898_v14 = vmul.f32 2.5, %v4075_v28  ;;  %v1061_v25 = vmul.f32 1.25, %v4066_v49 }
 0x1ac   :  { %7324 = vst [vmem:[#allocation32_spill] sm:$0xff] %v5237_v51  ;;  %v890_v0 = vadd.f32 %v886_v57, %v874_v8  ;;  %v909_v2 = vmul.f32 2.5, %v905_v58  ;;  %v910_v11 = vmul.f32 2.5, %v906_v53  ;;  %v1062_v10 = vmul.f32 1.25, %v4067_v50 }
 0x1ad   :  { %v901_v40 = vmul.f32 %v897_v61, %v633_v33  ;;  %v902_v59 = vmul.f32 %v898_v14, %v634_v34  ;;  %v1065_v56 = vmul.f32 %v1061_v25, %v5233_v22  ;;  %v1069_v18 = vmul.f32 1.25, %v5223_v60 }
 0x1ae   :  { %v913_v41 = vmul.f32 %v909_v2, %v637_v45  ;;  %v914_v20 = vmul.f32 %v910_v11, %v638_v46  ;;  %v1066_v52 = vmul.f32 %v1062_v10, %v5237_v51  ;;  %v1070_v35 = vmul.f32 1.25, %v5227_v5 }
 0x1af   :  { %v1073_v47 = vmul.f32 %v1069_v18, %v889_v3  ;;  %v1081_v23 = vmul.f32 1.25, %v4070_v17  ;;  %v1082_v24 = vmul.f32 1.25, %v4071_v21  ;;  %v1089_v28 = vmul.f32 1.25, %v905_v58 }
 0x1b0   :  { %v917_v8 = vadd.f32 %v913_v41, %v901_v40  ;;  %v918_v57 = vadd.f32 %v914_v20, %v902_v59  ;;  %v1074_v19 = vmul.f32 %v1070_v35, %v890_v0  ;;  %v1090_v1 = vmul.f32 1.25, %v906_v53 }
 0x1b1   :  { %v5245_v33 = vadd.f32 %v1073_v47, %v1065_v56  ;;  %v1085_v34 = vmul.f32 %v1081_v23, %v889_v3  ;;  %v1086_v61 = vmul.f32 %v1082_v24, %v890_v0  ;;  %v1241_v14 = vmul.f32 0.8333333, %v4066_v49 }
 0x1b2   :  { %v5247_v25 = vadd.f32 %v1074_v19, %v1066_v52  ;;  %v1093_v45 = vmul.f32 %v1089_v28, %v917_v8  ;;  %v1094_v46 = vmul.f32 %v1090_v1, %v918_v57  ;;  %v1242_v2 = vmul.f32 0.8333333, %v4067_v50 }
 0x1b3   :  { %7325 = vst [vmem:[#allocation33_spill] sm:$0xff] %v5245_v33  ;;  %v1245_v11 = vmul.f32 %v1241_v14, %v5245_v33  ;;  %v1249_v10 = vmul.f32 0.8333333, %v905_v58  ;;  %v1250_v17 = vmul.f32 0.8333333, %v906_v53  ;;  %v433_v21 = vmul.f32 0.5, %v5063_v9 }
 0x1b4   :  { %7326 = vst [vmem:[#allocation34_spill] sm:$0xff] %v5247_v25  ;;  %v1097_v40 = vadd.f32 %v1093_v45, %v1085_v34  ;;  %v1098_v59 = vadd.f32 %v1094_v46, %v1086_v61  ;;  %v1246_v35 = vmul.f32 %v1242_v2, %v5247_v25  ;;  %v434_v56 = vmul.f32 0.5, %v5061_v7 }
 0x1b5   :  { %4662 = vtanh.f32 %v433_v21  ;;  %vm491_vm2 = vcmp.ge.f32.partialorder %v5097_v26, -1.0  ;;  %vm492_vm0 = vcmp.ge.f32.partialorder %v5078_v15, -1.0  ;;  %vm503_vm3 = vcmp.ge.f32.partialorder %v5097_v26, -0.6 }
 0x1b6   :  { %v1253_v3 = vmul.f32 %v1249_v10, %v1097_v40  ;;  %v1254_v52 = vmul.f32 %v1250_v17, %v1098_v59  ;;  %4664 = vtanh.f32 %v434_v56  ;;  %v7327_v1 = vmov 0.0  }
 0x1b7   :  { %v5257_v19 = vsel %vm491_vm2, 1.0, %v7327_v1  ;;  %v5260_v49 = vsel %vm492_vm0, 1.0, %v7327_v1  ;;  %vm504_vm4 = vcmp.ge.f32.partialorder %v5078_v15, -0.6  ;;  %v4008_v50 = vsel %vm503_vm3, 1.0, %v7327_v1 }
 0x1b8   :  { %7328 = vst [vmem:[#allocation35_spill] sm:$0xff] %v5257_v19  ;;  %7329 = vst [vmem:[#allocation36_spill] sm:$0xff] %v5260_v49  ;;  %vm515_vm5 = vcmp.ge.f32.partialorder %v5097_v26, -0.2  ;;  %v1257_v58 = vadd.f32 %v1253_v3, %v1245_v11  ;;  %v1258_v53 = vadd.f32 %v1254_v52, %v1246_v35  ;;  %v4009_v0 = vsel %vm504_vm4, 1.0, %v7327_v1 }
 0x1b9   :  { %vm516_vm6 = vcmp.ge.f32.partialorder %v5078_v15, -0.2  ;;  %v4012_v18 = vsel %vm515_vm5, 1.0, %v7327_v1  ;;  %vm527_vm7 = vcmp.ge.f32.partialorder %v5097_v26, 0.2  ;;  %v5276_v24 = vsub.f32 %v5102_v27, %v5081_v16 }
 0x1ba   :  { %v4013_v41 = vsel %vm516_vm6, 1.0, %v7327_v1  ;;  %vm528_vm8 = vcmp.ge.f32.partialorder %v5078_v15, 0.2  ;;  %v4516_v20 = vpack.c.bf16 %v1258_v53, %v1257_v58  ;;  %v4016_v47 = vsel %vm527_vm7, 1.0, %v7327_v1 }
 0x1bb   :  { %v4017_v23 = vsel %vm528_vm8, 1.0, %v7327_v1  ;;  %vm539_vm9 = vcmp.ge.f32.partialorder %v5097_v26, 0.6  ;;  %vm540_vm10 = vcmp.ge.f32.partialorder %v5078_v15, 0.6  ;;  %v5283_v8 = vsub.f32 %v5257_v19, %v4008_v50 }
 0x1bc   :  { %v5280_v28 = vsel %vm539_vm9, 1.0, %v7327_v1  ;;  %4517 = vmatprep.subr.bf16.mxu0 %v4516_v20  ;;  %v5286_v57 = vsel %vm540_vm10, 1.0, %v7327_v1  ;;  %v5289_v34 = vsub.f32 %v5260_v49, %v4009_v0  ;;  %v615_v61 = vsub.f32 %v4008_v50, %v4012_v18 }
 0x1bd   :  { %7330 = vst [vmem:[#allocation37_spill] sm:$0xff] %v5283_v8  ;;  %v616_v14 = vsub.f32 %v4009_v0, %v4013_v41  ;;  %4519 = vmatpush3.bf16.msra.mxu0 %v4516_v20  ;;  %v619_v16 = vsub.f32 %v4012_v18, %v4016_v47  ;;  %v620_v45 = vsub.f32 %v4013_v41, %v4017_v23  ;;  %v5295_v2 = vadd.f32 1.0, %v5097_v26 }
 0x1be   :  { %7331 = vst [vmem:[#allocation38_spill] sm:$0xff] %v5289_v34  ;;  %v5292_v46 = vsub.f32 %v4016_v47, %v5280_v28  ;;  %v5298_v11 = vsub.f32 %v4017_v23, %v5286_v57  ;;  %v5301_v10 = vadd.f32 1.0, %v5078_v15  ;;  %v5304_v17 = vsub.f32 -0.2, %v5097_v26 }
 0x1bf   :  { %v5307_v21 = vsub.f32 -0.2, %v5078_v15  ;;  %v4663_v40 = vpop.eup %4662  ;;  %v731_v59 = vmul.f32 2.5, %v5295_v2  ;;  %v5311_v35 = vadd.f32 0.6, %v5097_v26  ;;  %v983_v3 = vmul.f32 1.25, %v5295_v2 }
 0x1c0   :  { %7332 = vst [vmem:[#allocation39_spill] sm:$0xff] %v5304_v17  ;;  %v5314_v56 = vadd.f32 0.6, %v5078_v15  ;;  %v4665_v52 = vpop.eup %4664  ;;  %v441_v50 = vadd.f32 1.0, %v4663_v40  ;;  %v732_v58 = vmul.f32 2.5, %v5301_v10  ;;  %v743_v53 = vmul.f32 2.5, %v5304_v17 }
 0x1c1   :  { %7333 = vst [vmem:[#allocation40_spill] sm:$0xff] %v5307_v21  ;;  %7334 = vst [vmem:[#allocation41_spill] sm:$0xff] %v5311_v35  ;;  %v744_v0 = vmul.f32 2.5, %v5307_v21  ;;  %v442_v18 = vadd.f32 1.0, %v4665_v52  ;;  %v735_v41 = vmul.f32 %v731_v59, %v5283_v8  ;;  %v759_v20 = vmul.f32 2.5, %v5311_v35 }
 0x1c2   :  { %7335 = vst [vmem:[#allocation42_spill] sm:$0xff] %v5314_v56  ;;  %v760_v47 = vmul.f32 2.5, %v5314_v56  ;;  %v445_v23 = vmul.f32 0.5, %v441_v50  ;;  %v736_v25 = vmul.f32 %v732_v58, %v5289_v34  ;;  %v747_v33 = vmul.f32 %v743_v53, %v615_v61 }
 0x1c3   :  { %v748_v5 = vmul.f32 %v744_v0, %v616_v14  ;;  %v446_v60 = vmul.f32 0.5, %v442_v18  ;;  %v763_v40 = vmul.f32 %v759_v20, %v615_v61  ;;  %v5325_v43 = vsub.f32 0.2, %v5097_v26 }
 0x1c4   :  { %v764_v44 = vmul.f32 %v760_v47, %v616_v14  ;;  %v449_v21 = vmul.f32 %v445_v23, %v5063_v9  ;;  %v5328_v52 = vadd.f32 %v747_v33, %v735_v41  ;;  %v5333_v17 = vsub.f32 0.2, %v5078_v15 }
 0x1c5   :  { %7336 = vst [vmem:[#allocation43_spill] sm:$0xff] %v5325_v43  ;;  %v5330_v59 = vadd.f32 %v748_v5, %v736_v25  ;;  %v450_v50 = vmul.f32 %v446_v60, %v5061_v7  ;;  %v771_v58 = vmul.f32 2.5, %v5325_v43  ;;  %v5338_v53 = vadd.f32 0.2, %v5097_v26 }
 0x1c6   :  { %7337 = vst [vmem:[#allocation44_spill] sm:$0xff] %v5328_v52  ;;  %7339 = vst [vmem:[#allocation46_spill] sm:$0xff] %v5333_v17  ;;  %v5341_v61 = vadd.f32 0.2, %v5078_v15  ;;  %vm551_vm11 = vcmp.ge.f32.partialorder %v5097_v26, 1.0  ;;  %v772_v33 = vmul.f32 2.5, %v5333_v17  ;;  %v987_v51 = vmul.f32 %v983_v3, %v5328_v52 }
 0x1c7   :  { %7338 = vst [vmem:[#allocation45_spill] sm:$0xff] %v5330_v59  ;;  %v795_v5 = vsub.f32 0.6, %v5097_v26  ;;  %v796_v25 = vsub.f32 0.6, %v5078_v15  ;;  %v984_v14 = vmul.f32 1.25, %v5301_v10  ;;  %v4486_v0 = vpack.c.bf16 %v450_v50, %v449_v21 }
 0x1c8   :  { %v775_v60 = vmul.f32 %v771_v58, %v619_v16  ;;  %v787_v18 = vmul.f32 2.5, %v5338_v53  ;;  %v788_v41 = vmul.f32 2.5, %v5341_v61  ;;  %v776_v20 = vmul.f32 %v772_v33, %v620_v45 }
 0x1c9   :  { %v799_v47 = vmul.f32 2.5, %v795_v5  ;;  %v800_v23 = vmul.f32 2.5, %v796_v25  ;;  %4487 = vmatpush3.bf16.msra.mxu1 %v4486_v0  ;;  %v988_v34 = vmul.f32 %v984_v14, %v5330_v59  ;;  %v991_v50 = vmul.f32 1.25, %v5325_v43 }
 0x1ca   :  { %v779_v22 = vadd.f32 %v775_v60, %v763_v40  ;;  %v791_v54 = vmul.f32 %v787_v18, %v619_v16  ;;  %v792_v37 = vmul.f32 %v788_v41, %v620_v45  ;;  %v780_v8 = vadd.f32 %v776_v20, %v764_v44 }
 0x1cb   :  { %v803_v49 = vmul.f32 %v799_v47, %v5292_v46  ;;  %v804_v21 = vmul.f32 %v800_v23, %v5298_v11  ;;  %v992_v58 = vmul.f32 1.25, %v5333_v17  ;;  %v1003_v33 = vmul.f32 1.25, %v5311_v35 }
 0x1cc   :  { %v1004_v19 = vmul.f32 1.25, %v5314_v56  ;;  %v1011_v3 = vmul.f32 1.25, %v795_v5  ;;  %v995_v45 = vmul.f32 %v991_v50, %v779_v22  ;;  %v1012_v40 = vmul.f32 1.25, %v796_v25 }
 0x1cd   :  { %v5358_v0 = vadd.f32 %v803_v49, %v791_v54  ;;  %v5360_v16 = vadd.f32 %v804_v21, %v792_v37  ;;  %v996_v44 = vmul.f32 %v992_v58, %v780_v8  ;;  %v1007_v14 = vmul.f32 %v1003_v33, %v779_v22  ;;  %v422_v49 = vld [vmem:[#allocation7 + $0x8] sm:$0xff] }
 0x1ce   :  { %v1008_v60 = vmul.f32 %v1004_v19, %v780_v8  ;;  %v1163_v18 = vmul.f32 0.8333333, %v5295_v2  ;;  %v5363_v41 = vadd.f32 %v995_v45, %v987_v51  ;;  %v1164_v23 = vmul.f32 0.8333333, %v5301_v10  ;;  %1338 = vmatprep.mubr.f32.mxu1 %v422_v49 }
 0x1cf   :  { %7340 = vst [vmem:[#allocation47_spill] sm:$0xff] %v5358_v0  ;;  %7341 = vst [vmem:[#allocation48_spill] sm:$0xff] %v5360_v16  ;;  %v1015_v20 = vmul.f32 %v1011_v3, %v5358_v0  ;;  %v1016_v47 = vmul.f32 %v1012_v40, %v5360_v16  ;;  %v5368_v17 = vadd.f32 %v996_v44, %v988_v34  ;;  %v1171_v54 = vmul.f32 0.8333333, %v795_v5 }
 0x1d0   :  { %7342 = vst [vmem:[#allocation49_spill] sm:$0xff] %v5363_v41  ;;  %v1172_v37 = vmul.f32 0.8333333, %v796_v25  ;;  %vm552_vm12 = vcmp.ge.f32.partialorder %v5078_v15, 1.0  ;;  %v1167_v51 = vmul.f32 %v1163_v18, %v5363_v41  ;;  %v4024_v19 = vsel %vm551_vm11, 1.0, %v7327_v1 }
 0x1d1   :  { %7343 = vst [vmem:[#allocation50_spill] sm:$0xff] %v5368_v17  ;;  %v5371_v21 = vadd.f32 %v1015_v20, %v1007_v14  ;;  %v5373_v22 = vadd.f32 %v1016_v47, %v1008_v60  ;;  %v1168_v8 = vmul.f32 %v1164_v23, %v5368_v17  ;;  %v4025_v34 = vsel %vm552_vm12, 1.0, %v7327_v1 }
 0x1d2   :  { %vm563_vm13 = vcmp.ge.f32.partialorder %v5097_v26, 1.4  ;;  %vm564_vm14 = vcmp.ge.f32.partialorder %v5078_v15, 1.4  ;;  %v5389_v50 = vsub.f32 %v5071_v12, %v5074_v13  ;;  %vm575_vm15 = vcmp.ge.f32.partialorder %v5097_v26, 1.8 }
 0x1d3   :  { %7344 = vst [vmem:[#allocation51_spill] sm:$0xff] %v5371_v21  ;;  %7345 = vst [vmem:[#allocation52_spill] sm:$0xff] %v5373_v22  ;;  %v1175_v2 = vmul.f32 %v1171_v54, %v5371_v21  ;;  %v1176_v10 = vmul.f32 %v1172_v37, %v5373_v22  ;;  %v4028_v5 = vsel %vm563_vm13, 1.0, %v7327_v1  ;;  %v4029_v25 = vsel %vm564_vm14, 1.0, %v7327_v1 }
 0x1d4   :  { %vm576_vm1 = vcmp.ge.f32.partialorder %v5078_v15, 1.8  ;;  %vm587_vm2 = vcmp.ge.f32.partialorder %v5097_v26, 2.2  ;;  %v4032_v3 = vsel %vm575_vm15, 1.0, %v7327_v1  ;;  %v5399_v44 = vsub.f32 %v5280_v28, %v4024_v19 }
 0x1d5   :  { %v1179_v58 = vadd.f32 %v1175_v2, %v1167_v51  ;;  %v1180_v33 = vadd.f32 %v1176_v10, %v1168_v8  ;;  %v4033_v45 = vsel %vm576_vm1, 1.0, %v7327_v1  ;;  %vm588_vm0 = vcmp.ge.f32.partialorder %v5078_v15, 2.2 }
 0x1d6   :  { %v4036_v40 = vsel %vm587_vm2, 1.0, %v7327_v1  ;;  %7346 = vst [vmem:[#allocation53_spill] sm:$0xff] %v5399_v44  ;;  %v5402_v13 = vsub.f32 %v5286_v57, %v4025_v34  ;;  %v4037_v60 = vsel %vm588_vm0, 1.0, %v7327_v1  ;;  %v631_v18 = vsub.f32 %v4024_v19, %v4028_v5 }
 0x1d7   :  { %v4488_v14 = vpack.c.bf16 %v1180_v33, %v1179_v58  ;;  %v632_v20 = vsub.f32 %v4025_v34, %v4029_v25  ;;  %v635_v47 = vsub.f32 %v4028_v5, %v4032_v3  ;;  %v636_v23 = vsub.f32 %v4029_v25, %v4033_v45 }
 0x1d8   :  { %7347 = vst [vmem:[#allocation54_spill] sm:$0xff] %v5402_v13  ;;  %v639_v54 = vsub.f32 %v4032_v3, %v4036_v40  ;;  %v4068_v37 = vadd.f32 -0.6, %v5097_v26  ;;  %v640_v49 = vsub.f32 %v4033_v45, %v4037_v60  ;;  %v4069_v51 = vadd.f32 -0.6, %v5078_v15 }
 0x1d9   :  { %4489 = vmatprep.subr.bf16.mxu1 %v4488_v14  ;;  %v5408_v28 = vsub.f32 1.4, %v5097_v26  ;;  %v5411_v57 = vsub.f32 1.4, %v5078_v15  ;;  %v4072_v2 = vadd.f32 -1.0, %v5097_v26  ;;  %v4073_v19 = vadd.f32 -1.0, %v5078_v15 }
 0x1da   :  { %v843_v8 = vmul.f32 2.5, %v4068_v37  ;;  %v5416_v34 = vsub.f32 1.8, %v5097_v26  ;;  %v844_v10 = vmul.f32 2.5, %v4069_v51  ;;  %v5421_v58 = vsub.f32 1.8, %v5078_v15 }
 0x1db   :  { %7348 = vst [vmem:[#allocation55_spill] sm:$0xff] %v5408_v28  ;;  %7349 = vst [vmem:[#allocation56_spill] sm:$0xff] %v5411_v57  ;;  %v855_v5 = vmul.f32 2.5, %v5408_v28  ;;  %v856_v25 = vmul.f32 2.5, %v5411_v57  ;;  %v871_v3 = vmul.f32 2.5, %v4072_v2  ;;  %v872_v45 = vmul.f32 2.5, %v4073_v19 }
 0x1dc   :  { %7350 = vst [vmem:[#allocation57_spill] sm:$0xff] %v5416_v34  ;;  %7351 = vst [vmem:[#allocation58_spill] sm:$0xff] %v5421_v58  ;;  %v847_v33 = vmul.f32 %v843_v8, %v5399_v44  ;;  %v883_v40 = vmul.f32 2.5, %v5416_v34  ;;  %v848_v14 = vmul.f32 %v844_v10, %v5402_v13  ;;  %v884_v41 = vmul.f32 2.5, %v5421_v58 }
 0x1dd   :  { %v859_v60 = vmul.f32 %v855_v5, %v631_v18  ;;  %v860_v17 = vmul.f32 %v856_v25, %v632_v20  ;;  %v875_v43 = vmul.f32 %v871_v3, %v631_v18  ;;  %v876_v59 = vmul.f32 %v872_v45, %v632_v20 }
 0x1de   :  { %v887_v52 = vmul.f32 %v883_v40, %v635_v47  ;;  %v4076_v57 = vadd.f32 -1.4, %v5097_v26  ;;  %v888_v8 = vmul.f32 %v884_v41, %v636_v23  ;;  %v4077_v21 = vadd.f32 -1.4, %v5078_v15 }
 0x1df   :  { %v5428_v28 = vadd.f32 %v859_v60, %v847_v33  ;;  %v5430_v22 = vadd.f32 %v860_v17, %v848_v14  ;;  %v907_v10 = vsub.f32 2.2, %v5097_v26  ;;  %v908_v5 = vsub.f32 2.2, %v5078_v15 }
 0x1e0   :  { %v891_v56 = vadd.f32 %v887_v52, %v875_v43  ;;  %v899_v35 = vmul.f32 2.5, %v4076_v57  ;;  %v892_v25 = vadd.f32 %v888_v8, %v876_v59  ;;  %v900_v13 = vmul.f32 2.5, %v4077_v21 }
 0x1e1   :  { %7352 = vst [vmem:[#allocation59_spill] sm:$0xff] %v5430_v22  ;;  %v1063_v18 = vmul.f32 1.25, %v4068_v37  ;;  %v1064_v20 = vmul.f32 1.25, %v4069_v51  ;;  %v911_v45 = vmul.f32 2.5, %v907_v10  ;;  %v912_v40 = vmul.f32 2.5, %v908_v5 }
 0x1e2   :  { %v903_v3 = vmul.f32 %v899_v35, %v635_v47  ;;  %v1071_v33 = vmul.f32 1.25, %v5416_v34  ;;  %v904_v17 = vmul.f32 %v900_v13, %v636_v23  ;;  %v1072_v43 = vmul.f32 1.25, %v5421_v58 }
 0x1e3   :  { %v1067_v41 = vmul.f32 %v1063_v18, %v5428_v28  ;;  %v1068_v14 = vmul.f32 %v1064_v20, %v5430_v22  ;;  %v915_v52 = vmul.f32 %v911_v45, %v639_v54  ;;  %v916_v57 = vmul.f32 %v912_v40, %v640_v49 }
 0x1e4   :  { %v1075_v60 = vmul.f32 %v1071_v33, %v891_v56  ;;  %v1083_v16 = vmul.f32 1.25, %v4072_v2  ;;  %v1076_v59 = vmul.f32 %v1072_v43, %v892_v25  ;;  %v1084_v21 = vmul.f32 1.25, %v4073_v19 }
 0x1e5   :  { %v1091_v8 = vmul.f32 1.25, %v907_v10  ;;  %v1092_v0 = vmul.f32 1.25, %v908_v5  ;;  %v919_v35 = vadd.f32 %v915_v52, %v903_v3  ;;  %v920_v47 = vadd.f32 %v916_v57, %v904_v17 }
 0x1e6   :  { %v5439_v44 = vadd.f32 %v1075_v60, %v1067_v41  ;;  %v1087_v34 = vmul.f32 %v1083_v16, %v891_v56  ;;  %v5441_v13 = vadd.f32 %v1076_v59, %v1068_v14  ;;  %v1088_v23 = vmul.f32 %v1084_v21, %v892_v25 }
 0x1e7   :  { %v1243_v18 = vmul.f32 0.8333333, %v4068_v37  ;;  %v1244_v20 = vmul.f32 0.8333333, %v4069_v51  ;;  %v1095_v22 = vmul.f32 %v1091_v8, %v919_v35  ;;  %v1096_v58 = vmul.f32 %v1092_v0, %v920_v47 }
 0x1e8   :  { %7353 = vst [vmem:[#allocation60_spill] sm:$0xff] %v5439_v44  ;;  %7354 = vst [vmem:[#allocation61_spill] sm:$0xff] %v5441_v13  ;;  %v1251_v54 = vmul.f32 0.8333333, %v907_v10  ;;  %v1252_v49 = vmul.f32 0.8333333, %v908_v5 }
 0x1e9   :  { %v1247_v2 = vmul.f32 %v1243_v18, %v5439_v44  ;;  %v1248_v19 = vmul.f32 %v1244_v20, %v5441_v13  ;;  %v435_v45 = vmul.f32 0.5, %v5097_v26  ;;  %v436_v3 = vmul.f32 0.5, %v5078_v15 }
 0x1ea   :  { %v1099_v40 = vadd.f32 %v1095_v22, %v1087_v34  ;;  %v1100_v33 = vadd.f32 %v1096_v58, %v1088_v23  ;;  %v5448_v56 = vadd.f32 -0.2, %v5063_v9  ;;  %v5451_v16 = vadd.f32 -0.2, %v5061_v7 }
 0x1eb   :  { %4666 = vtanh.f32 %v435_v45  ;;  %v821_v0 = vsub.f32 1.0, %v5063_v9  ;;  %v822_v37 = vsub.f32 1.0, %v5061_v7  ;;  %v1021_v51 = vmul.f32 1.25, %v5158_v62 }
 0x1ec   :  { %v1255_v10 = vmul.f32 %v1251_v54, %v1099_v40  ;;  %v1256_v5 = vmul.f32 %v1252_v49, %v1100_v33  ;;  %4668 = vtanh.f32 %v436_v3  ;;  %v813_v25 = vmul.f32 2.5, %v5448_v56 }
 0x1ed   :  { %v814_v22 = vmul.f32 2.5, %v5451_v16  ;;  %v825_v34 = vmul.f32 2.5, %v821_v0  ;;  %v826_v58 = vmul.f32 2.5, %v822_v37  ;;  %v1022_v17 = vmul.f32 1.25, %v5161_v63 }
 0x1ee   :  { %v1259_v41 = vadd.f32 %v1255_v10, %v1247_v2  ;;  %v1260_v14 = vadd.f32 %v1256_v5, %v1248_v19  ;;  %v817_v43 = vmul.f32 %v813_v25, %v5119_v31  ;;  %v1025_v52 = vmul.f32 %v1021_v51, %v5179_v36 }
 0x1ef   :  { %v818_v57 = vmul.f32 %v814_v22, %v5121_v38  ;;  %v829_v60 = vmul.f32 %v825_v34, %v5124_v39  ;;  %v830_v59 = vmul.f32 %v826_v58, %v5129_v42  ;;  %v1026_v21 = vmul.f32 %v1022_v17, %v5181_v55 }
 0x1f0   :  { %v4520_v8 = vpack.c.bf16 %v1260_v14, %v1259_v41  ;;  %v1029_v35 = vmul.f32 1.25, %v821_v0  ;;  %v1030_v47 = vmul.f32 1.25, %v822_v37  ;;  %v1181_v23 = vmul.f32 0.8333333, %v5138_v29 }
 0x1f1   :  { %v5466_v18 = vadd.f32 %v829_v60, %v817_v43  ;;  %v5468_v20 = vadd.f32 %v830_v59, %v818_v57  ;;  %v1182_v31 = vmul.f32 0.8333333, %v5141_v48  ;;  %v1189_v36 = vmul.f32 0.8333333, %v821_v0 }
 0x1f2   :  { %4521 = vmatprep.subr.bf16.mxu0 %v4520_v8  ;;  %v1185_v38 = vmul.f32 %v1181_v23, %v5190_v4  ;;  %v1190_v39 = vmul.f32 0.8333333, %v822_v37  ;;  %vm453_vm3 = vcmp.ge.f32.partialorder %v5063_v9, -2.2  ;;  %vm454_vm4 = vcmp.ge.f32.partialorder %v5061_v7, -2.2 }
 0x1f3   :  { %4523 = vmatpush3.bf16.msra.mxu0 %v4520_v8  ;;  %v1033_v42 = vmul.f32 %v1029_v35, %v5466_v18  ;;  %v1034_v29 = vmul.f32 %v1030_v47, %v5468_v20  ;;  %v1186_v55 = vmul.f32 %v1182_v31, %v5195_v6  ;;  %v3990_v54 = vsel %vm453_vm3, 1.0, %v7327_v1 }
 0x1f4   :  { %v3991_v48 = vsel %vm454_vm4, 1.0, %v7327_v1  ;;  %vm465_vm5 = vcmp.ge.f32.partialorder %v5063_v9, -1.8  ;;  %vm466_vm6 = vcmp.ge.f32.partialorder %v5061_v7, -1.8  ;;  %v681_v4 = vsub.f32 -1.0, %v5063_v9 }
 0x1f5   :  { %v4667_v49 = vpop.eup %4666  ;;  %v5482_v2 = vadd.f32 %v1033_v42, %v1025_v52  ;;  %v5484_v19 = vadd.f32 %v1034_v29, %v1026_v21  ;;  %v3994_v45 = vsel %vm465_vm5, 1.0, %v7327_v1  ;;  %v3995_v3 = vsel %vm466_vm6, 1.0, %v7327_v1 }
 0x1f6   :  { %v4669_v6 = vpop.eup %4668  ;;  %v443_v40 = vadd.f32 1.0, %v4667_v49  ;;  %v597_v33 = vsub.f32 %v3990_v54, %v3994_v45  ;;  %v598_v0 = vsub.f32 %v3991_v48, %v3995_v3  ;;  %v601_v37 = vsub.f32 %v3994_v45, %v5102_v27 }
 0x1f7   :  { %v444_v51 = vadd.f32 1.0, %v4669_v6  ;;  %v1193_v10 = vmul.f32 %v1189_v36, %v5482_v2  ;;  %v1194_v5 = vmul.f32 %v1190_v39, %v5484_v19  ;;  %v602_v25 = vsub.f32 %v3995_v3, %v5071_v12 }
 0x1f8   :  { %v447_v22 = vmul.f32 0.5, %v443_v40  ;;  %v5493_v34 = vadd.f32 2.2, %v5063_v9  ;;  %v5496_v58 = vadd.f32 2.2, %v5061_v7  ;;  %v682_v17 = vsub.f32 -1.0, %v5061_v7 }
 0x1f9   :  { %v448_v41 = vmul.f32 0.5, %v444_v51  ;;  %v1197_v14 = vadd.f32 %v1193_v10, %v1185_v38  ;;  %v1198_v43 = vadd.f32 %v1194_v5, %v1186_v55  ;;  %v653_v27 = vsub.f32 -1.4, %v5063_v9 }
 0x1fa   :  { %v451_v52 = vmul.f32 %v447_v22, %v5097_v26  ;;  %v645_v57 = vmul.f32 2.5, %v5493_v34  ;;  %v646_v12 = vmul.f32 2.5, %v5496_v58  ;;  %v654_v60 = vsub.f32 -1.4, %v5061_v7 }
 0x1fb   :  { %v452_v59 = vmul.f32 %v448_v41, %v5078_v15  ;;  %v4492_v21 = vpack.c.bf16 %v1198_v43, %v1197_v14  ;;  %v657_v8 = vmul.f32 2.5, %v653_v27  ;;  %v5506_v35 = vadd.f32 1.8, %v5063_v9 }
 0x1fc   :  { %v649_v47 = vmul.f32 %v645_v57, %v597_v33  ;;  %v650_v23 = vmul.f32 %v646_v12, %v598_v0  ;;  %v658_v31 = vmul.f32 2.5, %v654_v60  ;;  %v5509_v36 = vadd.f32 1.8, %v5061_v7 }
 0x1fd   :  { %v4490_v38 = vpack.c.bf16 %v452_v59, %v451_v52  ;;  %v661_v39 = vmul.f32 %v657_v8, %v601_v37  ;;  %v673_v42 = vmul.f32 2.5, %v5506_v35  ;;  %v685_v29 = vmul.f32 2.5, %v681_v4 }
 0x1fe   :  { %v662_v55 = vmul.f32 %v658_v31, %v602_v25  ;;  %v674_v54 = vmul.f32 2.5, %v5509_v36  ;;  %v686_v48 = vmul.f32 2.5, %v682_v17  ;;  %v5516_v49 = vadd.f32 1.4, %v5063_v9 }
 0x1ff   :  { %4491 = vmatpush3.bf16.msra.mxu1 %v4490_v38  ;;  %v665_v45 = vadd.f32 %v661_v39, %v649_v47  ;;  %v677_v3 = vmul.f32 %v673_v42, %v601_v37  ;;  %v689_v6 = vmul.f32 %v685_v29, %v5276_v24  ;;  %v5520_v40 = vadd.f32 1.4, %v5061_v7 }
 0x200   :  { %4493 = vmatprep.subr.bf16.mxu1 %v4492_v21  ;;  %v666_v33 = vadd.f32 %v662_v55, %v650_v23  ;;  %v678_v0 = vmul.f32 %v674_v54, %v602_v25  ;;  %v690_v51 = vmul.f32 %v686_v48, %v5389_v50  ;;  %v701_v10 = vmul.f32 2.5, %v5516_v49 }
 0x201   :  { %v693_v5 = vadd.f32 %v689_v6, %v677_v3  ;;  %v702_v22 = vmul.f32 2.5, %v5520_v40  ;;  %v709_v41 = vsub.f32 -0.6, %v5063_v9  ;;  %v710_v14 = vsub.f32 -0.6, %v5061_v7 }
 0x202   :  { %v694_v37 = vadd.f32 %v690_v51, %v678_v0  ;;  %v705_v43 = vmul.f32 %v701_v10, %v5276_v24  ;;  %v921_v27 = vmul.f32 1.25, %v5493_v34  ;;  %v922_v52 = vmul.f32 1.25, %v5496_v58 }
 0x203   :  { %v706_v25 = vmul.f32 %v702_v22, %v5389_v50  ;;  %v713_v57 = vmul.f32 2.5, %v709_v41  ;;  %v714_v12 = vmul.f32 2.5, %v710_v14  ;;  %v929_v60 = vmul.f32 1.25, %v681_v4 }
 0x204   :  { %v925_v59 = vmul.f32 %v921_v27, %v665_v45  ;;  %v926_v21 = vmul.f32 %v922_v52, %v666_v33  ;;  %v930_v8 = vmul.f32 1.25, %v682_v17  ;;  %v941_v47 = vmul.f32 1.25, %v5506_v35 }
 0x205   :  { %v717_v7 = vmul.f32 %v713_v57, %v5114_v30  ;;  %v718_v24 = vmul.f32 %v714_v12, %v5117_v32  ;;  %v933_v23 = vmul.f32 %v929_v60, %v693_v5  ;;  %v942_v31 = vmul.f32 1.25, %v5509_v36  ;;  %v7355_v60 = vld [vmem:[#allocation53_spill] sm:$0xff] }
 0x206   :  { %v934_v38 = vmul.f32 %v930_v8, %v694_v37  ;;  %v945_v39 = vmul.f32 %v941_v47, %v693_v5  ;;  %v949_v50 = vmul.f32 1.25, %v709_v41  ;;  %v950_v42 = vmul.f32 1.25, %v710_v14  ;;  %v7357_v47 = vld [vmem:[#allocation48_spill] sm:$0xff] }
 0x207   :  { %v5537_v29 = vadd.f32 %v717_v7, %v705_v43  ;;  %v5539_v9 = vadd.f32 %v718_v24, %v706_v25  ;;  %v937_v4 = vadd.f32 %v933_v23, %v925_v59  ;;  %v946_v55 = vmul.f32 %v942_v31, %v694_v37  ;;  %v7358_v31 = vld [vmem:[#allocation54_spill] sm:$0xff] }
 0x208   :  { %v938_v17 = vadd.f32 %v934_v38, %v926_v21  ;;  %v1101_v54 = vmul.f32 0.8333333, %v5493_v34  ;;  %v1102_v30 = vmul.f32 0.8333333, %v5496_v58  ;;  %v1109_v48 = vmul.f32 0.8333333, %v709_v41 }
 0x209   :  { %v953_v32 = vmul.f32 %v949_v50, %v5537_v29  ;;  %v954_v45 = vmul.f32 %v950_v42, %v5539_v9  ;;  %v1110_v3 = vmul.f32 0.8333333, %v710_v14  ;;  %v5546_v6 = vadd.f32 -0.2, %v5097_v26  ;;  %v7356_v21 = vld [vmem:[#allocation47_spill] sm:$0xff] }
 0x20a   :  { %v1105_v33 = vmul.f32 %v1101_v54, %v937_v4  ;;  %v1106_v0 = vmul.f32 %v1102_v30, %v938_v17  ;;  %v5549_v51 = vadd.f32 -0.2, %v5078_v15  ;;  %v823_v10 = vsub.f32 1.0, %v5097_v26  ;;  %v7359_v4 = vld [vmem:[#allocation41_spill] sm:$0xff] }
 0x20b   :  { %v5552_v5 = vadd.f32 %v953_v32, %v945_v39  ;;  %v5554_v34 = vadd.f32 %v954_v45, %v946_v55  ;;  %v815_v58 = vmul.f32 2.5, %v5546_v6  ;;  %v824_v22 = vsub.f32 1.0, %v5078_v15  ;;  %v7361_v45 = vld [vmem:[#allocation51_spill] sm:$0xff] }
 0x20c   :  { %v816_v41 = vmul.f32 2.5, %v5549_v51  ;;  %v827_v14 = vmul.f32 2.5, %v823_v10  ;;  %v1023_v37 = vmul.f32 1.25, %v5338_v53  ;;  %v1024_v43 = vmul.f32 1.25, %v5341_v61 }
 0x20d   :  { %v1113_v27 = vmul.f32 %v1109_v48, %v5552_v5  ;;  %v1114_v52 = vmul.f32 %v1110_v3, %v5554_v34  ;;  %v819_v25 = vmul.f32 %v815_v58, %v5292_v46  ;;  %v828_v57 = vmul.f32 2.5, %v824_v22  ;;  %v7360_v46 = vld [vmem:[#allocation42_spill] sm:$0xff] }
 0x20e   :  { %v820_v12 = vmul.f32 %v816_v41, %v5298_v11  ;;  %v831_v59 = vmul.f32 %v827_v14, %v7355_v60  ;;  %v1027_v8 = vmul.f32 %v1023_v37, %v7356_v21  ;;  %v1028_v7 = vmul.f32 %v1024_v43, %v7357_v47  ;;  %v7363_v47 = vld [vmem:[#allocation35_spill] sm:$0xff] }
 0x20f   :  { %v1117_v24 = vadd.f32 %v1113_v27, %v1105_v33  ;;  %v1118_v23 = vadd.f32 %v1114_v52, %v1106_v0  ;;  %v832_v38 = vmul.f32 %v828_v57, %v7358_v31  ;;  %v1031_v39 = vmul.f32 1.25, %v823_v10  ;;  %v7362_v33 = vld [vmem:[#allocation52_spill] sm:$0xff] }
 0x210   :  { %v5569_v50 = vadd.f32 %v831_v59, %v819_v25  ;;  %v1032_v42 = vmul.f32 1.25, %v824_v22  ;;  %v1183_v55 = vmul.f32 0.8333333, %v7359_v4  ;;  %v1184_v17 = vmul.f32 0.8333333, %v7360_v46 }
 0x211   :  { %v4494_v54 = vpack.c.bf16 %v1118_v23, %v1117_v24  ;;  %v5573_v11 = vadd.f32 %v832_v38, %v820_v12  ;;  %v1191_v30 = vmul.f32 0.8333333, %v823_v10  ;;  %v1192_v48 = vmul.f32 0.8333333, %v824_v22  ;;  %v7364_v24 = vld [vmem:[#allocation36_spill] sm:$0xff] }
 0x212   :  { %v1035_v32 = vmul.f32 %v1031_v39, %v5569_v50  ;;  %v1187_v3 = vmul.f32 %v1183_v55, %v7361_v45  ;;  %v1188_v0 = vmul.f32 %v1184_v17, %v7362_v33  ;;  %vm455_vm7 = vcmp.ge.f32.partialorder %v5097_v26, -2.2 }
 0x213   :  { %4495 = vmatpush3.bf16.msra.mxu1 %v4494_v54  ;;  %v1036_v58 = vmul.f32 %v1032_v42, %v5573_v11  ;;  %vm456_vm8 = vcmp.ge.f32.partialorder %v5078_v15, -2.2  ;;  %v3992_v41 = vsel %vm455_vm7, 1.0, %v7327_v1  ;;  %vm467_vm9 = vcmp.ge.f32.partialorder %v5097_v26, -1.8 }
 0x214   :  { %v5583_v14 = vadd.f32 %v1035_v32, %v1027_v8  ;;  %v3993_v10 = vsel %vm456_vm8, 1.0, %v7327_v1  ;;  %vm468_vm10 = vcmp.ge.f32.partialorder %v5078_v15, -1.8  ;;  %v3996_v22 = vsel %vm467_vm9, 1.0, %v7327_v1 }
 0x215   :  { %v5588_v37 = vadd.f32 %v1036_v58, %v1028_v7  ;;  %v3997_v43 = vsel %vm468_vm10, 1.0, %v7327_v1  ;;  %vm479_vm11 = vcmp.ge.f32.partialorder %v5097_v26, -1.4  ;;  %vm480_vm12 = vcmp.ge.f32.partialorder %v5078_v15, -1.4 }
 0x216   :  { %v1195_v27 = vmul.f32 %v1191_v30, %v5583_v14  ;;  %v4000_v52 = vsel %vm479_vm11, 1.0, %v7327_v1  ;;  %v4001_v25 = vsel %vm480_vm12, 1.0, %v7327_v1  ;;  %v599_v57 = vsub.f32 %v3992_v41, %v3996_v22 }
 0x217   :  { %v1196_v12 = vmul.f32 %v1192_v48, %v5588_v37  ;;  %v600_v60 = vsub.f32 %v3993_v10, %v3997_v43  ;;  %v603_v59 = vsub.f32 %v3996_v22, %v4000_v52  ;;  %v604_v21 = vsub.f32 %v3997_v43, %v4001_v25 }
 0x218   :  { %v1199_v8 = vadd.f32 %v1195_v27, %v1187_v3  ;;  %v607_v7 = vsub.f32 %v4000_v52, %v7363_v47  ;;  %v608_v23 = vsub.f32 %v4001_v25, %v7364_v24  ;;  %v4040_v31 = vadd.f32 2.2, %v5097_v26 }
 0x219   :  { %v1200_v38 = vadd.f32 %v1196_v12, %v1188_v0  ;;  %v4041_v39 = vadd.f32 2.2, %v5078_v15  ;;  %v655_v42 = vsub.f32 -1.4, %v5097_v26  ;;  %v656_v4 = vsub.f32 -1.4, %v5078_v15 }
 0x21a   :  { %v647_v55 = vmul.f32 2.5, %v4040_v31  ;;  %v5604_v46 = vadd.f32 1.8, %v5097_v26  ;;  %v5607_v17 = vadd.f32 1.8, %v5078_v15  ;;  %v683_v54 = vsub.f32 -1.0, %v5097_v26 }
 0x21b   :  { %v4496_v30 = vpack.c.bf16 %v1200_v38, %v1199_v8  ;;  %v648_v48 = vmul.f32 2.5, %v4041_v39  ;;  %v659_v32 = vmul.f32 2.5, %v655_v42  ;;  %v660_v45 = vmul.f32 2.5, %v656_v4 }
 0x21c   :  { %v651_v3 = vmul.f32 %v647_v55, %v599_v57  ;;  %v675_v33 = vmul.f32 2.5, %v5604_v46  ;;  %v676_v0 = vmul.f32 2.5, %v5607_v17  ;;  %v684_v58 = vsub.f32 -1.0, %v5078_v15 }
 0x21d   :  { %4497 = vmatprep.subr.bf16.mxu1 %v4496_v30  ;;  %v652_v41 = vmul.f32 %v648_v48, %v600_v60  ;;  %v663_v10 = vmul.f32 %v659_v32, %v603_v59  ;;  %v664_v22 = vmul.f32 %v660_v45, %v604_v21  ;;  %v687_v43 = vmul.f32 2.5, %v683_v54 }
 0x21e   :  { %v679_v27 = vmul.f32 %v675_v33, %v603_v59  ;;  %v680_v52 = vmul.f32 %v676_v0, %v604_v21  ;;  %v688_v25 = vmul.f32 2.5, %v684_v58  ;;  %v5614_v12 = vadd.f32 1.4, %v5097_v26 }
 0x21f   :  { %v667_v8 = vadd.f32 %v663_v10, %v651_v3  ;;  %v668_v47 = vadd.f32 %v664_v22, %v652_v41  ;;  %v691_v57 = vmul.f32 %v687_v43, %v607_v7  ;;  %v5617_v24 = vadd.f32 1.4, %v5078_v15  ;;  %v7365_v22 = vld [vmem:[#allocation37_spill] sm:$0xff] }
 0x220   :  { %v692_v38 = vmul.f32 %v688_v25, %v608_v23  ;;  %v703_v42 = vmul.f32 2.5, %v5614_v12  ;;  %v711_v60 = vsub.f32 -0.6, %v5097_v26  ;;  %v712_v4 = vsub.f32 -0.6, %v5078_v15  ;;  %v7366_v25 = vld [vmem:[#allocation38_spill] sm:$0xff] }
 0x221   :  { %v695_v55 = vadd.f32 %v691_v57, %v679_v27  ;;  %v704_v59 = vmul.f32 2.5, %v5617_v24  ;;  %v923_v21 = vmul.f32 1.25, %v4040_v31  ;;  %v924_v30 = vmul.f32 1.25, %v4041_v39 }
 0x222   :  { %v696_v48 = vadd.f32 %v692_v38, %v680_v52  ;;  %v707_v32 = vmul.f32 %v703_v42, %v607_v7  ;;  %v715_v45 = vmul.f32 2.5, %v711_v60  ;;  %v716_v3 = vmul.f32 2.5, %v712_v4 }
 0x223   :  { %v708_v33 = vmul.f32 %v704_v59, %v608_v23  ;;  %v927_v0 = vmul.f32 %v923_v21, %v667_v8  ;;  %v928_v41 = vmul.f32 %v924_v30, %v668_v47  ;;  %v931_v10 = vmul.f32 1.25, %v683_v54 }
 0x224   :  { %v719_v43 = vmul.f32 %v715_v45, %v7365_v22  ;;  %v720_v1 = vmul.f32 %v716_v3, %v7366_v25  ;;  %v932_v26 = vmul.f32 1.25, %v684_v58  ;;  %v943_v15 = vmul.f32 1.25, %v5604_v46  ;;  %v7369_v22 = vld [vmem:[#allocation31_spill] sm:$0xff] }
 0x225   :  { %v935_v27 = vmul.f32 %v931_v10, %v695_v55  ;;  %v944_v57 = vmul.f32 1.25, %v5607_v17  ;;  %v951_v13 = vmul.f32 1.25, %v711_v60  ;;  %v952_v44 = vmul.f32 1.25, %v712_v4 }
 0x226   :  { %v5627_v52 = vadd.f32 %v719_v43, %v707_v32  ;;  %v5629_v7 = vadd.f32 %v720_v1, %v708_v33  ;;  %v936_v23 = vmul.f32 %v932_v26, %v696_v48  ;;  %v947_v8 = vmul.f32 %v943_v15, %v695_v55  ;;  %v7370_v26 = vld [vmem:[#allocation32_spill] sm:$0xff] }
 0x227   :  { %v939_v47 = vadd.f32 %v935_v27, %v927_v0  ;;  %v948_v54 = vmul.f32 %v944_v57, %v696_v48  ;;  %v1103_v38 = vmul.f32 0.8333333, %v4040_v31  ;;  %v1104_v42 = vmul.f32 0.8333333, %v4041_v39  ;;  %v7367_v48 = vld [vmem:[#allocation27_spill] sm:$0xff]  ;;  %v7368_v0 = vld [vmem:[#allocation28_spill] sm:$0xff] }
 0x228   :  { %v940_v59 = vadd.f32 %v936_v23, %v928_v41  ;;  %v955_v58 = vmul.f32 %v951_v13, %v5627_v52  ;;  %v956_v21 = vmul.f32 %v952_v44, %v5629_v7  ;;  %v1111_v30 = vmul.f32 0.8333333, %v711_v60 }
 0x229   :  { %v1107_v45 = vmul.f32 %v1103_v38, %v939_v47  ;;  %v1112_v3 = vmul.f32 0.8333333, %v712_v4  ;;  %v1041_v10 = vmul.f32 1.25, %v5448_v56  ;;  %v1042_v32 = vmul.f32 1.25, %v5451_v16  ;;  %v7371_v38 = vld [vmem:[#allocation19_spill] sm:$0xff] }
 0x22a   :  { %v5635_v1 = vadd.f32 %v955_v58, %v947_v8  ;;  %v5637_v33 = vadd.f32 %v956_v21, %v948_v54  ;;  %v1108_v55 = vmul.f32 %v1104_v42, %v940_v59  ;;  %v1049_v31 = vmul.f32 1.25, %v7367_v48  ;;  %v7372_v58 = vld [vmem:[#allocation20_spill] sm:$0xff] }
 0x22b   :  { %v1045_v39 = vmul.f32 %v1041_v10, %v5466_v18  ;;  %v1046_v13 = vmul.f32 %v1042_v32, %v5468_v20  ;;  %v1050_v44 = vmul.f32 1.25, %v7368_v0  ;;  %v1201_v60 = vmul.f32 0.8333333, %v5158_v62  ;;  %v7373_v10 = vld [vmem:[#allocation23_spill] sm:$0xff] }
 0x22c   :  { %v1115_v4 = vmul.f32 %v1111_v30, %v5635_v1  ;;  %v1116_v41 = vmul.f32 %v1112_v3, %v5637_v33  ;;  %v1053_v43 = vmul.f32 %v1049_v31, %v7369_v22  ;;  %v1202_v25 = vmul.f32 0.8333333, %v5161_v63 }
 0x22d   :  { %v1054_v15 = vmul.f32 %v1050_v44, %v7370_v26  ;;  %v1205_v27 = vmul.f32 %v1201_v60, %v5482_v2  ;;  %v1209_v18 = vmul.f32 0.8333333, %v7367_v48  ;;  %v1210_v20 = vmul.f32 0.8333333, %v7368_v0  ;;  %v7374_v48 = vld [vmem:[#allocation24_spill] sm:$0xff] }
 0x22e   :  { %v1119_v57 = vadd.f32 %v1115_v4, %v1107_v45  ;;  %v1120_v23 = vadd.f32 %v1116_v41, %v1108_v55  ;;  %v5652_v8 = vadd.f32 %v1053_v43, %v1045_v39  ;;  %v1206_v62 = vmul.f32 %v1202_v25, %v5484_v19  ;;  %v7375_v43 = vld [vmem:[#allocation55_spill] sm:$0xff]  ;;  %v7376_v25 = vld [vmem:[#allocation56_spill] sm:$0xff] }
 0x22f   :  { %v5655_v47 = vadd.f32 %v1054_v15, %v1046_v13  ;;  %v961_v54 = vmul.f32 1.25, %v5516_v49  ;;  %v962_v63 = vmul.f32 1.25, %v5520_v40  ;;  %v969_v42 = vmul.f32 1.25, %v7371_v38 }
 0x230   :  { %v4498_v59 = vpack.c.bf16 %v1120_v23, %v1119_v57  ;;  %v1213_v2 = vmul.f32 %v1209_v18, %v5652_v8  ;;  %v970_v21 = vmul.f32 1.25, %v7372_v58  ;;  %v1121_v30 = vmul.f32 0.8333333, %v5506_v35  ;;  %v7377_v23 = vld [vmem:[#allocation59_spill] sm:$0xff] }
 0x231   :  { %v1214_v45 = vmul.f32 %v1210_v20, %v5655_v47  ;;  %v965_v3 = vmul.f32 %v961_v54, %v5537_v29  ;;  %v966_v19 = vmul.f32 %v962_v63, %v5539_v9  ;;  %v973_v32 = vmul.f32 %v969_v42, %v7373_v10 }
 0x232   :  { %4499 = vmatpush3.bf16.msra.mxu1 %v4498_v59  ;;  %v1217_v55 = vadd.f32 %v1213_v2, %v1205_v27  ;;  %v974_v31 = vmul.f32 %v970_v21, %v7374_v48  ;;  %v1122_v39 = vmul.f32 0.8333333, %v5509_v36  ;;  %v1125_v13 = vmul.f32 %v1121_v30, %v5552_v5  ;;  %v7378_v21 = vld [vmem:[#allocation39_spill] sm:$0xff]  ;;  %v7381_v48 = vld [vmem:[#allocation45_spill] sm:$0xff] }
 0x233   :  { %v1218_v0 = vadd.f32 %v1214_v45, %v1206_v62  ;;  %v5670_v44 = vadd.f32 %v973_v32, %v965_v3  ;;  %v1129_v35 = vmul.f32 0.8333333, %v7371_v38  ;;  %v1130_v60 = vmul.f32 0.8333333, %v7372_v58  ;;  %v7379_v45 = vld [vmem:[#allocation40_spill] sm:$0xff] }
 0x234   :  { %v5674_v29 = vadd.f32 %v974_v31, %v966_v19  ;;  %v1126_v9 = vmul.f32 %v1122_v39, %v5554_v34  ;;  %v1043_v4 = vmul.f32 1.25, %v5546_v6  ;;  %v1044_v41 = vmul.f32 1.25, %v5549_v51 }
 0x235   :  { %v4500_v22 = vpack.c.bf16 %v1218_v0, %v1217_v55  ;;  %v1133_v36 = vmul.f32 %v1129_v35, %v5670_v44  ;;  %v1051_v5 = vmul.f32 1.25, %v7375_v43  ;;  %v1052_v26 = vmul.f32 1.25, %v7376_v25  ;;  %v7380_v55 = vld [vmem:[#allocation44_spill] sm:$0xff] }
 0x236   :  { %v1134_v15 = vmul.f32 %v1130_v60, %v5674_v29  ;;  %v1047_v27 = vmul.f32 %v1043_v4, %v5569_v50  ;;  %v1048_v18 = vmul.f32 %v1044_v41, %v5573_v11  ;;  %v1203_v20 = vmul.f32 0.8333333, %v5338_v53 }
 0x237   :  { %4501 = vmatprep.subr.bf16.mxu1 %v4500_v22  ;;  %v1137_v34 = vadd.f32 %v1133_v36, %v1125_v13  ;;  %v1055_v57 = vmul.f32 %v1051_v5, %v5428_v28  ;;  %v1056_v62 = vmul.f32 %v1052_v26, %v7377_v23  ;;  %v1204_v54 = vmul.f32 0.8333333, %v5341_v61  ;;  %v7382_v36 = vld [vmem:[#allocation29_spill] sm:$0xff] }
 0x238   :  { %v1138_v63 = vadd.f32 %v1134_v15, %v1126_v9  ;;  %v1207_v38 = vmul.f32 %v1203_v20, %v5583_v14  ;;  %v1211_v42 = vmul.f32 0.8333333, %v7375_v43  ;;  %v1212_v59 = vmul.f32 0.8333333, %v7376_v25  ;;  %v7383_v25 = vld [vmem:[#allocation30_spill] sm:$0xff] }
 0x239   :  { %v1059_v50 = vadd.f32 %v1055_v57, %v1047_v27  ;;  %v1060_v2 = vadd.f32 %v1056_v62, %v1048_v18  ;;  %v1208_v11 = vmul.f32 %v1204_v54, %v5588_v37  ;;  %v963_v53 = vmul.f32 1.25, %v5614_v12  ;;  %v7384_v27 = vld [vmem:[#allocation33_spill] sm:$0xff] }
 0x23a   :  { %v4502_v58 = vpack.c.bf16 %v1138_v63, %v1137_v34  ;;  %v964_v28 = vmul.f32 1.25, %v5617_v24  ;;  %v971_v30 = vmul.f32 1.25, %v7378_v21  ;;  %v972_v61 = vmul.f32 1.25, %v7379_v45  ;;  %v7386_v63 = vld [vmem:[#allocation21_spill] sm:$0xff] }
 0x23b   :  { %v1215_v3 = vmul.f32 %v1211_v42, %v1059_v50  ;;  %v1216_v19 = vmul.f32 %v1212_v59, %v1060_v2  ;;  %v967_v14 = vmul.f32 %v963_v53, %v5627_v52  ;;  %v1123_v10 = vmul.f32 0.8333333, %v5604_v46 }
 0x23c   :  { %4503 = vmatpush3.bf16.msra.mxu1 %v4502_v58  ;;  %v968_v32 = vmul.f32 %v964_v28, %v5629_v7  ;;  %v975_v37 = vmul.f32 %v971_v30, %v7380_v55  ;;  %v976_v31 = vmul.f32 %v972_v61, %v7381_v48  ;;  %v1124_v39 = vmul.f32 0.8333333, %v5607_v17  ;;  %v7389_v58 = vld [vmem:[#allocation26_spill] sm:$0xff]  ;;  %v7393_v55 = vld [vmem:[#allocation61_spill] sm:$0xff] }
 0x23d   :  { %v1219_v13 = vadd.f32 %v1215_v3, %v1207_v38  ;;  %v1220_v0 = vadd.f32 %v1216_v19, %v1208_v11  ;;  %v1127_v35 = vmul.f32 %v1123_v10, %v5635_v1  ;;  %v1131_v60 = vmul.f32 0.8333333, %v7378_v21  ;;  %v7387_v38 = vld [vmem:[#allocation22_spill] sm:$0xff]  ;;  %v7390_v21 = vld [vmem:[#allocation57_spill] sm:$0xff] }
 0x23e   :  { %v979_v9 = vadd.f32 %v975_v37, %v967_v14  ;;  %v980_v4 = vadd.f32 %v976_v31, %v968_v32  ;;  %v1128_v52 = vmul.f32 %v1124_v39, %v5637_v33  ;;  %v1132_v46 = vmul.f32 0.8333333, %v7379_v45  ;;  %v7392_v32 = vld [vmem:[#allocation60_spill] sm:$0xff]  ;;  %v423_v37 = vld [vmem:[#allocation7 + $0x10] sm:$0xff]  ;;  %v426_v48 = vld [vmem:[#allocation7 + $0x28] sm:$0xff] }
 0x23f   :  { %v4504_v41 = vpack.c.bf16 %v1220_v0, %v1219_v13  ;;  %v1221_v7 = vmul.f32 0.8333333, %v5448_v56  ;;  %v1222_v22 = vmul.f32 0.8333333, %v5451_v16  ;;  %v1229_v43 = vmul.f32 0.8333333, %v7382_v36 }
 0x240   :  { %v1135_v17 = vmul.f32 %v1131_v60, %v979_v9  ;;  %v1136_v5 = vmul.f32 %v1132_v46, %v980_v4  ;;  %v1230_v26 = vmul.f32 0.8333333, %v7383_v25  ;;  %v1141_v1 = vmul.f32 0.8333333, %v5516_v49  ;;  %v7385_v16 = vld [vmem:[#allocation34_spill] sm:$0xff]  ;;  %v7394_v13 = vld [vmem:[#allocation43_spill] sm:$0xff] }
 0x241   :  { %4505 = vmatprep.subr.bf16.mxu1 %v4504_v41  ;;  %v1225_v15 = vmul.f32 %v1221_v7, %v5652_v8  ;;  %v1226_v33 = vmul.f32 %v1222_v22, %v5655_v47  ;;  %v1233_v18 = vmul.f32 %v1229_v43, %v7384_v27  ;;  %v1142_v20 = vmul.f32 0.8333333, %v5520_v40  ;;  %v7388_v40 = vld [vmem:[#allocation25_spill] sm:$0xff]  ;;  %v7397_v22 = vld [vmem:[#allocation50_spill] sm:$0xff] }
 0x242   :  { %v1139_v56 = vadd.f32 %v1135_v17, %v1127_v35  ;;  %v1140_v34 = vadd.f32 %v1136_v5, %v1128_v52  ;;  %v1234_v57 = vmul.f32 %v1230_v26, %v7385_v16  ;;  %v1145_v23 = vmul.f32 %v1141_v1, %v5670_v44  ;;  %v7391_v44 = vld [vmem:[#allocation58_spill] sm:$0xff]  ;;  %v7396_v41 = vld [vmem:[#allocation49_spill] sm:$0xff]  ;;  %v432_v17 = vld [vmem:[#allocation7 + $0x58] sm:$0xff] }
 0x243   :  { %v1237_v62 = vadd.f32 %v1233_v18, %v1225_v15  ;;  %v1146_v54 = vmul.f32 %v1142_v20, %v5674_v29  ;;  %v1149_v49 = vmul.f32 0.8333333, %v7386_v63  ;;  %v1150_v42 = vmul.f32 0.8333333, %v7387_v38  ;;  %v7395_v35 = vld [vmem:[#allocation46_spill] sm:$0xff]  ;;  %v425_v25 = vld [vmem:[#allocation7 + $0x20] sm:$0xff] }
 0x244   :  { %v4506_v8 = vpack.c.bf16 %v1140_v34, %v1139_v56  ;;  %v1238_v59 = vadd.f32 %v1234_v57, %v1226_v33  ;;  %v1223_v47 = vmul.f32 0.8333333, %v5546_v6  ;;  %v1224_v11 = vmul.f32 0.8333333, %v5549_v51  ;;  %v424_v26 = vld [vmem:[#allocation7 + $0x18] sm:$0xff]  ;;  %v427_v15 = vld [vmem:[#allocation7 + $0x30] sm:$0xff] }
 0x245   :  { %v1153_v53 = vmul.f32 %v1149_v49, %v7388_v40  ;;  %v1154_v28 = vmul.f32 %v1150_v42, %v7389_v58  ;;  %v1231_v30 = vmul.f32 0.8333333, %v7390_v21  ;;  %v1232_v45 = vmul.f32 0.8333333, %v7391_v44  ;;  %v428_v1 = vld [vmem:[#allocation7 + $0x38] sm:$0xff]  ;;  %v431_v33 = vld [vmem:[#allocation7 + $0x50] sm:$0xff] }
 0x246   :  { %4507 = vmatpush3.bf16.msra.mxu1 %v4506_v8  ;;  %v4508_v29 = vpack.c.bf16 %v1238_v59, %v1237_v62  ;;  %v1227_v61 = vmul.f32 %v1223_v47, %v1059_v50  ;;  %v1228_v3 = vmul.f32 %v1224_v11, %v1060_v2  ;;  %v1143_v19 = vmul.f32 0.8333333, %v5614_v12  ;;  %v429_v12 = vld [vmem:[#allocation7 + $0x40] sm:$0xff]  ;;  %v430_v27 = vld [vmem:[#allocation7 + $0x48] sm:$0xff] }
 0x247   :  { %v1157_v14 = vadd.f32 %v1153_v53, %v1145_v23  ;;  %v1158_v10 = vadd.f32 %v1154_v28, %v1146_v54  ;;  %v1235_v6 = vmul.f32 %v1231_v30, %v7392_v32  ;;  %v1236_v51 = vmul.f32 %v1232_v45, %v7393_v55 }
 0x248   :  { %4509 = vmatprep.subr.bf16.mxu1 %v4508_v29  ;;  %v1144_v31 = vmul.f32 0.8333333, %v5617_v24  ;;  %v1147_v39 = vmul.f32 %v1143_v19, %v979_v9  ;;  %v1151_v0 = vmul.f32 0.8333333, %v7394_v13  ;;  %v1152_v60 = vmul.f32 0.8333333, %v7395_v35 }
 0x249   :  { %v4510_v50 = vpack.c.bf16 %v1158_v10, %v1157_v14  ;;  %v1239_v2 = vadd.f32 %v1235_v6, %v1227_v61  ;;  %v1240_v52 = vadd.f32 %v1236_v51, %v1228_v3  ;;  %vm1261_vm13 = vcmask 261120  }
 0x24a   :  { %v1148_v46 = vmul.f32 %v1144_v31, %v980_v4  ;;  %v1155_v7 = vmul.f32 %v1151_v0, %v7396_v41  ;;  %v1156_v36 = vmul.f32 %v1152_v60, %v7397_v22  ;;  %4451 = vmatprep.mubr.msk.f32.mxu0 %vm1261_vm13, %v423_v37  ;;  %v421_v4 = vld [vmem:[#allocation7] sm:$0xff]  ;;  %v7398_v47 = vmov 0.0  }
 0x24b   :  { %4511 = vmatpush3.bf16.msra.mxu1 %v4510_v50  ;;  %v4512_v43 = vpack.c.bf16 %v1240_v52, %v1239_v2  ;;  %4452 = vmatmul.mubr.msk.f32.vlgmr.msra.gmra.mrb[4].mxu0 %vm1261_vm13, %v426_v48 }
 0x24c   :  { %v1159_v24 = vadd.f32 %v1155_v7, %v1147_v39  ;;  %v1160_v9 = vadd.f32 %v1156_v36, %v1148_v46  ;;  %4454 = vmatprep.mubr.msk.f32.mxu0 %vm1261_vm13, %v429_v12 }
 0x24d   :  { %4513 = vmatprep.subr.bf16.mxu1 %v4512_v43 }
 0x24e   :  { %v4514_v5 = vpack.c.bf16 %v1160_v9, %v1159_v24 }
 0x24f   :  { %4455 = vmatmul.mubr.msk.f32.gmra.mrb[6].mxu0 %vm1261_vm13, %v432_v17 }
 0x250   :  { %4515 = vmatpush3.bf16.msra.mxu1 %v4514_v5 }
 0x253   :  { %1339 = vmatmul.mubr.f32.vlgmr.msra.gmra.mrb[0].mxu1 %v421_v4 }
 0x254   :  { %1343 = vmatprep.mubr.f32.mxu1 %v425_v25 }
 0x257   :  { %1344 = vmatmul.mubr.f32.gmra.mrb[2].mxu1 %v424_v26 }
 0x258   :  { %1348 = vmatprep.mubr.f32.mxu1 %v428_v1 }
 0x25b   :  { %1349 = vmatmul.mubr.f32.gmra.mrb[4].mxu1 %v427_v15 }
 0x25c   :  { %1353 = vmatprep.mubr.f32.mxu1 %v431_v33 }
 0x25f   :  { %1354 = vmatmul.mubr.f32.gmra.mrb[6].mxu1 %v430_v27 }
 0x31e   :  { %v4453_v18 = vpop.f32.mrb[4].mxu0 }
 0x31f   :  { %v1425_v20 = vpop.f32.mrb[5].mxu0 }
 0x322   :  { %v4456_v56 = vpop.f32.mrb[6].mxu0 }
 0x323   :  { %v1435_v34 = vpop.f32.mrb[7].mxu0 }
 0x326   :  { %v4355_v16 = vpop.f32.mrb[0].mxu1 }
 0x327   :  { %v4356_v57 = vpop.f32.mrb[1].mxu1 }
 0x328   :  { %v4357_v23 = vadd.f32 %v4356_v57, %v4355_v16 }
 0x32a   :  { %v1426_v62 = vadd.f32 %v4357_v23, %v1425_v20  ;;  %v4358_v54 = vpop.f32.mrb[2].mxu1 }
 0x32b   :  { %v4359_v63 = vpop.f32.mrb[3].mxu1 }
 0x32c   :  { %v5739_v49 = vmax.f32 %v1426_v62, 0.0  ;;  %v4360_v38 = vadd.f32 %v4359_v63, %v4358_v54 }
 0x32e   :  { %v1431_v42 = vadd.f32 %v4453_v18, %v4360_v38  ;;  %v4361_v8 = vpop.f32.mrb[4].mxu1  ;;  %vm1498_vm14 = vcmp.ge.f32.partialorder %v5739_v49, -1.4  ;;  %vm1510_vm15 = vcmp.ge.f32.partialorder %v5739_v49, -1.0  ;;  %vm1522_vm1 = vcmp.ge.f32.partialorder %v5739_v49, -0.6 }
 0x32f   :  { %v4362_v59 = vpop.f32.mrb[5].mxu1  ;;  %v5745_v11 = vsel %vm1498_vm14, 1.0, %v7398_v47  ;;  %vm1534_vm2 = vcmp.ge.f32.partialorder %v5739_v49, -0.2  ;;  %v4094_v58 = vsel %vm1510_vm15, 1.0, %v7398_v47  ;;  %v4098_v28 = vsel %vm1522_vm1, 1.0, %v7398_v47 }
 0x330   :  { %v5748_v40 = vmax.f32 %v1431_v42, 0.0  ;;  %v4363_v53 = vadd.f32 %v4362_v59, %v4361_v8  ;;  %vm1546_vm0 = vcmp.ge.f32.partialorder %v5739_v49, 0.2  ;;  %v4102_v21 = vsel %vm1534_vm2, 1.0, %v7398_v47 }
 0x331   :  { %v4106_v30 = vsel %vm1546_vm0, 1.0, %v7398_v47  ;;  %vm1558_vm3 = vcmp.ge.f32.partialorder %v5739_v49, 0.6  ;;  %v5765_v19 = vsub.f32 %v5745_v11, %v4094_v58  ;;  %v5769_v32 = vsub.f32 %v4094_v58, %v4098_v28 }
 0x332   :  { %v1436_v44 = vadd.f32 %v4363_v53, %v1435_v34  ;;  %v4364_v45 = vpop.f32.mrb[6].mxu1  ;;  %vm1499_vm4 = vcmp.ge.f32.partialorder %v5748_v40, -1.4  ;;  %vm1511_vm5 = vcmp.ge.f32.partialorder %v5748_v40, -1.0  ;;  %vm1523_vm6 = vcmp.ge.f32.partialorder %v5748_v40, -0.6 }
 0x333   :  { %v4365_v29 = vpop.f32.mrb[7].mxu1  ;;  %v5760_v61 = vsel %vm1511_vm5, 1.0, %v7398_v47  ;;  %v4099_v3 = vsel %vm1523_vm6, 1.0, %v7398_v47  ;;  %vm1535_vm7 = vcmp.ge.f32.partialorder %v5748_v40, -0.2  ;;  %v5772_v6 = vsel %vm1499_vm4, 1.0, %v7398_v47 }
 0x334   :  { %v4366_v14 = vadd.f32 %v4365_v29, %v4364_v45  ;;  %v4103_v10 = vsel %vm1535_vm7, 1.0, %v7398_v47  ;;  %vm1547_vm8 = vcmp.ge.f32.partialorder %v5748_v40, 0.2  ;;  %vm1559_vm9 = vcmp.ge.f32.partialorder %v5748_v40, 0.6 }
 0x335   :  { %v4107_v55 = vsel %vm1547_vm8, 1.0, %v7398_v47  ;;  %v5779_v51 = vsel %vm1558_vm3, 1.0, %v7398_v47  ;;  %v5781_v37 = vmax.f32 %v1436_v44, 0.0  ;;  %v5784_v31 = vsel %vm1559_vm9, 1.0, %v7398_v47 }
 0x336   :  { %v1441_v48 = vadd.f32 %v4456_v56, %v4366_v14  ;;  %v5787_v39 = vsub.f32 %v5760_v61, %v4099_v3  ;;  %v1634_v13 = vsub.f32 %v4098_v28, %v4102_v21  ;;  %v1635_v0 = vsub.f32 %v4099_v3, %v4103_v10 }
 0x337   :  { %v1638_v35 = vsub.f32 %v4102_v21, %v4106_v30  ;;  %v1639_v60 = vsub.f32 %v4103_v10, %v4107_v55  ;;  %v5792_v2 = vsub.f32 %v4106_v30, %v5779_v51  ;;  %v4142_v52 = vadd.f32 1.0, %v5739_v49 }
 0x338   :  { %v5789_v50 = vmax.f32 %v1441_v48, 0.0  ;;  %v4143_v12 = vadd.f32 1.0, %v5748_v40  ;;  %v5797_v46 = vsub.f32 %v4107_v55, %v5784_v31  ;;  %v5800_v41 = vsub.f32 -0.2, %v5739_v49 }
 0x339   :  { %v5803_v7 = vsub.f32 -0.2, %v5748_v40  ;;  %v5806_v22 = vadd.f32 0.6, %v5739_v49  ;;  %v1750_v36 = vmul.f32 2.5, %v4142_v52  ;;  %v2002_v21 = vmul.f32 1.25, %v4142_v52 }
 0x33a   :  { %7399 = vst [vmem:[#allocation53_spill] sm:$0xff] %v5800_v41  ;;  %v1751_v43 = vmul.f32 2.5, %v4143_v12  ;;  %v5809_v24 = vadd.f32 0.6, %v5748_v40  ;;  %v5812_v9 = vsub.f32 0.2, %v5739_v49 }
 0x33b   :  { %7400 = vst [vmem:[#allocation47_spill] sm:$0xff] %v5803_v7  ;;  %v1762_v17 = vmul.f32 2.5, %v5800_v41  ;;  %v1763_v5 = vmul.f32 2.5, %v5803_v7  ;;  %v1778_v4 = vmul.f32 2.5, %v5806_v22  ;;  %v5818_v25 = vsub.f32 0.2, %v5748_v40 }
 0x33c   :  { %7401 = vst [vmem:[#allocation48_spill] sm:$0xff] %v5812_v9  ;;  %v1754_v26 = vmul.f32 %v1750_v36, %v5769_v32  ;;  %v1755_v1 = vmul.f32 %v1751_v43, %v5787_v39  ;;  %v1779_v15 = vmul.f32 2.5, %v5809_v24  ;;  %v1790_v33 = vmul.f32 2.5, %v5812_v9 }
 0x33d   :  { %7402 = vst [vmem:[#allocation54_spill] sm:$0xff] %v5818_v25  ;;  %v1766_v27 = vmul.f32 %v1762_v17, %v1634_v13  ;;  %v1767_v18 = vmul.f32 %v1763_v5, %v1635_v0  ;;  %v1782_v20 = vmul.f32 %v1778_v4, %v1634_v13  ;;  %v1791_v56 = vmul.f32 2.5, %v5818_v25 }
 0x33e   :  { %v1783_v34 = vmul.f32 %v1779_v15, %v1635_v0  ;;  %v1794_v16 = vmul.f32 %v1790_v33, %v1638_v35  ;;  %v5826_v57 = vadd.f32 0.2, %v5739_v49  ;;  %v5829_v23 = vadd.f32 0.2, %v5748_v40 }
 0x33f   :  { %v5831_v62 = vadd.f32 %v1766_v27, %v1754_v26  ;;  %v5833_v54 = vadd.f32 %v1767_v18, %v1755_v1  ;;  %v1795_v63 = vmul.f32 %v1791_v56, %v1639_v60  ;;  %v1814_v38 = vsub.f32 0.6, %v5739_v49 }
 0x340   :  { %v1798_v42 = vadd.f32 %v1794_v16, %v1782_v20  ;;  %v1806_v8 = vmul.f32 2.5, %v5826_v57  ;;  %v1807_v59 = vmul.f32 2.5, %v5829_v23  ;;  %v1815_v53 = vsub.f32 0.6, %v5748_v40 }
 0x341   :  { %7403 = vst [vmem:[#allocation41_spill] sm:$0xff] %v5831_v62  ;;  %7404 = vst [vmem:[#allocation42_spill] sm:$0xff] %v5833_v54  ;;  %v1799_v58 = vadd.f32 %v1795_v63, %v1783_v34  ;;  %v1818_v28 = vmul.f32 2.5, %v1814_v38  ;;  %v2003_v30 = vmul.f32 1.25, %v4143_v12  ;;  %v2010_v3 = vmul.f32 1.25, %v5812_v9 }
 0x342   :  { %v1810_v44 = vmul.f32 %v1806_v8, %v1638_v35  ;;  %v1811_v45 = vmul.f32 %v1807_v59, %v1639_v60  ;;  %v1819_v29 = vmul.f32 2.5, %v1815_v53  ;;  %v2006_v10 = vmul.f32 %v2002_v21, %v5831_v62 }
 0x343   :  { %v1822_v14 = vmul.f32 %v1818_v28, %v5792_v2  ;;  %v2007_v55 = vmul.f32 %v2003_v30, %v5833_v54  ;;  %v2011_v48 = vmul.f32 1.25, %v5818_v25  ;;  %v2014_v0 = vmul.f32 %v2010_v3, %v1798_v42 }
 0x344   :  { %v1823_v13 = vmul.f32 %v1819_v29, %v5797_v46  ;;  %v2022_v36 = vmul.f32 1.25, %v5806_v22  ;;  %v2023_v43 = vmul.f32 1.25, %v5809_v24  ;;  %v2030_v17 = vmul.f32 1.25, %v1814_v38 }
 0x345   :  { %v5847_v35 = vadd.f32 %v1822_v14, %v1810_v44  ;;  %v2015_v60 = vmul.f32 %v2011_v48, %v1799_v58  ;;  %v2031_v5 = vmul.f32 1.25, %v1815_v53  ;;  %v5851_v26 = vadd.f32 %v2014_v0, %v2006_v10 }
 0x346   :  { %v5849_v4 = vadd.f32 %v1823_v13, %v1811_v45  ;;  %v2026_v1 = vmul.f32 %v2022_v36, %v1798_v42  ;;  %v2027_v15 = vmul.f32 %v2023_v43, %v1799_v58  ;;  %v2182_v18 = vmul.f32 0.8333333, %v4142_v52 }
 0x347   :  { %7405 = vst [vmem:[#allocation51_spill] sm:$0xff] %v5851_v26  ;;  %v5853_v33 = vadd.f32 %v2015_v60, %v2007_v55  ;;  %v2034_v27 = vmul.f32 %v2030_v17, %v5847_v35  ;;  %v2183_v20 = vmul.f32 0.8333333, %v4143_v12  ;;  %v2190_v34 = vmul.f32 0.8333333, %v1814_v38 }
 0x348   :  { %v2035_v56 = vmul.f32 %v2031_v5, %v5849_v4  ;;  %v2191_v16 = vmul.f32 0.8333333, %v1815_v53  ;;  %v1454_v63 = vmul.f32 0.5, %v5739_v49  ;;  %v2186_v59 = vmul.f32 %v2182_v18, %v5851_v26 }
 0x349   :  { %7406 = vst [vmem:[#allocation52_spill] sm:$0xff] %v5853_v33  ;;  %v5858_v8 = vadd.f32 %v2034_v27, %v2026_v1  ;;  %v2187_v28 = vmul.f32 %v2183_v20, %v5853_v33  ;;  %v1455_v42 = vmul.f32 0.5, %v5748_v40  ;;  %vm1500_vm10 = vcmp.ge.f32.partialorder %v5781_v37, -1.4 }
 0x34a   :  { %v5863_v58 = vadd.f32 %v2035_v56, %v2027_v15  ;;  %4670 = vtanh.f32 %v1454_v63  ;;  %vm1501_vm11 = vcmp.ge.f32.partialorder %v5789_v50, -1.4  ;;  %v5869_v52 = vsub.f32 %v5772_v6, %v5760_v61 }
 0x34b   :  { %v2194_v12 = vmul.f32 %v2190_v34, %v5858_v8  ;;  %4672 = vtanh.f32 %v1455_v42  ;;  %v5873_v38 = vsel %vm1500_vm10, 1.0, %v7398_v47  ;;  %vm1512_vm12 = vcmp.ge.f32.partialorder %v5781_v37, -1.0 }
 0x34c   :  { %7407 = vst [vmem:[#allocation35_spill] sm:$0xff] %v5873_v38  ;;  %v2195_v53 = vmul.f32 %v2191_v16, %v5863_v58  ;;  %vm1513_vm14 = vcmp.ge.f32.partialorder %v5789_v50, -1.0  ;;  %vm1524_vm15 = vcmp.ge.f32.partialorder %v5781_v37, -0.6  ;;  %v5880_v30 = vsel %vm1501_vm11, 1.0, %v7398_v47 }
 0x34d   :  { %v2198_v21 = vadd.f32 %v2194_v12, %v2186_v59  ;;  %v4096_v61 = vsel %vm1512_vm12, 1.0, %v7398_v47  ;;  %vm1525_vm1 = vcmp.ge.f32.partialorder %v5789_v50, -0.6  ;;  %v5885_v45 = vsel %vm1513_vm14, 1.0, %v7398_v47 }
 0x34e   :  { %v2199_v44 = vadd.f32 %v2195_v53, %v2187_v28  ;;  %v4100_v29 = vsel %vm1524_vm15, 1.0, %v7398_v47  ;;  %vm1536_vm2 = vcmp.ge.f32.partialorder %v5781_v37, -0.2  ;;  %v4101_v3 = vsel %vm1525_vm1, 1.0, %v7398_v47 }
 0x34f   :  { %vm1537_vm0 = vcmp.ge.f32.partialorder %v5789_v50, -0.2  ;;  %v4104_v14 = vsel %vm1536_vm2, 1.0, %v7398_v47  ;;  %vm1548_vm3 = vcmp.ge.f32.partialorder %v5781_v37, 0.2  ;;  %v5900_v0 = vsub.f32 %v5873_v38, %v4096_v61 }
 0x350   :  { %v4524_v10 = vpack.c.bf16 %v2199_v44, %v2198_v21  ;;  %v4105_v55 = vsel %vm1537_vm0, 1.0, %v7398_v47  ;;  %vm1549_vm4 = vcmp.ge.f32.partialorder %v5789_v50, 0.2  ;;  %v4108_v48 = vsel %vm1548_vm3, 1.0, %v7398_v47 }
 0x351   :  { %v4109_v13 = vsel %vm1549_vm4, 1.0, %v7398_v47  ;;  %vm1560_vm5 = vcmp.ge.f32.partialorder %v5781_v37, 0.6  ;;  %vm1561_vm6 = vcmp.ge.f32.partialorder %v5789_v50, 0.6  ;;  %7408 = vst [vmem:[#allocation36_spill] sm:$0xff] %v5900_v0  ;;  %v5908_v60 = vsub.f32 %v4096_v61, %v4100_v29 }
 0x352   :  { %4525 = vmatprep.subr.bf16.mxu0 %v4524_v10  ;;  %v5903_v36 = vsel %vm1560_vm5, 1.0, %v7398_v47  ;;  %v5906_v43 = vsel %vm1561_vm6, 1.0, %v7398_v47  ;;  %v5911_v17 = vsub.f32 %v5885_v45, %v4101_v3  ;;  %v1636_v5 = vsub.f32 %v4100_v29, %v4104_v14 }
 0x353   :  { %7409 = vst [vmem:[#allocation37_spill] sm:$0xff] %v5908_v60  ;;  %v1637_v1 = vsub.f32 %v4101_v3, %v4105_v55  ;;  %v1640_v15 = vsub.f32 %v4104_v14, %v4108_v48  ;;  %v1641_v27 = vsub.f32 %v4105_v55, %v4109_v13  ;;  %v5914_v20 = vsub.f32 %v4108_v48, %v5903_v36 }
 0x354   :  { %7410 = vst [vmem:[#allocation38_spill] sm:$0xff] %v5911_v17  ;;  %v4671_v18 = vpop.eup %4670  ;;  %v5917_v56 = vsub.f32 %v4109_v13, %v5906_v43  ;;  %v5920_v34 = vadd.f32 1.0, %v5781_v37  ;;  %v5923_v16 = vadd.f32 1.0, %v5789_v50  ;;  %v5926_v28 = vsub.f32 -0.2, %v5781_v37 }
 0x355   :  { %v4673_v63 = vpop.eup %4672  ;;  %v1462_v59 = vadd.f32 1.0, %v4671_v18  ;;  %v5929_v42 = vsub.f32 -0.2, %v5789_v50  ;;  %v5932_v12 = vmul.f32 0.5, %v5781_v37  ;;  %v5937_v44 = vadd.f32 0.6, %v5781_v37 }
 0x356   :  { %7411 = vst [vmem:[#allocation27_spill] sm:$0xff] %v5926_v28  ;;  %v1463_v53 = vadd.f32 1.0, %v4673_v63  ;;  %v1752_v21 = vmul.f32 2.5, %v5920_v34  ;;  %v1753_v61 = vmul.f32 2.5, %v5923_v16  ;;  %v1764_v3 = vmul.f32 2.5, %v5926_v28 }
 0x357   :  { %7412 = vst [vmem:[#allocation28_spill] sm:$0xff] %v5929_v42  ;;  %v1466_v29 = vmul.f32 0.5, %v1462_v59  ;;  %v1765_v14 = vmul.f32 2.5, %v5929_v42  ;;  %v5942_v10 = vadd.f32 0.6, %v5789_v50  ;;  %v1780_v18 = vmul.f32 2.5, %v5937_v44 }
 0x358   :  { %v1467_v55 = vmul.f32 0.5, %v1463_v53  ;;  %v1756_v48 = vmul.f32 %v1752_v21, %v5908_v60  ;;  %v1757_v13 = vmul.f32 %v1753_v61, %v5911_v17  ;;  %v1768_v33 = vmul.f32 %v1764_v3, %v1636_v5 }
 0x359   :  { %v1470_v63 = vmul.f32 %v1466_v29, %v5739_v49  ;;  %v1769_v26 = vmul.f32 %v1765_v14, %v1637_v1  ;;  %v1781_v59 = vmul.f32 2.5, %v5942_v10  ;;  %v1784_v9 = vmul.f32 %v1780_v18, %v1636_v5 }
 0x35a   :  { %v1471_v25 = vmul.f32 %v1467_v55, %v5748_v40  ;;  %v5951_v42 = vsub.f32 0.2, %v5781_v37  ;;  %v5954_v53 = vsub.f32 0.2, %v5789_v50  ;;  %v5956_v21 = vadd.f32 %v1768_v33, %v1756_v48 }
 0x35b   :  { %v5958_v61 = vadd.f32 %v1769_v26, %v1757_v13  ;;  %v1785_v28 = vmul.f32 %v1781_v59, %v1637_v1  ;;  %v5961_v29 = vadd.f32 0.2, %v5781_v37  ;;  %v5966_v5 = vadd.f32 0.2, %v5789_v50 }
 0x35c   :  { %7413 = vst [vmem:[#allocation31_spill] sm:$0xff] %v5951_v42  ;;  %7414 = vst [vmem:[#allocation32_spill] sm:$0xff] %v5954_v53  ;;  %v4526_v3 = vpack.c.bf16 %v1471_v25, %v1470_v63  ;;  %v1792_v14 = vmul.f32 2.5, %v5951_v42  ;;  %v1793_v55 = vmul.f32 2.5, %v5954_v53  ;;  %v1816_v54 = vsub.f32 0.6, %v5781_v37 }
 0x35d   :  { %7415 = vst [vmem:[#allocation19_spill] sm:$0xff] %v5956_v21  ;;  %7416 = vst [vmem:[#allocation20_spill] sm:$0xff] %v5958_v61  ;;  %v1808_v18 = vmul.f32 2.5, %v5961_v29  ;;  %v1817_v33 = vsub.f32 0.6, %v5789_v50  ;;  %v2004_v26 = vmul.f32 1.25, %v5920_v34  ;;  %4674 = vtanh.f32 %v5932_v12 }
 0x35e   :  { %7417 = vst [vmem:[#allocation23_spill] sm:$0xff] %v5961_v29  ;;  %7418 = vst [vmem:[#allocation24_spill] sm:$0xff] %v5966_v5  ;;  %4527 = vmatpush3.bf16.msra.mxu0 %v4526_v3  ;;  %v1796_v1 = vmul.f32 %v1792_v14, %v1640_v15  ;;  %v1797_v48 = vmul.f32 %v1793_v55, %v1641_v27  ;;  %v1809_v25 = vmul.f32 2.5, %v5966_v5  ;;  %v2005_v13 = vmul.f32 1.25, %v5923_v16 }
 0x35f   :  { %v1812_v63 = vmul.f32 %v1808_v18, %v1640_v15  ;;  %v1820_v59 = vmul.f32 2.5, %v1816_v54  ;;  %v1821_v62 = vmul.f32 2.5, %v1817_v33  ;;  %v2008_v7 = vmul.f32 %v2004_v26, %v5956_v21 }
 0x360   :  { %v1800_v41 = vadd.f32 %v1796_v1, %v1784_v9  ;;  %v1801_v17 = vadd.f32 %v1797_v48, %v1785_v28  ;;  %v1813_v60 = vmul.f32 %v1809_v25, %v1641_v27  ;;  %v2009_v0 = vmul.f32 %v2005_v13, %v5958_v61 }
 0x361   :  { %v1824_v38 = vmul.f32 %v1820_v59, %v5914_v20  ;;  %v1825_v3 = vmul.f32 %v1821_v62, %v5917_v56  ;;  %v2012_v14 = vmul.f32 1.25, %v5951_v42  ;;  %v2013_v55 = vmul.f32 1.25, %v5954_v53 }
 0x362   :  { %v2024_v5 = vmul.f32 1.25, %v5937_v44  ;;  %v2025_v15 = vmul.f32 1.25, %v5942_v10  ;;  %v2032_v18 = vmul.f32 1.25, %v1816_v54  ;;  %v2033_v29 = vmul.f32 1.25, %v1817_v33 }
 0x363   :  { %v5982_v26 = vadd.f32 %v1824_v38, %v1812_v63  ;;  %v5984_v9 = vadd.f32 %v1825_v3, %v1813_v60  ;;  %v2016_v27 = vmul.f32 %v2012_v14, %v1800_v41  ;;  %v2017_v28 = vmul.f32 %v2013_v55, %v1801_v17 }
 0x364   :  { %v2028_v1 = vmul.f32 %v2024_v5, %v1800_v41  ;;  %v2029_v48 = vmul.f32 %v2025_v15, %v1801_v17  ;;  %v2184_v62 = vmul.f32 0.8333333, %v5920_v34  ;;  %v2185_v25 = vmul.f32 0.8333333, %v5923_v16 }
 0x365   :  { %v5988_v13 = vadd.f32 %v2016_v27, %v2008_v7  ;;  %v5990_v59 = vadd.f32 %v2017_v28, %v2009_v0  ;;  %v2036_v53 = vmul.f32 %v2032_v18, %v5982_v26  ;;  %v2037_v42 = vmul.f32 %v2033_v29, %v5984_v9 }
 0x366   :  { %v2192_v38 = vmul.f32 0.8333333, %v1816_v54  ;;  %v2193_v63 = vmul.f32 0.8333333, %v1817_v33  ;;  %v1457_v60 = vmul.f32 0.5, %v5789_v50  ;;  %vm1570_vm7 = vcmp.ge.f32.partialorder %v5739_v49, 1.0 }
 0x367   :  { %7419 = vst [vmem:[#allocation55_spill] sm:$0xff] %v5988_v13  ;;  %7420 = vst [vmem:[#allocation56_spill] sm:$0xff] %v5990_v59  ;;  %v5996_v41 = vadd.f32 %v2036_v53, %v2028_v1  ;;  %v5998_v17 = vadd.f32 %v2037_v42, %v2029_v48  ;;  %v2188_v34 = vmul.f32 %v2184_v62, %v5988_v13  ;;  %vm1571_vm8 = vcmp.ge.f32.partialorder %v5748_v40, 1.0 }
 0x368   :  { %v2189_v7 = vmul.f32 %v2185_v25, %v5990_v59  ;;  %4676 = vtanh.f32 %v1457_v60  ;;  %v6005_v54 = vadd.f32 -0.2, %v5739_v49  ;;  %v6010_v12 = vsel %vm1570_vm7, 1.0, %v7398_v47 }
 0x369   :  { %v2196_v0 = vmul.f32 %v2192_v38, %v5996_v41  ;;  %v2197_v16 = vmul.f32 %v2193_v63, %v5998_v17  ;;  %v6013_v42 = vsel %vm1571_vm8, 1.0, %v7398_v47  ;;  %v6017_v53 = vsub.f32 %v5779_v51, %v6010_v12 }
 0x36a   :  { %v6021_v29 = vsub.f32 %v5784_v31, %v6013_v42  ;;  %v6024_v5 = vadd.f32 -0.2, %v5748_v40  ;;  %v1834_v33 = vmul.f32 2.5, %v6005_v54  ;;  %v1842_v55 = vsub.f32 1.0, %v5739_v49 }
 0x36b   :  { %v2200_v3 = vadd.f32 %v2196_v0, %v2188_v34  ;;  %v2201_v14 = vadd.f32 %v2197_v16, %v2189_v7  ;;  %v1843_v15 = vsub.f32 1.0, %v5748_v40  ;;  %v6031_v18 = vsub.f32 %v5880_v30, %v5885_v45  ;;  %v4675_v0 = vpop.eup %4674 }
 0x36c   :  { %v1835_v51 = vmul.f32 2.5, %v6024_v5  ;;  %v1838_v31 = vmul.f32 %v1834_v33, %v5792_v2  ;;  %v2042_v27 = vmul.f32 1.25, %v5826_v57  ;;  %v1846_v1 = vmul.f32 2.5, %v1842_v55 }
 0x36d   :  { %v4528_v28 = vpack.c.bf16 %v2201_v14, %v2200_v3  ;;  %v1847_v48 = vmul.f32 2.5, %v1843_v15  ;;  %v2043_v62 = vmul.f32 1.25, %v5829_v23  ;;  %v2050_v63 = vmul.f32 1.25, %v1842_v55 }
 0x36e   :  { %v1839_v25 = vmul.f32 %v1835_v51, %v5797_v46  ;;  %v2046_v38 = vmul.f32 %v2042_v27, %v5847_v35  ;;  %v2051_v60 = vmul.f32 1.25, %v1843_v15  ;;  %v1850_v45 = vmul.f32 %v1846_v1, %v6017_v53 }
 0x36f   :  { %4529 = vmatprep.subr.bf16.mxu0 %v4528_v28  ;;  %v1851_v34 = vmul.f32 %v1847_v48, %v6021_v29  ;;  %v2202_v2 = vmul.f32 0.8333333, %v5806_v22  ;;  %v2203_v7 = vmul.f32 0.8333333, %v5809_v24  ;;  %v2047_v16 = vmul.f32 %v2043_v62, %v5849_v4 }
 0x370   :  { %v2210_v33 = vmul.f32 0.8333333, %v1842_v55  ;;  %v2211_v3 = vmul.f32 0.8333333, %v1843_v15  ;;  %vm1474_vm9 = vcmp.ge.f32.partialorder %v5739_v49, -2.2  ;;  %v6045_v35 = vadd.f32 %v1850_v45, %v1838_v31 }
 0x371   :  { %v1464_v46 = vadd.f32 1.0, %v4675_v0  ;;  %v6047_v14 = vadd.f32 %v1851_v34, %v1839_v25  ;;  %v2206_v51 = vmul.f32 %v2202_v2, %v5858_v8  ;;  %v2207_v28 = vmul.f32 %v2203_v7, %v5863_v58 }
 0x372   :  { %v4677_v27 = vpop.eup %4676  ;;  %vm1475_vm10 = vcmp.ge.f32.partialorder %v5748_v40, -2.2  ;;  %v4082_v22 = vsel %vm1474_vm9, 1.0, %v7398_v47  ;;  %vm1486_vm11 = vcmp.ge.f32.partialorder %v5739_v49, -1.8  ;;  %v2054_v55 = vmul.f32 %v2050_v63, %v6045_v35 }
 0x373   :  { %v1465_v24 = vadd.f32 1.0, %v4677_v27  ;;  %v1468_v4 = vmul.f32 0.5, %v1464_v46  ;;  %v2055_v15 = vmul.f32 %v2051_v60, %v6047_v14  ;;  %v4083_v31 = vsel %vm1475_vm10, 1.0, %v7398_v47  ;;  %v1449_v27 = vld [vmem:[#allocation8 + $0x8] sm:$0xff] }
 0x374   :  { %vm1487_vm12 = vcmp.ge.f32.partialorder %v5748_v40, -1.8  ;;  %v4086_v8 = vsel %vm1486_vm11, 1.0, %v7398_v47  ;;  %v6060_v58 = vadd.f32 2.2, %v5739_v49  ;;  %v6063_v62 = vadd.f32 %v2054_v55, %v2046_v38  ;;  %2352 = vmatprep.mubr.f32.mxu0 %v1449_v27 }
 0x375   :  { %v1469_v1 = vmul.f32 0.5, %v1465_v24  ;;  %v1472_v48 = vmul.f32 %v1468_v4, %v5781_v37  ;;  %v6065_v25 = vadd.f32 %v2055_v15, %v2047_v16  ;;  %v4087_v63 = vsel %vm1487_vm12, 1.0, %v7398_v47 }
 0x376   :  { %v1618_v45 = vsub.f32 %v4082_v22, %v4086_v8  ;;  %v1622_v60 = vsub.f32 %v4086_v8, %v5745_v11  ;;  %v6070_v34 = vadd.f32 2.2, %v5748_v40  ;;  %v2214_v7 = vmul.f32 %v2210_v33, %v6063_v62 }
 0x377   :  { %7421 = vst [vmem:[#allocation59_spill] sm:$0xff] %v6065_v25  ;;  %v1473_v2 = vmul.f32 %v1469_v1, %v5789_v50  ;;  %v2215_v0 = vmul.f32 %v2211_v3, %v6065_v25  ;;  %v1619_v46 = vsub.f32 %v4083_v31, %v4087_v63  ;;  %v1623_v38 = vsub.f32 %v4087_v63, %v5772_v6 }
 0x378   :  { %v1666_v16 = vmul.f32 2.5, %v6060_v58  ;;  %v1667_v24 = vmul.f32 2.5, %v6070_v34  ;;  %v1674_v22 = vsub.f32 -1.4, %v5739_v49  ;;  %v2218_v4 = vadd.f32 %v2214_v7, %v2206_v51 }
 0x379   :  { %v4530_v11 = vpack.c.bf16 %v1473_v2, %v1472_v48  ;;  %v2219_v55 = vadd.f32 %v2215_v0, %v2207_v28  ;;  %v1675_v15 = vsub.f32 -1.4, %v5748_v40  ;;  %v6081_v3 = vadd.f32 1.8, %v5739_v49 }
 0x37a   :  { %v1670_v8 = vmul.f32 %v1666_v16, %v1618_v45  ;;  %v1671_v33 = vmul.f32 %v1667_v24, %v1619_v46  ;;  %v1678_v1 = vmul.f32 2.5, %v1674_v22  ;;  %v6084_v63 = vadd.f32 1.8, %v5748_v40 }
 0x37b   :  { %4531 = vmatpush3.bf16.msra.mxu0 %v4530_v11  ;;  %v4532_v6 = vpack.c.bf16 %v2219_v55, %v2218_v4  ;;  %v1679_v31 = vmul.f32 2.5, %v1675_v15  ;;  %v1702_v59 = vsub.f32 -1.0, %v5739_v49  ;;  %v1694_v51 = vmul.f32 2.5, %v6081_v3 }
 0x37c   :  { %v1682_v27 = vmul.f32 %v1678_v1, %v1622_v60  ;;  %v1703_v28 = vsub.f32 -1.0, %v5748_v40  ;;  %v6090_v48 = vadd.f32 1.4, %v5739_v49  ;;  %v1695_v2 = vmul.f32 2.5, %v6084_v63 }
 0x37d   :  { %4533 = vmatprep.subr.bf16.mxu0 %v4532_v6  ;;  %v1683_v45 = vmul.f32 %v1679_v31, %v1623_v38  ;;  %v1706_v7 = vmul.f32 2.5, %v1702_v59  ;;  %v6094_v0 = vadd.f32 1.4, %v5748_v40  ;;  %v1698_v16 = vmul.f32 %v1694_v51, %v1622_v60 }
 0x37e   :  { %v1686_v46 = vadd.f32 %v1682_v27, %v1670_v8  ;;  %v1707_v24 = vmul.f32 2.5, %v1703_v28  ;;  %v1722_v22 = vmul.f32 2.5, %v6090_v48  ;;  %v1699_v4 = vmul.f32 %v1695_v2, %v1623_v38 }
 0x37f   :  { %7422 = vst [vmem:[#allocation39_spill] sm:$0xff] %v6094_v0  ;;  %v1687_v11 = vadd.f32 %v1683_v45, %v1671_v33  ;;  %v1710_v55 = vmul.f32 %v1706_v7, %v5765_v19  ;;  %v1723_v15 = vmul.f32 2.5, %v6094_v0  ;;  %v1730_v31 = vsub.f32 -0.6, %v5739_v49 }
 0x380   :  { %v1711_v1 = vmul.f32 %v1707_v24, %v5869_v52  ;;  %v1726_v6 = vmul.f32 %v1722_v22, %v5765_v19  ;;  %v1731_v13 = vsub.f32 -0.6, %v5748_v40  ;;  %v1942_v8 = vmul.f32 1.25, %v6060_v58 }
 0x381   :  { %v1714_v61 = vadd.f32 %v1710_v55, %v1698_v16  ;;  %v1727_v60 = vmul.f32 %v1723_v15, %v5869_v52  ;;  %v1943_v33 = vmul.f32 1.25, %v6070_v34  ;;  %v1734_v27 = vmul.f32 2.5, %v1730_v31 }
 0x382   :  { %v1715_v38 = vadd.f32 %v1711_v1, %v1699_v4  ;;  %v1735_v51 = vmul.f32 2.5, %v1731_v13  ;;  %v1950_v45 = vmul.f32 1.25, %v1702_v59  ;;  %v1946_v2 = vmul.f32 %v1942_v8, %v1686_v46 }
 0x383   :  { %v1947_v7 = vmul.f32 %v1943_v33, %v1687_v11  ;;  %v1951_v24 = vmul.f32 1.25, %v1703_v28  ;;  %v1962_v19 = vmul.f32 1.25, %v6081_v3  ;;  %v1738_v22 = vmul.f32 %v1734_v27, %v5769_v32 }
 0x384   :  { %v1739_v21 = vmul.f32 %v1735_v51, %v5787_v39  ;;  %v1954_v16 = vmul.f32 %v1950_v45, %v1714_v61  ;;  %v1963_v52 = vmul.f32 1.25, %v6084_v63  ;;  %v1970_v0 = vmul.f32 1.25, %v1730_v31 }
 0x385   :  { %v1955_v55 = vmul.f32 %v1951_v24, %v1715_v38  ;;  %v1966_v15 = vmul.f32 %v1962_v19, %v1714_v61  ;;  %v1971_v25 = vmul.f32 1.25, %v1731_v13  ;;  %v6110_v4 = vadd.f32 %v1738_v22, %v1726_v6  ;;  %v7425_v22 = vld [vmem:[#allocation24_spill] sm:$0xff] }
 0x386   :  { %v6112_v1 = vadd.f32 %v1739_v21, %v1727_v60  ;;  %v1958_v59 = vadd.f32 %v1954_v16, %v1946_v2  ;;  %v1967_v46 = vmul.f32 %v1963_v52, %v1715_v38  ;;  %v2122_v11 = vmul.f32 0.8333333, %v6060_v58 }
 0x387   :  { %v1959_v28 = vadd.f32 %v1955_v55, %v1947_v7  ;;  %v2123_v32 = vmul.f32 0.8333333, %v6070_v34  ;;  %v2130_v8 = vmul.f32 0.8333333, %v1730_v31  ;;  %v1974_v39 = vmul.f32 %v1970_v0, %v6110_v4 }
 0x388   :  { %v1975_v33 = vmul.f32 %v1971_v25, %v6112_v1  ;;  %v2131_v27 = vmul.f32 0.8333333, %v1731_v13  ;;  %vm1572_vm14 = vcmp.ge.f32.partialorder %v5781_v37, 1.0  ;;  %v2126_v61 = vmul.f32 %v2122_v11, %v1958_v59 }
 0x389   :  { %v2127_v6 = vmul.f32 %v2123_v32, %v1959_v28  ;;  %vm1573_vm15 = vcmp.ge.f32.partialorder %v5789_v50, 1.0  ;;  %v6121_v21 = vsel %vm1572_vm14, 1.0, %v7398_v47  ;;  %v6123_v60 = vadd.f32 %v1974_v39, %v1966_v15 }
 0x38a   :  { %v6125_v58 = vadd.f32 %v1975_v33, %v1967_v46  ;;  %v6128_v34 = vsel %vm1573_vm15, 1.0, %v7398_v47  ;;  %v6132_v25 = vsub.f32 %v5903_v36, %v6121_v21  ;;  %v6139_v0 = vadd.f32 -0.2, %v5781_v37  ;;  %v7424_v36 = vld [vmem:[#allocation23_spill] sm:$0xff] }
 0x38b   :  { %v6136_v13 = vsub.f32 %v5906_v43, %v6128_v34  ;;  %v6142_v31 = vadd.f32 -0.2, %v5789_v50  ;;  %v1844_v38 = vsub.f32 1.0, %v5781_v37  ;;  %v2134_v51 = vmul.f32 %v2130_v8, %v6123_v60 }
 0x38c   :  { %v2135_v45 = vmul.f32 %v2131_v27, %v6125_v58  ;;  %v1845_v2 = vsub.f32 1.0, %v5789_v50  ;;  %v2044_v7 = vmul.f32 1.25, %v7424_v36  ;;  %v1836_v24 = vmul.f32 2.5, %v6139_v0 }
 0x38d   :  { %7423 = vst [vmem:[#allocation40_spill] sm:$0xff] %v6136_v13  ;;  %v1837_v43 = vmul.f32 2.5, %v6142_v31  ;;  %v1848_v19 = vmul.f32 2.5, %v1844_v38  ;;  %v2045_v16 = vmul.f32 1.25, %v7425_v22  ;;  %v2138_v52 = vadd.f32 %v2134_v51, %v2126_v61 }
 0x38e   :  { %v2139_v55 = vadd.f32 %v2135_v45, %v2127_v6  ;;  %v1849_v15 = vmul.f32 2.5, %v1845_v2  ;;  %v2048_v59 = vmul.f32 %v2044_v7, %v5982_v26  ;;  %v1840_v46 = vmul.f32 %v1836_v24, %v5914_v20 }
 0x38f   :  { %v1841_v28 = vmul.f32 %v1837_v43, %v5917_v56  ;;  %v1852_v11 = vmul.f32 %v1848_v19, %v6132_v25  ;;  %v2049_v32 = vmul.f32 %v2045_v16, %v5984_v9  ;;  %v2052_v33 = vmul.f32 1.25, %v1844_v38  ;;  %v7430_v16 = vld [vmem:[#allocation35_spill] sm:$0xff] }
 0x390   :  { %v4534_v8 = vpack.c.bf16 %v2139_v55, %v2138_v52  ;;  %v1853_v39 = vmul.f32 %v1849_v15, %v6136_v13  ;;  %v2053_v27 = vmul.f32 1.25, %v1845_v2  ;;  %v2204_v61 = vmul.f32 0.8333333, %v5937_v44 }
 0x391   :  { %v6158_v36 = vadd.f32 %v1852_v11, %v1840_v46  ;;  %v2205_v6 = vmul.f32 0.8333333, %v5942_v10  ;;  %v2212_v26 = vmul.f32 0.8333333, %v1844_v38  ;;  %v2213_v56 = vmul.f32 0.8333333, %v1845_v2 }
 0x392   :  { %4535 = vmatpush3.bf16.msra.mxu0 %v4534_v8  ;;  %v6162_v20 = vadd.f32 %v1853_v39, %v1841_v28  ;;  %vm1476_vm1 = vcmp.ge.f32.partialorder %v5781_v37, -2.2  ;;  %vm1477_vm2 = vcmp.ge.f32.partialorder %v5789_v50, -2.2  ;;  %v2208_v51 = vmul.f32 %v2204_v61, %v5996_v41 }
 0x393   :  { %7426 = vst [vmem:[#allocation44_spill] sm:$0xff] %v6158_v36  ;;  %v2056_v9 = vmul.f32 %v2052_v33, %v6158_v36  ;;  %v2209_v45 = vmul.f32 %v2205_v6, %v5998_v17  ;;  %v4084_v7 = vsel %vm1476_vm1, 1.0, %v7398_v47  ;;  %v4085_v10 = vsel %vm1477_vm2, 1.0, %v7398_v47 }
 0x394   :  { %7427 = vst [vmem:[#allocation45_spill] sm:$0xff] %v6162_v20  ;;  %v2057_v44 = vmul.f32 %v2053_v27, %v6162_v20  ;;  %vm1488_vm0 = vcmp.ge.f32.partialorder %v5781_v37, -1.8  ;;  %vm1489_vm3 = vcmp.ge.f32.partialorder %v5789_v50, -1.8  ;;  %vm2858_vm2 = vcmask 130048  }
 0x395   :  { %v6174_v38 = vadd.f32 %v2056_v9, %v2048_v59  ;;  %v4088_v2 = vsel %vm1488_vm0, 1.0, %v7398_v47  ;;  %v4089_v24 = vsel %vm1489_vm3, 1.0, %v7398_v47  ;;  %v6179_v41 = vadd.f32 2.2, %v5781_v37 }
 0x396   :  { %v6181_v17 = vadd.f32 %v2057_v44, %v2049_v32  ;;  %v1620_v43 = vsub.f32 %v4084_v7, %v4088_v2  ;;  %v1621_v19 = vsub.f32 %v4085_v10, %v4089_v24  ;;  %v1624_v52 = vsub.f32 %v4088_v2, %v7430_v16 }
 0x397   :  { %7428 = vst [vmem:[#allocation29_spill] sm:$0xff] %v6174_v38  ;;  %v2216_v55 = vmul.f32 %v2212_v26, %v6174_v38  ;;  %v1625_v15 = vsub.f32 %v4089_v24, %v5880_v30  ;;  %v4133_v59 = vadd.f32 2.2, %v5789_v50  ;;  %v1668_v46 = vmul.f32 2.5, %v6179_v41 }
 0x398   :  { %7429 = vst [vmem:[#allocation30_spill] sm:$0xff] %v6181_v17  ;;  %v2217_v28 = vmul.f32 %v2213_v56, %v6181_v17  ;;  %v1676_v11 = vsub.f32 -1.4, %v5781_v37  ;;  %v1677_v8 = vsub.f32 -1.4, %v5789_v50  ;;  %v1704_v44 = vsub.f32 -1.0, %v5781_v37 }
 0x399   :  { %v6192_v32 = vadd.f32 1.8, %v5781_v37  ;;  %v2220_v39 = vadd.f32 %v2216_v55, %v2208_v51  ;;  %v1669_v33 = vmul.f32 2.5, %v4133_v59  ;;  %v1672_v27 = vmul.f32 %v1668_v46, %v1620_v43 }
 0x39a   :  { %v6195_v61 = vadd.f32 1.8, %v5789_v50  ;;  %v2221_v30 = vadd.f32 %v2217_v28, %v2209_v45  ;;  %v1680_v6 = vmul.f32 2.5, %v1676_v11  ;;  %v1681_v26 = vmul.f32 2.5, %v1677_v8 }
 0x39b   :  { %v1696_v9 = vmul.f32 2.5, %v6192_v32  ;;  %v1673_v7 = vmul.f32 %v1669_v33, %v1621_v19  ;;  %v1705_v10 = vsub.f32 -1.0, %v5789_v50  ;;  %v1708_v55 = vmul.f32 2.5, %v1704_v44  ;;  %v7433_v33 = vld [vmem:[#allocation36_spill] sm:$0xff] }
 0x39c   :  { %v1697_v56 = vmul.f32 2.5, %v6195_v61  ;;  %v4536_v2 = vpack.c.bf16 %v2221_v30, %v2220_v39  ;;  %v1684_v24 = vmul.f32 %v1680_v6, %v1624_v52  ;;  %v1685_v51 = vmul.f32 %v1681_v26, %v1625_v15 }
 0x39d   :  { %v1700_v16 = vmul.f32 %v1696_v9, %v1624_v52  ;;  %v1709_v46 = vmul.f32 2.5, %v1705_v10  ;;  %v6202_v45 = vadd.f32 1.4, %v5781_v37  ;;  %v6205_v19 = vadd.f32 1.4, %v5789_v50 }
 0x39e   :  { %v1701_v43 = vmul.f32 %v1697_v56, %v1625_v15  ;;  %4537 = vmatprep.subr.bf16.mxu0 %v4536_v2  ;;  %v1688_v28 = vadd.f32 %v1684_v24, %v1672_v27  ;;  %v1689_v11 = vadd.f32 %v1685_v51, %v1673_v7  ;;  %v1732_v8 = vsub.f32 -0.6, %v5781_v37  ;;  %v7434_v51 = vld [vmem:[#allocation37_spill] sm:$0xff] }
 0x39f   :  { %7431 = vst [vmem:[#allocation33_spill] sm:$0xff] %v6202_v45  ;;  %7432 = vst [vmem:[#allocation34_spill] sm:$0xff] %v6205_v19  ;;  %v1712_v17 = vmul.f32 %v1708_v55, %v7433_v33  ;;  %v1713_v39 = vmul.f32 %v1709_v46, %v6031_v18  ;;  %v1724_v52 = vmul.f32 2.5, %v6202_v45  ;;  %v1733_v15 = vsub.f32 -0.6, %v5789_v50  ;;  %v7435_v45 = vld [vmem:[#allocation38_spill] sm:$0xff] }
 0x3a0   :  { %v1725_v30 = vmul.f32 2.5, %v6205_v19  ;;  %v1736_v6 = vmul.f32 2.5, %v1732_v8  ;;  %v1944_v26 = vmul.f32 1.25, %v6179_v41  ;;  %v1945_v27 = vmul.f32 1.25, %v4133_v59 }
 0x3a1   :  { %v1716_v9 = vadd.f32 %v1712_v17, %v1700_v16  ;;  %v1717_v7 = vadd.f32 %v1713_v39, %v1701_v43  ;;  %v1728_v56 = vmul.f32 %v1724_v52, %v7433_v33  ;;  %v1737_v2 = vmul.f32 2.5, %v1733_v15 }
 0x3a2   :  { %v1729_v24 = vmul.f32 %v1725_v30, %v6031_v18  ;;  %v1740_v55 = vmul.f32 %v1736_v6, %v7434_v51  ;;  %v1948_v46 = vmul.f32 %v1944_v26, %v1688_v28  ;;  %v1949_v38 = vmul.f32 %v1945_v27, %v1689_v11 }
 0x3a3   :  { %v1741_v22 = vmul.f32 %v1737_v2, %v7435_v45  ;;  %v1952_v20 = vmul.f32 1.25, %v1704_v44  ;;  %v1953_v36 = vmul.f32 1.25, %v1705_v10  ;;  %v1964_v19 = vmul.f32 1.25, %v6192_v32 }
 0x3a4   :  { %v6219_v13 = vadd.f32 %v1740_v55, %v1728_v56  ;;  %v1965_v17 = vmul.f32 1.25, %v6195_v61  ;;  %v1972_v16 = vmul.f32 1.25, %v1732_v8  ;;  %v1973_v43 = vmul.f32 1.25, %v1733_v15 }
 0x3a5   :  { %v6222_v33 = vadd.f32 %v1741_v22, %v1729_v24  ;;  %v1956_v39 = vmul.f32 %v1952_v20, %v1716_v9  ;;  %v1957_v18 = vmul.f32 %v1953_v36, %v1717_v7  ;;  %v1968_v52 = vmul.f32 %v1964_v19, %v1716_v9 }
 0x3a6   :  { %v1969_v30 = vmul.f32 %v1965_v17, %v1717_v7  ;;  %v1976_v28 = vmul.f32 %v1972_v16, %v6219_v13  ;;  %v2124_v45 = vmul.f32 0.8333333, %v6179_v41  ;;  %v2125_v44 = vmul.f32 0.8333333, %v4133_v59 }
 0x3a7   :  { %v1960_v10 = vadd.f32 %v1956_v39, %v1948_v46  ;;  %v1961_v11 = vadd.f32 %v1957_v18, %v1949_v38  ;;  %v1977_v6 = vmul.f32 %v1973_v43, %v6222_v33  ;;  %v2132_v26 = vmul.f32 0.8333333, %v1732_v8 }
 0x3a8   :  { %v6227_v27 = vadd.f32 %v1976_v28, %v1968_v52  ;;  %v2133_v56 = vmul.f32 0.8333333, %v1733_v15  ;;  %vm1582_vm4 = vcmp.ge.f32.partialorder %v5739_v49, 1.4  ;;  %vm1583_vm5 = vcmp.ge.f32.partialorder %v5748_v40, 1.4 }
 0x3a9   :  { %v6231_v36 = vadd.f32 %v1977_v6, %v1969_v30  ;;  %v2128_v22 = vmul.f32 %v2124_v45, %v1960_v10  ;;  %v2129_v20 = vmul.f32 %v2125_v44, %v1961_v11  ;;  %v6234_v19 = vsel %vm1582_vm4, 1.0, %v7398_v47 }
 0x3aa   :  { %v2136_v41 = vmul.f32 %v2132_v26, %v6227_v27  ;;  %v6238_v38 = vsel %vm1583_vm5, 1.0, %v7398_v47  ;;  %v6242_v59 = vsub.f32 %v6010_v12, %v6234_v19  ;;  %v6245_v8 = vadd.f32 -0.6, %v5739_v49 }
 0x3ab   :  { %v2137_v15 = vmul.f32 %v2133_v56, %v6231_v36  ;;  %v6250_v9 = vsub.f32 %v6013_v42, %v6238_v38  ;;  %v6253_v7 = vadd.f32 -0.6, %v5748_v40  ;;  %v1870_v2 = vsub.f32 1.4, %v5739_v49 }
 0x3ac   :  { %v2140_v24 = vadd.f32 %v2136_v41, %v2128_v22  ;;  %v1862_v51 = vmul.f32 2.5, %v6245_v8  ;;  %v1871_v12 = vsub.f32 1.4, %v5748_v40  ;;  %v2062_v55 = vmul.f32 1.25, %v6005_v54  ;;  %v7436_v41 = vld [vmem:[#allocation59_spill] sm:$0xff] }
 0x3ad   :  { %v2141_v46 = vadd.f32 %v2137_v15, %v2129_v20  ;;  %v1863_v17 = vmul.f32 2.5, %v6253_v7  ;;  %v1874_v16 = vmul.f32 2.5, %v1870_v2  ;;  %v2063_v43 = vmul.f32 1.25, %v6024_v5  ;;  %v7437_v15 = vld [vmem:[#allocation39_spill] sm:$0xff] }
 0x3ae   :  { %v1866_v42 = vmul.f32 %v1862_v51, %v6017_v53  ;;  %v1875_v39 = vmul.f32 2.5, %v1871_v12  ;;  %v2066_v18 = vmul.f32 %v2062_v55, %v6045_v35  ;;  %v2070_v52 = vmul.f32 1.25, %v1870_v2 }
 0x3af   :  { %v4538_v30 = vpack.c.bf16 %v2141_v46, %v2140_v24  ;;  %v1867_v28 = vmul.f32 %v1863_v17, %v6021_v29  ;;  %v1878_v45 = vmul.f32 %v1874_v16, %v6242_v59  ;;  %v2067_v44 = vmul.f32 %v2063_v43, %v6047_v14  ;;  %v7439_v46 = vld [vmem:[#allocation47_spill] sm:$0xff] }
 0x3b0   :  { %v1879_v10 = vmul.f32 %v1875_v39, %v6250_v9  ;;  %v2071_v11 = vmul.f32 1.25, %v1871_v12  ;;  %v2222_v6 = vmul.f32 0.8333333, %v5826_v57  ;;  %v2223_v26 = vmul.f32 0.8333333, %v5829_v23  ;;  %v7438_v23 = vld [vmem:[#allocation53_spill] sm:$0xff] }
 0x3b1   :  { %4539 = vmatpush3.bf16.msra.mxu0 %v4538_v30  ;;  %v6269_v53 = vadd.f32 %v1878_v45, %v1866_v42  ;;  %v2230_v56 = vmul.f32 0.8333333, %v1870_v2  ;;  %v2231_v35 = vmul.f32 0.8333333, %v1871_v12  ;;  %v1982_v22 = vmul.f32 1.25, %v6090_v48  ;;  %v7440_v42 = vld [vmem:[#allocation41_spill] sm:$0xff] }
 0x3b2   :  { %v6272_v20 = vadd.f32 %v1879_v10, %v1867_v28  ;;  %v2226_v29 = vmul.f32 %v2222_v6, %v6063_v62  ;;  %v2227_v14 = vmul.f32 %v2223_v26, %v7436_v41  ;;  %v1983_v24 = vmul.f32 1.25, %v7437_v15  ;;  %v7441_v30 = vld [vmem:[#allocation42_spill] sm:$0xff] }
 0x3b3   :  { %v2074_v51 = vmul.f32 %v2070_v52, %v6269_v53  ;;  %v1986_v57 = vmul.f32 %v1982_v22, %v6110_v4  ;;  %v1990_v55 = vmul.f32 1.25, %v7438_v23  ;;  %v1991_v17 = vmul.f32 1.25, %v7439_v46 }
 0x3b4   :  { %v2075_v2 = vmul.f32 %v2071_v11, %v6272_v20  ;;  %v1987_v12 = vmul.f32 %v1983_v24, %v6112_v1  ;;  %v2142_v16 = vmul.f32 0.8333333, %v6081_v3  ;;  %v2143_v62 = vmul.f32 0.8333333, %v6084_v63 }
 0x3b5   :  { %v6285_v43 = vadd.f32 %v2074_v51, %v2066_v18  ;;  %v1994_v39 = vmul.f32 %v1990_v55, %v7440_v42  ;;  %v1995_v52 = vmul.f32 %v1991_v17, %v7441_v30  ;;  %v2150_v4 = vmul.f32 0.8333333, %v7438_v23 }
 0x3b6   :  { %v6290_v28 = vadd.f32 %v2075_v2, %v2067_v44  ;;  %v2146_v45 = vmul.f32 %v2142_v16, %v6123_v60  ;;  %v2147_v10 = vmul.f32 %v2143_v62, %v6125_v58  ;;  %v2151_v1 = vmul.f32 0.8333333, %v7439_v46  ;;  %v7442_v16 = vld [vmem:[#allocation40_spill] sm:$0xff] }
 0x3b7   :  { %v2234_v3 = vmul.f32 %v2230_v56, %v6285_v43  ;;  %v6296_v11 = vadd.f32 %v1994_v39, %v1986_v57  ;;  %v6298_v63 = vadd.f32 %v1995_v52, %v1987_v12  ;;  %vm1584_vm6 = vcmp.ge.f32.partialorder %v5781_v37, 1.4  ;;  %v7443_v39 = vld [vmem:[#allocation44_spill] sm:$0xff] }
 0x3b8   :  { %v2235_v18 = vmul.f32 %v2231_v35, %v6290_v28  ;;  %vm1585_vm7 = vcmp.ge.f32.partialorder %v5789_v50, 1.4  ;;  %v6304_v44 = vsel %vm1584_vm6, 1.0, %v7398_v47  ;;  %v6307_v60 = vadd.f32 -0.6, %v5781_v37 }
 0x3b9   :  { %v2238_v58 = vadd.f32 %v2234_v3, %v2226_v29  ;;  %v2154_v6 = vmul.f32 %v2150_v4, %v6296_v11  ;;  %v2155_v26 = vmul.f32 %v2151_v1, %v6298_v63  ;;  %v6312_v56 = vsel %vm1585_vm7, 1.0, %v7398_v47  ;;  %v7445_v3 = vld [vmem:[#allocation23_spill] sm:$0xff] }
 0x3ba   :  { %v2239_v22 = vadd.f32 %v2235_v18, %v2227_v14  ;;  %v6316_v35 = vsub.f32 %v6121_v21, %v6304_v44  ;;  %v6320_v41 = vsub.f32 %v6128_v34, %v6312_v56  ;;  %v6323_v24 = vadd.f32 -0.6, %v5789_v50 }
 0x3bb   :  { %v2158_v29 = vadd.f32 %v2154_v6, %v2146_v45  ;;  %v2159_v51 = vadd.f32 %v2155_v26, %v2147_v10  ;;  %v1864_v57 = vmul.f32 2.5, %v6307_v60  ;;  %v1872_v23 = vsub.f32 1.4, %v5781_v37  ;;  %v7444_v45 = vld [vmem:[#allocation45_spill] sm:$0xff] }
 0x3bc   :  { %v4540_v55 = vpack.c.bf16 %v2239_v22, %v2238_v58  ;;  %v1865_v14 = vmul.f32 2.5, %v6323_v24  ;;  %v1873_v46 = vsub.f32 1.4, %v5789_v50  ;;  %v2064_v21 = vmul.f32 1.25, %v6139_v0  ;;  %v7446_v58 = vld [vmem:[#allocation24_spill] sm:$0xff] }
 0x3bd   :  { %v4542_v17 = vpack.c.bf16 %v2159_v51, %v2158_v29  ;;  %v1868_v34 = vmul.f32 %v1864_v57, %v6132_v25  ;;  %v1876_v2 = vmul.f32 2.5, %v1872_v23  ;;  %v2065_v12 = vmul.f32 1.25, %v6142_v31  ;;  %v7447_v51 = vld [vmem:[#allocation29_spill] sm:$0xff] }
 0x3be   :  { %4541 = vmatprep.subr.bf16.mxu0 %v4540_v55  ;;  %v1869_v62 = vmul.f32 %v1865_v14, %v7442_v16  ;;  %v1877_v42 = vmul.f32 2.5, %v1873_v46  ;;  %v2068_v30 = vmul.f32 %v2064_v21, %v7443_v39  ;;  %v2072_v52 = vmul.f32 1.25, %v1872_v23  ;;  %v7448_v55 = vld [vmem:[#allocation33_spill] sm:$0xff]  ;;  %v7449_v21 = vld [vmem:[#allocation34_spill] sm:$0xff]  ;;  %v7451_v39 = vld [vmem:[#allocation27_spill] sm:$0xff] }
 0x3bf   :  { %4543 = vmatpush3.bf16.msra.mxu0 %v4542_v17  ;;  %v1880_v4 = vmul.f32 %v1876_v2, %v6316_v35  ;;  %v2069_v10 = vmul.f32 %v2065_v12, %v7444_v45  ;;  %v2073_v1 = vmul.f32 1.25, %v1873_v46  ;;  %v2224_v18 = vmul.f32 0.8333333, %v7445_v3  ;;  %v7450_v12 = vld [vmem:[#allocation30_spill] sm:$0xff]  ;;  %v7452_v3 = vld [vmem:[#allocation28_spill] sm:$0xff] }
 0x3c0   :  { %v1881_v25 = vmul.f32 %v1877_v42, %v6320_v41  ;;  %v2225_v6 = vmul.f32 0.8333333, %v7446_v58  ;;  %v2232_v26 = vmul.f32 0.8333333, %v1872_v23  ;;  %v2233_v22 = vmul.f32 0.8333333, %v1873_v46 }
 0x3c1   :  { %v6339_v29 = vadd.f32 %v1880_v4, %v1868_v34  ;;  %v2228_v57 = vmul.f32 %v2224_v18, %v7447_v51  ;;  %v1984_v14 = vmul.f32 1.25, %v7448_v55  ;;  %v1985_v17 = vmul.f32 1.25, %v7449_v21  ;;  %v7453_v18 = vld [vmem:[#allocation19_spill] sm:$0xff] }
 0x3c2   :  { %v6344_v2 = vadd.f32 %v1881_v25, %v1869_v62  ;;  %v2229_v16 = vmul.f32 %v2225_v6, %v7450_v12  ;;  %v1992_v45 = vmul.f32 1.25, %v7451_v39  ;;  %v1993_v42 = vmul.f32 1.25, %v7452_v3  ;;  %v7454_v62 = vld [vmem:[#allocation20_spill] sm:$0xff] }
 0x3c3   :  { %v2076_v58 = vmul.f32 %v2072_v52, %v6339_v29  ;;  %v1988_v23 = vmul.f32 %v1984_v14, %v6219_v13  ;;  %v1989_v46 = vmul.f32 %v1985_v17, %v6222_v33  ;;  %v2144_v34 = vmul.f32 0.8333333, %v6192_v32 }
 0x3c4   :  { %v2077_v4 = vmul.f32 %v2073_v1, %v6344_v2  ;;  %v1996_v51 = vmul.f32 %v1992_v45, %v7453_v18  ;;  %v1997_v25 = vmul.f32 %v1993_v42, %v7454_v62  ;;  %v2145_v6 = vmul.f32 0.8333333, %v6195_v61 }
 0x3c5   :  { %v6357_v12 = vadd.f32 %v2076_v58, %v2068_v30  ;;  %v2148_v21 = vmul.f32 %v2144_v34, %v6227_v27  ;;  %v2152_v52 = vmul.f32 0.8333333, %v7451_v39  ;;  %v2153_v13 = vmul.f32 0.8333333, %v7452_v3 }
 0x3c6   :  { %v6362_v14 = vadd.f32 %v2077_v4, %v2069_v10  ;;  %v6364_v33 = vadd.f32 %v1996_v51, %v1988_v23  ;;  %v6366_v32 = vadd.f32 %v1997_v25, %v1989_v46  ;;  %v2149_v1 = vmul.f32 %v2145_v6, %v6231_v36 }
 0x3c7   :  { %v2236_v17 = vmul.f32 %v2232_v26, %v6357_v12  ;;  %vm1594_vm8 = vcmp.ge.f32.partialorder %v5739_v49, 1.8  ;;  %vm1595_vm9 = vcmp.ge.f32.partialorder %v5748_v40, 1.8  ;;  %v6373_v61 = vadd.f32 -1.0, %v5739_v49 }
 0x3c8   :  { %v2237_v27 = vmul.f32 %v2233_v22, %v6362_v14  ;;  %v2156_v30 = vmul.f32 %v2152_v52, %v6364_v33  ;;  %v2157_v10 = vmul.f32 %v2153_v13, %v6366_v32  ;;  %v6379_v39 = vsel %vm1594_vm8, 1.0, %v7398_v47 }
 0x3c9   :  { %v2240_v45 = vadd.f32 %v2236_v17, %v2228_v57  ;;  %v6382_v36 = vsel %vm1595_vm9, 1.0, %v7398_v47  ;;  %v6386_v26 = vsub.f32 %v6234_v19, %v6379_v39  ;;  %v6389_v3 = vadd.f32 -1.0, %v5748_v40 }
 0x3ca   :  { %v2241_v42 = vadd.f32 %v2237_v27, %v2229_v16  ;;  %v2160_v22 = vadd.f32 %v2156_v30, %v2148_v21  ;;  %v2161_v58 = vadd.f32 %v2157_v10, %v2149_v1  ;;  %v6393_v23 = vsub.f32 %v6238_v38, %v6382_v36 }
 0x3cb   :  { %v1890_v46 = vmul.f32 2.5, %v6373_v61  ;;  %v1891_v57 = vmul.f32 2.5, %v6389_v3  ;;  %v1898_v34 = vsub.f32 1.8, %v5739_v49  ;;  %v1899_v4 = vsub.f32 1.8, %v5748_v40 }
 0x3cc   :  { %v4544_v19 = vpack.c.bf16 %v2241_v42, %v2240_v45  ;;  %v4546_v18 = vpack.c.bf16 %v2161_v58, %v2160_v22  ;;  %v2082_v51 = vmul.f32 1.25, %v6245_v8  ;;  %v2083_v38 = vmul.f32 1.25, %v6253_v7 }
 0x3cd   :  { %v1894_v16 = vmul.f32 %v1890_v46, %v6242_v59  ;;  %v1895_v21 = vmul.f32 %v1891_v57, %v6250_v9  ;;  %v1902_v62 = vmul.f32 2.5, %v1898_v34  ;;  %v1903_v25 = vmul.f32 2.5, %v1899_v4  ;;  %v7455_v57 = vld [vmem:[#allocation48_spill] sm:$0xff] }
 0x3ce   :  { %4545 = vmatprep.subr.bf16.mxu0 %v4544_v19  ;;  %v2086_v6 = vmul.f32 %v2082_v51, %v6269_v53  ;;  %v2090_v52 = vmul.f32 1.25, %v1898_v34  ;;  %v2091_v13 = vmul.f32 1.25, %v1899_v4  ;;  %v2242_v27 = vmul.f32 0.8333333, %v6005_v54  ;;  %v7456_v19 = vld [vmem:[#allocation54_spill] sm:$0xff] }
 0x3cf   :  { %4547 = vmatpush3.bf16.msra.mxu0 %v4546_v18  ;;  %v1906_v1 = vmul.f32 %v1902_v62, %v6386_v26  ;;  %v1907_v17 = vmul.f32 %v1903_v25, %v6393_v23  ;;  %v2243_v59 = vmul.f32 0.8333333, %v6024_v5  ;;  %v2087_v9 = vmul.f32 %v2083_v38, %v6272_v20  ;;  %v7458_v18 = vld [vmem:[#allocation52_spill] sm:$0xff] }
 0x3d0   :  { %v2250_v30 = vmul.f32 0.8333333, %v1898_v34  ;;  %v2251_v10 = vmul.f32 0.8333333, %v1899_v4  ;;  %v2162_v45 = vmul.f32 0.8333333, %v6090_v48  ;;  %v2246_v22 = vmul.f32 %v2242_v27, %v6285_v43 }
 0x3d1   :  { %v6410_v42 = vadd.f32 %v1906_v1, %v1894_v16  ;;  %v6412_v53 = vadd.f32 %v1907_v17, %v1895_v21  ;;  %v2247_v58 = vmul.f32 %v2243_v59, %v6290_v28  ;;  %v2163_v46 = vmul.f32 0.8333333, %v7437_v15  ;;  %v7457_v4 = vld [vmem:[#allocation51_spill] sm:$0xff] }
 0x3d2   :  { %v2166_v54 = vmul.f32 %v2162_v45, %v6296_v11  ;;  %v2170_v5 = vmul.f32 0.8333333, %v7455_v57  ;;  %v2171_v20 = vmul.f32 0.8333333, %v7456_v19  ;;  %vm1596_vm10 = vcmp.ge.f32.partialorder %v5781_v37, 1.8 }
 0x3d3   :  { %v2094_v34 = vmul.f32 %v2090_v52, %v6410_v42  ;;  %v2095_v48 = vmul.f32 %v2091_v13, %v6412_v53  ;;  %vm1597_vm11 = vcmp.ge.f32.partialorder %v5789_v50, 1.8  ;;  %v2167_v43 = vmul.f32 %v2163_v46, %v6298_v63 }
 0x3d4   :  { %v2174_v28 = vmul.f32 %v2170_v5, %v7457_v4  ;;  %v2175_v15 = vmul.f32 %v2171_v20, %v7458_v18  ;;  %v6428_v11 = vsel %vm1596_vm10, 1.0, %v7398_v47  ;;  %v6435_v21 = vsel %vm1597_vm11, 1.0, %v7398_v47 }
 0x3d5   :  { %v6430_v51 = vadd.f32 %v2094_v34, %v2086_v6  ;;  %v6432_v16 = vadd.f32 %v2095_v48, %v2087_v9  ;;  %v6439_v62 = vsub.f32 %v6304_v44, %v6428_v11  ;;  %v6443_v38 = vsub.f32 %v6312_v56, %v6435_v21 }
 0x3d6   :  { %v2178_v25 = vadd.f32 %v2174_v28, %v2166_v54  ;;  %v2179_v63 = vadd.f32 %v2175_v15, %v2167_v43  ;;  %v6446_v52 = vadd.f32 -1.0, %v5781_v37  ;;  %v6451_v1 = vadd.f32 -1.0, %v5789_v50 }
 0x3d7   :  { %v2254_v6 = vmul.f32 %v2250_v30, %v6430_v51  ;;  %v2255_v13 = vmul.f32 %v2251_v10, %v6432_v16  ;;  %v1900_v17 = vsub.f32 1.8, %v5781_v37  ;;  %v1901_v59 = vsub.f32 1.8, %v5789_v50 }
 0x3d8   :  { %v4550_v44 = vpack.c.bf16 %v2179_v63, %v2178_v25  ;;  %v1892_v27 = vmul.f32 2.5, %v6446_v52  ;;  %v2084_v56 = vmul.f32 1.25, %v6307_v60  ;;  %v1893_v46 = vmul.f32 2.5, %v6451_v1  ;;  %v7459_v63 = vld [vmem:[#allocation34_spill] sm:$0xff] }
 0x3d9   :  { %v2258_v9 = vadd.f32 %v2254_v6, %v2246_v22  ;;  %v2259_v45 = vadd.f32 %v2255_v13, %v2247_v58  ;;  %v1904_v54 = vmul.f32 2.5, %v1900_v17  ;;  %v1905_v10 = vmul.f32 2.5, %v1901_v59  ;;  %v7460_v13 = vld [vmem:[#allocation31_spill] sm:$0xff] }
 0x3da   :  { %v1896_v30 = vmul.f32 %v1892_v27, %v6316_v35  ;;  %v2085_v57 = vmul.f32 1.25, %v6323_v24  ;;  %v2088_v5 = vmul.f32 %v2084_v56, %v6339_v29  ;;  %v1897_v20 = vmul.f32 %v1893_v46, %v6320_v41  ;;  %v7461_v56 = vld [vmem:[#allocation32_spill] sm:$0xff] }
 0x3db   :  { %v4548_v19 = vpack.c.bf16 %v2259_v45, %v2258_v9  ;;  %v1908_v34 = vmul.f32 %v1904_v54, %v6439_v62  ;;  %v2092_v48 = vmul.f32 1.25, %v1900_v17  ;;  %v1909_v43 = vmul.f32 %v1905_v10, %v6443_v38  ;;  %v7463_v45 = vld [vmem:[#allocation56_spill] sm:$0xff] }
 0x3dc   :  { %v2089_v22 = vmul.f32 %v2085_v57, %v6344_v2  ;;  %v2093_v58 = vmul.f32 1.25, %v1901_v59  ;;  %v2244_v4 = vmul.f32 0.8333333, %v6139_v0  ;;  %v2245_v28 = vmul.f32 0.8333333, %v6142_v31 }
 0x3dd   :  { %4549 = vmatprep.subr.bf16.mxu0 %v4548_v19  ;;  %v6466_v35 = vadd.f32 %v1908_v34, %v1896_v30  ;;  %v2252_v18 = vmul.f32 0.8333333, %v1900_v17  ;;  %v2253_v29 = vmul.f32 0.8333333, %v1901_v59  ;;  %v6469_v15 = vadd.f32 %v1909_v43, %v1897_v20 }
 0x3de   :  { %4551 = vmatpush3.bf16.msra.mxu0 %v4550_v44  ;;  %v2248_v41 = vmul.f32 %v2244_v4, %v6357_v12  ;;  %v2164_v25 = vmul.f32 0.8333333, %v7448_v55  ;;  %v2165_v6 = vmul.f32 0.8333333, %v7459_v63  ;;  %v2249_v0 = vmul.f32 %v2245_v28, %v6362_v14  ;;  %v7462_v55 = vld [vmem:[#allocation55_spill] sm:$0xff] }
 0x3df   :  { %v2096_v2 = vmul.f32 %v2092_v48, %v6466_v35  ;;  %v2172_v27 = vmul.f32 0.8333333, %v7460_v13  ;;  %v2173_v9 = vmul.f32 0.8333333, %v7461_v56  ;;  %v2097_v31 = vmul.f32 %v2093_v58, %v6469_v15 }
 0x3e0   :  { %v2168_v17 = vmul.f32 %v2164_v25, %v6364_v33  ;;  %v2169_v44 = vmul.f32 %v2165_v6, %v6366_v32  ;;  %vm1606_vm12 = vcmp.ge.f32.partialorder %v5739_v49, 2.2  ;;  %vm1607_vm14 = vcmp.ge.f32.partialorder %v5748_v40, 2.2 }
 0x3e1   :  { %v6482_v12 = vadd.f32 %v2096_v2, %v2088_v5  ;;  %v2176_v59 = vmul.f32 %v2172_v27, %v7462_v55  ;;  %v2177_v46 = vmul.f32 %v2173_v9, %v7463_v45  ;;  %v6487_v14 = vadd.f32 %v2097_v31, %v2089_v22 }
 0x3e2   :  { %v4126_v54 = vsel %vm1606_vm12, 1.0, %v7398_v47  ;;  %v4127_v30 = vsel %vm1607_vm14, 1.0, %v7398_v47  ;;  %v4166_v33 = vadd.f32 -1.4, %v5739_v49  ;;  %v4167_v20 = vadd.f32 -1.4, %v5748_v40 }
 0x3e3   :  { %v2256_v32 = vmul.f32 %v2252_v18, %v6482_v12  ;;  %v2180_v10 = vadd.f32 %v2176_v59, %v2168_v17  ;;  %v2181_v57 = vadd.f32 %v2177_v46, %v2169_v44  ;;  %v2257_v5 = vmul.f32 %v2253_v29, %v6487_v14 }
 0x3e4   :  { %v1658_v19 = vsub.f32 %v6379_v39, %v4126_v54  ;;  %v1918_v34 = vmul.f32 2.5, %v4166_v33  ;;  %v1659_v43 = vsub.f32 %v6382_v36, %v4127_v30  ;;  %v1926_v22 = vsub.f32 2.2, %v5739_v49 }
 0x3e5   :  { %v4554_v48 = vpack.c.bf16 %v2181_v57, %v2180_v10  ;;  %v1927_v58 = vsub.f32 2.2, %v5748_v40  ;;  %v2260_v4 = vadd.f32 %v2256_v32, %v2248_v41  ;;  %v2261_v28 = vadd.f32 %v2257_v5, %v2249_v0  ;;  %v1451_v10 = vld [vmem:[#allocation8 + $0x18] sm:$0xff] }
 0x3e6   :  { %v1919_v25 = vmul.f32 2.5, %v4167_v20  ;;  %v1922_v18 = vmul.f32 %v1918_v34, %v6386_v26  ;;  %v1930_v63 = vmul.f32 2.5, %v1926_v22  ;;  %v2102_v29 = vmul.f32 1.25, %v6373_v61  ;;  %v1450_v20 = vld [vmem:[#allocation8 + $0x10] sm:$0xff] }
 0x3e7   :  { %v1931_v6 = vmul.f32 2.5, %v1927_v58  ;;  %v4552_v39 = vpack.c.bf16 %v2261_v28, %v2260_v4  ;;  %v2103_v13 = vmul.f32 1.25, %v6389_v3  ;;  %v2110_v27 = vmul.f32 1.25, %v1926_v22  ;;  %v1448_v3 = vld [vmem:[#allocation8] sm:$0xff] }
 0x3e8   :  { %v1923_v2 = vmul.f32 %v1919_v25, %v6393_v23  ;;  %v1934_v36 = vmul.f32 %v1930_v63, %v1658_v19  ;;  %v2106_v49 = vmul.f32 %v2102_v29, %v6410_v42  ;;  %v2262_v40 = vmul.f32 0.8333333, %v6245_v8 }
 0x3e9   :  { %v1935_v56 = vmul.f32 %v1931_v6, %v1659_v43  ;;  %4553 = vmatprep.subr.bf16.mxu0 %v4552_v39  ;;  %v2107_v41 = vmul.f32 %v2103_v13, %v6412_v53  ;;  %v2111_v26 = vmul.f32 1.25, %v1927_v58  ;;  %v2263_v0 = vmul.f32 0.8333333, %v6253_v7  ;;  %v1452_v53 = vld [vmem:[#allocation8 + $0x20] sm:$0xff] }
 0x3ea   :  { %v2270_v9 = vmul.f32 0.8333333, %v1926_v22  ;;  %4555 = vmatpush3.bf16.msra.mxu0 %v4554_v48  ;;  %v1938_v61 = vadd.f32 %v1934_v36, %v1922_v18  ;;  %v2266_v23 = vmul.f32 %v2262_v40, %v6430_v51  ;;  %vm1608_vm15 = vcmp.ge.f32.partialorder %v5781_v37, 2.2 }
 0x3eb   :  { %v1939_v31 = vadd.f32 %v1935_v56, %v1923_v2  ;;  %v2267_v17 = vmul.f32 %v2263_v0, %v6432_v16  ;;  %vm1609_vm1 = vcmp.ge.f32.partialorder %v5789_v50, 2.2  ;;  %v4128_v8 = vsel %vm1608_vm15, 1.0, %v7398_v47  ;;  %v1453_v0 = vld [vmem:[#allocation8 + $0x28] sm:$0xff] }
 0x3ec   :  { %v4168_v42 = vadd.f32 -1.4, %v5781_v37  ;;  %v2114_v44 = vmul.f32 %v2110_v27, %v1938_v61  ;;  %v2271_v55 = vmul.f32 0.8333333, %v1927_v58  ;;  %v4129_v59 = vsel %vm1609_vm1, 1.0, %v7398_v47 }
 0x3ed   :  { %v2115_v7 = vmul.f32 %v2111_v26, %v1939_v31  ;;  %2353 = vmatmul.mubr.f32.vlgmr.msra.gmra.mrb[8].mxu0 %v1448_v3  ;;  %v1660_v51 = vsub.f32 %v6428_v11, %v4128_v8  ;;  %v4169_v45 = vadd.f32 -1.4, %v5789_v50  ;;  %v1928_v16 = vsub.f32 2.2, %v5781_v37 }
 0x3ee   :  { %v1920_v46 = vmul.f32 2.5, %v4168_v42  ;;  %v2118_v54 = vadd.f32 %v2114_v44, %v2106_v49  ;;  %v1661_v33 = vsub.f32 %v6435_v21, %v4129_v59  ;;  %v1929_v32 = vsub.f32 2.2, %v5789_v50  ;;  %2357 = vmatprep.mubr.f32.mxu0 %v1452_v53 }
 0x3ef   :  { %v2119_v30 = vadd.f32 %v2115_v7, %v2107_v41  ;;  %v1921_v57 = vmul.f32 2.5, %v4169_v45  ;;  %v1932_v19 = vmul.f32 2.5, %v1928_v16  ;;  %v2104_v37 = vmul.f32 1.25, %v6446_v52 }
 0x3f0   :  { %v1924_v5 = vmul.f32 %v1920_v46, %v6439_v62  ;;  %v2274_v34 = vmul.f32 %v2270_v9, %v2118_v54  ;;  %v1933_v48 = vmul.f32 2.5, %v1929_v32  ;;  %v2105_v50 = vmul.f32 1.25, %v6451_v1 }
 0x3f1   :  { %v2275_v11 = vmul.f32 %v2271_v55, %v2119_v30  ;;  %v1925_v43 = vmul.f32 %v1921_v57, %v6443_v38  ;;  %v1936_v22 = vmul.f32 %v1932_v19, %v1660_v51  ;;  %2358 = vmatmul.mubr.f32.gmra.mrb[10].mxu0 %v1451_v10  ;;  %v2108_v62 = vmul.f32 %v2104_v37, %v6466_v35 }
 0x3f2   :  { %v2278_v58 = vadd.f32 %v2274_v34, %v2266_v23  ;;  %v1937_v4 = vmul.f32 %v1933_v48, %v1661_v33  ;;  %4465 = vmatprep.mubr.msk.f32.mxu0 %vm1261_vm13, %v1450_v20  ;;  %v2112_v25 = vmul.f32 1.25, %v1928_v16  ;;  %v2109_v6 = vmul.f32 %v2105_v50, %v6469_v15  ;;  %v2441_v23 = vld [vmem:[#allocation10 + $0x8] sm:$0xff] }
 0x3f3   :  { %v2279_v21 = vadd.f32 %v2275_v11, %v2267_v17  ;;  %v1940_v28 = vadd.f32 %v1936_v22, %v1924_v5  ;;  %v2113_v38 = vmul.f32 1.25, %v1929_v32  ;;  %v2264_v39 = vmul.f32 0.8333333, %v6307_v60  ;;  %4216 = vmatprep.mubr.msk.f32.mxu1 %vm2858_vm2, %v2441_v23 }
 0x3f4   :  { %v1941_v63 = vadd.f32 %v1937_v4, %v1925_v43  ;;  %v2265_v2 = vmul.f32 0.8333333, %v6323_v24  ;;  %v2272_v13 = vmul.f32 0.8333333, %v1928_v16  ;;  %v2273_v56 = vmul.f32 0.8333333, %v1929_v32 }
 0x3f5   :  { %v4556_v18 = vpack.c.bf16 %v2279_v21, %v2278_v58  ;;  %v2116_v29 = vmul.f32 %v2112_v25, %v1940_v28  ;;  %v2268_v36 = vmul.f32 %v2264_v39, %v6482_v12  ;;  %v4869_v60 = vmov 0.0|0.0  }
 0x3f6   :  { %v2117_v52 = vmul.f32 %v2113_v38, %v1941_v63  ;;  %v2269_v35 = vmul.f32 %v2265_v2, %v6487_v14  ;;  %4564 = vmatprep.subr.bf16.mxu1 %v4869_v60 }
 0x3f7   :  { %4557 = vmatprep.subr.bf16.mxu0 %v4556_v18  ;;  %v2120_v1 = vadd.f32 %v2116_v29, %v2108_v62 }
 0x3f8   :  { %4559 = vmatpush3.bf16.msra.mxu0 %v4556_v18  ;;  %v2121_v27 = vadd.f32 %v2117_v52, %v2109_v6 }
 0x3f9   :  { %v2276_v49 = vmul.f32 %v2272_v13, %v2120_v1 }
 0x3fa   :  { %v2277_v40 = vmul.f32 %v2273_v56, %v2121_v27 }
 0x3fb   :  { %v2280_v15 = vadd.f32 %v2276_v49, %v2268_v36 }
 0x3fc   :  { %v2281_v41 = vadd.f32 %v2277_v40, %v2269_v35 }
 0x3fe   :  { %v4560_v26 = vpack.c.bf16 %v2281_v41, %v2280_v15 }
 0x400   :  { %4561 = vmatprep.subr.bf16.mxu0 %v4560_v26 }
 0x401   :  { %4563 = vmatpush3.bf16.msra.mxu0 %v4560_v26 }
 0x402   :  { %4591 = vmatprep.subr.bf16.mxu0 %v4869_v60 }
 0x404   :  { %4466 = vmatmul.mubr.msk.f32.vlgmr.msra.gmra.mrb[12].mxu0 %vm1261_vm13, %v1453_v0 }
 0x4c0   :  { %v4407_v24 = vpop.f32.mrb[8].mxu0 }
 0x4c1   :  { %v4408_v12 = vpop.f32.mrb[9].mxu0 }
 0x4c2   :  { %v4409_v9 = vadd.f32 %v4408_v12, %v4407_v24 }
 0x4c4   :  { %v4410_v14 = vpop.f32.mrb[10].mxu0 }
 0x4c5   :  { %v4411_v61 = vpop.f32.mrb[11].mxu0 }
 0x4c6   :  { %v4412_v31 = vadd.f32 %v4411_v61, %v4410_v14 }
 0x4d7   :  { %v4467_v3 = vpop.f32.mrb[12].mxu0 }
 0x4d8   :  { %v2435_v17 = vadd.f32 %v4467_v3, %v4412_v31  ;;  %v2429_v8 = vpop.f32.mrb[13].mxu0 }
 0x4d9   :  { %v2430_v42 = vadd.f32 %v4409_v9, %v2429_v8 }
 0x4da   :  { %v6534_v53 = vmax.f32 %v2435_v17, 0.0 }
 0x4db   :  { %v6536_v44 = vmax.f32 %v2430_v42, 0.0 }
 0x4dc   :  { %v2445_v7 = vmul.f32 0.5, %v6534_v53  ;;  %vm2455_vm13 = vcmp.ge.f32.partialorder %v6534_v53, -2.2  ;;  %vm2461_vm0 = vcmp.ge.f32.partialorder %v6534_v53, -1.8  ;;  %vm2473_vm3 = vcmp.ge.f32.partialorder %v6534_v53, -1.0 }
 0x4dd   :  { %v2444_v55 = vmul.f32 0.5, %v6536_v44  ;;  %vm2454_vm4 = vcmp.ge.f32.partialorder %v6536_v44, -2.2  ;;  %v4173_v59 = vsel %vm2455_vm13, 1.0, %v7398_v47  ;;  %vm2460_vm5 = vcmp.ge.f32.partialorder %v6536_v44, -1.8 }
 0x4de   :  { %4678 = vtanh.f32 %v2445_v7  ;;  %v4172_v51 = vsel %vm2454_vm4, 1.0, %v7398_v47  ;;  %v4174_v45 = vsel %vm2460_vm5, 1.0, %v7398_v47  ;;  %v4175_v46 = vsel %vm2461_vm0, 1.0, %v7398_v47 }
 0x4df   :  { %4680 = vtanh.f32 %v2444_v55  ;;  %vm2466_vm6 = vcmp.ge.f32.partialorder %v6536_v44, -1.4  ;;  %vm2467_vm7 = vcmp.ge.f32.partialorder %v6534_v53, -1.4  ;;  %vm2472_vm8 = vcmp.ge.f32.partialorder %v6536_v44, -1.0 }
 0x4e0   :  { %v4176_v16 = vsel %vm2466_vm6, 1.0, %v7398_v47  ;;  %v4177_v54 = vsel %vm2467_vm7, 1.0, %v7398_v47  ;;  %v4178_v30 = vsel %vm2472_vm8, 1.0, %v7398_v47  ;;  %v4179_v33 = vsel %vm2473_vm3, 1.0, %v7398_v47 }
 0x4e1   :  { %vm2478_vm9 = vcmp.ge.f32.partialorder %v6536_v44, -0.6  ;;  %vm2479_vm10 = vcmp.ge.f32.partialorder %v6534_v53, -0.6  ;;  %v2526_v57 = vsub.f32 %v4172_v51, %v4174_v45  ;;  %v2527_v5 = vsub.f32 %v4173_v59, %v4175_v46 }
 0x4e2   :  { %v6561_v32 = vsel %vm2478_vm9, 1.0, %v7398_v47  ;;  %v6564_v10 = vsel %vm2479_vm10, 1.0, %v7398_v47  ;;  %v2528_v19 = vsub.f32 %v4174_v45, %v4176_v16  ;;  %v2529_v20 = vsub.f32 %v4175_v46, %v4177_v54 }
 0x4e3   :  { %v2530_v34 = vsub.f32 %v4176_v16, %v4178_v30  ;;  %v2531_v11 = vsub.f32 %v4177_v54, %v4179_v33  ;;  %v6567_v48 = vsub.f32 %v4178_v30, %v6561_v32  ;;  %v6570_v43 = vadd.f32 2.2, %v6536_v44 }
 0x4e4   :  { %v6573_v22 = vadd.f32 2.2, %v6534_v53  ;;  %v2554_v37 = vsub.f32 -1.4, %v6536_v44  ;;  %v6577_v58 = vsub.f32 %v4179_v33, %v6564_v10  ;;  %v2555_v21 = vsub.f32 -1.4, %v6534_v53 }
 0x4e5   :  { %v6581_v4 = vadd.f32 1.8, %v6536_v44  ;;  %v6584_v50 = vadd.f32 1.8, %v6534_v53  ;;  %v2550_v28 = vmul.f32 2.5, %v6570_v43  ;;  %v2568_v18 = vsub.f32 -1.0, %v6536_v44 }
 0x4e6   :  { %v2551_v62 = vmul.f32 2.5, %v6573_v22  ;;  %v2556_v25 = vmul.f32 2.5, %v2554_v37  ;;  %v2557_v63 = vmul.f32 2.5, %v2555_v21  ;;  %v2569_v29 = vsub.f32 -1.0, %v6534_v53 }
 0x4e7   :  { %v2564_v6 = vmul.f32 2.5, %v6581_v4  ;;  %v2565_v38 = vmul.f32 2.5, %v6584_v50  ;;  %v2552_v39 = vmul.f32 %v2550_v28, %v2526_v57  ;;  %v2570_v13 = vmul.f32 2.5, %v2568_v18 }
 0x4e8   :  { %v4679_v52 = vpop.eup %4678  ;;  %v2553_v2 = vmul.f32 %v2551_v62, %v2527_v5  ;;  %v2558_v1 = vmul.f32 %v2556_v25, %v2528_v19  ;;  %v2559_v35 = vmul.f32 %v2557_v63, %v2529_v20  ;;  %v2571_v41 = vmul.f32 2.5, %v2569_v29 }
 0x4e9   :  { %v4681_v27 = vpop.eup %4680  ;;  %v2449_v36 = vadd.f32 1.0, %v4679_v52  ;;  %v2566_v56 = vmul.f32 %v2564_v6, %v2528_v19  ;;  %v2567_v49 = vmul.f32 %v2565_v38, %v2529_v20  ;;  %v2572_v26 = vmul.f32 %v2570_v13, %v2530_v34 }
 0x4ea   :  { %v2448_v40 = vadd.f32 1.0, %v4681_v27  ;;  %v2560_v15 = vadd.f32 %v2558_v1, %v2552_v39  ;;  %v2561_v24 = vadd.f32 %v2559_v35, %v2553_v2  ;;  %v6593_v12 = vadd.f32 1.4, %v6536_v44 }
 0x4eb   :  { %v2451_v0 = vmul.f32 0.5, %v2449_v36  ;;  %v6596_v9 = vadd.f32 1.4, %v6534_v53  ;;  %v2573_v61 = vmul.f32 %v2571_v41, %v2531_v11  ;;  %v2574_v31 = vadd.f32 %v2572_v26, %v2566_v56 }
 0x4ec   :  { %v2450_v14 = vmul.f32 0.5, %v2448_v40  ;;  %v2582_v23 = vsub.f32 -0.6, %v6536_v44  ;;  %v2578_v17 = vmul.f32 2.5, %v6593_v12  ;;  %v2583_v42 = vsub.f32 -0.6, %v6534_v53 }
 0x4ed   :  { %v2453_v3 = vmul.f32 %v2451_v0, %v6534_v53  ;;  %v2579_v8 = vmul.f32 2.5, %v6596_v9  ;;  %v2575_v55 = vadd.f32 %v2573_v61, %v2567_v49  ;;  %v2688_v51 = vmul.f32 1.25, %v6570_v43 }
 0x4ee   :  { %v2452_v7 = vmul.f32 %v2450_v14, %v6536_v44  ;;  %v2584_v59 = vmul.f32 2.5, %v2582_v23  ;;  %v2580_v45 = vmul.f32 %v2578_v17, %v2530_v34  ;;  %v2585_v16 = vmul.f32 2.5, %v2583_v42 }
 0x4ef   :  { %v2581_v46 = vmul.f32 %v2579_v8, %v2531_v11  ;;  %v2689_v54 = vmul.f32 1.25, %v6573_v22  ;;  %v2690_v57 = vmul.f32 %v2688_v51, %v2560_v15  ;;  %v2692_v5 = vmul.f32 1.25, %v2568_v18 }
 0x4f0   :  { %v4565_v30 = vpack.c.bf16 %v2453_v3, %v2452_v7  ;;  %v2586_v33 = vmul.f32 %v2584_v59, %v6567_v48  ;;  %v2587_v19 = vmul.f32 %v2585_v16, %v6577_v58  ;;  %v2693_v37 = vmul.f32 1.25, %v2569_v29 }
 0x4f1   :  { %v2691_v20 = vmul.f32 %v2689_v54, %v2561_v24  ;;  %v2698_v21 = vmul.f32 1.25, %v6581_v4  ;;  %v2694_v62 = vmul.f32 %v2692_v5, %v2574_v31  ;;  %v2699_v34 = vmul.f32 1.25, %v6584_v50 }
 0x4f2   :  { %4566 = vmatpush1.bf16.msra.mxu1 %v4565_v30  ;;  %v2588_v28 = vadd.f32 %v2586_v33, %v2580_v45  ;;  %v2702_v11 = vmul.f32 1.25, %v2582_v23  ;;  %v2589_v25 = vadd.f32 %v2587_v19, %v2581_v46  ;;  %v2695_v63 = vmul.f32 %v2693_v37, %v2575_v55 }
 0x4f3   :  { %4567 = vmatprep.subr.bf16.mxu1 %v4869_v60  ;;  %v2700_v6 = vmul.f32 %v2698_v21, %v2574_v31  ;;  %v2703_v38 = vmul.f32 1.25, %v2583_v42  ;;  %v2696_v52 = vadd.f32 %v2694_v62, %v2690_v57  ;;  %v2701_v18 = vmul.f32 %v2699_v34, %v2575_v55 }
 0x4f4   :  { %v2704_v39 = vmul.f32 %v2702_v11, %v2588_v28  ;;  %v2778_v2 = vmul.f32 0.8333333, %v6570_v43  ;;  %v2697_v29 = vadd.f32 %v2695_v63, %v2691_v20  ;;  %v2779_v13 = vmul.f32 0.8333333, %v6573_v22 }
 0x4f5   :  { %v2705_v1 = vmul.f32 %v2703_v38, %v2589_v25  ;;  %v2782_v27 = vmul.f32 0.8333333, %v2582_v23  ;;  %v2783_v56 = vmul.f32 0.8333333, %v2583_v42  ;;  %vm2484_vm11 = vcmp.ge.f32.partialorder %v6536_v44, -0.2 }
 0x4f6   :  { %v2706_v36 = vadd.f32 %v2704_v39, %v2700_v6  ;;  %v2780_v35 = vmul.f32 %v2778_v2, %v2696_v52  ;;  %v2781_v40 = vmul.f32 %v2779_v13, %v2697_v29  ;;  %vm2485_vm12 = vcmp.ge.f32.partialorder %v6534_v53, -0.2 }
 0x4f7   :  { %v2707_v49 = vadd.f32 %v2705_v1, %v2701_v18  ;;  %v4182_v15 = vsel %vm2484_vm11, 1.0, %v7398_v47  ;;  %v4183_v26 = vsel %vm2485_vm12, 1.0, %v7398_v47  ;;  %v6619_v0 = vadd.f32 1.0, %v6536_v44 }
 0x4f8   :  { %v2784_v41 = vmul.f32 %v2782_v27, %v2706_v36  ;;  %v2534_v43 = vsub.f32 %v6561_v32, %v4182_v15  ;;  %v2535_v24 = vsub.f32 %v6564_v10, %v4183_v26  ;;  %v6623_v14 = vadd.f32 1.0, %v6534_v53 }
 0x4f9   :  { %v2785_v22 = vmul.f32 %v2783_v56, %v2707_v49  ;;  %v2596_v61 = vsub.f32 -0.2, %v6536_v44  ;;  %v2592_v23 = vmul.f32 2.5, %v6619_v0  ;;  %v2597_v3 = vsub.f32 -0.2, %v6534_v53 }
 0x4fa   :  { %v2786_v31 = vadd.f32 %v2784_v41, %v2780_v35  ;;  %v2708_v17 = vmul.f32 1.25, %v6593_v12  ;;  %v2593_v32 = vmul.f32 2.5, %v6623_v14  ;;  %v2709_v7 = vmul.f32 1.25, %v6596_v9 }
 0x4fb   :  { %v2787_v8 = vadd.f32 %v2785_v22, %v2781_v40  ;;  %v2598_v42 = vmul.f32 2.5, %v2596_v61  ;;  %v2594_v10 = vmul.f32 %v2592_v23, %v6567_v48  ;;  %v2599_v55 = vmul.f32 2.5, %v2597_v3 }
 0x4fc   :  { %v2710_v59 = vmul.f32 %v2708_v17, %v2588_v28  ;;  %v2712_v51 = vmul.f32 1.25, %v2596_v61  ;;  %v2595_v46 = vmul.f32 %v2593_v32, %v6577_v58  ;;  %v2711_v54 = vmul.f32 %v2709_v7, %v2589_v25 }
 0x4fd   :  { %v4568_v45 = vpack.c.bf16 %v2787_v8, %v2786_v31  ;;  %v2600_v16 = vmul.f32 %v2598_v42, %v2534_v43  ;;  %v2601_v30 = vmul.f32 %v2599_v55, %v2535_v24  ;;  %v2713_v33 = vmul.f32 1.25, %v2597_v3 }
 0x4fe   :  { %v2788_v57 = vmul.f32 0.8333333, %v6581_v4  ;;  %v2789_v5 = vmul.f32 0.8333333, %v6584_v50  ;;  %v2792_v20 = vmul.f32 0.8333333, %v2596_v61 }
 0x4ff   :  { %4569 = vmatpush1.bf16.msra.mxu1 %v4568_v45  ;;  %v2602_v19 = vadd.f32 %v2600_v16, %v2594_v10  ;;  %v2793_v37 = vmul.f32 0.8333333, %v2597_v3  ;;  %vm2490_vm14 = vcmp.ge.f32.partialorder %v6536_v44, 0.2  ;;  %v2603_v48 = vadd.f32 %v2601_v30, %v2595_v46 }
 0x500   :  { %4570 = vmatprep.subr.bf16.mxu1 %v4869_v60  ;;  %v2790_v21 = vmul.f32 %v2788_v57, %v2706_v36  ;;  %v2791_v28 = vmul.f32 %v2789_v5, %v2707_v49  ;;  %vm2491_vm15 = vcmp.ge.f32.partialorder %v6534_v53, 0.2  ;;  %v4184_v62 = vsel %vm2490_vm14, 1.0, %v7398_v47 }
 0x501   :  { %v2714_v58 = vmul.f32 %v2712_v51, %v2602_v19  ;;  %v4185_v4 = vsel %vm2491_vm15, 1.0, %v7398_v47  ;;  %v6641_v50 = vadd.f32 0.6, %v6536_v44  ;;  %v2715_v34 = vmul.f32 %v2713_v33, %v2603_v48 }
 0x502   :  { %v2536_v11 = vsub.f32 %v4182_v15, %v4184_v62  ;;  %v2537_v25 = vsub.f32 %v4183_v26, %v4185_v4  ;;  %v6644_v63 = vadd.f32 0.6, %v6534_v53  ;;  %v2610_v52 = vsub.f32 0.2, %v6536_v44 }
 0x503   :  { %v2716_v6 = vadd.f32 %v2714_v58, %v2710_v59  ;;  %v2606_v38 = vmul.f32 2.5, %v6641_v50  ;;  %v2611_v18 = vsub.f32 0.2, %v6534_v53  ;;  %v2717_v39 = vadd.f32 %v2715_v34, %v2711_v54 }
 0x504   :  { %v2607_v2 = vmul.f32 2.5, %v6644_v63  ;;  %v2718_v29 = vmul.f32 1.25, %v6619_v0  ;;  %v2719_v1 = vmul.f32 1.25, %v6623_v14  ;;  %v2612_v36 = vmul.f32 2.5, %v2610_v52 }
 0x505   :  { %v2794_v13 = vmul.f32 %v2792_v20, %v2716_v6  ;;  %v2608_v27 = vmul.f32 %v2606_v38, %v2534_v43  ;;  %v2613_v35 = vmul.f32 2.5, %v2611_v18  ;;  %v2795_v56 = vmul.f32 %v2793_v37, %v2717_v39 }
 0x506   :  { %v2609_v49 = vmul.f32 %v2607_v2, %v2535_v24  ;;  %v2720_v40 = vmul.f32 %v2718_v29, %v2602_v19  ;;  %v2721_v15 = vmul.f32 %v2719_v1, %v2603_v48  ;;  %v2614_v26 = vmul.f32 %v2612_v36, %v2536_v11 }
 0x507   :  { %v2796_v41 = vadd.f32 %v2794_v13, %v2790_v21  ;;  %v2615_v22 = vmul.f32 %v2613_v35, %v2537_v25  ;;  %v2722_v61 = vmul.f32 1.25, %v2610_v52  ;;  %v2797_v31 = vadd.f32 %v2795_v56, %v2791_v28 }
 0x508   :  { %v2723_v23 = vmul.f32 1.25, %v2611_v18  ;;  %v2798_v3 = vmul.f32 0.8333333, %v6593_v12  ;;  %v2799_v17 = vmul.f32 0.8333333, %v6596_v9  ;;  %v2616_v8 = vadd.f32 %v2614_v26, %v2608_v27 }
 0x509   :  { %v2617_v32 = vadd.f32 %v2615_v22, %v2609_v49  ;;  %v2802_v42 = vmul.f32 0.8333333, %v2610_v52  ;;  %v2803_v43 = vmul.f32 0.8333333, %v2611_v18  ;;  %v4571_v7 = vpack.c.bf16 %v2797_v31, %v2796_v41 }
 0x50a   :  { %v2800_v10 = vmul.f32 %v2798_v3, %v2716_v6  ;;  %v2801_v55 = vmul.f32 %v2799_v17, %v2717_v39  ;;  %vm2496_vm1 = vcmp.ge.f32.partialorder %v6536_v44, 0.6  ;;  %v2724_v24 = vmul.f32 %v2722_v61, %v2616_v8 }
 0x50b   :  { %v2725_v59 = vmul.f32 %v2723_v23, %v2617_v32  ;;  %vm2497_vm13 = vcmp.ge.f32.partialorder %v6534_v53, 0.6  ;;  %v4186_v51 = vsel %vm2496_vm1, 1.0, %v7398_v47  ;;  %4572 = vmatpush1.bf16.msra.mxu1 %v4571_v7  ;;  %v6659_v9 = vadd.f32 0.2, %v6536_v44 }
 0x50c   :  { %v4187_v12 = vsel %vm2497_vm13, 1.0, %v7398_v47  ;;  %v2538_v45 = vsub.f32 %v4184_v62, %v4186_v51  ;;  %v6662_v46 = vadd.f32 0.2, %v6534_v53  ;;  %4573 = vmatprep.subr.bf16.mxu1 %v4869_v60  ;;  %v2726_v16 = vadd.f32 %v2724_v24, %v2720_v40 }
 0x50d   :  { %v2727_v54 = vadd.f32 %v2725_v59, %v2721_v15  ;;  %v2539_v30 = vsub.f32 %v4185_v4, %v4187_v12  ;;  %v2624_v33 = vsub.f32 0.6, %v6536_v44  ;;  %v2620_v57 = vmul.f32 2.5, %v6659_v9 }
 0x50e   :  { %v2621_v5 = vmul.f32 2.5, %v6662_v46  ;;  %v2625_v19 = vsub.f32 0.6, %v6534_v53  ;;  %v2728_v20 = vmul.f32 1.25, %v6641_v50  ;;  %v2804_v37 = vmul.f32 %v2802_v42, %v2726_v16 }
 0x50f   :  { %v2805_v48 = vmul.f32 %v2803_v43, %v2727_v54  ;;  %v2626_v21 = vmul.f32 2.5, %v2624_v33  ;;  %v2729_v28 = vmul.f32 1.25, %v6644_v63  ;;  %v2622_v58 = vmul.f32 %v2620_v57, %v2536_v11 }
 0x510   :  { %v2623_v62 = vmul.f32 %v2621_v5, %v2537_v25  ;;  %v2627_v34 = vmul.f32 2.5, %v2625_v19  ;;  %v2730_v6 = vmul.f32 %v2728_v20, %v2616_v8  ;;  %v2806_v4 = vadd.f32 %v2804_v37, %v2800_v10 }
 0x511   :  { %v2807_v38 = vadd.f32 %v2805_v48, %v2801_v55  ;;  %v2628_v52 = vmul.f32 %v2626_v21, %v2538_v45  ;;  %v2731_v18 = vmul.f32 %v2729_v28, %v2617_v32  ;;  %v2732_v2 = vmul.f32 1.25, %v2624_v33 }
 0x512   :  { %v2629_v39 = vmul.f32 %v2627_v34, %v2539_v30  ;;  %v2733_v29 = vmul.f32 1.25, %v2625_v19  ;;  %v2808_v1 = vmul.f32 0.8333333, %v6619_v0  ;;  %v2809_v36 = vmul.f32 0.8333333, %v6623_v14 }
 0x513   :  { %v4574_v13 = vpack.c.bf16 %v2807_v38, %v2806_v4  ;;  %v2630_v27 = vadd.f32 %v2628_v52, %v2622_v58  ;;  %v2812_v35 = vmul.f32 0.8333333, %v2624_v33  ;;  %v2813_v11 = vmul.f32 0.8333333, %v2625_v19 }
 0x514   :  { %v2631_v56 = vadd.f32 %v2629_v39, %v2623_v62  ;;  %v2810_v49 = vmul.f32 %v2808_v1, %v2726_v16  ;;  %vm2502_vm0 = vcmp.ge.f32.partialorder %v6536_v44, 1.0  ;;  %v2811_v40 = vmul.f32 %v2809_v36, %v2727_v54 }
 0x515   :  { %4575 = vmatpush1.bf16.msra.mxu1 %v4574_v13  ;;  %v2734_v25 = vmul.f32 %v2732_v2, %v2630_v27  ;;  %vm2503_vm3 = vcmp.ge.f32.partialorder %v6534_v53, 1.0  ;;  %v4188_v15 = vsel %vm2502_vm0, 1.0, %v7398_v47  ;;  %v6679_v14 = vadd.f32 -0.2, %v6536_v44 }
 0x516   :  { %4576 = vmatprep.subr.bf16.mxu1 %v4869_v60  ;;  %v2735_v0 = vmul.f32 %v2733_v29, %v2631_v56  ;;  %v4189_v41 = vsel %vm2503_vm3, 1.0, %v7398_v47  ;;  %v2540_v26 = vsub.f32 %v4186_v51, %v4188_v15  ;;  %v6682_v31 = vadd.f32 -0.2, %v6534_v53 }
 0x517   :  { %v2736_v22 = vadd.f32 %v2734_v25, %v2730_v6  ;;  %v2541_v61 = vsub.f32 %v4187_v12, %v4189_v41  ;;  %v2638_v23 = vsub.f32 1.0, %v6536_v44  ;;  %v2634_v17 = vmul.f32 2.5, %v6679_v14 }
 0x518   :  { %v2737_v3 = vadd.f32 %v2735_v0, %v2731_v18  ;;  %v2639_v8 = vsub.f32 1.0, %v6534_v53  ;;  %v2738_v32 = vmul.f32 1.25, %v6659_v9  ;;  %v2635_v43 = vmul.f32 2.5, %v6682_v31 }
 0x519   :  { %v2814_v42 = vmul.f32 %v2812_v35, %v2736_v22  ;;  %v2640_v7 = vmul.f32 2.5, %v2638_v23  ;;  %v2739_v10 = vmul.f32 1.25, %v6662_v46  ;;  %v2636_v24 = vmul.f32 %v2634_v17, %v2538_v45 }
 0x51a   :  { %v2815_v55 = vmul.f32 %v2813_v11, %v2737_v3  ;;  %v2641_v59 = vmul.f32 2.5, %v2639_v8  ;;  %v2740_v51 = vmul.f32 %v2738_v32, %v2630_v27  ;;  %v2637_v16 = vmul.f32 %v2635_v43, %v2539_v30 }
 0x51b   :  { %v2816_v12 = vadd.f32 %v2814_v42, %v2810_v49  ;;  %v2642_v54 = vmul.f32 %v2640_v7, %v2540_v26  ;;  %v2741_v33 = vmul.f32 %v2739_v10, %v2631_v56  ;;  %v2742_v19 = vmul.f32 1.25, %v2638_v23 }
 0x51c   :  { %v2817_v57 = vadd.f32 %v2815_v55, %v2811_v40  ;;  %v2643_v5 = vmul.f32 %v2641_v59, %v2541_v61  ;;  %v2743_v20 = vmul.f32 1.25, %v2639_v8  ;;  %v2818_v48 = vmul.f32 0.8333333, %v6641_v50 }
 0x51d   :  { %v2644_v37 = vadd.f32 %v2642_v54, %v2636_v24  ;;  %v2819_v21 = vmul.f32 0.8333333, %v6644_v63  ;;  %v2822_v28 = vmul.f32 0.8333333, %v2638_v23  ;;  %v2823_v34 = vmul.f32 0.8333333, %v2639_v8 }
 0x51e   :  { %v4577_v58 = vpack.c.bf16 %v2817_v57, %v2816_v12  ;;  %v2645_v62 = vadd.f32 %v2643_v5, %v2637_v16  ;;  %vm2508_vm4 = vcmp.ge.f32.partialorder %v6536_v44, 1.4  ;;  %v2820_v6 = vmul.f32 %v2818_v48, %v2736_v22 }
 0x51f   :  { %v2744_v45 = vmul.f32 %v2742_v19, %v2644_v37  ;;  %v2821_v30 = vmul.f32 %v2819_v21, %v2737_v3  ;;  %vm2509_vm5 = vcmp.ge.f32.partialorder %v6534_v53, 1.4  ;;  %v4190_v38 = vsel %vm2508_vm4, 1.0, %v7398_v47 }
 0x520   :  { %4578 = vmatpush1.bf16.msra.mxu1 %v4577_v58  ;;  %v2745_v4 = vmul.f32 %v2743_v20, %v2645_v62  ;;  %v4191_v52 = vsel %vm2509_vm5, 1.0, %v7398_v47  ;;  %v6697_v50 = vadd.f32 -0.6, %v6536_v44  ;;  %v2542_v18 = vsub.f32 %v4188_v15, %v4190_v38 }
 0x521   :  { %4579 = vmatprep.subr.bf16.mxu1 %v4869_v60  ;;  %v2746_v63 = vadd.f32 %v2744_v45, %v2740_v51  ;;  %v2543_v39 = vsub.f32 %v4189_v41, %v4191_v52  ;;  %v6701_v2 = vadd.f32 -0.6, %v6534_v53  ;;  %v2652_v13 = vsub.f32 1.4, %v6536_v44 }
 0x522   :  { %v2747_v29 = vadd.f32 %v2745_v4, %v2741_v33  ;;  %v2648_v1 = vmul.f32 2.5, %v6697_v50  ;;  %v2653_v27 = vsub.f32 1.4, %v6534_v53  ;;  %v2748_v56 = vmul.f32 1.25, %v6679_v14 }
 0x523   :  { %v2824_v36 = vmul.f32 %v2822_v28, %v2746_v63  ;;  %v2649_v35 = vmul.f32 2.5, %v6701_v2  ;;  %v2749_v49 = vmul.f32 1.25, %v6682_v31  ;;  %v2654_v40 = vmul.f32 2.5, %v2652_v13 }
 0x524   :  { %v2825_v11 = vmul.f32 %v2823_v34, %v2747_v29  ;;  %v2650_v25 = vmul.f32 %v2648_v1, %v2540_v26  ;;  %v2655_v15 = vmul.f32 2.5, %v2653_v27  ;;  %v2750_v22 = vmul.f32 %v2748_v56, %v2644_v37 }
 0x525   :  { %v2826_v0 = vadd.f32 %v2824_v36, %v2820_v6  ;;  %v2651_v41 = vmul.f32 %v2649_v35, %v2541_v61  ;;  %v2656_v3 = vmul.f32 %v2654_v40, %v2542_v18  ;;  %v2751_v8 = vmul.f32 %v2749_v49, %v2645_v62 }
 0x526   :  { %v2827_v23 = vadd.f32 %v2825_v11, %v2821_v30  ;;  %v2657_v17 = vmul.f32 %v2655_v15, %v2543_v39  ;;  %v2752_v32 = vmul.f32 1.25, %v2652_v13  ;;  %v2828_v42 = vmul.f32 0.8333333, %v6659_v9 }
 0x527   :  { %v2829_v43 = vmul.f32 0.8333333, %v6662_v46  ;;  %v6712_v7 = vadd.f32 -1.0, %v6536_v44  ;;  %v2658_v55 = vadd.f32 %v2656_v3, %v2650_v25  ;;  %v2753_v24 = vmul.f32 1.25, %v2653_v27 }
 0x528   :  { %v4580_v10 = vpack.c.bf16 %v2827_v23, %v2826_v0  ;;  %v2659_v26 = vadd.f32 %v2657_v17, %v2651_v41  ;;  %v2830_v59 = vmul.f32 %v2828_v42, %v2746_v63  ;;  %v2832_v61 = vmul.f32 0.8333333, %v2652_v13 }
 0x529   :  { %v2831_v51 = vmul.f32 %v2829_v43, %v2747_v29  ;;  %vm2514_vm6 = vcmp.ge.f32.partialorder %v6536_v44, 1.8  ;;  %v2754_v12 = vmul.f32 %v2752_v32, %v2658_v55  ;;  %vm2515_vm7 = vcmp.ge.f32.partialorder %v6534_v53, 1.8 }
 0x52a   :  { %4581 = vmatpush1.bf16.msra.mxu1 %v4580_v10  ;;  %v2755_v16 = vmul.f32 %v2753_v24, %v2659_v26  ;;  %v6717_v9 = vsel %vm2514_vm6, 1.0, %v7398_v47  ;;  %v2833_v46 = vmul.f32 0.8333333, %v2653_v27  ;;  %v6721_v54 = vsel %vm2515_vm7, 1.0, %v7398_v47 }
 0x52b   :  { %4582 = vmatprep.subr.bf16.mxu1 %v4869_v60  ;;  %v6724_v33 = vadd.f32 -1.0, %v6534_v53  ;;  %v2662_v57 = vmul.f32 2.5, %v6712_v7  ;;  %v2756_v5 = vadd.f32 %v2754_v12, %v2750_v22  ;;  %v2544_v20 = vsub.f32 %v4190_v38, %v6717_v9 }
 0x52c   :  { %v2757_v19 = vadd.f32 %v2755_v16, %v2751_v8  ;;  %v2666_v37 = vsub.f32 1.8, %v6536_v44  ;;  %v2545_v48 = vsub.f32 %v4191_v52, %v6721_v54  ;;  %v2667_v28 = vsub.f32 1.8, %v6534_v53 }
 0x52d   :  { %v2663_v21 = vmul.f32 2.5, %v6724_v33  ;;  %v2758_v58 = vmul.f32 1.25, %v6697_v50  ;;  %v2834_v62 = vmul.f32 %v2832_v61, %v2756_v5  ;;  %v2664_v45 = vmul.f32 %v2662_v57, %v2542_v18 }
 0x52e   :  { %v2835_v34 = vmul.f32 %v2833_v46, %v2757_v19  ;;  %v2668_v6 = vmul.f32 2.5, %v2666_v37  ;;  %v2669_v4 = vmul.f32 2.5, %v2667_v28  ;;  %v2759_v63 = vmul.f32 1.25, %v6701_v2 }
 0x52f   :  { %v2665_v30 = vmul.f32 %v2663_v21, %v2543_v39  ;;  %v2760_v29 = vmul.f32 %v2758_v58, %v2658_v55  ;;  %v2836_v38 = vadd.f32 %v2834_v62, %v2830_v59  ;;  %v2762_v27 = vmul.f32 1.25, %v2666_v37 }
 0x530   :  { %v2837_v1 = vadd.f32 %v2835_v34, %v2831_v51  ;;  %v2670_v13 = vmul.f32 %v2668_v6, %v2544_v20  ;;  %v2671_v52 = vmul.f32 %v2669_v4, %v2545_v48  ;;  %v2761_v36 = vmul.f32 %v2759_v63, %v2659_v26 }
 0x531   :  { %v2763_v35 = vmul.f32 1.25, %v2667_v28  ;;  %v2838_v56 = vmul.f32 0.8333333, %v6679_v14  ;;  %v2839_v25 = vmul.f32 0.8333333, %v6682_v31 }
 0x532   :  { %v4583_v49 = vpack.c.bf16 %v2837_v1, %v2836_v38  ;;  %v2672_v11 = vadd.f32 %v2670_v13, %v2664_v45  ;;  %v2842_v18 = vmul.f32 0.8333333, %v2666_v37  ;;  %v2673_v40 = vadd.f32 %v2671_v52, %v2665_v30  ;;  %v2440_v52 = vld [vmem:[#allocation10] sm:$0xff] }
 0x533   :  { %v2840_v39 = vmul.f32 %v2838_v56, %v2756_v5  ;;  %v2843_v15 = vmul.f32 0.8333333, %v2667_v28  ;;  %vm2520_vm8 = vcmp.ge.f32.partialorder %v6536_v44, 2.2  ;;  %vm2521_vm9 = vcmp.ge.f32.partialorder %v6534_v53, 2.2 }
 0x534   :  { %4584 = vmatpush1.bf16.msra.mxu1 %v4583_v49  ;;  %v2764_v0 = vmul.f32 %v2762_v27, %v2672_v11  ;;  %v4194_v41 = vsel %vm2520_vm8, 1.0, %v7398_v47  ;;  %v4214_v22 = vadd.f32 -1.4, %v6536_v44  ;;  %v2765_v14 = vmul.f32 %v2763_v35, %v2673_v40 }
 0x535   :  { %4585 = vmatprep.subr.bf16.mxu1 %v4869_v60  ;;  %v2841_v23 = vmul.f32 %v2839_v25, %v2757_v19  ;;  %v4195_v31 = vsel %vm2521_vm9, 1.0, %v7398_v47  ;;  %v4215_v3 = vadd.f32 -1.4, %v6534_v53  ;;  %v2546_v8 = vsub.f32 %v6717_v9, %v4194_v41 }
 0x536   :  { %v2766_v17 = vadd.f32 %v2764_v0, %v2760_v29  ;;  %v2676_v32 = vmul.f32 2.5, %v4214_v22  ;;  %v2680_v42 = vsub.f32 2.2, %v6536_v44  ;;  %v2767_v43 = vadd.f32 %v2765_v14, %v2761_v36  ;;  %v2943_v36 = vld [vmem:[#allocation11 + $0x8] sm:$0xff] }
 0x537   :  { %v2547_v10 = vsub.f32 %v6721_v54, %v4195_v31  ;;  %v2677_v55 = vmul.f32 2.5, %v4215_v3  ;;  %v2681_v26 = vsub.f32 2.2, %v6534_v53  ;;  %v2768_v5 = vmul.f32 1.25, %v6712_v7  ;;  %4262 = vmatprep.mubr.msk.f32.mxu0 %vm2858_vm2, %v2943_v36 }
 0x538   :  { %v2844_v24 = vmul.f32 %v2842_v18, %v2766_v17  ;;  %v2678_v59 = vmul.f32 %v2676_v32, %v2544_v20  ;;  %v2682_v51 = vmul.f32 2.5, %v2680_v42  ;;  %v2845_v61 = vmul.f32 %v2843_v15, %v2767_v43 }
 0x539   :  { %v2679_v12 = vmul.f32 %v2677_v55, %v2545_v48  ;;  %v2683_v16 = vmul.f32 2.5, %v2681_v26  ;;  %v2769_v44 = vmul.f32 1.25, %v6724_v33  ;;  %v2770_v21 = vmul.f32 %v2768_v5, %v2672_v11 }
 0x53a   :  { %v2846_v46 = vadd.f32 %v2844_v24, %v2840_v39  ;;  %v2684_v57 = vmul.f32 %v2682_v51, %v2546_v8  ;;  %v2847_v9 = vadd.f32 %v2845_v61, %v2841_v23  ;;  %v2772_v54 = vmul.f32 1.25, %v2680_v42 }
 0x53b   :  { %v2685_v19 = vmul.f32 %v2683_v16, %v2547_v10  ;;  %v2771_v53 = vmul.f32 %v2769_v44, %v2673_v40  ;;  %v2773_v62 = vmul.f32 1.25, %v2681_v26  ;;  %v2848_v34 = vmul.f32 0.8333333, %v6697_v50  ;;  %v2443_v50 = vld [vmem:[#allocation10 + $0x18] sm:$0xff] }
 0x53c   :  { %v2686_v37 = vadd.f32 %v2684_v57, %v2678_v59  ;;  %v4586_v28 = vpack.c.bf16 %v2847_v9, %v2846_v46  ;;  %v2849_v45 = vmul.f32 0.8333333, %v6701_v2  ;;  %v2852_v30 = vmul.f32 0.8333333, %v2680_v42  ;;  %v2442_v2 = vld [vmem:[#allocation10 + $0x10] sm:$0xff] }
 0x53d   :  { %v2687_v58 = vadd.f32 %v2685_v19, %v2679_v12  ;;  %v2850_v6 = vmul.f32 %v2848_v34, %v2766_v17  ;;  %v2853_v63 = vmul.f32 0.8333333, %v2681_v26 }
 0x53e   :  { %v2774_v20 = vmul.f32 %v2772_v54, %v2686_v37  ;;  %4587 = vmatpush1.bf16.msra.mxu1 %v4586_v28  ;;  %v2851_v4 = vmul.f32 %v2849_v45, %v2767_v43 }
 0x53f   :  { %v2775_v48 = vmul.f32 %v2773_v62, %v2687_v58  ;;  %4588 = vmatprep.subr.bf16.mxu1 %v4869_v60 }
 0x540   :  { %v2776_v7 = vadd.f32 %v2774_v20, %v2770_v21 }
 0x541   :  { %v2777_v33 = vadd.f32 %v2775_v48, %v2771_v53 }
 0x542   :  { %v2854_v29 = vmul.f32 %v2852_v30, %v2776_v7 }
 0x543   :  { %v2855_v38 = vmul.f32 %v2853_v63, %v2777_v33 }
 0x544   :  { %v2856_v1 = vadd.f32 %v2854_v29, %v2850_v6 }
 0x545   :  { %v2857_v13 = vadd.f32 %v2855_v38, %v2851_v4 }
 0x547   :  { %v4589_v27 = vpack.c.bf16 %v2857_v13, %v2856_v1 }
 0x549   :  { %4590 = vmatpush1.bf16.msra.mxu1 %v4589_v27 }
 0x54a   :  { %4618 = vmatprep.subr.bf16.mxu1 %v4869_v60 }
 0x54c   :  { %2930 = vmatmul.mubr.f32.vlgmr.msra.gmra.mrb[8].mxu1 %v2440_v52 }
 0x54d   :  { %4217 = vmatprep.mubr.msk.f32.mxu1 %vm2858_vm2, %v2443_v50 }
 0x550   :  { %2935 = vmatmul.mubr.f32.gmra.mrb[10].mxu1 %v2442_v2 }
 0x61f   :  { %v2931_v35 = vpop.f32.mrb[8].mxu1 }
 0x620   :  { %v6755_v56 = vmax.f32 %v2931_v35, 0.0  ;;  %v2933_v49 = vpop.f32.mrb[9].mxu1 }
 0x622   :  { %v2946_v11 = vmul.f32 0.5, %v6755_v56  ;;  %vm2956_vm10 = vcmp.ge.f32.partialorder %v6755_v56, -2.2  ;;  %vm2962_vm11 = vcmp.ge.f32.partialorder %v6755_v56, -1.8  ;;  %vm2974_vm12 = vcmp.ge.f32.partialorder %v6755_v56, -1.0 }
 0x623   :  { %v2936_v25 = vpop.f32.mrb[10].mxu1  ;;  %v4218_v18 = vsel %vm2956_vm10, 1.0, %v7398_v47  ;;  %v4220_v40 = vsel %vm2962_vm11, 1.0, %v7398_v47  ;;  %vm2968_vm14 = vcmp.ge.f32.partialorder %v6755_v56, -1.4  ;;  %v4224_v41 = vsel %vm2974_vm12, 1.0, %v7398_v47 }
 0x624   :  { %v6764_v39 = vmax.f32 %v2936_v25, 0.0  ;;  %v2938_v15 = vpop.f32.mrb[11].mxu1  ;;  %4682 = vtanh.f32 %v2946_v11  ;;  %v4222_v0 = vsel %vm2968_vm14, 1.0, %v7398_v47  ;;  %vm2980_vm15 = vcmp.ge.f32.partialorder %v6755_v56, -0.6 }
 0x625   :  { %v6770_v22 = vsel %vm2980_vm15, 1.0, %v7398_v47  ;;  %v3028_v14 = vsub.f32 %v4218_v18, %v4220_v40  ;;  %v3030_v23 = vsub.f32 %v4220_v40, %v4222_v0  ;;  %v3032_v42 = vsub.f32 %v4222_v0, %v4224_v41 }
 0x626   :  { %v2947_v31 = vmul.f32 0.5, %v6764_v39  ;;  %vm2957_vm1 = vcmp.ge.f32.partialorder %v6764_v39, -2.2  ;;  %vm2963_vm13 = vcmp.ge.f32.partialorder %v6764_v39, -1.8  ;;  %vm2975_vm0 = vcmp.ge.f32.partialorder %v6764_v39, -1.0 }
 0x627   :  { %v4219_v3 = vsel %vm2957_vm1, 1.0, %v7398_v47  ;;  %v4221_v17 = vsel %vm2963_vm13, 1.0, %v7398_v47  ;;  %vm2969_vm3 = vcmp.ge.f32.partialorder %v6764_v39, -1.4  ;;  %v4225_v8 = vsel %vm2975_vm0, 1.0, %v7398_v47 }
 0x628   :  { %4684 = vtanh.f32 %v2947_v31  ;;  %v4223_v32 = vsel %vm2969_vm3, 1.0, %v7398_v47  ;;  %vm2981_vm4 = vcmp.ge.f32.partialorder %v6764_v39, -0.6  ;;  %v3029_v10 = vsub.f32 %v4219_v3, %v4221_v17 }
 0x629   :  { %v6783_v43 = vsel %vm2981_vm4, 1.0, %v7398_v47  ;;  %v3031_v55 = vsub.f32 %v4221_v17, %v4223_v32  ;;  %v3033_v26 = vsub.f32 %v4223_v32, %v4225_v8  ;;  %v6786_v24 = vsub.f32 %v4224_v41, %v6770_v22 }
 0x62a   :  { %v6789_v59 = vadd.f32 2.2, %v6755_v56  ;;  %v6792_v51 = vadd.f32 2.2, %v6764_v39  ;;  %v3056_v61 = vsub.f32 -1.4, %v6755_v56  ;;  %v6796_v12 = vsub.f32 %v4225_v8, %v6783_v43 }
 0x62b   :  { %v3057_v16 = vsub.f32 -1.4, %v6764_v39  ;;  %v6800_v46 = vadd.f32 1.8, %v6755_v56  ;;  %v6803_v57 = vadd.f32 1.8, %v6764_v39 }
 0x62c   :  { %v3052_v5 = vmul.f32 2.5, %v6789_v59  ;;  %v3053_v9 = vmul.f32 2.5, %v6792_v51  ;;  %v3058_v19 = vmul.f32 2.5, %v3056_v61  ;;  %v3070_v44 = vsub.f32 -1.0, %v6755_v56 }
 0x62d   :  { %v3059_v37 = vmul.f32 2.5, %v3057_v16  ;;  %v3066_v21 = vmul.f32 2.5, %v6800_v46  ;;  %v3067_v54 = vmul.f32 2.5, %v6803_v57  ;;  %v3071_v28 = vsub.f32 -1.0, %v6764_v39 }
 0x62e   :  { %v4683_v58 = vpop.eup %4682  ;;  %v3054_v53 = vmul.f32 %v3052_v5, %v3028_v14  ;;  %v3055_v62 = vmul.f32 %v3053_v9, %v3029_v10  ;;  %v3060_v20 = vmul.f32 %v3058_v19, %v3030_v23  ;;  %v3072_v34 = vmul.f32 2.5, %v3070_v44 }
 0x62f   :  { %v2950_v48 = vadd.f32 1.0, %v4683_v58  ;;  %v3061_v45 = vmul.f32 %v3059_v37, %v3031_v55  ;;  %v3068_v7 = vmul.f32 %v3066_v21, %v3030_v23  ;;  %v3069_v6 = vmul.f32 %v3067_v54, %v3031_v55 }
 0x630   :  { %v3062_v30 = vadd.f32 %v3060_v20, %v3054_v53  ;;  %v3073_v33 = vmul.f32 2.5, %v3071_v28  ;;  %v3074_v4 = vmul.f32 %v3072_v34, %v3032_v42  ;;  %v6812_v63 = vadd.f32 1.4, %v6755_v56 }
 0x631   :  { %v2952_v29 = vmul.f32 0.5, %v2950_v48  ;;  %v3063_v38 = vadd.f32 %v3061_v45, %v3055_v62  ;;  %v6815_v1 = vadd.f32 1.4, %v6764_v39  ;;  %v3084_v13 = vsub.f32 -0.6, %v6755_v56 }
 0x632   :  { %v4685_v27 = vpop.eup %4684  ;;  %v3075_v52 = vmul.f32 %v3073_v33, %v3033_v26  ;;  %v3076_v50 = vadd.f32 %v3074_v4, %v3068_v7  ;;  %v3080_v2 = vmul.f32 2.5, %v6812_v63  ;;  %v3085_v36 = vsub.f32 -0.6, %v6764_v39 }
 0x633   :  { %v2951_v35 = vadd.f32 1.0, %v4685_v27  ;;  %v2954_v49 = vmul.f32 %v2952_v29, %v6755_v56  ;;  %v3081_v11 = vmul.f32 2.5, %v6815_v1  ;;  %v3086_v25 = vmul.f32 2.5, %v3084_v13 }
 0x634   :  { %v3077_v18 = vadd.f32 %v3075_v52, %v3069_v6  ;;  %v3082_v40 = vmul.f32 %v3080_v2, %v3032_v42  ;;  %v3087_v15 = vmul.f32 2.5, %v3085_v36  ;;  %v3190_v0 = vmul.f32 1.25, %v6789_v59 }
 0x635   :  { %v2953_v41 = vmul.f32 0.5, %v2951_v35  ;;  %v3083_v14 = vmul.f32 %v3081_v11, %v3033_v26  ;;  %v3088_v23 = vmul.f32 %v3086_v25, %v6786_v24  ;;  %v3191_v31 = vmul.f32 1.25, %v6792_v51 }
 0x636   :  { %v3089_v3 = vmul.f32 %v3087_v15, %v6796_v12  ;;  %v3192_v17 = vmul.f32 %v3190_v0, %v3062_v30  ;;  %v3194_v8 = vmul.f32 1.25, %v3070_v44  ;;  %v3195_v32 = vmul.f32 1.25, %v3071_v28 }
 0x637   :  { %v2955_v10 = vmul.f32 %v2953_v41, %v6764_v39  ;;  %v3090_v55 = vadd.f32 %v3088_v23, %v3082_v40  ;;  %v3193_v61 = vmul.f32 %v3191_v31, %v3063_v38  ;;  %v3200_v42 = vmul.f32 1.25, %v6800_v46 }
 0x638   :  { %v3091_v16 = vadd.f32 %v3089_v3, %v3083_v14  ;;  %v3196_v5 = vmul.f32 %v3194_v8, %v3076_v50  ;;  %v3197_v9 = vmul.f32 %v3195_v32, %v3077_v18  ;;  %v3201_v26 = vmul.f32 1.25, %v6803_v57 }
 0x639   :  { %v4592_v19 = vpack.c.bf16 %v2955_v10, %v2954_v49  ;;  %v3202_v37 = vmul.f32 %v3200_v42, %v3076_v50  ;;  %v3204_v21 = vmul.f32 1.25, %v3084_v13  ;;  %v3205_v54 = vmul.f32 1.25, %v3085_v36 }
 0x63a   :  { %v3198_v58 = vadd.f32 %v3196_v5, %v3192_v17  ;;  %v3199_v53 = vadd.f32 %v3197_v9, %v3193_v61  ;;  %v3203_v62 = vmul.f32 %v3201_v26, %v3077_v18  ;;  %v3280_v44 = vmul.f32 0.8333333, %v6789_v59 }
 0x63b   :  { %4593 = vmatpush1.bf16.msra.mxu0 %v4592_v19  ;;  %v3206_v28 = vmul.f32 %v3204_v21, %v3090_v55  ;;  %v3207_v20 = vmul.f32 %v3205_v54, %v3091_v16  ;;  %v3281_v34 = vmul.f32 0.8333333, %v6792_v51  ;;  %v3284_v48 = vmul.f32 0.8333333, %v3084_v13 }
 0x63c   :  { %4594 = vmatprep.subr.bf16.mxu0 %v4869_v60  ;;  %v3282_v45 = vmul.f32 %v3280_v44, %v3198_v58  ;;  %v3285_v7 = vmul.f32 0.8333333, %v3085_v36  ;;  %vm2986_vm5 = vcmp.ge.f32.partialorder %v6755_v56, -0.2  ;;  %vm2987_vm6 = vcmp.ge.f32.partialorder %v6764_v39, -0.2 }
 0x63d   :  { %v3208_v6 = vadd.f32 %v3206_v28, %v3202_v37  ;;  %v3209_v30 = vadd.f32 %v3207_v20, %v3203_v62  ;;  %v3283_v33 = vmul.f32 %v3281_v34, %v3199_v53  ;;  %v4228_v4 = vsel %vm2986_vm5, 1.0, %v7398_v47 }
 0x63e   :  { %v4229_v59 = vsel %vm2987_vm6, 1.0, %v7398_v47  ;;  %v3036_v29 = vsub.f32 %v6770_v22, %v4228_v4  ;;  %v6838_v51 = vadd.f32 1.0, %v6755_v56  ;;  %v6841_v38 = vadd.f32 1.0, %v6764_v39 }
 0x63f   :  { %v3286_v13 = vmul.f32 %v3284_v48, %v3208_v6  ;;  %v3287_v27 = vmul.f32 %v3285_v7, %v3209_v30  ;;  %v3037_v52 = vsub.f32 %v6783_v43, %v4229_v59  ;;  %v3098_v50 = vsub.f32 -0.2, %v6755_v56 }
 0x640   :  { %v3094_v2 = vmul.f32 2.5, %v6838_v51  ;;  %v3095_v36 = vmul.f32 2.5, %v6841_v38  ;;  %v3099_v35 = vsub.f32 -0.2, %v6764_v39  ;;  %v3210_v22 = vmul.f32 1.25, %v6812_v63 }
 0x641   :  { %v3288_v49 = vadd.f32 %v3286_v13, %v3282_v45  ;;  %v3289_v11 = vadd.f32 %v3287_v27, %v3283_v33  ;;  %v3100_v25 = vmul.f32 2.5, %v3098_v50  ;;  %v3211_v18 = vmul.f32 1.25, %v6815_v1 }
 0x642   :  { %v3096_v40 = vmul.f32 %v3094_v2, %v6786_v24  ;;  %v3097_v15 = vmul.f32 %v3095_v36, %v6796_v12  ;;  %v3101_v43 = vmul.f32 2.5, %v3099_v35  ;;  %v3212_v0 = vmul.f32 %v3210_v22, %v3090_v55 }
 0x643   :  { %v4595_v41 = vpack.c.bf16 %v3289_v11, %v3288_v49  ;;  %v3102_v14 = vmul.f32 %v3100_v25, %v3036_v29  ;;  %v3213_v23 = vmul.f32 %v3211_v18, %v3091_v16  ;;  %v3214_v31 = vmul.f32 1.25, %v3098_v50 }
 0x644   :  { %v3103_v3 = vmul.f32 %v3101_v43, %v3037_v52  ;;  %v3215_v17 = vmul.f32 1.25, %v3099_v35  ;;  %v3290_v8 = vmul.f32 0.8333333, %v6800_v46  ;;  %v3291_v32 = vmul.f32 0.8333333, %v6803_v57 }
 0x645   :  { %4596 = vmatpush1.bf16.msra.mxu0 %v4595_v41  ;;  %v3104_v10 = vadd.f32 %v3102_v14, %v3096_v40  ;;  %v3294_v61 = vmul.f32 0.8333333, %v3098_v50  ;;  %v3295_v42 = vmul.f32 0.8333333, %v3099_v35  ;;  %vm2992_vm7 = vcmp.ge.f32.partialorder %v6755_v56, 0.2 }
 0x646   :  { %4597 = vmatprep.subr.bf16.mxu0 %v4869_v60  ;;  %v3105_v24 = vadd.f32 %v3103_v3, %v3097_v15  ;;  %v3292_v12 = vmul.f32 %v3290_v8, %v3208_v6  ;;  %v3293_v55 = vmul.f32 %v3291_v32, %v3209_v30  ;;  %vm2993_vm8 = vcmp.ge.f32.partialorder %v6764_v39, 0.2 }
 0x647   :  { %v3216_v16 = vmul.f32 %v3214_v31, %v3104_v10  ;;  %v4230_v5 = vsel %vm2992_vm7, 1.0, %v7398_v47  ;;  %v4231_v46 = vsel %vm2993_vm8, 1.0, %v7398_v47  ;;  %v6860_v57 = vadd.f32 0.6, %v6755_v56 }
 0x648   :  { %v3217_v9 = vmul.f32 %v3215_v17, %v3105_v24  ;;  %v3038_v26 = vsub.f32 %v4228_v4, %v4230_v5  ;;  %v3039_v19 = vsub.f32 %v4229_v59, %v4231_v46  ;;  %v6863_v37 = vadd.f32 0.6, %v6764_v39 }
 0x649   :  { %v3218_v21 = vadd.f32 %v3216_v16, %v3212_v0  ;;  %v3108_v54 = vmul.f32 2.5, %v6860_v57  ;;  %v3112_v58 = vsub.f32 0.2, %v6755_v56  ;;  %v3113_v53 = vsub.f32 0.2, %v6764_v39 }
 0x64a   :  { %v3219_v62 = vadd.f32 %v3217_v9, %v3213_v23  ;;  %v3109_v44 = vmul.f32 2.5, %v6863_v37  ;;  %v3220_v28 = vmul.f32 1.25, %v6838_v51  ;;  %v3221_v20 = vmul.f32 1.25, %v6841_v38 }
 0x64b   :  { %v3296_v34 = vmul.f32 %v3294_v61, %v3218_v21  ;;  %v3110_v48 = vmul.f32 %v3108_v54, %v3036_v29  ;;  %v3114_v45 = vmul.f32 2.5, %v3112_v58  ;;  %v3115_v7 = vmul.f32 2.5, %v3113_v53 }
 0x64c   :  { %v3297_v6 = vmul.f32 %v3295_v42, %v3219_v62  ;;  %v3111_v30 = vmul.f32 %v3109_v44, %v3037_v52  ;;  %v3222_v33 = vmul.f32 %v3220_v28, %v3104_v10  ;;  %v3223_v4 = vmul.f32 %v3221_v20, %v3105_v24 }
 0x64d   :  { %v3298_v59 = vadd.f32 %v3296_v34, %v3292_v12  ;;  %v3116_v13 = vmul.f32 %v3114_v45, %v3038_v26  ;;  %v3117_v27 = vmul.f32 %v3115_v7, %v3039_v19  ;;  %v3224_v50 = vmul.f32 1.25, %v3112_v58 }
 0x64e   :  { %v3299_v2 = vadd.f32 %v3297_v6, %v3293_v55  ;;  %v3225_v36 = vmul.f32 1.25, %v3113_v53  ;;  %v3300_v35 = vmul.f32 0.8333333, %v6812_v63  ;;  %v3301_v22 = vmul.f32 0.8333333, %v6815_v1 }
 0x64f   :  { %v3118_v49 = vadd.f32 %v3116_v13, %v3110_v48  ;;  %v3119_v11 = vadd.f32 %v3117_v27, %v3111_v30  ;;  %v3304_v25 = vmul.f32 0.8333333, %v3112_v58  ;;  %v3305_v29 = vmul.f32 0.8333333, %v3113_v53 }
 0x650   :  { %v4598_v18 = vpack.c.bf16 %v3299_v2, %v3298_v59  ;;  %v3302_v40 = vmul.f32 %v3300_v35, %v3218_v21  ;;  %v3303_v15 = vmul.f32 %v3301_v22, %v3219_v62  ;;  %vm2998_vm9 = vcmp.ge.f32.partialorder %v6755_v56, 0.6 }
 0x651   :  { %v3226_v52 = vmul.f32 %v3224_v50, %v3118_v49  ;;  %v3227_v43 = vmul.f32 %v3225_v36, %v3119_v11  ;;  %vm2999_vm10 = vcmp.ge.f32.partialorder %v6764_v39, 0.6  ;;  %v4232_v0 = vsel %vm2998_vm9, 1.0, %v7398_v47 }
 0x652   :  { %4599 = vmatpush1.bf16.msra.mxu0 %v4598_v18  ;;  %v4233_v63 = vsel %vm2999_vm10, 1.0, %v7398_v47  ;;  %v3040_v41 = vsub.f32 %v4230_v5, %v4232_v0  ;;  %v6878_v1 = vadd.f32 0.2, %v6755_v56  ;;  %v6881_v14 = vadd.f32 0.2, %v6764_v39 }
 0x653   :  { %4600 = vmatprep.subr.bf16.mxu0 %v4869_v60  ;;  %v3228_v23 = vadd.f32 %v3226_v52, %v3222_v33  ;;  %v3229_v31 = vadd.f32 %v3227_v43, %v3223_v4  ;;  %v3041_v3 = vsub.f32 %v4231_v46, %v4233_v63  ;;  %v3126_v17 = vsub.f32 0.6, %v6755_v56 }
 0x654   :  { %v3122_v8 = vmul.f32 2.5, %v6878_v1  ;;  %v3123_v32 = vmul.f32 2.5, %v6881_v14  ;;  %v3127_v10 = vsub.f32 0.6, %v6764_v39  ;;  %v3230_v61 = vmul.f32 1.25, %v6860_v57 }
 0x655   :  { %v3306_v42 = vmul.f32 %v3304_v25, %v3228_v23  ;;  %v3307_v24 = vmul.f32 %v3305_v29, %v3229_v31  ;;  %v3128_v12 = vmul.f32 2.5, %v3126_v17  ;;  %v3231_v55 = vmul.f32 1.25, %v6863_v37 }
 0x656   :  { %v3124_v16 = vmul.f32 %v3122_v8, %v3038_v26  ;;  %v3125_v5 = vmul.f32 %v3123_v32, %v3039_v19  ;;  %v3129_v9 = vmul.f32 2.5, %v3127_v10  ;;  %v3232_v21 = vmul.f32 %v3230_v61, %v3118_v49 }
 0x657   :  { %v3308_v46 = vadd.f32 %v3306_v42, %v3302_v40  ;;  %v3309_v54 = vadd.f32 %v3307_v24, %v3303_v15  ;;  %v3130_v58 = vmul.f32 %v3128_v12, %v3040_v41  ;;  %v3233_v53 = vmul.f32 %v3231_v55, %v3119_v11 }
 0x658   :  { %v3131_v62 = vmul.f32 %v3129_v9, %v3041_v3  ;;  %v3234_v44 = vmul.f32 1.25, %v3126_v17  ;;  %v3235_v28 = vmul.f32 1.25, %v3127_v10  ;;  %v3310_v20 = vmul.f32 0.8333333, %v6838_v51 }
 0x659   :  { %v4601_v34 = vpack.c.bf16 %v3309_v54, %v3308_v46  ;;  %v3132_v48 = vadd.f32 %v3130_v58, %v3124_v16  ;;  %v3311_v45 = vmul.f32 0.8333333, %v6841_v38  ;;  %v3314_v7 = vmul.f32 0.8333333, %v3126_v17 }
 0x65a   :  { %v3133_v6 = vadd.f32 %v3131_v62, %v3125_v5  ;;  %v3312_v30 = vmul.f32 %v3310_v20, %v3228_v23  ;;  %v3315_v26 = vmul.f32 0.8333333, %v3127_v10  ;;  %vm3004_vm11 = vcmp.ge.f32.partialorder %v6755_v56, 1.0 }
 0x65b   :  { %4602 = vmatpush1.bf16.msra.mxu0 %v4601_v34  ;;  %v3236_v19 = vmul.f32 %v3234_v44, %v3132_v48  ;;  %v3313_v33 = vmul.f32 %v3311_v45, %v3229_v31  ;;  %vm3005_vm12 = vcmp.ge.f32.partialorder %v6764_v39, 1.0  ;;  %v4234_v4 = vsel %vm3004_vm11, 1.0, %v7398_v47 }
 0x65c   :  { %4603 = vmatprep.subr.bf16.mxu0 %v4869_v60  ;;  %v3237_v51 = vmul.f32 %v3235_v28, %v3133_v6  ;;  %v4235_v59 = vsel %vm3005_vm12, 1.0, %v7398_v47  ;;  %v3042_v13 = vsub.f32 %v4232_v0, %v4234_v4  ;;  %v6898_v38 = vadd.f32 -0.2, %v6755_v56 }
 0x65d   :  { %v3238_v27 = vadd.f32 %v3236_v19, %v3232_v21  ;;  %v3043_v50 = vsub.f32 %v4233_v63, %v4235_v59  ;;  %v6901_v2 = vadd.f32 -0.2, %v6764_v39  ;;  %v3140_v36 = vsub.f32 1.0, %v6755_v56 }
 0x65e   :  { %v3239_v35 = vadd.f32 %v3237_v51, %v3233_v53  ;;  %v3136_v22 = vmul.f32 2.5, %v6898_v38  ;;  %v3141_v49 = vsub.f32 1.0, %v6764_v39  ;;  %v3240_v11 = vmul.f32 1.25, %v6878_v1 }
 0x65f   :  { %v3316_v25 = vmul.f32 %v3314_v7, %v3238_v27  ;;  %v3137_v29 = vmul.f32 2.5, %v6901_v2  ;;  %v3142_v18 = vmul.f32 2.5, %v3140_v36  ;;  %v3241_v40 = vmul.f32 1.25, %v6881_v14 }
 0x660   :  { %v3317_v15 = vmul.f32 %v3315_v26, %v3239_v35  ;;  %v3138_v52 = vmul.f32 %v3136_v22, %v3040_v41  ;;  %v3143_v43 = vmul.f32 2.5, %v3141_v49  ;;  %v3242_v0 = vmul.f32 %v3240_v11, %v3132_v48 }
 0x661   :  { %v3318_v63 = vadd.f32 %v3316_v25, %v3312_v30  ;;  %v3139_v23 = vmul.f32 %v3137_v29, %v3041_v3  ;;  %v3144_v31 = vmul.f32 %v3142_v18, %v3042_v13  ;;  %v3243_v17 = vmul.f32 %v3241_v40, %v3133_v6 }
 0x662   :  { %v3319_v8 = vadd.f32 %v3317_v15, %v3313_v33  ;;  %v3145_v32 = vmul.f32 %v3143_v43, %v3043_v50  ;;  %v3244_v10 = vmul.f32 1.25, %v3140_v36  ;;  %v3245_v61 = vmul.f32 1.25, %v3141_v49 }
 0x663   :  { %v3146_v42 = vadd.f32 %v3144_v31, %v3138_v52  ;;  %v3320_v24 = vmul.f32 0.8333333, %v6860_v57  ;;  %v3321_v12 = vmul.f32 0.8333333, %v6863_v37  ;;  %v3324_v55 = vmul.f32 0.8333333, %v3140_v36 }
 0x664   :  { %v4604_v16 = vpack.c.bf16 %v3319_v8, %v3318_v63  ;;  %v3147_v5 = vadd.f32 %v3145_v32, %v3139_v23  ;;  %v3325_v9 = vmul.f32 0.8333333, %v3141_v49  ;;  %vm3010_vm14 = vcmp.ge.f32.partialorder %v6755_v56, 1.4 }
 0x665   :  { %v3246_v41 = vmul.f32 %v3244_v10, %v3146_v42  ;;  %v3322_v21 = vmul.f32 %v3320_v24, %v3238_v27  ;;  %v3323_v3 = vmul.f32 %v3321_v12, %v3239_v35  ;;  %vm3011_vm15 = vcmp.ge.f32.partialorder %v6764_v39, 1.4 }
 0x666   :  { %4605 = vmatpush1.bf16.msra.mxu0 %v4604_v16  ;;  %v3247_v46 = vmul.f32 %v3245_v61, %v3147_v5  ;;  %v4236_v54 = vsel %vm3010_vm14, 1.0, %v7398_v47  ;;  %v4237_v58 = vsel %vm3011_vm15, 1.0, %v7398_v47  ;;  %v6916_v57 = vadd.f32 -0.6, %v6755_v56 }
 0x667   :  { %4606 = vmatprep.subr.bf16.mxu0 %v4869_v60  ;;  %v3248_v37 = vadd.f32 %v3246_v41, %v3242_v0  ;;  %v3044_v53 = vsub.f32 %v4234_v4, %v4236_v54  ;;  %v3045_v62 = vsub.f32 %v4235_v59, %v4237_v58  ;;  %v6920_v44 = vadd.f32 -0.6, %v6764_v39 }
 0x668   :  { %v3249_v28 = vadd.f32 %v3247_v46, %v3243_v17  ;;  %v3150_v20 = vmul.f32 2.5, %v6916_v57  ;;  %v3154_v34 = vsub.f32 1.4, %v6755_v56  ;;  %v3155_v48 = vsub.f32 1.4, %v6764_v39 }
 0x669   :  { %v3326_v45 = vmul.f32 %v3324_v55, %v3248_v37  ;;  %v3151_v7 = vmul.f32 2.5, %v6920_v44  ;;  %v3250_v6 = vmul.f32 1.25, %v6898_v38  ;;  %v3251_v30 = vmul.f32 1.25, %v6901_v2 }
 0x66a   :  { %v3327_v26 = vmul.f32 %v3325_v9, %v3249_v28  ;;  %v3152_v19 = vmul.f32 %v3150_v20, %v3042_v13  ;;  %v3156_v33 = vmul.f32 2.5, %v3154_v34  ;;  %v3157_v4 = vmul.f32 2.5, %v3155_v48 }
 0x66b   :  { %v3328_v51 = vadd.f32 %v3326_v45, %v3322_v21  ;;  %v3153_v59 = vmul.f32 %v3151_v7, %v3043_v50  ;;  %v3252_v27 = vmul.f32 %v3250_v6, %v3146_v42  ;;  %v3253_v49 = vmul.f32 %v3251_v30, %v3147_v5 }
 0x66c   :  { %v3329_v36 = vadd.f32 %v3327_v26, %v3323_v3  ;;  %v3158_v35 = vmul.f32 %v3156_v33, %v3044_v53  ;;  %v3159_v22 = vmul.f32 %v3157_v4, %v3045_v62  ;;  %v3254_v11 = vmul.f32 1.25, %v3154_v34 }
 0x66d   :  { %v3330_v25 = vmul.f32 0.8333333, %v6878_v1  ;;  %v3331_v29 = vmul.f32 0.8333333, %v6881_v14  ;;  %v6931_v18 = vadd.f32 -1.0, %v6755_v56  ;;  %v3255_v52 = vmul.f32 1.25, %v3155_v48 }
 0x66e   :  { %v4607_v40 = vpack.c.bf16 %v3329_v36, %v3328_v51  ;;  %v3160_v15 = vadd.f32 %v3158_v35, %v3152_v19  ;;  %v3161_v13 = vadd.f32 %v3159_v22, %v3153_v59  ;;  %v3334_v50 = vmul.f32 0.8333333, %v3154_v34 }
 0x66f   :  { %v3332_v43 = vmul.f32 %v3330_v25, %v3248_v37  ;;  %v3333_v0 = vmul.f32 %v3331_v29, %v3249_v28  ;;  %vm3016_vm1 = vcmp.ge.f32.partialorder %v6755_v56, 1.8  ;;  %vm3017_vm13 = vcmp.ge.f32.partialorder %v6764_v39, 1.8 }
 0x670   :  { %4608 = vmatpush1.bf16.msra.mxu0 %v4607_v40  ;;  %v3256_v63 = vmul.f32 %v3254_v11, %v3160_v15  ;;  %v3257_v23 = vmul.f32 %v3255_v52, %v3161_v13  ;;  %v6936_v1 = vsel %vm3016_vm1, 1.0, %v7398_v47  ;;  %v3335_v14 = vmul.f32 0.8333333, %v3155_v48 }
 0x671   :  { %4609 = vmatprep.subr.bf16.mxu0 %v4869_v60  ;;  %v6940_v31 = vsel %vm3017_vm13, 1.0, %v7398_v47  ;;  %v6943_v17 = vadd.f32 -1.0, %v6764_v39  ;;  %v3164_v8 = vmul.f32 2.5, %v6931_v18  ;;  %v3046_v61 = vsub.f32 %v4236_v54, %v6936_v1 }
 0x672   :  { %v3258_v32 = vadd.f32 %v3256_v63, %v3252_v27  ;;  %v3259_v10 = vadd.f32 %v3257_v23, %v3253_v49  ;;  %v3168_v42 = vsub.f32 1.8, %v6755_v56  ;;  %v3047_v24 = vsub.f32 %v4237_v58, %v6940_v31 }
 0x673   :  { %v3165_v12 = vmul.f32 2.5, %v6943_v17  ;;  %v3169_v55 = vsub.f32 1.8, %v6764_v39  ;;  %v3260_v16 = vmul.f32 1.25, %v6916_v57  ;;  %v3166_v41 = vmul.f32 %v3164_v8, %v3044_v53 }
 0x674   :  { %v3336_v5 = vmul.f32 %v3334_v50, %v3258_v32  ;;  %v3337_v9 = vmul.f32 %v3335_v14, %v3259_v10  ;;  %v3170_v21 = vmul.f32 2.5, %v3168_v42  ;;  %v3261_v37 = vmul.f32 1.25, %v6920_v44 }
 0x675   :  { %v3167_v3 = vmul.f32 %v3165_v12, %v3045_v62  ;;  %v3171_v46 = vmul.f32 2.5, %v3169_v55  ;;  %v3262_v28 = vmul.f32 %v3260_v16, %v3160_v15  ;;  %v3264_v48 = vmul.f32 1.25, %v3168_v42 }
 0x676   :  { %v3338_v54 = vadd.f32 %v3336_v5, %v3332_v43  ;;  %v3339_v20 = vadd.f32 %v3337_v9, %v3333_v0  ;;  %v3172_v34 = vmul.f32 %v3170_v21, %v3046_v61  ;;  %v3263_v45 = vmul.f32 %v3261_v37, %v3161_v13 }
 0x677   :  { %v3173_v58 = vmul.f32 %v3171_v46, %v3047_v24  ;;  %v3265_v7 = vmul.f32 1.25, %v3169_v55  ;;  %v3340_v6 = vmul.f32 0.8333333, %v6898_v38  ;;  %v3341_v19 = vmul.f32 0.8333333, %v6901_v2 }
 0x678   :  { %v4610_v30 = vpack.c.bf16 %v3339_v20, %v3338_v54  ;;  %v3174_v26 = vadd.f32 %v3172_v34, %v3166_v41  ;;  %v3344_v53 = vmul.f32 0.8333333, %v3168_v42  ;;  %v3345_v4 = vmul.f32 0.8333333, %v3169_v55 }
 0x679   :  { %v3175_v33 = vadd.f32 %v3173_v58, %v3167_v3  ;;  %v3342_v62 = vmul.f32 %v3340_v6, %v3258_v32  ;;  %vm3022_vm0 = vcmp.ge.f32.partialorder %v6755_v56, 2.2  ;;  %vm3023_vm3 = vcmp.ge.f32.partialorder %v6764_v39, 2.2  ;;  %v2942_v58 = vld [vmem:[#allocation11] sm:$0xff] }
 0x67a   :  { %4611 = vmatpush1.bf16.msra.mxu0 %v4610_v30  ;;  %v3266_v51 = vmul.f32 %v3264_v48, %v3174_v26  ;;  %v4240_v59 = vsel %vm3022_vm0, 1.0, %v7398_v47  ;;  %v4260_v27 = vadd.f32 -1.4, %v6755_v56  ;;  %v3343_v36 = vmul.f32 %v3341_v19, %v3259_v10 }
 0x67b   :  { %4612 = vmatprep.subr.bf16.mxu0 %v4869_v60  ;;  %v3267_v38 = vmul.f32 %v3265_v7, %v3175_v33  ;;  %v4241_v2 = vsel %vm3023_vm3, 1.0, %v7398_v47  ;;  %v4261_v35 = vadd.f32 -1.4, %v6764_v39  ;;  %v3048_v49 = vsub.f32 %v6936_v1, %v4240_v59 }
 0x67c   :  { %v3268_v22 = vadd.f32 %v3266_v51, %v3262_v28  ;;  %v3178_v11 = vmul.f32 2.5, %v4260_v27  ;;  %v3182_v25 = vsub.f32 2.2, %v6755_v56  ;;  %v3049_v40 = vsub.f32 %v6940_v31, %v4241_v2 }
 0x67d   :  { %v3269_v29 = vadd.f32 %v3267_v38, %v3263_v45  ;;  %v3179_v15 = vmul.f32 2.5, %v4261_v35  ;;  %v3183_v13 = vsub.f32 2.2, %v6764_v39  ;;  %v3270_v8 = vmul.f32 1.25, %v6931_v18  ;;  %v2945_v45 = vld [vmem:[#allocation11 + $0x18] sm:$0xff] }
 0x67e   :  { %v3346_v52 = vmul.f32 %v3344_v53, %v3268_v22  ;;  %v3180_v43 = vmul.f32 %v3178_v11, %v3046_v61  ;;  %v3184_v0 = vmul.f32 2.5, %v3182_v25  ;;  %v3271_v56 = vmul.f32 1.25, %v6943_v17 }
 0x67f   :  { %v3347_v50 = vmul.f32 %v3345_v4, %v3269_v29  ;;  %v3181_v63 = vmul.f32 %v3179_v15, %v3047_v24  ;;  %v3185_v23 = vmul.f32 2.5, %v3183_v13  ;;  %v3272_v12 = vmul.f32 %v3270_v8, %v3174_v26 }
 0x680   :  { %v3186_v14 = vmul.f32 %v3184_v0, %v3048_v49  ;;  %v3348_v32 = vadd.f32 %v3346_v52, %v3342_v62  ;;  %v3274_v31 = vmul.f32 1.25, %v3182_v25  ;;  %v3273_v39 = vmul.f32 %v3271_v56, %v3175_v33 }
 0x681   :  { %v3349_v1 = vadd.f32 %v3347_v50, %v3343_v36  ;;  %v3187_v10 = vmul.f32 %v3185_v23, %v3049_v40  ;;  %v3275_v5 = vmul.f32 1.25, %v3183_v13  ;;  %v3350_v24 = vmul.f32 0.8333333, %v6916_v57  ;;  %v2944_v57 = vld [vmem:[#allocation11 + $0x10] sm:$0xff] }
 0x682   :  { %v3188_v42 = vadd.f32 %v3186_v14, %v3180_v43  ;;  %v3351_v41 = vmul.f32 0.8333333, %v6920_v44  ;;  %v3354_v21 = vmul.f32 0.8333333, %v3182_v25  ;;  %v3355_v37 = vmul.f32 0.8333333, %v3183_v13 }
 0x683   :  { %v4613_v55 = vpack.c.bf16 %v3349_v1, %v3348_v32  ;;  %v3189_v16 = vadd.f32 %v3187_v10, %v3181_v63  ;;  %v3352_v17 = vmul.f32 %v3350_v24, %v3268_v22  ;;  %v6975_v44 = vld.sshfl [vmem:[%s7215_s6] sm:$0x33 pattern:$0x76325410]  ;;  %s4870_s6 = smov [#allocation13]  }
 0x684   :  { %v3276_v61 = vmul.f32 %v3274_v31, %v3188_v42  ;;  %v3353_v46 = vmul.f32 %v3351_v41, %v3269_v29  ;;  %v3866_v7 = vcombine.high %v6975_v44, %v6975_v44  ;;  %s3952_s0 = sshll.u32 %s4870_s6, 4  ;;  %s3953_s0 = int_to_ptr.vmem [resolvable:$true] %s3952_s0 }
 0x685   :  { %4614 = vmatpush1.bf16.msra.mxu0 %v4613_v55  ;;  %v3277_v9 = vmul.f32 %v3275_v5, %v3189_v16  ;;  %s4824_s18 = scalar_lea.vmem %s3953_s0, 32  ;;  %p4829_p7 = scmp.lt.s32.totalorder %s3953_s0, %s3953_s0 }
 0x686   :  { %4615 = vmatprep.subr.bf16.mxu0 %v4869_v60  ;;  %v3278_v18 = vadd.f32 %v3276_v61, %v3272_v12  ;;  %4309 = vmatprep.mubr.msk.f32.mxu1 %vm2858_vm2, %v3866_v7  ;;  %p4825_p6 = scmp.ne.s32.totalorder %s3953_s0, %s4824_s18  ;;  %p4830_p8 = scmp.lt.s32.totalorder %s4824_s18, %s4824_s18 }
 0x687   :  { %v3279_v3 = vadd.f32 %v3277_v9, %v3273_v39 }
 0x688   :  { %v3356_v28 = vmul.f32 %v3354_v21, %v3278_v18  ;;  %p4831_p9 = por %p4830_p8, %p4829_p7 }
 0x689   :  { %v3357_v54 = vmul.f32 %v3355_v37, %v3279_v3 }
 0x68a   :  { %v3358_v20 = vadd.f32 %v3356_v28, %v3352_v17  ;;  %p4832_p10 = pnand %p4831_p9, %p4825_p6 }
 0x68b   :  { %v3359_v34 = vadd.f32 %v3357_v54, %v3353_v46 }
 0x68d   :  { %v4616_v48 = vpack.c.bf16 %v3359_v34, %v3358_v20 }
 0x68f   :  { %4617 = vmatpush1.bf16.msra.mxu0 %v4616_v48 }
 0x692   :  { %3431 = vmatmul.mubr.f32.vlgmr.msra.gmra.mrb[14].mxu0 %v2942_v58 }
 0x693   :  { %4263 = vmatprep.mubr.msk.f32.mxu0 %vm2858_vm2, %v2945_v45 }
 0x696   :  { %3436 = vmatmul.mubr.f32.gmra.mrb[16].mxu0 %v2944_v57 }
 0x765   :  { %v3432_v6 = vpop.f32.mrb[14].mxu0 }
 0x766   :  { %v6980_v30 = vmax.f32 %v3432_v6, 0.0  ;;  %v3434_v26 = vpop.f32.mrb[15].mxu0 }
 0x768   :  { %v3444_v19 = vmul.f32 0.5, %v6980_v30  ;;  %vm3454_vm4 = vcmp.ge.f32.partialorder %v6980_v30, -2.2  ;;  %vm3460_vm5 = vcmp.ge.f32.partialorder %v6980_v30, -1.8  ;;  %vm3472_vm6 = vcmp.ge.f32.partialorder %v6980_v30, -1.0 }
 0x769   :  { %v3437_v53 = vpop.f32.mrb[16].mxu0  ;;  %v4264_v33 = vsel %vm3454_vm4, 1.0, %v7398_v47  ;;  %v4266_v62 = vsel %vm3460_vm5, 1.0, %v7398_v47  ;;  %vm3466_vm7 = vcmp.ge.f32.partialorder %v6980_v30, -1.4  ;;  %v4270_v27 = vsel %vm3472_vm6, 1.0, %v7398_v47 }
 0x76a   :  { %v6989_v4 = vmax.f32 %v3437_v53, 0.0  ;;  %v3439_v51 = vpop.f32.mrb[17].mxu0  ;;  %4686 = vtanh.f32 %v3444_v19  ;;  %v4268_v59 = vsel %vm3466_vm7, 1.0, %v7398_v47  ;;  %vm3478_vm2 = vcmp.ge.f32.partialorder %v6980_v30, -0.6 }
 0x76b   :  { %v6995_v38 = vsel %vm3478_vm2, 1.0, %v7398_v47  ;;  %v3526_v36 = vsub.f32 %v4264_v33, %v4266_v62  ;;  %v3528_v2 = vsub.f32 %v4266_v62, %v4268_v59  ;;  %v3530_v29 = vsub.f32 %v4268_v59, %v4270_v27 }
 0x76c   :  { %v3445_v35 = vmul.f32 0.5, %v6989_v4  ;;  %vm3455_vm8 = vcmp.ge.f32.partialorder %v6989_v4, -2.2  ;;  %vm3461_vm9 = vcmp.ge.f32.partialorder %v6989_v4, -1.8  ;;  %vm3473_vm10 = vcmp.ge.f32.partialorder %v6989_v4, -1.0 }
 0x76d   :  { %v4265_v22 = vsel %vm3455_vm8, 1.0, %v7398_v47  ;;  %v4267_v49 = vsel %vm3461_vm9, 1.0, %v7398_v47  ;;  %vm3467_vm11 = vcmp.ge.f32.partialorder %v6989_v4, -1.4  ;;  %v4271_v11 = vsel %vm3473_vm10, 1.0, %v7398_v47 }
 0x76e   :  { %4688 = vtanh.f32 %v3445_v35  ;;  %v4269_v25 = vsel %vm3467_vm11, 1.0, %v7398_v47  ;;  %vm3479_vm12 = vcmp.ge.f32.partialorder %v6989_v4, -0.6  ;;  %v3527_v15 = vsub.f32 %v4265_v22, %v4267_v49 }
 0x76f   :  { %v7008_v40 = vsel %vm3479_vm12, 1.0, %v7398_v47  ;;  %v3529_v13 = vsub.f32 %v4267_v49, %v4269_v25  ;;  %v3531_v52 = vsub.f32 %v4269_v25, %v4271_v11  ;;  %v7011_v43 = vsub.f32 %v4270_v27, %v6995_v38 }
 0x770   :  { %v7014_v0 = vadd.f32 2.2, %v6980_v30  ;;  %v7017_v50 = vadd.f32 2.2, %v6989_v4  ;;  %v3554_v63 = vsub.f32 -1.4, %v6980_v30  ;;  %v7021_v23 = vsub.f32 %v4271_v11, %v7008_v40 }
 0x771   :  { %v3555_v14 = vsub.f32 -1.4, %v6989_v4  ;;  %v7025_v8 = vadd.f32 1.8, %v6980_v30  ;;  %v7028_v32 = vadd.f32 1.8, %v6989_v4 }
 0x772   :  { %v3550_v1 = vmul.f32 2.5, %v7014_v0  ;;  %v3551_v10 = vmul.f32 2.5, %v7017_v50  ;;  %v3556_v56 = vmul.f32 2.5, %v3554_v63  ;;  %v3568_v42 = vsub.f32 -1.0, %v6980_v30 }
 0x773   :  { %v3557_v12 = vmul.f32 2.5, %v3555_v14  ;;  %v3564_v31 = vmul.f32 2.5, %v7025_v8  ;;  %v3565_v55 = vmul.f32 2.5, %v7028_v32  ;;  %v3569_v16 = vsub.f32 -1.0, %v6989_v4 }
 0x774   :  { %v4687_v39 = vpop.eup %4686  ;;  %v3552_v5 = vmul.f32 %v3550_v1, %v3526_v36  ;;  %v3553_v61 = vmul.f32 %v3551_v10, %v3527_v15  ;;  %v3558_v9 = vmul.f32 %v3556_v56, %v3528_v2  ;;  %v3570_v24 = vmul.f32 2.5, %v3568_v42 }
 0x775   :  { %v3448_v41 = vadd.f32 1.0, %v4687_v39  ;;  %v3559_v18 = vmul.f32 %v3557_v12, %v3529_v13  ;;  %v3566_v21 = vmul.f32 %v3564_v31, %v3528_v2  ;;  %v3567_v3 = vmul.f32 %v3565_v55, %v3529_v13 }
 0x776   :  { %v3560_v17 = vadd.f32 %v3558_v9, %v3552_v5  ;;  %v3571_v46 = vmul.f32 2.5, %v3569_v16  ;;  %v3572_v37 = vmul.f32 %v3570_v24, %v3530_v29  ;;  %v7037_v28 = vadd.f32 1.4, %v6980_v30 }
 0x777   :  { %v3450_v54 = vmul.f32 0.5, %v3448_v41  ;;  %v3561_v20 = vadd.f32 %v3559_v18, %v3553_v61  ;;  %v7040_v34 = vadd.f32 1.4, %v6989_v4  ;;  %v3582_v48 = vsub.f32 -0.6, %v6980_v30 }
 0x778   :  { %v4689_v58 = vpop.eup %4688  ;;  %v3573_v45 = vmul.f32 %v3571_v46, %v3531_v52  ;;  %v3574_v57 = vadd.f32 %v3572_v37, %v3566_v21  ;;  %v3578_v7 = vmul.f32 2.5, %v7037_v28  ;;  %v3583_v6 = vsub.f32 -0.6, %v6989_v4 }
 0x779   :  { %v3449_v26 = vadd.f32 1.0, %v4689_v58  ;;  %v3452_v19 = vmul.f32 %v3450_v54, %v6980_v30  ;;  %v3579_v53 = vmul.f32 2.5, %v7040_v34  ;;  %v3584_v33 = vmul.f32 2.5, %v3582_v48 }
 0x77a   :  { %v3575_v62 = vadd.f32 %v3573_v45, %v3567_v3  ;;  %v3580_v51 = vmul.f32 %v3578_v7, %v3530_v29  ;;  %v3585_v59 = vmul.f32 2.5, %v3583_v6  ;;  %v3688_v27 = vmul.f32 1.25, %v7014_v0 }
 0x77b   :  { %v3451_v36 = vmul.f32 0.5, %v3449_v26  ;;  %v3581_v2 = vmul.f32 %v3579_v53, %v3531_v52  ;;  %v3586_v35 = vmul.f32 %v3584_v33, %v7011_v43  ;;  %v3689_v22 = vmul.f32 1.25, %v7017_v50 }
 0x77c   :  { %v3587_v49 = vmul.f32 %v3585_v59, %v7021_v23  ;;  %v3690_v11 = vmul.f32 %v3688_v27, %v3560_v17  ;;  %v3692_v25 = vmul.f32 1.25, %v3568_v42  ;;  %v3693_v15 = vmul.f32 1.25, %v3569_v16 }
 0x77d   :  { %v3453_v13 = vmul.f32 %v3451_v36, %v6989_v4  ;;  %v3588_v63 = vadd.f32 %v3586_v35, %v3580_v51  ;;  %v3691_v14 = vmul.f32 %v3689_v22, %v3561_v20  ;;  %v3698_v29 = vmul.f32 1.25, %v7025_v8 }
 0x77e   :  { %v3589_v1 = vadd.f32 %v3587_v49, %v3581_v2  ;;  %v3694_v10 = vmul.f32 %v3692_v25, %v3574_v57  ;;  %v3695_v56 = vmul.f32 %v3693_v15, %v3575_v62  ;;  %v3699_v52 = vmul.f32 1.25, %v7028_v32 }
 0x77f   :  { %v4619_v12 = vpack.c.bf16 %v3453_v13, %v3452_v19  ;;  %v3700_v31 = vmul.f32 %v3698_v29, %v3574_v57  ;;  %v3702_v55 = vmul.f32 1.25, %v3582_v48  ;;  %v3703_v39 = vmul.f32 1.25, %v3583_v6 }
 0x780   :  { %v3696_v5 = vadd.f32 %v3694_v10, %v3690_v11  ;;  %v3697_v61 = vadd.f32 %v3695_v56, %v3691_v14  ;;  %v3701_v9 = vmul.f32 %v3699_v52, %v3575_v62  ;;  %v3778_v42 = vmul.f32 0.8333333, %v7014_v0 }
 0x781   :  { %4620 = vmatpush1.bf16.msra.mxu1 %v4619_v12  ;;  %v3704_v16 = vmul.f32 %v3702_v55, %v3588_v63  ;;  %v3705_v24 = vmul.f32 %v3703_v39, %v3589_v1  ;;  %v3779_v41 = vmul.f32 0.8333333, %v7017_v50  ;;  %v3782_v18 = vmul.f32 0.8333333, %v3582_v48 }
 0x782   :  { %4621 = vmatprep.subr.bf16.mxu1 %v4869_v60  ;;  %v3780_v21 = vmul.f32 %v3778_v42, %v3696_v5  ;;  %v3783_v3 = vmul.f32 0.8333333, %v3583_v6  ;;  %vm3484_vm14 = vcmp.ge.f32.partialorder %v6980_v30, -0.2  ;;  %vm3485_vm15 = vcmp.ge.f32.partialorder %v6989_v4, -0.2 }
 0x783   :  { %v3706_v17 = vadd.f32 %v3704_v16, %v3700_v31  ;;  %v3707_v46 = vadd.f32 %v3705_v24, %v3701_v9  ;;  %v3781_v37 = vmul.f32 %v3779_v41, %v3697_v61  ;;  %v4274_v54 = vsel %vm3484_vm14, 1.0, %v7398_v47 }
 0x784   :  { %v4275_v0 = vsel %vm3485_vm15, 1.0, %v7398_v47  ;;  %v3534_v20 = vsub.f32 %v6995_v38, %v4274_v54  ;;  %v7063_v50 = vadd.f32 1.0, %v6980_v30  ;;  %v7066_v48 = vadd.f32 1.0, %v6989_v4 }
 0x785   :  { %v3784_v58 = vmul.f32 %v3782_v18, %v3706_v17  ;;  %v3785_v45 = vmul.f32 %v3783_v3, %v3707_v46  ;;  %v3535_v57 = vsub.f32 %v7008_v40, %v4275_v0  ;;  %v3596_v7 = vsub.f32 -0.2, %v6980_v30 }
 0x786   :  { %v3592_v6 = vmul.f32 2.5, %v7063_v50  ;;  %v3593_v26 = vmul.f32 2.5, %v7066_v48  ;;  %v3597_v19 = vsub.f32 -0.2, %v6989_v4  ;;  %v3708_v38 = vmul.f32 1.25, %v7037_v28 }
 0x787   :  { %v3786_v53 = vadd.f32 %v3784_v58, %v3780_v21  ;;  %v3787_v33 = vadd.f32 %v3785_v45, %v3781_v37  ;;  %v3598_v62 = vmul.f32 2.5, %v3596_v7  ;;  %v3709_v51 = vmul.f32 1.25, %v7040_v34 }
 0x788   :  { %v3594_v59 = vmul.f32 %v3592_v6, %v7011_v43  ;;  %v3595_v27 = vmul.f32 %v3593_v26, %v7021_v23  ;;  %v3599_v40 = vmul.f32 2.5, %v3597_v19  ;;  %v3710_v36 = vmul.f32 %v3708_v38, %v3588_v63 }
 0x789   :  { %v4622_v2 = vpack.c.bf16 %v3787_v33, %v3786_v53  ;;  %v3600_v35 = vmul.f32 %v3598_v62, %v3534_v20  ;;  %v3711_v22 = vmul.f32 %v3709_v51, %v3589_v1  ;;  %v3712_v49 = vmul.f32 1.25, %v3596_v7 }
 0x78a   :  { %v3601_v11 = vmul.f32 %v3599_v40, %v3535_v57  ;;  %v3713_v25 = vmul.f32 1.25, %v3597_v19  ;;  %v3788_v15 = vmul.f32 0.8333333, %v7025_v8  ;;  %v3789_v13 = vmul.f32 0.8333333, %v7028_v32 }
 0x78b   :  { %4623 = vmatpush1.bf16.msra.mxu1 %v4622_v2  ;;  %v3602_v14 = vadd.f32 %v3600_v35, %v3594_v59  ;;  %v3792_v29 = vmul.f32 0.8333333, %v3596_v7  ;;  %v3793_v10 = vmul.f32 0.8333333, %v3597_v19  ;;  %vm3490_vm1 = vcmp.ge.f32.partialorder %v6980_v30, 0.2 }
 0x78c   :  { %4624 = vmatprep.subr.bf16.mxu1 %v4869_v60  ;;  %v3603_v43 = vadd.f32 %v3601_v11, %v3595_v27  ;;  %v3790_v23 = vmul.f32 %v3788_v15, %v3706_v17  ;;  %v3791_v63 = vmul.f32 %v3789_v13, %v3707_v46  ;;  %vm3491_vm13 = vcmp.ge.f32.partialorder %v6989_v4, 0.2 }
 0x78d   :  { %v3714_v1 = vmul.f32 %v3712_v49, %v3602_v14  ;;  %v4276_v56 = vsel %vm3490_vm1, 1.0, %v7398_v47  ;;  %v4277_v8 = vsel %vm3491_vm13, 1.0, %v7398_v47  ;;  %v7085_v32 = vadd.f32 0.6, %v6980_v30 }
 0x78e   :  { %v3715_v52 = vmul.f32 %v3713_v25, %v3603_v43  ;;  %v3536_v12 = vsub.f32 %v4274_v54, %v4276_v56  ;;  %v3537_v31 = vsub.f32 %v4275_v0, %v4277_v8  ;;  %v7088_v55 = vadd.f32 0.6, %v6989_v4 }
 0x78f   :  { %v3716_v39 = vadd.f32 %v3714_v1, %v3710_v36  ;;  %v3606_v5 = vmul.f32 2.5, %v7085_v32  ;;  %v3610_v61 = vsub.f32 0.2, %v6980_v30  ;;  %v3611_v9 = vsub.f32 0.2, %v6989_v4 }
 0x790   :  { %v3717_v42 = vadd.f32 %v3715_v52, %v3711_v22  ;;  %v3607_v16 = vmul.f32 2.5, %v7088_v55  ;;  %v3718_v24 = vmul.f32 1.25, %v7063_v50  ;;  %v3719_v41 = vmul.f32 1.25, %v7066_v48 }
 0x791   :  { %v3794_v18 = vmul.f32 %v3792_v29, %v3716_v39  ;;  %v3608_v21 = vmul.f32 %v3606_v5, %v3534_v20  ;;  %v3612_v3 = vmul.f32 2.5, %v3610_v61  ;;  %v3613_v17 = vmul.f32 2.5, %v3611_v9 }
 0x792   :  { %v3795_v46 = vmul.f32 %v3793_v10, %v3717_v42  ;;  %v3609_v37 = vmul.f32 %v3607_v16, %v3535_v57  ;;  %v3720_v54 = vmul.f32 %v3718_v24, %v3602_v14  ;;  %v3721_v0 = vmul.f32 %v3719_v41, %v3603_v43 }
 0x793   :  { %v3796_v58 = vadd.f32 %v3794_v18, %v3790_v23  ;;  %v3614_v45 = vmul.f32 %v3612_v3, %v3536_v12  ;;  %v3615_v7 = vmul.f32 %v3613_v17, %v3537_v31  ;;  %v3722_v6 = vmul.f32 1.25, %v3610_v61 }
 0x794   :  { %v3797_v26 = vadd.f32 %v3795_v46, %v3791_v63  ;;  %v3723_v19 = vmul.f32 1.25, %v3611_v9  ;;  %v3798_v38 = vmul.f32 0.8333333, %v7037_v28  ;;  %v3799_v53 = vmul.f32 0.8333333, %v7040_v34 }
 0x795   :  { %v3616_v33 = vadd.f32 %v3614_v45, %v3608_v21  ;;  %v3617_v62 = vadd.f32 %v3615_v7, %v3609_v37  ;;  %v3802_v51 = vmul.f32 0.8333333, %v3610_v61  ;;  %v3803_v20 = vmul.f32 0.8333333, %v3611_v9 }
 0x796   :  { %v4625_v59 = vpack.c.bf16 %v3797_v26, %v3796_v58  ;;  %v3800_v27 = vmul.f32 %v3798_v38, %v3716_v39  ;;  %v3801_v40 = vmul.f32 %v3799_v53, %v3717_v42  ;;  %vm3496_vm0 = vcmp.ge.f32.partialorder %v6980_v30, 0.6 }
 0x797   :  { %v3724_v57 = vmul.f32 %v3722_v6, %v3616_v33  ;;  %v3725_v36 = vmul.f32 %v3723_v19, %v3617_v62  ;;  %vm3497_vm3 = vcmp.ge.f32.partialorder %v6989_v4, 0.6  ;;  %v4278_v2 = vsel %vm3496_vm0, 1.0, %v7398_v47 }
 0x798   :  { %4626 = vmatpush1.bf16.msra.mxu1 %v4625_v59  ;;  %v4279_v28 = vsel %vm3497_vm3, 1.0, %v7398_v47  ;;  %v3538_v35 = vsub.f32 %v4276_v56, %v4278_v2  ;;  %v7103_v34 = vadd.f32 0.2, %v6980_v30  ;;  %v7106_v22 = vadd.f32 0.2, %v6989_v4 }
 0x799   :  { %4627 = vmatprep.subr.bf16.mxu1 %v4869_v60  ;;  %v3726_v49 = vadd.f32 %v3724_v57, %v3720_v54  ;;  %v3727_v11 = vadd.f32 %v3725_v36, %v3721_v0  ;;  %v3539_v25 = vsub.f32 %v4277_v8, %v4279_v28  ;;  %v3624_v15 = vsub.f32 0.6, %v6980_v30 }
 0x79a   :  { %v3620_v13 = vmul.f32 2.5, %v7103_v34  ;;  %v3621_v14 = vmul.f32 2.5, %v7106_v22  ;;  %v3625_v29 = vsub.f32 0.6, %v6989_v4  ;;  %v3728_v10 = vmul.f32 1.25, %v7085_v32 }
 0x79b   :  { %v3804_v43 = vmul.f32 %v3802_v51, %v3726_v49  ;;  %v3805_v23 = vmul.f32 %v3803_v20, %v3727_v11  ;;  %v3626_v63 = vmul.f32 2.5, %v3624_v15  ;;  %v3729_v1 = vmul.f32 1.25, %v7088_v55 }
 0x79c   :  { %v3622_v56 = vmul.f32 %v3620_v13, %v3536_v12  ;;  %v3623_v52 = vmul.f32 %v3621_v14, %v3537_v31  ;;  %v3627_v39 = vmul.f32 2.5, %v3625_v29  ;;  %v3730_v5 = vmul.f32 %v3728_v10, %v3616_v33 }
 0x79d   :  { %v3806_v8 = vadd.f32 %v3804_v43, %v3800_v27  ;;  %v3807_v61 = vadd.f32 %v3805_v23, %v3801_v40  ;;  %v3628_v9 = vmul.f32 %v3626_v63, %v3538_v35  ;;  %v3731_v42 = vmul.f32 %v3729_v1, %v3617_v62 }
 0x79e   :  { %v3629_v16 = vmul.f32 %v3627_v39, %v3539_v25  ;;  %v3732_v24 = vmul.f32 1.25, %v3624_v15  ;;  %v3733_v41 = vmul.f32 1.25, %v3625_v29  ;;  %v3808_v18 = vmul.f32 0.8333333, %v7063_v50 }
 0x79f   :  { %v4628_v21 = vpack.c.bf16 %v3807_v61, %v3806_v8  ;;  %v3630_v3 = vadd.f32 %v3628_v9, %v3622_v56  ;;  %v3809_v17 = vmul.f32 0.8333333, %v7066_v48  ;;  %v3812_v46 = vmul.f32 0.8333333, %v3624_v15 }
 0x7a0   :  { %v3631_v37 = vadd.f32 %v3629_v16, %v3623_v52  ;;  %v3810_v54 = vmul.f32 %v3808_v18, %v3726_v49  ;;  %v3813_v12 = vmul.f32 0.8333333, %v3625_v29  ;;  %vm3502_vm4 = vcmp.ge.f32.partialorder %v6980_v30, 1.0 }
 0x7a1   :  { %4629 = vmatpush1.bf16.msra.mxu1 %v4628_v21  ;;  %v3734_v31 = vmul.f32 %v3732_v24, %v3630_v3  ;;  %v3811_v0 = vmul.f32 %v3809_v17, %v3727_v11  ;;  %vm3503_vm5 = vcmp.ge.f32.partialorder %v6989_v4, 1.0  ;;  %v4280_v58 = vsel %vm3502_vm4, 1.0, %v7398_v47 }
 0x7a2   :  { %4630 = vmatprep.subr.bf16.mxu1 %v4869_v60  ;;  %v3735_v50 = vmul.f32 %v3733_v41, %v3631_v37  ;;  %v4281_v45 = vsel %vm3503_vm5, 1.0, %v7398_v47  ;;  %v3540_v7 = vsub.f32 %v4278_v2, %v4280_v58  ;;  %v7123_v48 = vadd.f32 -0.2, %v6980_v30 }
 0x7a3   :  { %v3736_v6 = vadd.f32 %v3734_v31, %v3730_v5  ;;  %v3541_v26 = vsub.f32 %v4279_v28, %v4281_v45  ;;  %v7126_v19 = vadd.f32 -0.2, %v6989_v4  ;;  %v3638_v38 = vsub.f32 1.0, %v6980_v30 }
 0x7a4   :  { %v3737_v53 = vadd.f32 %v3735_v50, %v3731_v42  ;;  %v3634_v33 = vmul.f32 2.5, %v7123_v48  ;;  %v3639_v62 = vsub.f32 1.0, %v6989_v4  ;;  %v3738_v51 = vmul.f32 1.25, %v7103_v34 }
 0x7a5   :  { %v3814_v20 = vmul.f32 %v3812_v46, %v3736_v6  ;;  %v3635_v59 = vmul.f32 2.5, %v7126_v19  ;;  %v3640_v27 = vmul.f32 2.5, %v3638_v38  ;;  %v3739_v40 = vmul.f32 1.25, %v7106_v22 }
 0x7a6   :  { %v3815_v57 = vmul.f32 %v3813_v12, %v3737_v53  ;;  %v3636_v36 = vmul.f32 %v3634_v33, %v3538_v35  ;;  %v3641_v2 = vmul.f32 2.5, %v3639_v62  ;;  %v3740_v28 = vmul.f32 %v3738_v51, %v3630_v3 }
 0x7a7   :  { %v3816_v49 = vadd.f32 %v3814_v20, %v3810_v54  ;;  %v3637_v11 = vmul.f32 %v3635_v59, %v3539_v25  ;;  %v3642_v15 = vmul.f32 %v3640_v27, %v3540_v7  ;;  %v3741_v13 = vmul.f32 %v3739_v40, %v3631_v37 }
 0x7a8   :  { %v3817_v14 = vadd.f32 %v3815_v57, %v3811_v0  ;;  %v3643_v29 = vmul.f32 %v3641_v2, %v3541_v26  ;;  %v3742_v10 = vmul.f32 1.25, %v3638_v38  ;;  %v3743_v43 = vmul.f32 1.25, %v3639_v62 }
 0x7a9   :  { %v3644_v23 = vadd.f32 %v3642_v15, %v3636_v36  ;;  %v3818_v63 = vmul.f32 0.8333333, %v7085_v32  ;;  %v3819_v1 = vmul.f32 0.8333333, %v7088_v55  ;;  %v3822_v56 = vmul.f32 0.8333333, %v3638_v38 }
 0x7aa   :  { %v4631_v52 = vpack.c.bf16 %v3817_v14, %v3816_v49  ;;  %v3645_v39 = vadd.f32 %v3643_v29, %v3637_v11  ;;  %v3823_v5 = vmul.f32 0.8333333, %v3639_v62  ;;  %vm3508_vm6 = vcmp.ge.f32.partialorder %v6980_v30, 1.4 }
 0x7ab   :  { %v3744_v35 = vmul.f32 %v3742_v10, %v3644_v23  ;;  %v3820_v8 = vmul.f32 %v3818_v63, %v3736_v6  ;;  %v3821_v25 = vmul.f32 %v3819_v1, %v3737_v53  ;;  %vm3509_vm7 = vcmp.ge.f32.partialorder %v6989_v4, 1.4 }
 0x7ac   :  { %4632 = vmatpush1.bf16.msra.mxu1 %v4631_v52  ;;  %v3745_v61 = vmul.f32 %v3743_v43, %v3645_v39  ;;  %v4282_v9 = vsel %vm3508_vm6, 1.0, %v7398_v47  ;;  %v4283_v42 = vsel %vm3509_vm7, 1.0, %v7398_v47  ;;  %v7141_v32 = vadd.f32 -0.6, %v6980_v30 }
 0x7ad   :  { %4633 = vmatprep.subr.bf16.mxu1 %v4869_v60  ;;  %v3746_v55 = vadd.f32 %v3744_v35, %v3740_v28  ;;  %v3542_v16 = vsub.f32 %v4280_v58, %v4282_v9  ;;  %v3543_v24 = vsub.f32 %v4281_v45, %v4283_v42  ;;  %v7145_v41 = vadd.f32 -0.6, %v6989_v4 }
 0x7ae   :  { %v3747_v18 = vadd.f32 %v3745_v61, %v3741_v13  ;;  %v3648_v21 = vmul.f32 2.5, %v7141_v32  ;;  %v3652_v3 = vsub.f32 1.4, %v6980_v30  ;;  %v3653_v17 = vsub.f32 1.4, %v6989_v4 }
 0x7af   :  { %v3824_v46 = vmul.f32 %v3822_v56, %v3746_v55  ;;  %v3649_v37 = vmul.f32 2.5, %v7145_v41  ;;  %v3748_v54 = vmul.f32 1.25, %v7123_v48  ;;  %v3749_v12 = vmul.f32 1.25, %v7126_v19 }
 0x7b0   :  { %v3825_v31 = vmul.f32 %v3823_v5, %v3747_v18  ;;  %v3650_v0 = vmul.f32 %v3648_v21, %v3540_v7  ;;  %v3654_v58 = vmul.f32 2.5, %v3652_v3  ;;  %v3655_v50 = vmul.f32 2.5, %v3653_v17 }
 0x7b1   :  { %v3826_v45 = vadd.f32 %v3824_v46, %v3820_v8  ;;  %v3651_v6 = vmul.f32 %v3649_v37, %v3541_v26  ;;  %v3750_v38 = vmul.f32 %v3748_v54, %v3644_v23  ;;  %v3751_v51 = vmul.f32 %v3749_v12, %v3645_v39 }
 0x7b2   :  { %v3827_v53 = vadd.f32 %v3825_v31, %v3821_v25  ;;  %v3656_v33 = vmul.f32 %v3654_v58, %v3542_v16  ;;  %v3657_v62 = vmul.f32 %v3655_v50, %v3543_v24  ;;  %v3752_v20 = vmul.f32 1.25, %v3652_v3 }
 0x7b3   :  { %v3828_v59 = vmul.f32 0.8333333, %v7103_v34  ;;  %v3829_v27 = vmul.f32 0.8333333, %v7106_v22  ;;  %v7156_v40 = vadd.f32 -1.0, %v6980_v30  ;;  %v3753_v2 = vmul.f32 1.25, %v3653_v17 }
 0x7b4   :  { %v4634_v57 = vpack.c.bf16 %v3827_v53, %v3826_v45  ;;  %v3658_v36 = vadd.f32 %v3656_v33, %v3650_v0  ;;  %v3659_v7 = vadd.f32 %v3657_v62, %v3651_v6  ;;  %v3832_v26 = vmul.f32 0.8333333, %v3652_v3 }
 0x7b5   :  { %v3830_v28 = vmul.f32 %v3828_v59, %v3746_v55  ;;  %v3831_v49 = vmul.f32 %v3829_v27, %v3747_v18  ;;  %vm3514_vm2 = vcmp.ge.f32.partialorder %v6980_v30, 1.8  ;;  %vm3515_vm8 = vcmp.ge.f32.partialorder %v6989_v4, 1.8 }
 0x7b6   :  { %4635 = vmatpush1.bf16.msra.mxu1 %v4634_v57  ;;  %v3754_v11 = vmul.f32 %v3752_v20, %v3658_v36  ;;  %v3755_v15 = vmul.f32 %v3753_v2, %v3659_v7  ;;  %v7161_v34 = vsel %vm3514_vm2, 1.0, %v7398_v47  ;;  %v3833_v22 = vmul.f32 0.8333333, %v3653_v17 }
 0x7b7   :  { %4636 = vmatprep.subr.bf16.mxu1 %v4869_v60  ;;  %v7165_v13 = vsel %vm3515_vm8, 1.0, %v7398_v47  ;;  %v7168_v14 = vadd.f32 -1.0, %v6989_v4  ;;  %v3662_v29 = vmul.f32 2.5, %v7156_v40  ;;  %v3544_v23 = vsub.f32 %v4282_v9, %v7161_v34 }
 0x7b8   :  { %v3756_v10 = vadd.f32 %v3754_v11, %v3750_v38  ;;  %v3757_v43 = vadd.f32 %v3755_v15, %v3751_v51  ;;  %v3666_v63 = vsub.f32 1.8, %v6980_v30  ;;  %v3545_v1 = vsub.f32 %v4283_v42, %v7165_v13 }
 0x7b9   :  { %v3663_v56 = vmul.f32 2.5, %v7168_v14  ;;  %v3667_v52 = vsub.f32 1.8, %v6989_v4  ;;  %v3758_v39 = vmul.f32 1.25, %v7141_v32  ;;  %v3664_v8 = vmul.f32 %v3662_v29, %v3542_v16 }
 0x7ba   :  { %v3834_v5 = vmul.f32 %v3832_v26, %v3756_v10  ;;  %v3835_v35 = vmul.f32 %v3833_v22, %v3757_v43  ;;  %v3668_v25 = vmul.f32 2.5, %v3666_v63  ;;  %v3759_v18 = vmul.f32 1.25, %v7145_v41 }
 0x7bb   :  { %v3665_v61 = vmul.f32 %v3663_v56, %v3543_v24  ;;  %v3669_v55 = vmul.f32 2.5, %v3667_v52  ;;  %v3760_v21 = vmul.f32 %v3758_v39, %v3658_v36  ;;  %v3762_v46 = vmul.f32 1.25, %v3666_v63 }
 0x7bc   :  { %v3836_v9 = vadd.f32 %v3834_v5, %v3830_v28  ;;  %v3837_v3 = vadd.f32 %v3835_v35, %v3831_v49  ;;  %v3670_v17 = vmul.f32 %v3668_v25, %v3544_v23  ;;  %v3761_v37 = vmul.f32 %v3759_v18, %v3659_v7 }
 0x7bd   :  { %v3671_v42 = vmul.f32 %v3669_v55, %v3545_v1  ;;  %v3763_v54 = vmul.f32 1.25, %v3667_v52  ;;  %v3838_v12 = vmul.f32 0.8333333, %v7123_v48  ;;  %v3839_v58 = vmul.f32 0.8333333, %v7126_v19 }
 0x7be   :  { %v4637_v31 = vpack.c.bf16 %v3837_v3, %v3836_v9  ;;  %v3672_v0 = vadd.f32 %v3670_v17, %v3664_v8  ;;  %v3842_v16 = vmul.f32 0.8333333, %v3666_v63  ;;  %v3843_v45 = vmul.f32 0.8333333, %v3667_v52 }
 0x7bf   :  { %v3673_v50 = vadd.f32 %v3671_v42, %v3665_v61  ;;  %v3840_v24 = vmul.f32 %v3838_v12, %v3756_v10  ;;  %vm3520_vm9 = vcmp.ge.f32.partialorder %v6980_v30, 2.2  ;;  %vm3521_vm10 = vcmp.ge.f32.partialorder %v6989_v4, 2.2 }
 0x7c0   :  { %4638 = vmatpush1.bf16.msra.mxu1 %v4637_v31  ;;  %v3764_v6 = vmul.f32 %v3762_v46, %v3672_v0  ;;  %v4286_v38 = vsel %vm3520_vm9, 1.0, %v7398_v47  ;;  %v4306_v53 = vadd.f32 -1.4, %v6980_v30  ;;  %v3841_v33 = vmul.f32 %v3839_v58, %v3757_v43 }
 0x7c1   :  { %4639 = vmatprep.subr.bf16.mxu1 %v4869_v60  ;;  %v3765_v48 = vmul.f32 %v3763_v54, %v3673_v50  ;;  %v4287_v19 = vsel %vm3521_vm10, 1.0, %v7398_v47  ;;  %v4307_v62 = vadd.f32 -1.4, %v6989_v4  ;;  %v3546_v20 = vsub.f32 %v7161_v34, %v4286_v38 }
 0x7c2   :  { %v3766_v51 = vadd.f32 %v3764_v6, %v3760_v21  ;;  %v3676_v59 = vmul.f32 2.5, %v4306_v53  ;;  %v3680_v27 = vsub.f32 2.2, %v6980_v30  ;;  %v3547_v36 = vsub.f32 %v7165_v13, %v4287_v19 }
 0x7c3   :  { %v3767_v57 = vadd.f32 %v3765_v48, %v3761_v37  ;;  %v3677_v7 = vmul.f32 2.5, %v4307_v62  ;;  %v3681_v2 = vsub.f32 2.2, %v6989_v4  ;;  %v3768_v29 = vmul.f32 1.25, %v7156_v40 }
 0x7c4   :  { %v3844_v28 = vmul.f32 %v3842_v16, %v3766_v51  ;;  %v3678_v49 = vmul.f32 %v3676_v59, %v3544_v23  ;;  %v3682_v26 = vmul.f32 2.5, %v3680_v27  ;;  %v3769_v30 = vmul.f32 1.25, %v7168_v14 }
 0x7c5   :  { %v3845_v11 = vmul.f32 %v3843_v45, %v3767_v57  ;;  %v3679_v15 = vmul.f32 %v3677_v7, %v3545_v1  ;;  %v3683_v47 = vmul.f32 2.5, %v3681_v2  ;;  %v3770_v56 = vmul.f32 %v3768_v29, %v3672_v0 }
 0x7c6   :  { %v3684_v22 = vmul.f32 %v3682_v26, %v3546_v20  ;;  %v3846_v10 = vadd.f32 %v3844_v28, %v3840_v24  ;;  %v3772_v13 = vmul.f32 1.25, %v3680_v27  ;;  %v3771_v4 = vmul.f32 %v3769_v30, %v3673_v50 }
 0x7c7   :  { %v3847_v34 = vadd.f32 %v3845_v11, %v3841_v33  ;;  %v3685_v43 = vmul.f32 %v3683_v47, %v3547_v36  ;;  %v3773_v5 = vmul.f32 1.25, %v3681_v2  ;;  %v3848_v1 = vmul.f32 0.8333333, %v7141_v32 }
 0x7c8   :  { %v3686_v63 = vadd.f32 %v3684_v22, %v3678_v49  ;;  %v3849_v8 = vmul.f32 0.8333333, %v7145_v41  ;;  %v3852_v25 = vmul.f32 0.8333333, %v3680_v27  ;;  %v3853_v18 = vmul.f32 0.8333333, %v3681_v2 }
 0x7c9   :  { %v4640_v52 = vpack.c.bf16 %v3847_v34, %v3846_v10  ;;  %v3687_v39 = vadd.f32 %v3685_v43, %v3679_v15  ;;  %v3850_v14 = vmul.f32 %v3848_v1, %v3766_v51  ;;  %vm3944_vm11 = vcmask 123904  }
 0x7ca   :  { %v3774_v23 = vmul.f32 %v3772_v13, %v3686_v63  ;;  %v3851_v55 = vmul.f32 %v3849_v8, %v3767_v57 }
 0x7cb   :  { %4641 = vmatpush1.bf16.msra.mxu1 %v4640_v52  ;;  %v3775_v35 = vmul.f32 %v3773_v5, %v3687_v39 }
 0x7cc   :  { %4642 = vmatprep.subr.bf16.mxu1 %v4869_v60  ;;  %v3776_v40 = vadd.f32 %v3774_v23, %v3770_v56 }
 0x7cd   :  { %v3777_v61 = vadd.f32 %v3775_v35, %v3771_v4 }
 0x7ce   :  { %v3854_v21 = vmul.f32 %v3852_v25, %v3776_v40 }
 0x7cf   :  { %v3855_v9 = vmul.f32 %v3853_v18, %v3777_v61 }
 0x7d0   :  { %v3856_v3 = vadd.f32 %v3854_v21, %v3850_v14 }
 0x7d1   :  { %v3857_v17 = vadd.f32 %v3855_v9, %v3851_v55 }
 0x7d3   :  { %v4643_v46 = vpack.c.bf16 %v3857_v17, %v3856_v3 }
 0x7d5   :  { %4644 = vmatpush1.bf16.msra.mxu1 %v4643_v46 }
 0x7d8   :  { %3935 = vmatmul.mubr.f32.vlgmr.msra.gmra.mrb[12].mxu1 %v6975_v44 }
 0x8ab   :  { %v3936_v42 = vpop.f32.mrb[12].mxu1 }
 0x8ac   :  { %v3940_v32 = vmul.f32 0.5, %v3936_v42  ;;  %v3938_v37 = vpop.f32.mrb[13].mxu1 }
 0x8ae   :  { %4690 = vtanh.f32 %v3940_v32 }
 0x8b8   :  { %v4691_v41 = vpop.eup %4690 }
 0x8b9   :  { %v3942_v60 = vadd.f32 1.0, %v4691_v41 }
 0x8bb   :  { %v3943_v54 = vmul.f32 0.5, %v3942_v60 }
 0x8bd   :  { %3945 = vst.msk [vmem:[#allocation13] sm:$0x3] %vm3944_vm11, %v3943_v54 }
 0x8be   :  { %4835 = shalt.err (!%p4832_p10)
}
 0x8bf   :  { %s4836_s8 = scalar_lea.hbm %s7216_s7, 32 }
 0x8c0   :  { %p4837_p11 = scmp.ne.s32.totalorder %s7216_s7, %s4836_s8  ;;  %p4840_p12 = scmp.lt.u32.totalorder %s4836_s8, %s7216_s7 }
 0x8c2   :  { %p4842_p13 = pnand %p4840_p12, %p4837_p11 }
 0x8c4   :  { %4845 = shalt.err (!%p4842_p13)
}
 0x8c5   :  { %3955 = dma.vmem_to_hbm [thread:$0]  %s3953_s0, 32, %s7216_s7, [#allocation4]  }
 0x8c6   :  { %4854 = dma.done.wait [#allocation4], 32  }
 0x8c7   :  { %4855 = vsyncadd [#allocation4], 4294967264 }
 0x8c8   :  { %3959 = vsyncpa [#allocation3], 1 }
 0x8c9   :  { %3960 = vsyncpa [#allocation6], 1 }
 0x8ca   :  { %3961 = vsyncpa [#allocation9], 1 }
 0x8cb   :  { %3962 = vsyncpa [#allocation12], 1 }
 0x8cc   :  { %3963 = vsyncpa [#allocation4], 1 }

</bundles_post_ra>
